<compile_context>
chip_gen: v5e
topology: v5e:2x2
jax: 0.10.0
libtpu: 0.0.40
codegen_flags: <defaults>
</compile_context>

<pallas_src>
import jax
import jax.numpy as jnp
from jax.experimental import pallas as pl
from jax.experimental.pallas import tpu as pltpu


N_PATCH2 = 9     # 3x3 conv2 output positions
N_TAPS = 64      # 8x8 conv2 kernel taps
C1 = 128         # conv1 / conv2 channel count
FC_OUT = 1000


# ---------------------------------------------------------------- kernel ----

def fused_kernel(p1_ref, w1_ref, g_ref, b_ref, w2_ref, fw_ref, fb_ref, o_ref):
    # p1: (576, 192) f32   rows = (kh, kw, ph, pw), cols = (c_in, ih, iw)
    # w1: (192, 128) f32   gamma/beta: (1, 128) f32
    # w2: (64, 128, 128) bf16  [tap, c_in, c_out]
    # fw: (9, 128, 1000) bf16  [patch, c, out]   fb: (1, 1000) f32
    # o : (1, 1000) f32

    # ---- conv1 as one patch matmul (f32) + BatchNorm2d(eps=0) --------------
    y1 = jnp.dot(p1_ref[...], w1_ref[...], preferred_element_type=jnp.float32)
    mean = jnp.mean(y1, axis=0, keepdims=True)
    var = jnp.mean(jnp.square(y1 - mean), axis=0, keepdims=True)  # biased var
    y1 = (y1 - mean) * jax.lax.rsqrt(var) * g_ref[...] + b_ref[...]  # eps == 0
    y1 = y1.astype(jnp.bfloat16)

    # ---- conv2: sum over the 64 taps, each a (9,128)x(128,128) MXU matmul --
    # Rows of y1 are tap-major, so tap k owns the contiguous rows [9k, 9k+9).
    acc = jnp.zeros((N_PATCH2, C1), jnp.float32)
    for k in range(N_TAPS):
        g_k = y1[k * N_PATCH2:(k + 1) * N_PATCH2, :]          # (9, 128) bf16
        acc = acc + jnp.dot(g_k, w2_ref[k],
                            preferred_element_type=jnp.float32)
    y2 = acc.astype(jnp.bfloat16)                             # (9, 128), (ph,pw) raster

    # ---- fc: flatten folded into the pre-permuted weight (9,128,1000) ------
    out = fb_ref[...]
    for p in range(N_PATCH2):
        out = out + jnp.dot(y2[p:p + 1, :], fw_ref[p],
                            preferred_element_type=jnp.float32)
    o_ref[...] = out


# ----------------------------------------------------------- pallas wrapper -

def _full_spec(shape):
    nd = len(shape)
    return pl.BlockSpec(shape, lambda i, _nd=nd: (0,) * _nd)


def fused_forward(p1, w1m, gamma, beta, w2k, fw3, fb):
    args = (p1, w1m, gamma, beta, w2k, fw3, fb)
    return pl.pallas_call(
        fused_kernel,
        out_shape=jax.ShapeDtypeStruct((1, FC_OUT), jnp.float32),
        grid=(1,),
        in_specs=[_full_spec(a.shape) for a in args],
        out_specs=_full_spec((1, FC_OUT)),
        compiler_params=pltpu.CompilerParams(
            dimension_semantics=("arbitrary",),
            vmem_limit_bytes=32 * 1024 * 1024,   # ~11 MiB resident; safe on v5e/v6e/v7x
        ),
    )(*args)


# --------------------------------------------------------------- weight prep

def prepare_params(params):
    """One-time layout folding of the torch-layout weights (kept OUT of the
    jitted forward path so no transposes are re-materialized per call)."""
    w1, gamma, beta, w2, fw, fb = params
    # conv1: (128, 3, 8, 8) -> (192, 128), contraction order (c_in, ih, iw)
    w1m = w1.reshape(128, 192).T
    # conv2: (c_out, c_in, kh, kw) -> (tap = kh*8+kw, c_in, c_out), bf16
    w2k = jnp.transpose(w2, (2, 3, 1, 0)).reshape(64, 128, 128).astype(jnp.bfloat16)
    # fc: torch flatten index is c*9 + ph*3 + pw; fold it into the weight:
    # (1000, 1152) -> (1000, 128, 9) -> (patch, c, out), bf16
    fw3 = jnp.transpose(fw.reshape(1000, 128, 9), (2, 1, 0)).astype(jnp.bfloat16)
    return (w1m, gamma.reshape(1, 128), beta.reshape(1, 128),
            w2k, fw3, fb.reshape(1, 1000))


# -------------------------------------------------------------------- model -

@jax.jit
def test_model8_forward(x, prep):
    w1m, gamma, beta, w2k, fw3, fb = prep
    # conv1 patch extraction (single XLA transpose, input-dependent so it must
    # stay in the forward).  H = ph*8+kh, W = pw*8+kw, pixel = (H*8+ih, W*8+iw)
    # rows ordered (kh, kw, ph, pw)  -> conv2 taps are contiguous row blocks
    # cols ordered (c, ih, iw)       -> matches torch Conv2d weight layout
    p1 = (x.reshape(3, 3, 8, 8, 3, 8, 8)        # (c, ph, kh, ih, pw, kw, iw)
            .transpose(2, 5, 1, 4, 0, 3, 6)     # (kh, kw, ph, pw, c, ih, iw)
            .reshape(576, 192))
    return fused_forward(p1, w1m, gamma, beta, w2k, fw3, fb)


def init_params(key):
    k1, k2, k3, k4, k5, k6 = jax.random.split(key, 6)
    w1 = 0.05 * jax.random.normal(k1, (128, 3, 8, 8), jnp.float32)    # conv1 weight
    gamma = 1.0 + 0.1 * jax.random.normal(k2, (128,), jnp.float32)    # BN weight
    beta = 0.1 * jax.random.normal(k3, (128,), jnp.float32)           # BN bias
    w2 = 0.02 * jax.random.normal(k4, (128, 128, 8, 8), jnp.float32)  # conv2 weight
    fw = 0.02 * jax.random.normal(k5, (1000, 1152), jnp.float32)      # fc weight
    fb = 0.01 * jax.random.normal(k6, (1000,), jnp.float32)           # fc bias
    return (w1, gamma, beta, w2, fw, fb)


if __name__ == "__main__":
    key = jax.random.PRNGKey(0)
    kx, kp = jax.random.split(key)
    # Shape is dictated by the module's reshape(1, 128*3*3): (1, 3, 192, 192).
    x = jax.random.normal(kx, (1, 3, 192, 192), jnp.float32)
    params = init_params(kp)
    prep = jax.tree_util.tree_map(jax.block_until_ready, prepare_params(params))

    out = test_model8_forward(x, prep)
    out = jax.block_until_ready(out)
    assert out.shape == (1, 1000) and out.dtype == jnp.float32
    print("KERNEL_OK")
</pallas_src>

<mosaic_0001>
module attributes {stable_mosaic.version = 11 : i64} {
  func.func @fused_kernel(%arg0: i32, %arg1: memref<576x192xf32, #tpu.memory_space<vmem>>, %arg2: memref<192x128xf32, #tpu.memory_space<vmem>>, %arg3: memref<1x128xf32, #tpu.memory_space<vmem>>, %arg4: memref<1x128xf32, #tpu.memory_space<vmem>>, %arg5: memref<64x128x128xbf16, #tpu.memory_space<vmem>>, %arg6: memref<9x128x1000xbf16, #tpu.memory_space<vmem>>, %arg7: memref<1x1000xf32, #tpu.memory_space<vmem>>, %arg8: memref<1x1000xf32, #tpu.memory_space<vmem>>) attributes {dimension_semantics = [#tpu.dimension_semantics<arbitrary>], iteration_bounds = array<i64: 1>, scalar_prefetch = 0 : i64, scratch_operands = 0 : i64, tpu.core_type = #tpu.core_type<tc>, window_params = [{pipeline_mode = #tpu.pipeline_mode<synchronous>, transform_indices = @transform_0, window_bounds = array<i64: 576, 192>}, {pipeline_mode = #tpu.pipeline_mode<synchronous>, transform_indices = @transform_1, window_bounds = array<i64: 192, 128>}, {pipeline_mode = #tpu.pipeline_mode<synchronous>, transform_indices = @transform_2, window_bounds = array<i64: 1, 128>}, {pipeline_mode = #tpu.pipeline_mode<synchronous>, transform_indices = @transform_3, window_bounds = array<i64: 1, 128>}, {pipeline_mode = #tpu.pipeline_mode<synchronous>, transform_indices = @transform_4, window_bounds = array<i64: 64, 128, 128>}, {pipeline_mode = #tpu.pipeline_mode<synchronous>, transform_indices = @transform_5, window_bounds = array<i64: 9, 128, 1000>}, {pipeline_mode = #tpu.pipeline_mode<synchronous>, transform_indices = @transform_6, window_bounds = array<i64: 1, 1000>}, {pipeline_mode = #tpu.pipeline_mode<synchronous>, transform_indices = @transform_7, window_bounds = array<i64: 1, 1000>}]} {
    %c0 = arith.constant 0 : index
    %c0_0 = arith.constant 0 : index
    %0 = vector.load %arg1[%c0, %c0_0] : memref<576x192xf32, #tpu.memory_space<vmem>>, vector<576x192xf32>
    %c0_1 = arith.constant 0 : index
    %c0_2 = arith.constant 0 : index
    %1 = vector.load %arg2[%c0_1, %c0_2] : memref<192x128xf32, #tpu.memory_space<vmem>>, vector<192x128xf32>
    %cst = arith.constant dense<0.000000e+00> : vector<576x128xf32>
    %2 = tpu.matmul %0, %1, %cst {dimension_numbers = #tpu.dot_dimension_numbers<[1], [0], [0], [1], [0, 0, 1, 1], [], []>} : vector<576x192xf32>, vector<192x128xf32>, vector<576x128xf32> -> vector<576x128xf32>
    %cst_3 = arith.constant dense<0.000000e+00> : vector<128xf32>
    %3 = vector.multi_reduction <add>, %2, %cst_3 [0] : vector<576x128xf32> to vector<128xf32>
    %4 = vector.shape_cast %3 : vector<128xf32> to vector<1x128xf32>
    %cst_4 = arith.constant 5.760000e+02 : f32
    %5 = vector.broadcast %cst_4 : f32 to vector<1x128xf32>
    %6 = arith.divf %4, %5 : vector<1x128xf32>
    %7 = vector.broadcast %6 : vector<1x128xf32> to vector<576x128xf32>
    %8 = arith.subf %2, %7 : vector<576x128xf32>
    %9 = arith.mulf %8, %8 : vector<576x128xf32>
    %cst_5 = arith.constant dense<0.000000e+00> : vector<128xf32>
    %10 = vector.multi_reduction <add>, %9, %cst_5 [0] : vector<576x128xf32> to vector<128xf32>
    %11 = vector.shape_cast %10 : vector<128xf32> to vector<1x128xf32>
    %cst_6 = arith.constant 5.760000e+02 : f32
    %12 = vector.broadcast %cst_6 : f32 to vector<1x128xf32>
    %13 = arith.divf %11, %12 : vector<1x128xf32>
    %14 = vector.broadcast %6 : vector<1x128xf32> to vector<576x128xf32>
    %15 = arith.subf %2, %14 : vector<576x128xf32>
    %16 = math.rsqrt %13 : vector<1x128xf32>
    %17 = vector.broadcast %16 : vector<1x128xf32> to vector<576x128xf32>
    %18 = arith.mulf %15, %17 : vector<576x128xf32>
    %c0_7 = arith.constant 0 : index
    %c0_8 = arith.constant 0 : index
    %19 = vector.load %arg3[%c0_7, %c0_8] : memref<1x128xf32, #tpu.memory_space<vmem>>, vector<1x128xf32>
    %20 = vector.broadcast %19 : vector<1x128xf32> to vector<576x128xf32>
    %21 = arith.mulf %18, %20 : vector<576x128xf32>
    %c0_9 = arith.constant 0 : index
    %c0_10 = arith.constant 0 : index
    %22 = vector.load %arg4[%c0_9, %c0_10] : memref<1x128xf32, #tpu.memory_space<vmem>>, vector<1x128xf32>
    %23 = vector.broadcast %22 : vector<1x128xf32> to vector<576x128xf32>
    %24 = arith.addf %21, %23 : vector<576x128xf32>
    %25 = arith.truncf %24 : vector<576x128xf32> to vector<576x128xbf16>
    %cst_11 = arith.constant 0.000000e+00 : f32
    %26 = vector.broadcast %cst_11 : f32 to vector<9x128xf32>
    %27 = vector.extract_strided_slice %25 {offsets = [0, 0], sizes = [9, 128], strides = [1, 1]} : vector<576x128xbf16> to vector<9x128xbf16>
    %c0_12 = arith.constant 0 : index
    %c0_13 = arith.constant 0 : index
    %c0_14 = arith.constant 0 : index
    %28 = vector.load %arg5[%c0_12, %c0_13, %c0_14] : memref<64x128x128xbf16, #tpu.memory_space<vmem>>, vector<1x128x128xbf16>
    %29 = vector.shape_cast %28 : vector<1x128x128xbf16> to vector<128x128xbf16>
    %cst_15 = arith.constant dense<0.000000e+00> : vector<9x128xf32>
    %30 = tpu.matmul %27, %29, %cst_15 {dimension_numbers = #tpu.dot_dimension_numbers<[1], [0], [0], [1], [0, 0, 1, 1], [], []>} : vector<9x128xbf16>, vector<128x128xbf16>, vector<9x128xf32> -> vector<9x128xf32>
    %31 = arith.addf %26, %30 : vector<9x128xf32>
    %32 = vector.extract_strided_slice %25 {offsets = [9, 0], sizes = [9, 128], strides = [1, 1]} : vector<576x128xbf16> to vector<9x128xbf16>
    %c1 = arith.constant 1 : index
    %c0_16 = arith.constant 0 : index
    %c0_17 = arith.constant 0 : index
    %33 = vector.load %arg5[%c1, %c0_16, %c0_17] : memref<64x128x128xbf16, #tpu.memory_space<vmem>>, vector<1x128x128xbf16>
    %34 = vector.shape_cast %33 : vector<1x128x128xbf16> to vector<128x128xbf16>
    %cst_18 = arith.constant dense<0.000000e+00> : vector<9x128xf32>
    %35 = tpu.matmul %32, %34, %cst_18 {dimension_numbers = #tpu.dot_dimension_numbers<[1], [0], [0], [1], [0, 0, 1, 1], [], []>} : vector<9x128xbf16>, vector<128x128xbf16>, vector<9x128xf32> -> vector<9x128xf32>
    %36 = arith.addf %31, %35 : vector<9x128xf32>
    %37 = vector.extract_strided_slice %25 {offsets = [18, 0], sizes = [9, 128], strides = [1, 1]} : vector<576x128xbf16> to vector<9x128xbf16>
    %c2 = arith.constant 2 : index
    %c0_19 = arith.constant 0 : index
    %c0_20 = arith.constant 0 : index
    %38 = vector.load %arg5[%c2, %c0_19, %c0_20] : memref<64x128x128xbf16, #tpu.memory_space<vmem>>, vector<1x128x128xbf16>
    %39 = vector.shape_cast %38 : vector<1x128x128xbf16> to vector<128x128xbf16>
    %cst_21 = arith.constant dense<0.000000e+00> : vector<9x128xf32>
    %40 = tpu.matmul %37, %39, %cst_21 {dimension_numbers = #tpu.dot_dimension_numbers<[1], [0], [0], [1], [0, 0, 1, 1], [], []>} : vector<9x128xbf16>, vector<128x128xbf16>, vector<9x128xf32> -> vector<9x128xf32>
    %41 = arith.addf %36, %40 : vector<9x128xf32>
    %42 = vector.extract_strided_slice %25 {offsets = [27, 0], sizes = [9, 128], strides = [1, 1]} : vector<576x128xbf16> to vector<9x128xbf16>
    %c3 = arith.constant 3 : index
    %c0_22 = arith.constant 0 : index
    %c0_23 = arith.constant 0 : index
    %43 = vector.load %arg5[%c3, %c0_22, %c0_23] : memref<64x128x128xbf16, #tpu.memory_space<vmem>>, vector<1x128x128xbf16>
    %44 = vector.shape_cast %43 : vector<1x128x128xbf16> to vector<128x128xbf16>
    %cst_24 = arith.constant dense<0.000000e+00> : vector<9x128xf32>
    %45 = tpu.matmul %42, %44, %cst_24 {dimension_numbers = #tpu.dot_dimension_numbers<[1], [0], [0], [1], [0, 0, 1, 1], [], []>} : vector<9x128xbf16>, vector<128x128xbf16>, vector<9x128xf32> -> vector<9x128xf32>
    %46 = arith.addf %41, %45 : vector<9x128xf32>
    %47 = vector.extract_strided_slice %25 {offsets = [36, 0], sizes = [9, 128], strides = [1, 1]} : vector<576x128xbf16> to vector<9x128xbf16>
    %c4 = arith.constant 4 : index
    %c0_25 = arith.constant 0 : index
    %c0_26 = arith.constant 0 : index
    %48 = vector.load %arg5[%c4, %c0_25, %c0_26] : memref<64x128x128xbf16, #tpu.memory_space<vmem>>, vector<1x128x128xbf16>
    %49 = vector.shape_cast %48 : vector<1x128x128xbf16> to vector<128x128xbf16>
    %cst_27 = arith.constant dense<0.000000e+00> : vector<9x128xf32>
    %50 = tpu.matmul %47, %49, %cst_27 {dimension_numbers = #tpu.dot_dimension_numbers<[1], [0], [0], [1], [0, 0, 1, 1], [], []>} : vector<9x128xbf16>, vector<128x128xbf16>, vector<9x128xf32> -> vector<9x128xf32>
    %51 = arith.addf %46, %50 : vector<9x128xf32>
    %52 = vector.extract_strided_slice %25 {offsets = [45, 0], sizes = [9, 128], strides = [1, 1]} : vector<576x128xbf16> to vector<9x128xbf16>
    %c5 = arith.constant 5 : index
    %c0_28 = arith.constant 0 : index
    %c0_29 = arith.constant 0 : index
    %53 = vector.load %arg5[%c5, %c0_28, %c0_29] : memref<64x128x128xbf16, #tpu.memory_space<vmem>>, vector<1x128x128xbf16>
    %54 = vector.shape_cast %53 : vector<1x128x128xbf16> to vector<128x128xbf16>
    %cst_30 = arith.constant dense<0.000000e+00> : vector<9x128xf32>
    %55 = tpu.matmul %52, %54, %cst_30 {dimension_numbers = #tpu.dot_dimension_numbers<[1], [0], [0], [1], [0, 0, 1, 1], [], []>} : vector<9x128xbf16>, vector<128x128xbf16>, vector<9x128xf32> -> vector<9x128xf32>
    %56 = arith.addf %51, %55 : vector<9x128xf32>
    %57 = vector.extract_strided_slice %25 {offsets = [54, 0], sizes = [9, 128], strides = [1, 1]} : vector<576x128xbf16> to vector<9x128xbf16>
    %c6 = arith.constant 6 : index
    %c0_31 = arith.constant 0 : index
    %c0_32 = arith.constant 0 : index
    %58 = vector.load %arg5[%c6, %c0_31, %c0_32] : memref<64x128x128xbf16, #tpu.memory_space<vmem>>, vector<1x128x128xbf16>
    %59 = vector.shape_cast %58 : vector<1x128x128xbf16> to vector<128x128xbf16>
    %cst_33 = arith.constant dense<0.000000e+00> : vector<9x128xf32>
    %60 = tpu.matmul %57, %59, %cst_33 {dimension_numbers = #tpu.dot_dimension_numbers<[1], [0], [0], [1], [0, 0, 1, 1], [], []>} : vector<9x128xbf16>, vector<128x128xbf16>, vector<9x128xf32> -> vector<9x128xf32>
    %61 = arith.addf %56, %60 : vector<9x128xf32>
    %62 = vector.extract_strided_slice %25 {offsets = [63, 0], sizes = [9, 128], strides = [1, 1]} : vector<576x128xbf16> to vector<9x128xbf16>
    %c7 = arith.constant 7 : index
    %c0_34 = arith.constant 0 : index
    %c0_35 = arith.constant 0 : index
    %63 = vector.load %arg5[%c7, %c0_34, %c0_35] : memref<64x128x128xbf16, #tpu.memory_space<vmem>>, vector<1x128x128xbf16>
    %64 = vector.shape_cast %63 : vector<1x128x128xbf16> to vector<128x128xbf16>
    %cst_36 = arith.constant dense<0.000000e+00> : vector<9x128xf32>
    %65 = tpu.matmul %62, %64, %cst_36 {dimension_numbers = #tpu.dot_dimension_numbers<[1], [0], [0], [1], [0, 0, 1, 1], [], []>} : vector<9x128xbf16>, vector<128x128xbf16>, vector<9x128xf32> -> vector<9x128xf32>
    %66 = arith.addf %61, %65 : vector<9x128xf32>
    %67 = vector.extract_strided_slice %25 {offsets = [72, 0], sizes = [9, 128], strides = [1, 1]} : vector<576x128xbf16> to vector<9x128xbf16>
    %c8 = arith.constant 8 : index
    %c0_37 = arith.constant 0 : index
    %c0_38 = arith.constant 0 : index
    %68 = vector.load %arg5[%c8, %c0_37, %c0_38] : memref<64x128x128xbf16, #tpu.memory_space<vmem>>, vector<1x128x128xbf16>
    %69 = vector.shape_cast %68 : vector<1x128x128xbf16> to vector<128x128xbf16>
    %cst_39 = arith.constant dense<0.000000e+00> : vector<9x128xf32>
    %70 = tpu.matmul %67, %69, %cst_39 {dimension_numbers = #tpu.dot_dimension_numbers<[1], [0], [0], [1], [0, 0, 1, 1], [], []>} : vector<9x128xbf16>, vector<128x128xbf16>, vector<9x128xf32> -> vector<9x128xf32>
    %71 = arith.addf %66, %70 : vector<9x128xf32>
    %72 = vector.extract_strided_slice %25 {offsets = [81, 0], sizes = [9, 128], strides = [1, 1]} : vector<576x128xbf16> to vector<9x128xbf16>
    %c9 = arith.constant 9 : index
    %c0_40 = arith.constant 0 : index
    %c0_41 = arith.constant 0 : index
    %73 = vector.load %arg5[%c9, %c0_40, %c0_41] : memref<64x128x128xbf16, #tpu.memory_space<vmem>>, vector<1x128x128xbf16>
    %74 = vector.shape_cast %73 : vector<1x128x128xbf16> to vector<128x128xbf16>
    %cst_42 = arith.constant dense<0.000000e+00> : vector<9x128xf32>
    %75 = tpu.matmul %72, %74, %cst_42 {dimension_numbers = #tpu.dot_dimension_numbers<[1], [0], [0], [1], [0, 0, 1, 1], [], []>} : vector<9x128xbf16>, vector<128x128xbf16>, vector<9x128xf32> -> vector<9x128xf32>
    %76 = arith.addf %71, %75 : vector<9x128xf32>
    %77 = vector.extract_strided_slice %25 {offsets = [90, 0], sizes = [9, 128], strides = [1, 1]} : vector<576x128xbf16> to vector<9x128xbf16>
    %c10 = arith.constant 10 : index
    %c0_43 = arith.constant 0 : index
    %c0_44 = arith.constant 0 : index
    %78 = vector.load %arg5[%c10, %c0_43, %c0_44] : memref<64x128x128xbf16, #tpu.memory_space<vmem>>, vector<1x128x128xbf16>
    %79 = vector.shape_cast %78 : vector<1x128x128xbf16> to vector<128x128xbf16>
    %cst_45 = arith.constant dense<0.000000e+00> : vector<9x128xf32>
    %80 = tpu.matmul %77, %79, %cst_45 {dimension_numbers = #tpu.dot_dimension_numbers<[1], [0], [0], [1], [0, 0, 1, 1], [], []>} : vector<9x128xbf16>, vector<128x128xbf16>, vector<9x128xf32> -> vector<9x128xf32>
    %81 = arith.addf %76, %80 : vector<9x128xf32>
    %82 = vector.extract_strided_slice %25 {offsets = [99, 0], sizes = [9, 128], strides = [1, 1]} : vector<576x128xbf16> to vector<9x128xbf16>
    %c11 = arith.constant 11 : index
    %c0_46 = arith.constant 0 : index
    %c0_47 = arith.constant 0 : index
    %83 = vector.load %arg5[%c11, %c0_46, %c0_47] : memref<64x128x128xbf16, #tpu.memory_space<vmem>>, vector<1x128x128xbf16>
    %84 = vector.shape_cast %83 : vector<1x128x128xbf16> to vector<128x128xbf16>
    %cst_48 = arith.constant dense<0.000000e+00> : vector<9x128xf32>
    %85 = tpu.matmul %82, %84, %cst_48 {dimension_numbers = #tpu.dot_dimension_numbers<[1], [0], [0], [1], [0, 0, 1, 1], [], []>} : vector<9x128xbf16>, vector<128x128xbf16>, vector<9x128xf32> -> vector<9x128xf32>
    %86 = arith.addf %81, %85 : vector<9x128xf32>
    %87 = vector.extract_strided_slice %25 {offsets = [108, 0], sizes = [9, 128], strides = [1, 1]} : vector<576x128xbf16> to vector<9x128xbf16>
    %c12 = arith.constant 12 : index
    %c0_49 = arith.constant 0 : index
    %c0_50 = arith.constant 0 : index
    %88 = vector.load %arg5[%c12, %c0_49, %c0_50] : memref<64x128x128xbf16, #tpu.memory_space<vmem>>, vector<1x128x128xbf16>
    %89 = vector.shape_cast %88 : vector<1x128x128xbf16> to vector<128x128xbf16>
    %cst_51 = arith.constant dense<0.000000e+00> : vector<9x128xf32>
    %90 = tpu.matmul %87, %89, %cst_51 {dimension_numbers = #tpu.dot_dimension_numbers<[1], [0], [0], [1], [0, 0, 1, 1], [], []>} : vector<9x128xbf16>, vector<128x128xbf16>, vector<9x128xf32> -> vector<9x128xf32>
    %91 = arith.addf %86, %90 : vector<9x128xf32>
    %92 = vector.extract_strided_slice %25 {offsets = [117, 0], sizes = [9, 128], strides = [1, 1]} : vector<576x128xbf16> to vector<9x128xbf16>
    %c13 = arith.constant 13 : index
    %c0_52 = arith.constant 0 : index
    %c0_53 = arith.constant 0 : index
    %93 = vector.load %arg5[%c13, %c0_52, %c0_53] : memref<64x128x128xbf16, #tpu.memory_space<vmem>>, vector<1x128x128xbf16>
    %94 = vector.shape_cast %93 : vector<1x128x128xbf16> to vector<128x128xbf16>
    %cst_54 = arith.constant dense<0.000000e+00> : vector<9x128xf32>
    %95 = tpu.matmul %92, %94, %cst_54 {dimension_numbers = #tpu.dot_dimension_numbers<[1], [0], [0], [1], [0, 0, 1, 1], [], []>} : vector<9x128xbf16>, vector<128x128xbf16>, vector<9x128xf32> -> vector<9x128xf32>
    %96 = arith.addf %91, %95 : vector<9x128xf32>
    %97 = vector.extract_strided_slice %25 {offsets = [126, 0], sizes = [9, 128], strides = [1, 1]} : vector<576x128xbf16> to vector<9x128xbf16>
    %c14 = arith.constant 14 : index
    %c0_55 = arith.constant 0 : index
    %c0_56 = arith.constant 0 : index
    %98 = vector.load %arg5[%c14, %c0_55, %c0_56] : memref<64x128x128xbf16, #tpu.memory_space<vmem>>, vector<1x128x128xbf16>
    %99 = vector.shape_cast %98 : vector<1x128x128xbf16> to vector<128x128xbf16>
    %cst_57 = arith.constant dense<0.000000e+00> : vector<9x128xf32>
    %100 = tpu.matmul %97, %99, %cst_57 {dimension_numbers = #tpu.dot_dimension_numbers<[1], [0], [0], [1], [0, 0, 1, 1], [], []>} : vector<9x128xbf16>, vector<128x128xbf16>, vector<9x128xf32> -> vector<9x128xf32>
    %101 = arith.addf %96, %100 : vector<9x128xf32>
    %102 = vector.extract_strided_slice %25 {offsets = [135, 0], sizes = [9, 128], strides = [1, 1]} : vector<576x128xbf16> to vector<9x128xbf16>
    %c15 = arith.constant 15 : index
    %c0_58 = arith.constant 0 : index
    %c0_59 = arith.constant 0 : index
    %103 = vector.load %arg5[%c15, %c0_58, %c0_59] : memref<64x128x128xbf16, #tpu.memory_space<vmem>>, vector<1x128x128xbf16>
    %104 = vector.shape_cast %103 : vector<1x128x128xbf16> to vector<128x128xbf16>
    %cst_60 = arith.constant dense<0.000000e+00> : vector<9x128xf32>
    %105 = tpu.matmul %102, %104, %cst_60 {dimension_numbers = #tpu.dot_dimension_numbers<[1], [0], [0], [1], [0, 0, 1, 1], [], []>} : vector<9x128xbf16>, vector<128x128xbf16>, vector<9x128xf32> -> vector<9x128xf32>
    %106 = arith.addf %101, %105 : vector<9x128xf32>
    %107 = vector.extract_strided_slice %25 {offsets = [144, 0], sizes = [9, 128], strides = [1, 1]} : vector<576x128xbf16> to vector<9x128xbf16>
    %c16 = arith.constant 16 : index
    %c0_61 = arith.constant 0 : index
    %c0_62 = arith.constant 0 : index
    %108 = vector.load %arg5[%c16, %c0_61, %c0_62] : memref<64x128x128xbf16, #tpu.memory_space<vmem>>, vector<1x128x128xbf16>
    %109 = vector.shape_cast %108 : vector<1x128x128xbf16> to vector<128x128xbf16>
    %cst_63 = arith.constant dense<0.000000e+00> : vector<9x128xf32>
    %110 = tpu.matmul %107, %109, %cst_63 {dimension_numbers = #tpu.dot_dimension_numbers<[1], [0], [0], [1], [0, 0, 1, 1], [], []>} : vector<9x128xbf16>, vector<128x128xbf16>, vector<9x128xf32> -> vector<9x128xf32>
    %111 = arith.addf %106, %110 : vector<9x128xf32>
    %112 = vector.extract_strided_slice %25 {offsets = [153, 0], sizes = [9, 128], strides = [1, 1]} : vector<576x128xbf16> to vector<9x128xbf16>
    %c17 = arith.constant 17 : index
    %c0_64 = arith.constant 0 : index
    %c0_65 = arith.constant 0 : index
    %113 = vector.load %arg5[%c17, %c0_64, %c0_65] : memref<64x128x128xbf16, #tpu.memory_space<vmem>>, vector<1x128x128xbf16>
    %114 = vector.shape_cast %113 : vector<1x128x128xbf16> to vector<128x128xbf16>
    %cst_66 = arith.constant dense<0.000000e+00> : vector<9x128xf32>
    %115 = tpu.matmul %112, %114, %cst_66 {dimension_numbers = #tpu.dot_dimension_numbers<[1], [0], [0], [1], [0, 0, 1, 1], [], []>} : vector<9x128xbf16>, vector<128x128xbf16>, vector<9x128xf32> -> vector<9x128xf32>
    %116 = arith.addf %111, %115 : vector<9x128xf32>
    %117 = vector.extract_strided_slice %25 {offsets = [162, 0], sizes = [9, 128], strides = [1, 1]} : vector<576x128xbf16> to vector<9x128xbf16>
    %c18 = arith.constant 18 : index
    %c0_67 = arith.constant 0 : index
    %c0_68 = arith.constant 0 : index
    %118 = vector.load %arg5[%c18, %c0_67, %c0_68] : memref<64x128x128xbf16, #tpu.memory_space<vmem>>, vector<1x128x128xbf16>
    %119 = vector.shape_cast %118 : vector<1x128x128xbf16> to vector<128x128xbf16>
    %cst_69 = arith.constant dense<0.000000e+00> : vector<9x128xf32>
    %120 = tpu.matmul %117, %119, %cst_69 {dimension_numbers = #tpu.dot_dimension_numbers<[1], [0], [0], [1], [0, 0, 1, 1], [], []>} : vector<9x128xbf16>, vector<128x128xbf16>, vector<9x128xf32> -> vector<9x128xf32>
    %121 = arith.addf %116, %120 : vector<9x128xf32>
    %122 = vector.extract_strided_slice %25 {offsets = [171, 0], sizes = [9, 128], strides = [1, 1]} : vector<576x128xbf16> to vector<9x128xbf16>
    %c19 = arith.constant 19 : index
    %c0_70 = arith.constant 0 : index
    %c0_71 = arith.constant 0 : index
    %123 = vector.load %arg5[%c19, %c0_70, %c0_71] : memref<64x128x128xbf16, #tpu.memory_space<vmem>>, vector<1x128x128xbf16>
    %124 = vector.shape_cast %123 : vector<1x128x128xbf16> to vector<128x128xbf16>
    %cst_72 = arith.constant dense<0.000000e+00> : vector<9x128xf32>
    %125 = tpu.matmul %122, %124, %cst_72 {dimension_numbers = #tpu.dot_dimension_numbers<[1], [0], [0], [1], [0, 0, 1, 1], [], []>} : vector<9x128xbf16>, vector<128x128xbf16>, vector<9x128xf32> -> vector<9x128xf32>
    %126 = arith.addf %121, %125 : vector<9x128xf32>
    %127 = vector.extract_strided_slice %25 {offsets = [180, 0], sizes = [9, 128], strides = [1, 1]} : vector<576x128xbf16> to vector<9x128xbf16>
    %c20 = arith.constant 20 : index
    %c0_73 = arith.constant 0 : index
    %c0_74 = arith.constant 0 : index
    %128 = vector.load %arg5[%c20, %c0_73, %c0_74] : memref<64x128x128xbf16, #tpu.memory_space<vmem>>, vector<1x128x128xbf16>
    %129 = vector.shape_cast %128 : vector<1x128x128xbf16> to vector<128x128xbf16>
    %cst_75 = arith.constant dense<0.000000e+00> : vector<9x128xf32>
    %130 = tpu.matmul %127, %129, %cst_75 {dimension_numbers = #tpu.dot_dimension_numbers<[1], [0], [0], [1], [0, 0, 1, 1], [], []>} : vector<9x128xbf16>, vector<128x128xbf16>, vector<9x128xf32> -> vector<9x128xf32>
    %131 = arith.addf %126, %130 : vector<9x128xf32>
    %132 = vector.extract_strided_slice %25 {offsets = [189, 0], sizes = [9, 128], strides = [1, 1]} : vector<576x128xbf16> to vector<9x128xbf16>
    %c21 = arith.constant 21 : index
    %c0_76 = arith.constant 0 : index
    %c0_77 = arith.constant 0 : index
    %133 = vector.load %arg5[%c21, %c0_76, %c0_77] : memref<64x128x128xbf16, #tpu.memory_space<vmem>>, vector<1x128x128xbf16>
    %134 = vector.shape_cast %133 : vector<1x128x128xbf16> to vector<128x128xbf16>
    %cst_78 = arith.constant dense<0.000000e+00> : vector<9x128xf32>
    %135 = tpu.matmul %132, %134, %cst_78 {dimension_numbers = #tpu.dot_dimension_numbers<[1], [0], [0], [1], [0, 0, 1, 1], [], []>} : vector<9x128xbf16>, vector<128x128xbf16>, vector<9x128xf32> -> vector<9x128xf32>
    %136 = arith.addf %131, %135 : vector<9x128xf32>
    %137 = vector.extract_strided_slice %25 {offsets = [198, 0], sizes = [9, 128], strides = [1, 1]} : vector<576x128xbf16> to vector<9x128xbf16>
    %c22 = arith.constant 22 : index
    %c0_79 = arith.constant 0 : index
    %c0_80 = arith.constant 0 : index
    %138 = vector.load %arg5[%c22, %c0_79, %c0_80] : memref<64x128x128xbf16, #tpu.memory_space<vmem>>, vector<1x128x128xbf16>
    %139 = vector.shape_cast %138 : vector<1x128x128xbf16> to vector<128x128xbf16>
    %cst_81 = arith.constant dense<0.000000e+00> : vector<9x128xf32>
    %140 = tpu.matmul %137, %139, %cst_81 {dimension_numbers = #tpu.dot_dimension_numbers<[1], [0], [0], [1], [0, 0, 1, 1], [], []>} : vector<9x128xbf16>, vector<128x128xbf16>, vector<9x128xf32> -> vector<9x128xf32>
    %141 = arith.addf %136, %140 : vector<9x128xf32>
    %142 = vector.extract_strided_slice %25 {offsets = [207, 0], sizes = [9, 128], strides = [1, 1]} : vector<576x128xbf16> to vector<9x128xbf16>
    %c23 = arith.constant 23 : index
    %c0_82 = arith.constant 0 : index
    %c0_83 = arith.constant 0 : index
    %143 = vector.load %arg5[%c23, %c0_82, %c0_83] : memref<64x128x128xbf16, #tpu.memory_space<vmem>>, vector<1x128x128xbf16>
    %144 = vector.shape_cast %143 : vector<1x128x128xbf16> to vector<128x128xbf16>
    %cst_84 = arith.constant dense<0.000000e+00> : vector<9x128xf32>
    %145 = tpu.matmul %142, %144, %cst_84 {dimension_numbers = #tpu.dot_dimension_numbers<[1], [0], [0], [1], [0, 0, 1, 1], [], []>} : vector<9x128xbf16>, vector<128x128xbf16>, vector<9x128xf32> -> vector<9x128xf32>
    %146 = arith.addf %141, %145 : vector<9x128xf32>
    %147 = vector.extract_strided_slice %25 {offsets = [216, 0], sizes = [9, 128], strides = [1, 1]} : vector<576x128xbf16> to vector<9x128xbf16>
    %c24 = arith.constant 24 : index
    %c0_85 = arith.constant 0 : index
    %c0_86 = arith.constant 0 : index
    %148 = vector.load %arg5[%c24, %c0_85, %c0_86] : memref<64x128x128xbf16, #tpu.memory_space<vmem>>, vector<1x128x128xbf16>
    %149 = vector.shape_cast %148 : vector<1x128x128xbf16> to vector<128x128xbf16>
    %cst_87 = arith.constant dense<0.000000e+00> : vector<9x128xf32>
    %150 = tpu.matmul %147, %149, %cst_87 {dimension_numbers = #tpu.dot_dimension_numbers<[1], [0], [0], [1], [0, 0, 1, 1], [], []>} : vector<9x128xbf16>, vector<128x128xbf16>, vector<9x128xf32> -> vector<9x128xf32>
    %151 = arith.addf %146, %150 : vector<9x128xf32>
    %152 = vector.extract_strided_slice %25 {offsets = [225, 0], sizes = [9, 128], strides = [1, 1]} : vector<576x128xbf16> to vector<9x128xbf16>
    %c25 = arith.constant 25 : index
    %c0_88 = arith.constant 0 : index
    %c0_89 = arith.constant 0 : index
    %153 = vector.load %arg5[%c25, %c0_88, %c0_89] : memref<64x128x128xbf16, #tpu.memory_space<vmem>>, vector<1x128x128xbf16>
    %154 = vector.shape_cast %153 : vector<1x128x128xbf16> to vector<128x128xbf16>
    %cst_90 = arith.constant dense<0.000000e+00> : vector<9x128xf32>
    %155 = tpu.matmul %152, %154, %cst_90 {dimension_numbers = #tpu.dot_dimension_numbers<[1], [0], [0], [1], [0, 0, 1, 1], [], []>} : vector<9x128xbf16>, vector<128x128xbf16>, vector<9x128xf32> -> vector<9x128xf32>
    %156 = arith.addf %151, %155 : vector<9x128xf32>
    %157 = vector.extract_strided_slice %25 {offsets = [234, 0], sizes = [9, 128], strides = [1, 1]} : vector<576x128xbf16> to vector<9x128xbf16>
    %c26 = arith.constant 26 : index
    %c0_91 = arith.constant 0 : index
    %c0_92 = arith.constant 0 : index
    %158 = vector.load %arg5[%c26, %c0_91, %c0_92] : memref<64x128x128xbf16, #tpu.memory_space<vmem>>, vector<1x128x128xbf16>
    %159 = vector.shape_cast %158 : vector<1x128x128xbf16> to vector<128x128xbf16>
    %cst_93 = arith.constant dense<0.000000e+00> : vector<9x128xf32>
    %160 = tpu.matmul %157, %159, %cst_93 {dimension_numbers = #tpu.dot_dimension_numbers<[1], [0], [0], [1], [0, 0, 1, 1], [], []>} : vector<9x128xbf16>, vector<128x128xbf16>, vector<9x128xf32> -> vector<9x128xf32>
    %161 = arith.addf %156, %160 : vector<9x128xf32>
    %162 = vector.extract_strided_slice %25 {offsets = [243, 0], sizes = [9, 128], strides = [1, 1]} : vector<576x128xbf16> to vector<9x128xbf16>
    %c27 = arith.constant 27 : index
    %c0_94 = arith.constant 0 : index
    %c0_95 = arith.constant 0 : index
    %163 = vector.load %arg5[%c27, %c0_94, %c0_95] : memref<64x128x128xbf16, #tpu.memory_space<vmem>>, vector<1x128x128xbf16>
    %164 = vector.shape_cast %163 : vector<1x128x128xbf16> to vector<128x128xbf16>
    %cst_96 = arith.constant dense<0.000000e+00> : vector<9x128xf32>
    %165 = tpu.matmul %162, %164, %cst_96 {dimension_numbers = #tpu.dot_dimension_numbers<[1], [0], [0], [1], [0, 0, 1, 1], [], []>} : vector<9x128xbf16>, vector<128x128xbf16>, vector<9x128xf32> -> vector<9x128xf32>
    %166 = arith.addf %161, %165 : vector<9x128xf32>
    %167 = vector.extract_strided_slice %25 {offsets = [252, 0], sizes = [9, 128], strides = [1, 1]} : vector<576x128xbf16> to vector<9x128xbf16>
    %c28 = arith.constant 28 : index
    %c0_97 = arith.constant 0 : index
    %c0_98 = arith.constant 0 : index
    %168 = vector.load %arg5[%c28, %c0_97, %c0_98] : memref<64x128x128xbf16, #tpu.memory_space<vmem>>, vector<1x128x128xbf16>
    %169 = vector.shape_cast %168 : vector<1x128x128xbf16> to vector<128x128xbf16>
    %cst_99 = arith.constant dense<0.000000e+00> : vector<9x128xf32>
    %170 = tpu.matmul %167, %169, %cst_99 {dimension_numbers = #tpu.dot_dimension_numbers<[1], [0], [0], [1], [0, 0, 1, 1], [], []>} : vector<9x128xbf16>, vector<128x128xbf16>, vector<9x128xf32> -> vector<9x128xf32>
    %171 = arith.addf %166, %170 : vector<9x128xf32>
    %172 = vector.extract_strided_slice %25 {offsets = [261, 0], sizes = [9, 128], strides = [1, 1]} : vector<576x128xbf16> to vector<9x128xbf16>
    %c29 = arith.constant 29 : index
    %c0_100 = arith.constant 0 : index
    %c0_101 = arith.constant 0 : index
    %173 = vector.load %arg5[%c29, %c0_100, %c0_101] : memref<64x128x128xbf16, #tpu.memory_space<vmem>>, vector<1x128x128xbf16>
    %174 = vector.shape_cast %173 : vector<1x128x128xbf16> to vector<128x128xbf16>
    %cst_102 = arith.constant dense<0.000000e+00> : vector<9x128xf32>
    %175 = tpu.matmul %172, %174, %cst_102 {dimension_numbers = #tpu.dot_dimension_numbers<[1], [0], [0], [1], [0, 0, 1, 1], [], []>} : vector<9x128xbf16>, vector<128x128xbf16>, vector<9x128xf32> -> vector<9x128xf32>
    %176 = arith.addf %171, %175 : vector<9x128xf32>
    %177 = vector.extract_strided_slice %25 {offsets = [270, 0], sizes = [9, 128], strides = [1, 1]} : vector<576x128xbf16> to vector<9x128xbf16>
    %c30 = arith.constant 30 : index
    %c0_103 = arith.constant 0 : index
    %c0_104 = arith.constant 0 : index
    %178 = vector.load %arg5[%c30, %c0_103, %c0_104] : memref<64x128x128xbf16, #tpu.memory_space<vmem>>, vector<1x128x128xbf16>
    %179 = vector.shape_cast %178 : vector<1x128x128xbf16> to vector<128x128xbf16>
    %cst_105 = arith.constant dense<0.000000e+00> : vector<9x128xf32>
    %180 = tpu.matmul %177, %179, %cst_105 {dimension_numbers = #tpu.dot_dimension_numbers<[1], [0], [0], [1], [0, 0, 1, 1], [], []>} : vector<9x128xbf16>, vector<128x128xbf16>, vector<9x128xf32> -> vector<9x128xf32>
    %181 = arith.addf %176, %180 : vector<9x128xf32>
    %182 = vector.extract_strided_slice %25 {offsets = [279, 0], sizes = [9, 128], strides = [1, 1]} : vector<576x128xbf16> to vector<9x128xbf16>
    %c31 = arith.constant 31 : index
    %c0_106 = arith.constant 0 : index
    %c0_107 = arith.constant 0 : index
    %183 = vector.load %arg5[%c31, %c0_106, %c0_107] : memref<64x128x128xbf16, #tpu.memory_space<vmem>>, vector<1x128x128xbf16>
    %184 = vector.shape_cast %183 : vector<1x128x128xbf16> to vector<128x128xbf16>
    %cst_108 = arith.constant dense<0.000000e+00> : vector<9x128xf32>
    %185 = tpu.matmul %182, %184, %cst_108 {dimension_numbers = #tpu.dot_dimension_numbers<[1], [0], [0], [1], [0, 0, 1, 1], [], []>} : vector<9x128xbf16>, vector<128x128xbf16>, vector<9x128xf32> -> vector<9x128xf32>
    %186 = arith.addf %181, %185 : vector<9x128xf32>
    %187 = vector.extract_strided_slice %25 {offsets = [288, 0], sizes = [9, 128], strides = [1, 1]} : vector<576x128xbf16> to vector<9x128xbf16>
    %c32 = arith.constant 32 : index
    %c0_109 = arith.constant 0 : index
    %c0_110 = arith.constant 0 : index
    %188 = vector.load %arg5[%c32, %c0_109, %c0_110] : memref<64x128x128xbf16, #tpu.memory_space<vmem>>, vector<1x128x128xbf16>
    %189 = vector.shape_cast %188 : vector<1x128x128xbf16> to vector<128x128xbf16>
    %cst_111 = arith.constant dense<0.000000e+00> : vector<9x128xf32>
    %190 = tpu.matmul %187, %189, %cst_111 {dimension_numbers = #tpu.dot_dimension_numbers<[1], [0], [0], [1], [0, 0, 1, 1], [], []>} : vector<9x128xbf16>, vector<128x128xbf16>, vector<9x128xf32> -> vector<9x128xf32>
    %191 = arith.addf %186, %190 : vector<9x128xf32>
    %192 = vector.extract_strided_slice %25 {offsets = [297, 0], sizes = [9, 128], strides = [1, 1]} : vector<576x128xbf16> to vector<9x128xbf16>
    %c33 = arith.constant 33 : index
    %c0_112 = arith.constant 0 : index
    %c0_113 = arith.constant 0 : index
    %193 = vector.load %arg5[%c33, %c0_112, %c0_113] : memref<64x128x128xbf16, #tpu.memory_space<vmem>>, vector<1x128x128xbf16>
    %194 = vector.shape_cast %193 : vector<1x128x128xbf16> to vector<128x128xbf16>
    %cst_114 = arith.constant dense<0.000000e+00> : vector<9x128xf32>
    %195 = tpu.matmul %192, %194, %cst_114 {dimension_numbers = #tpu.dot_dimension_numbers<[1], [0], [0], [1], [0, 0, 1, 1], [], []>} : vector<9x128xbf16>, vector<128x128xbf16>, vector<9x128xf32> -> vector<9x128xf32>
    %196 = arith.addf %191, %195 : vector<9x128xf32>
    %197 = vector.extract_strided_slice %25 {offsets = [306, 0], sizes = [9, 128], strides = [1, 1]} : vector<576x128xbf16> to vector<9x128xbf16>
    %c34 = arith.constant 34 : index
    %c0_115 = arith.constant 0 : index
    %c0_116 = arith.constant 0 : index
    %198 = vector.load %arg5[%c34, %c0_115, %c0_116] : memref<64x128x128xbf16, #tpu.memory_space<vmem>>, vector<1x128x128xbf16>
    %199 = vector.shape_cast %198 : vector<1x128x128xbf16> to vector<128x128xbf16>
    %cst_117 = arith.constant dense<0.000000e+00> : vector<9x128xf32>
    %200 = tpu.matmul %197, %199, %cst_117 {dimension_numbers = #tpu.dot_dimension_numbers<[1], [0], [0], [1], [0, 0, 1, 1], [], []>} : vector<9x128xbf16>, vector<128x128xbf16>, vector<9x128xf32> -> vector<9x128xf32>
    %201 = arith.addf %196, %200 : vector<9x128xf32>
    %202 = vector.extract_strided_slice %25 {offsets = [315, 0], sizes = [9, 128], strides = [1, 1]} : vector<576x128xbf16> to vector<9x128xbf16>
    %c35 = arith.constant 35 : index
    %c0_118 = arith.constant 0 : index
    %c0_119 = arith.constant 0 : index
    %203 = vector.load %arg5[%c35, %c0_118, %c0_119] : memref<64x128x128xbf16, #tpu.memory_space<vmem>>, vector<1x128x128xbf16>
    %204 = vector.shape_cast %203 : vector<1x128x128xbf16> to vector<128x128xbf16>
    %cst_120 = arith.constant dense<0.000000e+00> : vector<9x128xf32>
    %205 = tpu.matmul %202, %204, %cst_120 {dimension_numbers = #tpu.dot_dimension_numbers<[1], [0], [0], [1], [0, 0, 1, 1], [], []>} : vector<9x128xbf16>, vector<128x128xbf16>, vector<9x128xf32> -> vector<9x128xf32>
    %206 = arith.addf %201, %205 : vector<9x128xf32>
    %207 = vector.extract_strided_slice %25 {offsets = [324, 0], sizes = [9, 128], strides = [1, 1]} : vector<576x128xbf16> to vector<9x128xbf16>
    %c36 = arith.constant 36 : index
    %c0_121 = arith.constant 0 : index
    %c0_122 = arith.constant 0 : index
    %208 = vector.load %arg5[%c36, %c0_121, %c0_122] : memref<64x128x128xbf16, #tpu.memory_space<vmem>>, vector<1x128x128xbf16>
    %209 = vector.shape_cast %208 : vector<1x128x128xbf16> to vector<128x128xbf16>
    %cst_123 = arith.constant dense<0.000000e+00> : vector<9x128xf32>
    %210 = tpu.matmul %207, %209, %cst_123 {dimension_numbers = #tpu.dot_dimension_numbers<[1], [0], [0], [1], [0, 0, 1, 1], [], []>} : vector<9x128xbf16>, vector<128x128xbf16>, vector<9x128xf32> -> vector<9x128xf32>
    %211 = arith.addf %206, %210 : vector<9x128xf32>
    %212 = vector.extract_strided_slice %25 {offsets = [333, 0], sizes = [9, 128], strides = [1, 1]} : vector<576x128xbf16> to vector<9x128xbf16>
    %c37 = arith.constant 37 : index
    %c0_124 = arith.constant 0 : index
    %c0_125 = arith.constant 0 : index
    %213 = vector.load %arg5[%c37, %c0_124, %c0_125] : memref<64x128x128xbf16, #tpu.memory_space<vmem>>, vector<1x128x128xbf16>
    %214 = vector.shape_cast %213 : vector<1x128x128xbf16> to vector<128x128xbf16>
    %cst_126 = arith.constant dense<0.000000e+00> : vector<9x128xf32>
    %215 = tpu.matmul %212, %214, %cst_126 {dimension_numbers = #tpu.dot_dimension_numbers<[1], [0], [0], [1], [0, 0, 1, 1], [], []>} : vector<9x128xbf16>, vector<128x128xbf16>, vector<9x128xf32> -> vector<9x128xf32>
    %216 = arith.addf %211, %215 : vector<9x128xf32>
    %217 = vector.extract_strided_slice %25 {offsets = [342, 0], sizes = [9, 128], strides = [1, 1]} : vector<576x128xbf16> to vector<9x128xbf16>
    %c38 = arith.constant 38 : index
    %c0_127 = arith.constant 0 : index
    %c0_128 = arith.constant 0 : index
    %218 = vector.load %arg5[%c38, %c0_127, %c0_128] : memref<64x128x128xbf16, #tpu.memory_space<vmem>>, vector<1x128x128xbf16>
    %219 = vector.shape_cast %218 : vector<1x128x128xbf16> to vector<128x128xbf16>
    %cst_129 = arith.constant dense<0.000000e+00> : vector<9x128xf32>
    %220 = tpu.matmul %217, %219, %cst_129 {dimension_numbers = #tpu.dot_dimension_numbers<[1], [0], [0], [1], [0, 0, 1, 1], [], []>} : vector<9x128xbf16>, vector<128x128xbf16>, vector<9x128xf32> -> vector<9x128xf32>
    %221 = arith.addf %216, %220 : vector<9x128xf32>
    %222 = vector.extract_strided_slice %25 {offsets = [351, 0], sizes = [9, 128], strides = [1, 1]} : vector<576x128xbf16> to vector<9x128xbf16>
    %c39 = arith.constant 39 : index
    %c0_130 = arith.constant 0 : index
    %c0_131 = arith.constant 0 : index
    %223 = vector.load %arg5[%c39, %c0_130, %c0_131] : memref<64x128x128xbf16, #tpu.memory_space<vmem>>, vector<1x128x128xbf16>
    %224 = vector.shape_cast %223 : vector<1x128x128xbf16> to vector<128x128xbf16>
    %cst_132 = arith.constant dense<0.000000e+00> : vector<9x128xf32>
    %225 = tpu.matmul %222, %224, %cst_132 {dimension_numbers = #tpu.dot_dimension_numbers<[1], [0], [0], [1], [0, 0, 1, 1], [], []>} : vector<9x128xbf16>, vector<128x128xbf16>, vector<9x128xf32> -> vector<9x128xf32>
    %226 = arith.addf %221, %225 : vector<9x128xf32>
    %227 = vector.extract_strided_slice %25 {offsets = [360, 0], sizes = [9, 128], strides = [1, 1]} : vector<576x128xbf16> to vector<9x128xbf16>
    %c40 = arith.constant 40 : index
    %c0_133 = arith.constant 0 : index
    %c0_134 = arith.constant 0 : index
    %228 = vector.load %arg5[%c40, %c0_133, %c0_134] : memref<64x128x128xbf16, #tpu.memory_space<vmem>>, vector<1x128x128xbf16>
    %229 = vector.shape_cast %228 : vector<1x128x128xbf16> to vector<128x128xbf16>
    %cst_135 = arith.constant dense<0.000000e+00> : vector<9x128xf32>
    %230 = tpu.matmul %227, %229, %cst_135 {dimension_numbers = #tpu.dot_dimension_numbers<[1], [0], [0], [1], [0, 0, 1, 1], [], []>} : vector<9x128xbf16>, vector<128x128xbf16>, vector<9x128xf32> -> vector<9x128xf32>
    %231 = arith.addf %226, %230 : vector<9x128xf32>
    %232 = vector.extract_strided_slice %25 {offsets = [369, 0], sizes = [9, 128], strides = [1, 1]} : vector<576x128xbf16> to vector<9x128xbf16>
    %c41 = arith.constant 41 : index
    %c0_136 = arith.constant 0 : index
    %c0_137 = arith.constant 0 : index
    %233 = vector.load %arg5[%c41, %c0_136, %c0_137] : memref<64x128x128xbf16, #tpu.memory_space<vmem>>, vector<1x128x128xbf16>
    %234 = vector.shape_cast %233 : vector<1x128x128xbf16> to vector<128x128xbf16>
    %cst_138 = arith.constant dense<0.000000e+00> : vector<9x128xf32>
    %235 = tpu.matmul %232, %234, %cst_138 {dimension_numbers = #tpu.dot_dimension_numbers<[1], [0], [0], [1], [0, 0, 1, 1], [], []>} : vector<9x128xbf16>, vector<128x128xbf16>, vector<9x128xf32> -> vector<9x128xf32>
    %236 = arith.addf %231, %235 : vector<9x128xf32>
    %237 = vector.extract_strided_slice %25 {offsets = [378, 0], sizes = [9, 128], strides = [1, 1]} : vector<576x128xbf16> to vector<9x128xbf16>
    %c42 = arith.constant 42 : index
    %c0_139 = arith.constant 0 : index
    %c0_140 = arith.constant 0 : index
    %238 = vector.load %arg5[%c42, %c0_139, %c0_140] : memref<64x128x128xbf16, #tpu.memory_space<vmem>>, vector<1x128x128xbf16>
    %239 = vector.shape_cast %238 : vector<1x128x128xbf16> to vector<128x128xbf16>
    %cst_141 = arith.constant dense<0.000000e+00> : vector<9x128xf32>
    %240 = tpu.matmul %237, %239, %cst_141 {dimension_numbers = #tpu.dot_dimension_numbers<[1], [0], [0], [1], [0, 0, 1, 1], [], []>} : vector<9x128xbf16>, vector<128x128xbf16>, vector<9x128xf32> -> vector<9x128xf32>
    %241 = arith.addf %236, %240 : vector<9x128xf32>
    %242 = vector.extract_strided_slice %25 {offsets = [387, 0], sizes = [9, 128], strides = [1, 1]} : vector<576x128xbf16> to vector<9x128xbf16>
    %c43 = arith.constant 43 : index
    %c0_142 = arith.constant 0 : index
    %c0_143 = arith.constant 0 : index
    %243 = vector.load %arg5[%c43, %c0_142, %c0_143] : memref<64x128x128xbf16, #tpu.memory_space<vmem>>, vector<1x128x128xbf16>
    %244 = vector.shape_cast %243 : vector<1x128x128xbf16> to vector<128x128xbf16>
    %cst_144 = arith.constant dense<0.000000e+00> : vector<9x128xf32>
    %245 = tpu.matmul %242, %244, %cst_144 {dimension_numbers = #tpu.dot_dimension_numbers<[1], [0], [0], [1], [0, 0, 1, 1], [], []>} : vector<9x128xbf16>, vector<128x128xbf16>, vector<9x128xf32> -> vector<9x128xf32>
    %246 = arith.addf %241, %245 : vector<9x128xf32>
    %247 = vector.extract_strided_slice %25 {offsets = [396, 0], sizes = [9, 128], strides = [1, 1]} : vector<576x128xbf16> to vector<9x128xbf16>
    %c44 = arith.constant 44 : index
    %c0_145 = arith.constant 0 : index
    %c0_146 = arith.constant 0 : index
    %248 = vector.load %arg5[%c44, %c0_145, %c0_146] : memref<64x128x128xbf16, #tpu.memory_space<vmem>>, vector<1x128x128xbf16>
    %249 = vector.shape_cast %248 : vector<1x128x128xbf16> to vector<128x128xbf16>
    %cst_147 = arith.constant dense<0.000000e+00> : vector<9x128xf32>
    %250 = tpu.matmul %247, %249, %cst_147 {dimension_numbers = #tpu.dot_dimension_numbers<[1], [0], [0], [1], [0, 0, 1, 1], [], []>} : vector<9x128xbf16>, vector<128x128xbf16>, vector<9x128xf32> -> vector<9x128xf32>
    %251 = arith.addf %246, %250 : vector<9x128xf32>
    %252 = vector.extract_strided_slice %25 {offsets = [405, 0], sizes = [9, 128], strides = [1, 1]} : vector<576x128xbf16> to vector<9x128xbf16>
    %c45 = arith.constant 45 : index
    %c0_148 = arith.constant 0 : index
    %c0_149 = arith.constant 0 : index
    %253 = vector.load %arg5[%c45, %c0_148, %c0_149] : memref<64x128x128xbf16, #tpu.memory_space<vmem>>, vector<1x128x128xbf16>
    %254 = vector.shape_cast %253 : vector<1x128x128xbf16> to vector<128x128xbf16>
    %cst_150 = arith.constant dense<0.000000e+00> : vector<9x128xf32>
    %255 = tpu.matmul %252, %254, %cst_150 {dimension_numbers = #tpu.dot_dimension_numbers<[1], [0], [0], [1], [0, 0, 1, 1], [], []>} : vector<9x128xbf16>, vector<128x128xbf16>, vector<9x128xf32> -> vector<9x128xf32>
    %256 = arith.addf %251, %255 : vector<9x128xf32>
    %257 = vector.extract_strided_slice %25 {offsets = [414, 0], sizes = [9, 128], strides = [1, 1]} : vector<576x128xbf16> to vector<9x128xbf16>
    %c46 = arith.constant 46 : index
    %c0_151 = arith.constant 0 : index
    %c0_152 = arith.constant 0 : index
    %258 = vector.load %arg5[%c46, %c0_151, %c0_152] : memref<64x128x128xbf16, #tpu.memory_space<vmem>>, vector<1x128x128xbf16>
    %259 = vector.shape_cast %258 : vector<1x128x128xbf16> to vector<128x128xbf16>
    %cst_153 = arith.constant dense<0.000000e+00> : vector<9x128xf32>
    %260 = tpu.matmul %257, %259, %cst_153 {dimension_numbers = #tpu.dot_dimension_numbers<[1], [0], [0], [1], [0, 0, 1, 1], [], []>} : vector<9x128xbf16>, vector<128x128xbf16>, vector<9x128xf32> -> vector<9x128xf32>
    %261 = arith.addf %256, %260 : vector<9x128xf32>
    %262 = vector.extract_strided_slice %25 {offsets = [423, 0], sizes = [9, 128], strides = [1, 1]} : vector<576x128xbf16> to vector<9x128xbf16>
    %c47 = arith.constant 47 : index
    %c0_154 = arith.constant 0 : index
    %c0_155 = arith.constant 0 : index
    %263 = vector.load %arg5[%c47, %c0_154, %c0_155] : memref<64x128x128xbf16, #tpu.memory_space<vmem>>, vector<1x128x128xbf16>
    %264 = vector.shape_cast %263 : vector<1x128x128xbf16> to vector<128x128xbf16>
    %cst_156 = arith.constant dense<0.000000e+00> : vector<9x128xf32>
    %265 = tpu.matmul %262, %264, %cst_156 {dimension_numbers = #tpu.dot_dimension_numbers<[1], [0], [0], [1], [0, 0, 1, 1], [], []>} : vector<9x128xbf16>, vector<128x128xbf16>, vector<9x128xf32> -> vector<9x128xf32>
    %266 = arith.addf %261, %265 : vector<9x128xf32>
    %267 = vector.extract_strided_slice %25 {offsets = [432, 0], sizes = [9, 128], strides = [1, 1]} : vector<576x128xbf16> to vector<9x128xbf16>
    %c48 = arith.constant 48 : index
    %c0_157 = arith.constant 0 : index
    %c0_158 = arith.constant 0 : index
    %268 = vector.load %arg5[%c48, %c0_157, %c0_158] : memref<64x128x128xbf16, #tpu.memory_space<vmem>>, vector<1x128x128xbf16>
    %269 = vector.shape_cast %268 : vector<1x128x128xbf16> to vector<128x128xbf16>
    %cst_159 = arith.constant dense<0.000000e+00> : vector<9x128xf32>
    %270 = tpu.matmul %267, %269, %cst_159 {dimension_numbers = #tpu.dot_dimension_numbers<[1], [0], [0], [1], [0, 0, 1, 1], [], []>} : vector<9x128xbf16>, vector<128x128xbf16>, vector<9x128xf32> -> vector<9x128xf32>
    %271 = arith.addf %266, %270 : vector<9x128xf32>
    %272 = vector.extract_strided_slice %25 {offsets = [441, 0], sizes = [9, 128], strides = [1, 1]} : vector<576x128xbf16> to vector<9x128xbf16>
    %c49 = arith.constant 49 : index
    %c0_160 = arith.constant 0 : index
    %c0_161 = arith.constant 0 : index
    %273 = vector.load %arg5[%c49, %c0_160, %c0_161] : memref<64x128x128xbf16, #tpu.memory_space<vmem>>, vector<1x128x128xbf16>
    %274 = vector.shape_cast %273 : vector<1x128x128xbf16> to vector<128x128xbf16>
    %cst_162 = arith.constant dense<0.000000e+00> : vector<9x128xf32>
    %275 = tpu.matmul %272, %274, %cst_162 {dimension_numbers = #tpu.dot_dimension_numbers<[1], [0], [0], [1], [0, 0, 1, 1], [], []>} : vector<9x128xbf16>, vector<128x128xbf16>, vector<9x128xf32> -> vector<9x128xf32>
    %276 = arith.addf %271, %275 : vector<9x128xf32>
    %277 = vector.extract_strided_slice %25 {offsets = [450, 0], sizes = [9, 128], strides = [1, 1]} : vector<576x128xbf16> to vector<9x128xbf16>
    %c50 = arith.constant 50 : index
    %c0_163 = arith.constant 0 : index
    %c0_164 = arith.constant 0 : index
    %278 = vector.load %arg5[%c50, %c0_163, %c0_164] : memref<64x128x128xbf16, #tpu.memory_space<vmem>>, vector<1x128x128xbf16>
    %279 = vector.shape_cast %278 : vector<1x128x128xbf16> to vector<128x128xbf16>
    %cst_165 = arith.constant dense<0.000000e+00> : vector<9x128xf32>
    %280 = tpu.matmul %277, %279, %cst_165 {dimension_numbers = #tpu.dot_dimension_numbers<[1], [0], [0], [1], [0, 0, 1, 1], [], []>} : vector<9x128xbf16>, vector<128x128xbf16>, vector<9x128xf32> -> vector<9x128xf32>
    %281 = arith.addf %276, %280 : vector<9x128xf32>
    %282 = vector.extract_strided_slice %25 {offsets = [459, 0], sizes = [9, 128], strides = [1, 1]} : vector<576x128xbf16> to vector<9x128xbf16>
    %c51 = arith.constant 51 : index
    %c0_166 = arith.constant 0 : index
    %c0_167 = arith.constant 0 : index
    %283 = vector.load %arg5[%c51, %c0_166, %c0_167] : memref<64x128x128xbf16, #tpu.memory_space<vmem>>, vector<1x128x128xbf16>
    %284 = vector.shape_cast %283 : vector<1x128x128xbf16> to vector<128x128xbf16>
    %cst_168 = arith.constant dense<0.000000e+00> : vector<9x128xf32>
    %285 = tpu.matmul %282, %284, %cst_168 {dimension_numbers = #tpu.dot_dimension_numbers<[1], [0], [0], [1], [0, 0, 1, 1], [], []>} : vector<9x128xbf16>, vector<128x128xbf16>, vector<9x128xf32> -> vector<9x128xf32>
    %286 = arith.addf %281, %285 : vector<9x128xf32>
    %287 = vector.extract_strided_slice %25 {offsets = [468, 0], sizes = [9, 128], strides = [1, 1]} : vector<576x128xbf16> to vector<9x128xbf16>
    %c52 = arith.constant 52 : index
    %c0_169 = arith.constant 0 : index
    %c0_170 = arith.constant 0 : index
    %288 = vector.load %arg5[%c52, %c0_169, %c0_170] : memref<64x128x128xbf16, #tpu.memory_space<vmem>>, vector<1x128x128xbf16>
    %289 = vector.shape_cast %288 : vector<1x128x128xbf16> to vector<128x128xbf16>
    %cst_171 = arith.constant dense<0.000000e+00> : vector<9x128xf32>
    %290 = tpu.matmul %287, %289, %cst_171 {dimension_numbers = #tpu.dot_dimension_numbers<[1], [0], [0], [1], [0, 0, 1, 1], [], []>} : vector<9x128xbf16>, vector<128x128xbf16>, vector<9x128xf32> -> vector<9x128xf32>
    %291 = arith.addf %286, %290 : vector<9x128xf32>
    %292 = vector.extract_strided_slice %25 {offsets = [477, 0], sizes = [9, 128], strides = [1, 1]} : vector<576x128xbf16> to vector<9x128xbf16>
    %c53 = arith.constant 53 : index
    %c0_172 = arith.constant 0 : index
    %c0_173 = arith.constant 0 : index
    %293 = vector.load %arg5[%c53, %c0_172, %c0_173] : memref<64x128x128xbf16, #tpu.memory_space<vmem>>, vector<1x128x128xbf16>
    %294 = vector.shape_cast %293 : vector<1x128x128xbf16> to vector<128x128xbf16>
    %cst_174 = arith.constant dense<0.000000e+00> : vector<9x128xf32>
    %295 = tpu.matmul %292, %294, %cst_174 {dimension_numbers = #tpu.dot_dimension_numbers<[1], [0], [0], [1], [0, 0, 1, 1], [], []>} : vector<9x128xbf16>, vector<128x128xbf16>, vector<9x128xf32> -> vector<9x128xf32>
    %296 = arith.addf %291, %295 : vector<9x128xf32>
    %297 = vector.extract_strided_slice %25 {offsets = [486, 0], sizes = [9, 128], strides = [1, 1]} : vector<576x128xbf16> to vector<9x128xbf16>
    %c54 = arith.constant 54 : index
    %c0_175 = arith.constant 0 : index
    %c0_176 = arith.constant 0 : index
    %298 = vector.load %arg5[%c54, %c0_175, %c0_176] : memref<64x128x128xbf16, #tpu.memory_space<vmem>>, vector<1x128x128xbf16>
    %299 = vector.shape_cast %298 : vector<1x128x128xbf16> to vector<128x128xbf16>
    %cst_177 = arith.constant dense<0.000000e+00> : vector<9x128xf32>
    %300 = tpu.matmul %297, %299, %cst_177 {dimension_numbers = #tpu.dot_dimension_numbers<[1], [0], [0], [1], [0, 0, 1, 1], [], []>} : vector<9x128xbf16>, vector<128x128xbf16>, vector<9x128xf32> -> vector<9x128xf32>
    %301 = arith.addf %296, %300 : vector<9x128xf32>
    %302 = vector.extract_strided_slice %25 {offsets = [495, 0], sizes = [9, 128], strides = [1, 1]} : vector<576x128xbf16> to vector<9x128xbf16>
    %c55 = arith.constant 55 : index
    %c0_178 = arith.constant 0 : index
    %c0_179 = arith.constant 0 : index
    %303 = vector.load %arg5[%c55, %c0_178, %c0_179] : memref<64x128x128xbf16, #tpu.memory_space<vmem>>, vector<1x128x128xbf16>
    %304 = vector.shape_cast %303 : vector<1x128x128xbf16> to vector<128x128xbf16>
    %cst_180 = arith.constant dense<0.000000e+00> : vector<9x128xf32>
    %305 = tpu.matmul %302, %304, %cst_180 {dimension_numbers = #tpu.dot_dimension_numbers<[1], [0], [0], [1], [0, 0, 1, 1], [], []>} : vector<9x128xbf16>, vector<128x128xbf16>, vector<9x128xf32> -> vector<9x128xf32>
    %306 = arith.addf %301, %305 : vector<9x128xf32>
    %307 = vector.extract_strided_slice %25 {offsets = [504, 0], sizes = [9, 128], strides = [1, 1]} : vector<576x128xbf16> to vector<9x128xbf16>
    %c56 = arith.constant 56 : index
    %c0_181 = arith.constant 0 : index
    %c0_182 = arith.constant 0 : index
    %308 = vector.load %arg5[%c56, %c0_181, %c0_182] : memref<64x128x128xbf16, #tpu.memory_space<vmem>>, vector<1x128x128xbf16>
    %309 = vector.shape_cast %308 : vector<1x128x128xbf16> to vector<128x128xbf16>
    %cst_183 = arith.constant dense<0.000000e+00> : vector<9x128xf32>
    %310 = tpu.matmul %307, %309, %cst_183 {dimension_numbers = #tpu.dot_dimension_numbers<[1], [0], [0], [1], [0, 0, 1, 1], [], []>} : vector<9x128xbf16>, vector<128x128xbf16>, vector<9x128xf32> -> vector<9x128xf32>
    %311 = arith.addf %306, %310 : vector<9x128xf32>
    %312 = vector.extract_strided_slice %25 {offsets = [513, 0], sizes = [9, 128], strides = [1, 1]} : vector<576x128xbf16> to vector<9x128xbf16>
    %c57 = arith.constant 57 : index
    %c0_184 = arith.constant 0 : index
    %c0_185 = arith.constant 0 : index
    %313 = vector.load %arg5[%c57, %c0_184, %c0_185] : memref<64x128x128xbf16, #tpu.memory_space<vmem>>, vector<1x128x128xbf16>
    %314 = vector.shape_cast %313 : vector<1x128x128xbf16> to vector<128x128xbf16>
    %cst_186 = arith.constant dense<0.000000e+00> : vector<9x128xf32>
    %315 = tpu.matmul %312, %314, %cst_186 {dimension_numbers = #tpu.dot_dimension_numbers<[1], [0], [0], [1], [0, 0, 1, 1], [], []>} : vector<9x128xbf16>, vector<128x128xbf16>, vector<9x128xf32> -> vector<9x128xf32>
    %316 = arith.addf %311, %315 : vector<9x128xf32>
    %317 = vector.extract_strided_slice %25 {offsets = [522, 0], sizes = [9, 128], strides = [1, 1]} : vector<576x128xbf16> to vector<9x128xbf16>
    %c58 = arith.constant 58 : index
    %c0_187 = arith.constant 0 : index
    %c0_188 = arith.constant 0 : index
    %318 = vector.load %arg5[%c58, %c0_187, %c0_188] : memref<64x128x128xbf16, #tpu.memory_space<vmem>>, vector<1x128x128xbf16>
    %319 = vector.shape_cast %318 : vector<1x128x128xbf16> to vector<128x128xbf16>
    %cst_189 = arith.constant dense<0.000000e+00> : vector<9x128xf32>
    %320 = tpu.matmul %317, %319, %cst_189 {dimension_numbers = #tpu.dot_dimension_numbers<[1], [0], [0], [1], [0, 0, 1, 1], [], []>} : vector<9x128xbf16>, vector<128x128xbf16>, vector<9x128xf32> -> vector<9x128xf32>
    %321 = arith.addf %316, %320 : vector<9x128xf32>
    %322 = vector.extract_strided_slice %25 {offsets = [531, 0], sizes = [9, 128], strides = [1, 1]} : vector<576x128xbf16> to vector<9x128xbf16>
    %c59 = arith.constant 59 : index
    %c0_190 = arith.constant 0 : index
    %c0_191 = arith.constant 0 : index
    %323 = vector.load %arg5[%c59, %c0_190, %c0_191] : memref<64x128x128xbf16, #tpu.memory_space<vmem>>, vector<1x128x128xbf16>
    %324 = vector.shape_cast %323 : vector<1x128x128xbf16> to vector<128x128xbf16>
    %cst_192 = arith.constant dense<0.000000e+00> : vector<9x128xf32>
    %325 = tpu.matmul %322, %324, %cst_192 {dimension_numbers = #tpu.dot_dimension_numbers<[1], [0], [0], [1], [0, 0, 1, 1], [], []>} : vector<9x128xbf16>, vector<128x128xbf16>, vector<9x128xf32> -> vector<9x128xf32>
    %326 = arith.addf %321, %325 : vector<9x128xf32>
    %327 = vector.extract_strided_slice %25 {offsets = [540, 0], sizes = [9, 128], strides = [1, 1]} : vector<576x128xbf16> to vector<9x128xbf16>
    %c60 = arith.constant 60 : index
    %c0_193 = arith.constant 0 : index
    %c0_194 = arith.constant 0 : index
    %328 = vector.load %arg5[%c60, %c0_193, %c0_194] : memref<64x128x128xbf16, #tpu.memory_space<vmem>>, vector<1x128x128xbf16>
    %329 = vector.shape_cast %328 : vector<1x128x128xbf16> to vector<128x128xbf16>
    %cst_195 = arith.constant dense<0.000000e+00> : vector<9x128xf32>
    %330 = tpu.matmul %327, %329, %cst_195 {dimension_numbers = #tpu.dot_dimension_numbers<[1], [0], [0], [1], [0, 0, 1, 1], [], []>} : vector<9x128xbf16>, vector<128x128xbf16>, vector<9x128xf32> -> vector<9x128xf32>
    %331 = arith.addf %326, %330 : vector<9x128xf32>
    %332 = vector.extract_strided_slice %25 {offsets = [549, 0], sizes = [9, 128], strides = [1, 1]} : vector<576x128xbf16> to vector<9x128xbf16>
    %c61 = arith.constant 61 : index
    %c0_196 = arith.constant 0 : index
    %c0_197 = arith.constant 0 : index
    %333 = vector.load %arg5[%c61, %c0_196, %c0_197] : memref<64x128x128xbf16, #tpu.memory_space<vmem>>, vector<1x128x128xbf16>
    %334 = vector.shape_cast %333 : vector<1x128x128xbf16> to vector<128x128xbf16>
    %cst_198 = arith.constant dense<0.000000e+00> : vector<9x128xf32>
    %335 = tpu.matmul %332, %334, %cst_198 {dimension_numbers = #tpu.dot_dimension_numbers<[1], [0], [0], [1], [0, 0, 1, 1], [], []>} : vector<9x128xbf16>, vector<128x128xbf16>, vector<9x128xf32> -> vector<9x128xf32>
    %336 = arith.addf %331, %335 : vector<9x128xf32>
    %337 = vector.extract_strided_slice %25 {offsets = [558, 0], sizes = [9, 128], strides = [1, 1]} : vector<576x128xbf16> to vector<9x128xbf16>
    %c62 = arith.constant 62 : index
    %c0_199 = arith.constant 0 : index
    %c0_200 = arith.constant 0 : index
    %338 = vector.load %arg5[%c62, %c0_199, %c0_200] : memref<64x128x128xbf16, #tpu.memory_space<vmem>>, vector<1x128x128xbf16>
    %339 = vector.shape_cast %338 : vector<1x128x128xbf16> to vector<128x128xbf16>
    %cst_201 = arith.constant dense<0.000000e+00> : vector<9x128xf32>
    %340 = tpu.matmul %337, %339, %cst_201 {dimension_numbers = #tpu.dot_dimension_numbers<[1], [0], [0], [1], [0, 0, 1, 1], [], []>} : vector<9x128xbf16>, vector<128x128xbf16>, vector<9x128xf32> -> vector<9x128xf32>
    %341 = arith.addf %336, %340 : vector<9x128xf32>
    %342 = vector.extract_strided_slice %25 {offsets = [567, 0], sizes = [9, 128], strides = [1, 1]} : vector<576x128xbf16> to vector<9x128xbf16>
    %c63 = arith.constant 63 : index
    %c0_202 = arith.constant 0 : index
    %c0_203 = arith.constant 0 : index
    %343 = vector.load %arg5[%c63, %c0_202, %c0_203] : memref<64x128x128xbf16, #tpu.memory_space<vmem>>, vector<1x128x128xbf16>
    %344 = vector.shape_cast %343 : vector<1x128x128xbf16> to vector<128x128xbf16>
    %cst_204 = arith.constant dense<0.000000e+00> : vector<9x128xf32>
    %345 = tpu.matmul %342, %344, %cst_204 {dimension_numbers = #tpu.dot_dimension_numbers<[1], [0], [0], [1], [0, 0, 1, 1], [], []>} : vector<9x128xbf16>, vector<128x128xbf16>, vector<9x128xf32> -> vector<9x128xf32>
    %346 = arith.addf %341, %345 : vector<9x128xf32>
    %347 = arith.truncf %346 : vector<9x128xf32> to vector<9x128xbf16>
    %c0_205 = arith.constant 0 : index
    %c0_206 = arith.constant 0 : index
    %348 = vector.load %arg7[%c0_205, %c0_206] : memref<1x1000xf32, #tpu.memory_space<vmem>>, vector<1x1000xf32>
    %349 = vector.extract_strided_slice %347 {offsets = [0, 0], sizes = [1, 128], strides = [1, 1]} : vector<9x128xbf16> to vector<1x128xbf16>
    %c0_207 = arith.constant 0 : index
    %c0_208 = arith.constant 0 : index
    %c0_209 = arith.constant 0 : index
    %350 = vector.load %arg6[%c0_207, %c0_208, %c0_209] : memref<9x128x1000xbf16, #tpu.memory_space<vmem>>, vector<1x128x1000xbf16>
    %351 = vector.shape_cast %350 : vector<1x128x1000xbf16> to vector<128x1000xbf16>
    %cst_210 = arith.constant dense<0.000000e+00> : vector<1x1000xf32>
    %352 = tpu.matmul %349, %351, %cst_210 {dimension_numbers = #tpu.dot_dimension_numbers<[1], [0], [0], [1], [0, 0, 1, 1], [], []>} : vector<1x128xbf16>, vector<128x1000xbf16>, vector<1x1000xf32> -> vector<1x1000xf32>
    %353 = arith.addf %348, %352 : vector<1x1000xf32>
    %354 = vector.extract_strided_slice %347 {offsets = [1, 0], sizes = [1, 128], strides = [1, 1]} : vector<9x128xbf16> to vector<1x128xbf16>
    %c1_211 = arith.constant 1 : index
    %c0_212 = arith.constant 0 : index
    %c0_213 = arith.constant 0 : index
    %355 = vector.load %arg6[%c1_211, %c0_212, %c0_213] : memref<9x128x1000xbf16, #tpu.memory_space<vmem>>, vector<1x128x1000xbf16>
    %356 = vector.shape_cast %355 : vector<1x128x1000xbf16> to vector<128x1000xbf16>
    %cst_214 = arith.constant dense<0.000000e+00> : vector<1x1000xf32>
    %357 = tpu.matmul %354, %356, %cst_214 {dimension_numbers = #tpu.dot_dimension_numbers<[1], [0], [0], [1], [0, 0, 1, 1], [], []>} : vector<1x128xbf16>, vector<128x1000xbf16>, vector<1x1000xf32> -> vector<1x1000xf32>
    %358 = arith.addf %353, %357 : vector<1x1000xf32>
    %359 = vector.extract_strided_slice %347 {offsets = [2, 0], sizes = [1, 128], strides = [1, 1]} : vector<9x128xbf16> to vector<1x128xbf16>
    %c2_215 = arith.constant 2 : index
    %c0_216 = arith.constant 0 : index
    %c0_217 = arith.constant 0 : index
    %360 = vector.load %arg6[%c2_215, %c0_216, %c0_217] : memref<9x128x1000xbf16, #tpu.memory_space<vmem>>, vector<1x128x1000xbf16>
    %361 = vector.shape_cast %360 : vector<1x128x1000xbf16> to vector<128x1000xbf16>
    %cst_218 = arith.constant dense<0.000000e+00> : vector<1x1000xf32>
    %362 = tpu.matmul %359, %361, %cst_218 {dimension_numbers = #tpu.dot_dimension_numbers<[1], [0], [0], [1], [0, 0, 1, 1], [], []>} : vector<1x128xbf16>, vector<128x1000xbf16>, vector<1x1000xf32> -> vector<1x1000xf32>
    %363 = arith.addf %358, %362 : vector<1x1000xf32>
    %364 = vector.extract_strided_slice %347 {offsets = [3, 0], sizes = [1, 128], strides = [1, 1]} : vector<9x128xbf16> to vector<1x128xbf16>
    %c3_219 = arith.constant 3 : index
    %c0_220 = arith.constant 0 : index
    %c0_221 = arith.constant 0 : index
    %365 = vector.load %arg6[%c3_219, %c0_220, %c0_221] : memref<9x128x1000xbf16, #tpu.memory_space<vmem>>, vector<1x128x1000xbf16>
    %366 = vector.shape_cast %365 : vector<1x128x1000xbf16> to vector<128x1000xbf16>
    %cst_222 = arith.constant dense<0.000000e+00> : vector<1x1000xf32>
    %367 = tpu.matmul %364, %366, %cst_222 {dimension_numbers = #tpu.dot_dimension_numbers<[1], [0], [0], [1], [0, 0, 1, 1], [], []>} : vector<1x128xbf16>, vector<128x1000xbf16>, vector<1x1000xf32> -> vector<1x1000xf32>
    %368 = arith.addf %363, %367 : vector<1x1000xf32>
    %369 = vector.extract_strided_slice %347 {offsets = [4, 0], sizes = [1, 128], strides = [1, 1]} : vector<9x128xbf16> to vector<1x128xbf16>
    %c4_223 = arith.constant 4 : index
    %c0_224 = arith.constant 0 : index
    %c0_225 = arith.constant 0 : index
    %370 = vector.load %arg6[%c4_223, %c0_224, %c0_225] : memref<9x128x1000xbf16, #tpu.memory_space<vmem>>, vector<1x128x1000xbf16>
    %371 = vector.shape_cast %370 : vector<1x128x1000xbf16> to vector<128x1000xbf16>
    %cst_226 = arith.constant dense<0.000000e+00> : vector<1x1000xf32>
    %372 = tpu.matmul %369, %371, %cst_226 {dimension_numbers = #tpu.dot_dimension_numbers<[1], [0], [0], [1], [0, 0, 1, 1], [], []>} : vector<1x128xbf16>, vector<128x1000xbf16>, vector<1x1000xf32> -> vector<1x1000xf32>
    %373 = arith.addf %368, %372 : vector<1x1000xf32>
    %374 = vector.extract_strided_slice %347 {offsets = [5, 0], sizes = [1, 128], strides = [1, 1]} : vector<9x128xbf16> to vector<1x128xbf16>
    %c5_227 = arith.constant 5 : index
    %c0_228 = arith.constant 0 : index
    %c0_229 = arith.constant 0 : index
    %375 = vector.load %arg6[%c5_227, %c0_228, %c0_229] : memref<9x128x1000xbf16, #tpu.memory_space<vmem>>, vector<1x128x1000xbf16>
    %376 = vector.shape_cast %375 : vector<1x128x1000xbf16> to vector<128x1000xbf16>
    %cst_230 = arith.constant dense<0.000000e+00> : vector<1x1000xf32>
    %377 = tpu.matmul %374, %376, %cst_230 {dimension_numbers = #tpu.dot_dimension_numbers<[1], [0], [0], [1], [0, 0, 1, 1], [], []>} : vector<1x128xbf16>, vector<128x1000xbf16>, vector<1x1000xf32> -> vector<1x1000xf32>
    %378 = arith.addf %373, %377 : vector<1x1000xf32>
    %379 = vector.extract_strided_slice %347 {offsets = [6, 0], sizes = [1, 128], strides = [1, 1]} : vector<9x128xbf16> to vector<1x128xbf16>
    %c6_231 = arith.constant 6 : index
    %c0_232 = arith.constant 0 : index
    %c0_233 = arith.constant 0 : index
    %380 = vector.load %arg6[%c6_231, %c0_232, %c0_233] : memref<9x128x1000xbf16, #tpu.memory_space<vmem>>, vector<1x128x1000xbf16>
    %381 = vector.shape_cast %380 : vector<1x128x1000xbf16> to vector<128x1000xbf16>
    %cst_234 = arith.constant dense<0.000000e+00> : vector<1x1000xf32>
    %382 = tpu.matmul %379, %381, %cst_234 {dimension_numbers = #tpu.dot_dimension_numbers<[1], [0], [0], [1], [0, 0, 1, 1], [], []>} : vector<1x128xbf16>, vector<128x1000xbf16>, vector<1x1000xf32> -> vector<1x1000xf32>
    %383 = arith.addf %378, %382 : vector<1x1000xf32>
    %384 = vector.extract_strided_slice %347 {offsets = [7, 0], sizes = [1, 128], strides = [1, 1]} : vector<9x128xbf16> to vector<1x128xbf16>
    %c7_235 = arith.constant 7 : index
    %c0_236 = arith.constant 0 : index
    %c0_237 = arith.constant 0 : index
    %385 = vector.load %arg6[%c7_235, %c0_236, %c0_237] : memref<9x128x1000xbf16, #tpu.memory_space<vmem>>, vector<1x128x1000xbf16>
    %386 = vector.shape_cast %385 : vector<1x128x1000xbf16> to vector<128x1000xbf16>
    %cst_238 = arith.constant dense<0.000000e+00> : vector<1x1000xf32>
    %387 = tpu.matmul %384, %386, %cst_238 {dimension_numbers = #tpu.dot_dimension_numbers<[1], [0], [0], [1], [0, 0, 1, 1], [], []>} : vector<1x128xbf16>, vector<128x1000xbf16>, vector<1x1000xf32> -> vector<1x1000xf32>
    %388 = arith.addf %383, %387 : vector<1x1000xf32>
    %389 = vector.extract_strided_slice %347 {offsets = [8, 0], sizes = [1, 128], strides = [1, 1]} : vector<9x128xbf16> to vector<1x128xbf16>
    %c8_239 = arith.constant 8 : index
    %c0_240 = arith.constant 0 : index
    %c0_241 = arith.constant 0 : index
    %390 = vector.load %arg6[%c8_239, %c0_240, %c0_241] : memref<9x128x1000xbf16, #tpu.memory_space<vmem>>, vector<1x128x1000xbf16>
    %391 = vector.shape_cast %390 : vector<1x128x1000xbf16> to vector<128x1000xbf16>
    %cst_242 = arith.constant dense<0.000000e+00> : vector<1x1000xf32>
    %392 = tpu.matmul %389, %391, %cst_242 {dimension_numbers = #tpu.dot_dimension_numbers<[1], [0], [0], [1], [0, 0, 1, 1], [], []>} : vector<1x128xbf16>, vector<128x1000xbf16>, vector<1x1000xf32> -> vector<1x1000xf32>
    %393 = arith.addf %388, %392 : vector<1x1000xf32>
    %c0_243 = arith.constant 0 : index
    %c0_244 = arith.constant 0 : index
    %394 = vector.load %arg8[%c0_243, %c0_244] : memref<1x1000xf32, #tpu.memory_space<vmem>>, vector<1x1000xf32>
    tpu.vector_store %arg8[%c0_243, %c0_244], %393 {strides = array<i32>} : memref<1x1000xf32, #tpu.memory_space<vmem>>, vector<1x1000xf32>,
    return
  }
  func.func @transform_0(%arg0: i32) -> (i32, i32) {
    %c0_i32 = arith.constant 0 : i32
    %c0_i32_0 = arith.constant 0 : i32
    %c0_i32_1 = arith.constant 0 : i32
    return %c0_i32, %c0_i32_0 : i32, i32
  }
  func.func @transform_1(%arg0: i32) -> (i32, i32) {
    %c0_i32 = arith.constant 0 : i32
    %c0_i32_0 = arith.constant 0 : i32
    %c0_i32_1 = arith.constant 0 : i32
    return %c0_i32, %c0_i32_0 : i32, i32
  }
  func.func @transform_2(%arg0: i32) -> (i32, i32) {
    %c0_i32 = arith.constant 0 : i32
    %c0_i32_0 = arith.constant 0 : i32
    %c0_i32_1 = arith.constant 0 : i32
    return %c0_i32, %c0_i32_0 : i32, i32
  }
  func.func @transform_3(%arg0: i32) -> (i32, i32) {
    %c0_i32 = arith.constant 0 : i32
    %c0_i32_0 = arith.constant 0 : i32
    %c0_i32_1 = arith.constant 0 : i32
    return %c0_i32, %c0_i32_0 : i32, i32
  }
  func.func @transform_4(%arg0: i32) -> (i32, i32, i32) {
    %c0_i32 = arith.constant 0 : i32
    %c0_i32_0 = arith.constant 0 : i32
    %c0_i32_1 = arith.constant 0 : i32
    %c0_i32_2 = arith.constant 0 : i32
    return %c0_i32, %c0_i32_0, %c0_i32_1 : i32, i32, i32
  }
  func.func @transform_5(%arg0: i32) -> (i32, i32, i32) {
    %c0_i32 = arith.constant 0 : i32
    %c0_i32_0 = arith.constant 0 : i32
    %c0_i32_1 = arith.constant 0 : i32
    %c0_i32_2 = arith.constant 0 : i32
    return %c0_i32, %c0_i32_0, %c0_i32_1 : i32, i32, i32
  }
  func.func @transform_6(%arg0: i32) -> (i32, i32) {
    %c0_i32 = arith.constant 0 : i32
    %c0_i32_0 = arith.constant 0 : i32
    %c0_i32_1 = arith.constant 0 : i32
    return %c0_i32, %c0_i32_0 : i32, i32
  }
  func.func @transform_7(%arg0: i32) -> (i32, i32) {
    %c0_i32 = arith.constant 0 : i32
    %c0_i32_0 = arith.constant 0 : i32
    %c0_i32_1 = arith.constant 0 : i32
    return %c0_i32, %c0_i32_0 : i32, i32
  }
}

</mosaic_0001>

<bundles_post_ra>
// kernel: test_model8_forward.1
= control target key start
LH: loop header
LB: loop body
LE: loop exit
PB: predicated region body
PF: predicated region fallthrough
CT: control target
= control target key end

     0   :  { %s26482_s0 = inlined_call_operand.vmem [shape: f32[576,192], index: 0, kind: input, shape index: {}]   ;;  %s26483_s1 = inlined_call_operand.vmem [shape: f32[192,128], index: 1, kind: input, shape index: {}]   ;;  %s26484_s2 = inlined_call_operand.vmem [shape: f32[1,128], index: 2, kind: input, shape index: {}]   ;;  %s26485_s3 = inlined_call_operand.vmem [shape: f32[1,128], index: 3, kind: input, shape index: {}]   ;;  %s26486_s4 = inlined_call_operand.vmem [shape: bf16[64,128,128], index: 4, kind: input, shape index: {}]   ;;  %s26487_s5 = inlined_call_operand.vmem [shape: bf16[9,128,1000], index: 5, kind: input, shape index: {}]   ;;  %s26488_s6 = inlined_call_operand.vmem [shape: f32[1,1000], index: 6, kind: input, shape index: {}]   ;;  %s26489_s7 = inlined_call_operand.hbm [shape: f32[1,1000], index: 7, kind: output, shape index: {}]  }
   0x1   :  { %v186_v0 = vld [vmem:[%s26483_s1 + $0x78] sm:$0xff]  ;;  %v185_v1 = vld [vmem:[%s26483_s1 + $0x70] sm:$0xff]  ;;  %v184_v2 = vld [vmem:[%s26483_s1 + $0x68] sm:$0xff] }
   0x2   :  { %412 = vmatpush.msra.mxu0 %v186_v0  ;;  %v194_v3 = vld [vmem:[%s26483_s1 + $0xb8] sm:$0xff]  ;;  %v193_v4 = vld [vmem:[%s26483_s1 + $0xb0] sm:$0xff]  ;;  %v183_v5 = vld [vmem:[%s26483_s1 + $0x60] sm:$0xff] }
   0x3   :  { %653 = vmatpush.msra.mxu1 %v194_v3  ;;  %v192_v6 = vld [vmem:[%s26483_s1 + $0xa8] sm:$0xff]  ;;  %v182_v7 = vld [vmem:[%s26483_s1 + $0x58] sm:$0xff]  ;;  %v191_v8 = vld [vmem:[%s26483_s1 + $0xa0] sm:$0xff] }
   0x4   :  { %413 = vmatpush.msra.mxu0 %v185_v1  ;;  %v181_v9 = vld [vmem:[%s26483_s1 + $0x50] sm:$0xff]  ;;  %v190_v10 = vld [vmem:[%s26483_s1 + $0x98] sm:$0xff]  ;;  %v180_v11 = vld [vmem:[%s26483_s1 + $0x48] sm:$0xff] }
   0x5   :  { %654 = vmatpush.msra.mxu1 %v193_v4 }
   0x6   :  { %414 = vmatpush.msra.mxu0 %v184_v2 }
   0x7   :  { %655 = vmatpush.msra.mxu1 %v192_v6 }
   0x8   :  { %415 = vmatpush.msra.mxu0 %v183_v5 }
   0x9   :  { %656 = vmatpush.msra.mxu1 %v191_v8 }
   0xa   :  { %416 = vmatpush.msra.mxu0 %v182_v7 }
   0xb   :  { %12 = vsyncpa [#allocation3], 0  ;;  %v189_v12 = vld [vmem:[%s26483_s1 + $0x90] sm:$0xff]  ;;  %v179_v13 = vld [vmem:[%s26483_s1 + $0x40] sm:$0xff]  ;;  %657 = vmatpush.msra.mxu1 %v190_v10  ;;  %vm195_vm0 = vcmask 523264   ;;  %vm7720_vm5 = vcmask 1040384  }
   0xc   :  { %417 = vmatpush.msra.mxu0 %v181_v9  ;;  %v188_v14 = vld [vmem:[%s26483_s1 + $0x88] sm:$0xff]  ;;  %v178_v15 = vld [vmem:[%s26483_s1 + $0x38] sm:$0xff]  ;;  %v187_v16 = vld [vmem:[%s26483_s1 + $0x80] sm:$0xff]  ;;  %vm7722_vm6 = vcmask 1042434   ;;  %vm7724_vm7 = vcmask 1041408   ;;  %vm7726_vm8 = vcmask 1044484  }
   0xd   :  { %658 = vmatpush.msra.mxu1 %v189_v12  ;;  %v177_v17 = vld [vmem:[%s26483_s1 + $0x30] sm:$0xff]  ;;  %v28_v18 = vld [vmem:[%s26482_s0 + $0x8] sm:$0xff]  ;;  %v175_v20 = vld [vmem:[%s26483_s1 + $0x20] sm:$0xff]  ;;  %vm7728_vm9 = vcmask 1046534   ;;  %vm7730_vm10 = vcmask 1045508   ;;  %vm7732_vm11 = vcmask 1043456  }
   0xe   :  { %418 = vmatpush.msra.mxu0 %v180_v11  ;;  %v176_v19 = vld [vmem:[%s26483_s1 + $0x28] sm:$0xff]  ;;  %v174_v21 = vld [vmem:[%s26483_s1 + $0x18] sm:$0xff]  ;;  %v173_v22 = vld [vmem:[%s26483_s1 + $0x10] sm:$0xff] }
   0xf   :  { %659 = vmatpush.msra.mxu1 %v188_v14  ;;  %v30_v23 = vld [vmem:[%s26482_s0 + $0x18] sm:$0xff]  ;;  %v172_v24 = vld [vmem:[%s26483_s1 + $0x8] sm:$0xff]  ;;  %v171_v25 = vld [vmem:[%s26483_s1] sm:$0xff] }
  0x10   :  { %419 = vmatpush.msra.mxu0 %v179_v13  ;;  %v27_v26 = vld [vmem:[%s26482_s0] sm:$0xff]  ;;  %v32_v27 = vld [vmem:[%s26482_s0 + $0x28] sm:$0xff]  ;;  %v29_v28 = vld [vmem:[%s26482_s0 + $0x10] sm:$0xff] }
  0x11   :  { %660 = vmatpush.msra.mxu1 %v187_v16  ;;  %v34_v29 = vld [vmem:[%s26482_s0 + $0x38] sm:$0xff]  ;;  %v31_v30 = vld [vmem:[%s26482_s0 + $0x20] sm:$0xff]  ;;  %v36_v31 = vld [vmem:[%s26482_s0 + $0x48] sm:$0xff] }
  0x12   :  { %420 = vmatpush.msra.mxu0 %v178_v15  ;;  %11880 = vmatmul.msk.f32.vlgmr.msra.gmra.mxu1 %vm195_vm0, %v28_v18  ;;  %v33_v32 = vld [vmem:[%s26482_s0 + $0x30] sm:$0xff]  ;;  %v38_v33 = vld [vmem:[%s26482_s0 + $0x58] sm:$0xff]  ;;  %v35_v34 = vld [vmem:[%s26482_s0 + $0x40] sm:$0xff] }
  0x13   :  { %v40_v35 = vld [vmem:[%s26482_s0 + $0x68] sm:$0xff]  ;;  %v37_v36 = vld [vmem:[%s26482_s0 + $0x50] sm:$0xff]  ;;  %v42_v37 = vld [vmem:[%s26482_s0 + $0x78] sm:$0xff] }
  0x14   :  { %421 = vmatpush.msra.mxu0 %v177_v17  ;;  %v39_v38 = vld [vmem:[%s26482_s0 + $0x60] sm:$0xff]  ;;  %v44_v39 = vld [vmem:[%s26482_s0 + $0x88] sm:$0xff]  ;;  %v41_v40 = vld [vmem:[%s26482_s0 + $0x70] sm:$0xff] }
  0x15   :  { %v46_v41 = vld [vmem:[%s26482_s0 + $0x98] sm:$0xff]  ;;  %v43_v42 = vld [vmem:[%s26482_s0 + $0x80] sm:$0xff]  ;;  %v48_v43 = vld [vmem:[%s26482_s0 + $0xa8] sm:$0xff] }
  0x16   :  { %422 = vmatpush.msra.mxu0 %v176_v19  ;;  %v45_v44 = vld [vmem:[%s26482_s0 + $0x90] sm:$0xff]  ;;  %v50_v45 = vld [vmem:[%s26482_s0 + $0xb8] sm:$0xff]  ;;  %v47_v46 = vld [vmem:[%s26482_s0 + $0xa0] sm:$0xff] }
  0x17   :  { %v52_v47 = vld [vmem:[%s26482_s0 + $0xc8] sm:$0xff]  ;;  %v49_v48 = vld [vmem:[%s26482_s0 + $0xb0] sm:$0xff]  ;;  %v54_v49 = vld [vmem:[%s26482_s0 + $0xd8] sm:$0xff] }
  0x18   :  { %423 = vmatpush.msra.mxu0 %v175_v20  ;;  %v51_v50 = vld [vmem:[%s26482_s0 + $0xc0] sm:$0xff]  ;;  %v56_v51 = vld [vmem:[%s26482_s0 + $0xe8] sm:$0xff]  ;;  %v53_v52 = vld [vmem:[%s26482_s0 + $0xd0] sm:$0xff] }
  0x19   :  { %v58_v53 = vld [vmem:[%s26482_s0 + $0xf8] sm:$0xff]  ;;  %v55_v54 = vld [vmem:[%s26482_s0 + $0xe0] sm:$0xff]  ;;  %v60_v56 = vld [vmem:[%s26482_s0 + $0x108] sm:$0xff] }
  0x1a   :  { %424 = vmatpush.msra.mxu0 %v174_v21  ;;  %11881 = vmatmul.msk.f32.gmra.mxu1 %vm195_vm0, %v30_v23  ;;  %v57_v57 = vld [vmem:[%s26482_s0 + $0xf0] sm:$0xff]  ;;  %v62_v59 = vld [vmem:[%s26482_s0 + $0x118] sm:$0xff]  ;;  %v59_v61 = vld [vmem:[%s26482_s0 + $0x100] sm:$0xff] }
  0x1b   :  { %v64_v63 = vld [vmem:[%s26482_s0 + $0x128] sm:$0xff]  ;;  %v61_v1 = vld [vmem:[%s26482_s0 + $0x110] sm:$0xff]  ;;  %v66_v3 = vld [vmem:[%s26482_s0 + $0x138] sm:$0xff] }
  0x1c   :  { %425 = vmatpush.msra.mxu0 %v173_v22  ;;  %v63_v5 = vld [vmem:[%s26482_s0 + $0x120] sm:$0xff]  ;;  %v68_v7 = vld [vmem:[%s26482_s0 + $0x148] sm:$0xff]  ;;  %v65_v9 = vld [vmem:[%s26482_s0 + $0x130] sm:$0xff] }
  0x1d   :  { %v70_v11 = vld [vmem:[%s26482_s0 + $0x158] sm:$0xff]  ;;  %v67_v13 = vld [vmem:[%s26482_s0 + $0x140] sm:$0xff]  ;;  %v72_v15 = vld [vmem:[%s26482_s0 + $0x168] sm:$0xff] }
  0x1e   :  { %426 = vmatpush.msra.mxu0 %v172_v24  ;;  %v69_v17 = vld [vmem:[%s26482_s0 + $0x150] sm:$0xff]  ;;  %v74_v19 = vld [vmem:[%s26482_s0 + $0x178] sm:$0xff]  ;;  %v71_v21 = vld [vmem:[%s26482_s0 + $0x160] sm:$0xff] }
  0x1f   :  { %v76_v23 = vld [vmem:[%s26482_s0 + $0x188] sm:$0xff] }
  0x20   :  { %427 = vmatpush.msra.mxu0 %v171_v25  ;;  %v73_v25 = vld [vmem:[%s26482_s0 + $0x170] sm:$0xff] }
  0x21   :  { %428 = vmatmul.f32.vlgmr.msra.gmra.mxu0 %v27_v26 }
  0x22   :  { %11882 = vmatmul.msk.f32.gmra.mxu1 %vm195_vm0, %v32_v27  ;;  %v78_v27 = vld [vmem:[%s26482_s0 + $0x198] sm:$0xff] }
  0x29   :  { %431 = vmatmul.f32.gmra.mxu0 %v29_v28 }
  0x2a   :  { %11883 = vmatmul.msk.f32.gmra.mxu1 %vm195_vm0, %v34_v29  ;;  %v75_v29 = vld [vmem:[%s26482_s0 + $0x180] sm:$0xff] }
  0x31   :  { %434 = vmatmul.f32.gmra.mxu0 %v31_v30 }
  0x32   :  { %11884 = vmatmul.msk.f32.gmra.mxu1 %vm195_vm0, %v36_v31  ;;  %v80_v31 = vld [vmem:[%s26482_s0 + $0x1a8] sm:$0xff] }
  0x39   :  { %437 = vmatmul.f32.gmra.mxu0 %v33_v32 }
  0x3a   :  { %11885 = vmatmul.msk.f32.gmra.mxu1 %vm195_vm0, %v38_v33  ;;  %v77_v33 = vld [vmem:[%s26482_s0 + $0x190] sm:$0xff] }
  0x41   :  { %440 = vmatmul.f32.gmra.mxu0 %v35_v34 }
  0x42   :  { %11886 = vmatmul.msk.f32.gmra.mxu1 %vm195_vm0, %v40_v35  ;;  %v82_v35 = vld [vmem:[%s26482_s0 + $0x1b8] sm:$0xff] }
  0x49   :  { %443 = vmatmul.f32.gmra.mxu0 %v37_v36 }
  0x4a   :  { %11887 = vmatmul.msk.f32.gmra.mxu1 %vm195_vm0, %v42_v37  ;;  %v79_v37 = vld [vmem:[%s26482_s0 + $0x1a0] sm:$0xff] }
  0x51   :  { %446 = vmatmul.f32.gmra.mxu0 %v39_v38 }
  0x52   :  { %11888 = vmatmul.msk.f32.gmra.mxu1 %vm195_vm0, %v44_v39  ;;  %v84_v39 = vld [vmem:[%s26482_s0 + $0x1c8] sm:$0xff] }
  0x59   :  { %449 = vmatmul.f32.gmra.mxu0 %v41_v40 }
  0x5a   :  { %11889 = vmatmul.msk.f32.gmra.mxu1 %vm195_vm0, %v46_v41  ;;  %v81_v41 = vld [vmem:[%s26482_s0 + $0x1b0] sm:$0xff] }
  0x61   :  { %452 = vmatmul.f32.gmra.mxu0 %v43_v42 }
  0x62   :  { %11890 = vmatmul.msk.f32.gmra.mxu1 %vm195_vm0, %v48_v43  ;;  %v86_v43 = vld [vmem:[%s26482_s0 + $0x1d8] sm:$0xff] }
  0x69   :  { %455 = vmatmul.f32.gmra.mxu0 %v45_v44 }
  0x6a   :  { %11891 = vmatmul.msk.f32.gmra.mxu1 %vm195_vm0, %v50_v45  ;;  %v83_v45 = vld [vmem:[%s26482_s0 + $0x1c0] sm:$0xff] }
  0x71   :  { %458 = vmatmul.f32.gmra.mxu0 %v47_v46 }
  0x72   :  { %11892 = vmatmul.msk.f32.gmra.mxu1 %vm195_vm0, %v52_v47  ;;  %v88_v47 = vld [vmem:[%s26482_s0 + $0x1e8] sm:$0xff] }
  0x79   :  { %461 = vmatmul.f32.gmra.mxu0 %v49_v48 }
  0x7a   :  { %11893 = vmatmul.msk.f32.gmra.mxu1 %vm195_vm0, %v54_v49  ;;  %v85_v49 = vld [vmem:[%s26482_s0 + $0x1d0] sm:$0xff] }
  0x81   :  { %464 = vmatmul.f32.gmra.mxu0 %v51_v50 }
  0x82   :  { %11894 = vmatmul.msk.f32.gmra.mxu1 %vm195_vm0, %v56_v51  ;;  %v90_v51 = vld [vmem:[%s26482_s0 + $0x1f8] sm:$0xff] }
  0x89   :  { %467 = vmatmul.f32.gmra.mxu0 %v53_v52 }
  0x8a   :  { %11895 = vmatmul.msk.f32.gmra.mxu1 %vm195_vm0, %v58_v53  ;;  %v87_v53 = vld [vmem:[%s26482_s0 + $0x1e0] sm:$0xff] }
  0x8f   :  { %v19175_v55 = vpop.f32.mrf.mxu1 }
  0x91   :  { %470 = vmatmul.f32.gmra.mxu0 %v55_v54 }
  0x92   :  { %11896 = vmatmul.msk.f32.gmra.mxu1 %vm195_vm0, %v60_v56  ;;  %v92_v56 = vld [vmem:[%s26482_s0 + $0x208] sm:$0xff] }
  0x97   :  { %v19184_v58 = vpop.f32.mrf.mxu1 }
  0x99   :  { %473 = vmatmul.f32.gmra.mxu0 %v57_v57 }
  0x9a   :  { %11897 = vmatmul.msk.f32.gmra.mxu1 %vm195_vm0, %v62_v59  ;;  %v89_v59 = vld [vmem:[%s26482_s0 + $0x1f0] sm:$0xff] }
  0x9e   :  { %v19190_v60 = vpop.f32.mrf.mxu0 }
  0x9f   :  { %v19195_v62 = vpop.f32.mrf.mxu1 }
  0xa1   :  { %476 = vmatmul.f32.gmra.mxu0 %v59_v61 }
  0xa2   :  { %11898 = vmatmul.msk.f32.gmra.mxu1 %vm195_vm0, %v64_v63  ;;  %v94_v63 = vld [vmem:[%s26482_s0 + $0x218] sm:$0xff] }
  0xa6   :  { %v19201_v0 = vpop.f32.mrf.mxu0 }
  0xa7   :  { %v19206_v2 = vpop.f32.mrf.mxu1 }
  0xa9   :  { %479 = vmatmul.f32.gmra.mxu0 %v61_v1 }
  0xaa   :  { %11899 = vmatmul.msk.f32.gmra.mxu1 %vm195_vm0, %v66_v3  ;;  %v91_v3 = vld [vmem:[%s26482_s0 + $0x200] sm:$0xff] }
  0xae   :  { %v19212_v4 = vpop.f32.mrf.mxu0 }
  0xaf   :  { %v19217_v6 = vpop.f32.mrf.mxu1 }
  0xb1   :  { %482 = vmatmul.f32.gmra.mxu0 %v63_v5 }
  0xb2   :  { %11900 = vmatmul.msk.f32.gmra.mxu1 %vm195_vm0, %v68_v7  ;;  %v96_v7 = vld [vmem:[%s26482_s0 + $0x228] sm:$0xff] }
  0xb6   :  { %v19223_v8 = vpop.f32.mrf.mxu0 }
  0xb7   :  { %v19228_v10 = vpop.f32.mrf.mxu1 }
  0xb9   :  { %485 = vmatmul.f32.gmra.mxu0 %v65_v9 }
  0xba   :  { %11901 = vmatmul.msk.f32.gmra.mxu1 %vm195_vm0, %v70_v11  ;;  %v93_v11 = vld [vmem:[%s26482_s0 + $0x210] sm:$0xff] }
  0xbe   :  { %v19234_v12 = vpop.f32.mrf.mxu0 }
  0xbf   :  { %v19239_v14 = vpop.f32.mrf.mxu1 }
  0xc1   :  { %488 = vmatmul.f32.gmra.mxu0 %v67_v13 }
  0xc2   :  { %11902 = vmatmul.msk.f32.gmra.mxu1 %vm195_vm0, %v72_v15  ;;  %v98_v15 = vld [vmem:[%s26482_s0 + $0x238] sm:$0xff] }
  0xc6   :  { %v19245_v16 = vpop.f32.mrf.mxu0 }
  0xc7   :  { %v19250_v18 = vpop.f32.mrf.mxu1 }
  0xc9   :  { %491 = vmatmul.f32.gmra.mxu0 %v69_v17 }
  0xca   :  { %11903 = vmatmul.msk.f32.gmra.mxu1 %vm195_vm0, %v74_v19  ;;  %v95_v19 = vld [vmem:[%s26482_s0 + $0x220] sm:$0xff] }
  0xce   :  { %v19256_v20 = vpop.f32.mrf.mxu0 }
  0xcf   :  { %v19261_v22 = vpop.f32.mrf.mxu1 }
  0xd1   :  { %494 = vmatmul.f32.gmra.mxu0 %v71_v21 }
  0xd2   :  { %11904 = vmatmul.msk.f32.gmra.mxu1 %vm195_vm0, %v76_v23  ;;  %v100_v23 = vld [vmem:[%s26482_s0 + $0x248] sm:$0xff] }
  0xd6   :  { %v19267_v24 = vpop.f32.mrf.mxu0 }
  0xd7   :  { %v19272_v26 = vpop.f32.mrf.mxu1 }
  0xd9   :  { %497 = vmatmul.f32.gmra.mxu0 %v73_v25 }
  0xda   :  { %11905 = vmatmul.msk.f32.gmra.mxu1 %vm195_vm0, %v78_v27  ;;  %v97_v27 = vld [vmem:[%s26482_s0 + $0x230] sm:$0xff] }
  0xde   :  { %v19278_v28 = vpop.f32.mrf.mxu0 }
  0xdf   :  { %v19283_v30 = vpop.f32.mrf.mxu1 }
  0xe1   :  { %500 = vmatmul.f32.gmra.mxu0 %v75_v29 }
  0xe2   :  { %11906 = vmatmul.msk.f32.gmra.mxu1 %vm195_vm0, %v80_v31  ;;  %v102_v31 = vld [vmem:[%s26482_s0 + $0x258] sm:$0xff] }
  0xe6   :  { %v19289_v32 = vpop.f32.mrf.mxu0 }
  0xe7   :  { %v19294_v34 = vpop.f32.mrf.mxu1 }
  0xe9   :  { %503 = vmatmul.f32.gmra.mxu0 %v77_v33 }
  0xea   :  { %11907 = vmatmul.msk.f32.gmra.mxu1 %vm195_vm0, %v82_v35  ;;  %v99_v35 = vld [vmem:[%s26482_s0 + $0x240] sm:$0xff] }
  0xee   :  { %v19300_v36 = vpop.f32.mrf.mxu0 }
  0xef   :  { %v19305_v38 = vpop.f32.mrf.mxu1 }
  0xf1   :  { %506 = vmatmul.f32.gmra.mxu0 %v79_v37 }
  0xf2   :  { %11908 = vmatmul.msk.f32.gmra.mxu1 %vm195_vm0, %v84_v39  ;;  %v104_v39 = vld [vmem:[%s26482_s0 + $0x268] sm:$0xff] }
  0xf6   :  { %v19311_v40 = vpop.f32.mrf.mxu0 }
  0xf7   :  { %v19316_v42 = vpop.f32.mrf.mxu1 }
  0xf9   :  { %509 = vmatmul.f32.gmra.mxu0 %v81_v41 }
  0xfa   :  { %11909 = vmatmul.msk.f32.gmra.mxu1 %vm195_vm0, %v86_v43  ;;  %v101_v43 = vld [vmem:[%s26482_s0 + $0x250] sm:$0xff] }
  0xfe   :  { %v19322_v44 = vpop.f32.mrf.mxu0 }
  0xff   :  { %v19327_v46 = vpop.f32.mrf.mxu1 }
 0x101   :  { %512 = vmatmul.f32.gmra.mxu0 %v83_v45 }
 0x102   :  { %11910 = vmatmul.msk.f32.gmra.mxu1 %vm195_vm0, %v88_v47  ;;  %v106_v47 = vld [vmem:[%s26482_s0 + $0x278] sm:$0xff] }
 0x106   :  { %v19333_v48 = vpop.f32.mrf.mxu0 }
 0x107   :  { %v19338_v50 = vpop.f32.mrf.mxu1 }
 0x109   :  { %515 = vmatmul.f32.gmra.mxu0 %v85_v49 }
 0x10a   :  { %11911 = vmatmul.msk.f32.gmra.mxu1 %vm195_vm0, %v90_v51  ;;  %v103_v51 = vld [vmem:[%s26482_s0 + $0x260] sm:$0xff] }
 0x10e   :  { %v19344_v52 = vpop.f32.mrf.mxu0 }
 0x10f   :  { %v19349_v54 = vpop.f32.mrf.mxu1 }
 0x111   :  { %518 = vmatmul.f32.gmra.mxu0 %v87_v53 }
 0x112   :  { %11912 = vmatmul.msk.f32.gmra.mxu1 %vm195_vm0, %v92_v56  ;;  %v108_v56 = vld [vmem:[%s26482_s0 + $0x288] sm:$0xff] }
 0x116   :  { %v19355_v57 = vpop.f32.mrf.mxu0 }
 0x117   :  { %v19360_v61 = vpop.f32.mrf.mxu1 }
 0x119   :  { %521 = vmatmul.f32.gmra.mxu0 %v89_v59 }
 0x11a   :  { %11913 = vmatmul.msk.f32.gmra.mxu1 %vm195_vm0, %v94_v63  ;;  %v105_v63 = vld [vmem:[%s26482_s0 + $0x270] sm:$0xff] }
 0x11e   :  { %v19366_v1 = vpop.f32.mrf.mxu0 }
 0x11f   :  { %v19371_v5 = vpop.f32.mrf.mxu1 }
 0x121   :  { %524 = vmatmul.f32.gmra.mxu0 %v91_v3 }
 0x122   :  { %11914 = vmatmul.msk.f32.gmra.mxu1 %vm195_vm0, %v96_v7  ;;  %v110_v7 = vld [vmem:[%s26482_s0 + $0x298] sm:$0xff] }
 0x126   :  { %v19377_v9 = vpop.f32.mrf.mxu0 }
 0x127   :  { %v19382_v13 = vpop.f32.mrf.mxu1 }
 0x129   :  { %527 = vmatmul.f32.gmra.mxu0 %v93_v11 }
 0x12a   :  { %11915 = vmatmul.msk.f32.gmra.mxu1 %vm195_vm0, %v98_v15  ;;  %v107_v15 = vld [vmem:[%s26482_s0 + $0x280] sm:$0xff] }
 0x12e   :  { %v19388_v17 = vpop.f32.mrf.mxu0 }
 0x12f   :  { %v19393_v21 = vpop.f32.mrf.mxu1 }
 0x131   :  { %530 = vmatmul.f32.gmra.mxu0 %v95_v19 }
 0x132   :  { %11916 = vmatmul.msk.f32.gmra.mxu1 %vm195_vm0, %v100_v23  ;;  %v112_v23 = vld [vmem:[%s26482_s0 + $0x2a8] sm:$0xff] }
 0x136   :  { %v19399_v25 = vpop.f32.mrf.mxu0 }
 0x137   :  { %v19404_v29 = vpop.f32.mrf.mxu1 }
 0x139   :  { %533 = vmatmul.f32.gmra.mxu0 %v97_v27 }
 0x13a   :  { %11917 = vmatmul.msk.f32.gmra.mxu1 %vm195_vm0, %v102_v31  ;;  %v109_v31 = vld [vmem:[%s26482_s0 + $0x290] sm:$0xff] }
 0x13e   :  { %v19410_v33 = vpop.f32.mrf.mxu0 }
 0x13f   :  { %v19415_v37 = vpop.f32.mrf.mxu1 }
 0x141   :  { %536 = vmatmul.f32.gmra.mxu0 %v99_v35 }
 0x142   :  { %11918 = vmatmul.msk.f32.gmra.mxu1 %vm195_vm0, %v104_v39  ;;  %v114_v39 = vld [vmem:[%s26482_s0 + $0x2b8] sm:$0xff] }
 0x146   :  { %v19421_v41 = vpop.f32.mrf.mxu0 }
 0x147   :  { %v19426_v45 = vpop.f32.mrf.mxu1 }
 0x149   :  { %539 = vmatmul.f32.gmra.mxu0 %v101_v43 }
 0x14a   :  { %11919 = vmatmul.msk.f32.gmra.mxu1 %vm195_vm0, %v106_v47  ;;  %v111_v47 = vld [vmem:[%s26482_s0 + $0x2a0] sm:$0xff] }
 0x14e   :  { %v19432_v49 = vpop.f32.mrf.mxu0 }
 0x14f   :  { %v19437_v53 = vpop.f32.mrf.mxu1 }
 0x151   :  { %542 = vmatmul.f32.gmra.mxu0 %v103_v51 }
 0x152   :  { %11920 = vmatmul.msk.f32.gmra.mxu1 %vm195_vm0, %v108_v56  ;;  %v116_v56 = vld [vmem:[%s26482_s0 + $0x2c8] sm:$0xff] }
 0x156   :  { %v19443_v59 = vpop.f32.mrf.mxu0 }
 0x157   :  { %v19448_v3 = vpop.f32.mrf.mxu1 }
 0x159   :  { %545 = vmatmul.f32.gmra.mxu0 %v105_v63 }
 0x15a   :  { %11921 = vmatmul.msk.f32.gmra.mxu1 %vm195_vm0, %v110_v7  ;;  %v113_v7 = vld [vmem:[%s26482_s0 + $0x2b0] sm:$0xff] }
 0x15e   :  { %v19454_v11 = vpop.f32.mrf.mxu0 }
 0x15f   :  { %v19459_v19 = vpop.f32.mrf.mxu1 }
 0x161   :  { %548 = vmatmul.f32.gmra.mxu0 %v107_v15 }
 0x162   :  { %11922 = vmatmul.msk.f32.gmra.mxu1 %vm195_vm0, %v112_v23  ;;  %v118_v23 = vld [vmem:[%s26482_s0 + $0x2d8] sm:$0xff] }
 0x166   :  { %v19465_v27 = vpop.f32.mrf.mxu0 }
 0x167   :  { %v19470_v35 = vpop.f32.mrf.mxu1 }
 0x168   :  { %26552 = vst [vmem:[#allocation5_spill] sm:$0xff] %v19470_v35 }
 0x169   :  { %551 = vmatmul.f32.gmra.mxu0 %v109_v31 }
 0x16a   :  { %11923 = vmatmul.msk.f32.gmra.mxu1 %vm195_vm0, %v114_v39  ;;  %v115_v39 = vld [vmem:[%s26482_s0 + $0x2c0] sm:$0xff] }
 0x16e   :  { %v19476_v43 = vpop.f32.mrf.mxu0 }
 0x16f   :  { %v19481_v51 = vpop.f32.mrf.mxu1 }
 0x170   :  { %26553 = vst [vmem:[#allocation6_spill] sm:$0xff] %v19481_v51 }
 0x171   :  { %554 = vmatmul.f32.gmra.mxu0 %v111_v47 }
 0x172   :  { %11924 = vmatmul.msk.f32.gmra.mxu1 %vm195_vm0, %v116_v56  ;;  %v120_v56 = vld [vmem:[%s26482_s0 + $0x2e8] sm:$0xff] }
 0x176   :  { %v19487_v63 = vpop.f32.mrf.mxu0 }
 0x177   :  { %v19492_v15 = vpop.f32.mrf.mxu1 }
 0x178   :  { %26554 = vst [vmem:[#allocation7_spill] sm:$0xff] %v19492_v15 }
 0x179   :  { %557 = vmatmul.f32.gmra.mxu0 %v113_v7 }
 0x17a   :  { %11925 = vmatmul.msk.f32.gmra.mxu1 %vm195_vm0, %v118_v23  ;;  %v117_v23 = vld [vmem:[%s26482_s0 + $0x2d0] sm:$0xff] }
 0x17e   :  { %v19498_v31 = vpop.f32.mrf.mxu0 }
 0x17f   :  { %26555 = vst [vmem:[#allocation8_spill] sm:$0xff] %v19498_v31  ;;  %v19503_v47 = vpop.f32.mrf.mxu1 }
 0x180   :  { %26556 = vst [vmem:[#allocation9_spill] sm:$0xff] %v19503_v47 }
 0x181   :  { %560 = vmatmul.f32.gmra.mxu0 %v115_v39  ;;  %v122_v39 = vld [vmem:[%s26482_s0 + $0x2f8] sm:$0xff] }
 0x182   :  { %11926 = vmatmul.msk.f32.gmra.mxu1 %vm195_vm0, %v120_v56  ;;  %v119_v56 = vld [vmem:[%s26482_s0 + $0x2e0] sm:$0xff] }
 0x186   :  { %v19509_v7 = vpop.f32.mrf.mxu0 }
 0x187   :  { %26557 = vst [vmem:[#allocation10_spill] sm:$0xff] %v19509_v7  ;;  %v19514_v15 = vpop.f32.mrf.mxu1 }
 0x188   :  { %26558 = vst [vmem:[#allocation11_spill] sm:$0xff] %v19514_v15 }
 0x189   :  { %563 = vmatmul.f32.gmra.mxu0 %v117_v23  ;;  %v124_v23 = vld [vmem:[%s26482_s0 + $0x308] sm:$0xff] }
 0x18a   :  { %11927 = vmatmul.msk.f32.gmra.mxu1 %vm195_vm0, %v122_v39  ;;  %v121_v39 = vld [vmem:[%s26482_s0 + $0x2f0] sm:$0xff] }
 0x18e   :  { %v19520_v47 = vpop.f32.mrf.mxu0 }
 0x18f   :  { %26559 = vst [vmem:[#allocation12_spill] sm:$0xff] %v19520_v47  ;;  %v19525_v7 = vpop.f32.mrf.mxu1 }
 0x190   :  { %26560 = vst [vmem:[#allocation13_spill] sm:$0xff] %v19525_v7 }
 0x191   :  { %566 = vmatmul.f32.gmra.mxu0 %v119_v56  ;;  %v126_v56 = vld [vmem:[%s26482_s0 + $0x318] sm:$0xff] }
 0x192   :  { %11928 = vmatmul.msk.f32.gmra.mxu1 %vm195_vm0, %v124_v23  ;;  %v123_v23 = vld [vmem:[%s26482_s0 + $0x300] sm:$0xff] }
 0x196   :  { %v19531_v15 = vpop.f32.mrf.mxu0 }
 0x197   :  { %26561 = vst [vmem:[#allocation14_spill] sm:$0xff] %v19531_v15  ;;  %v19536_v47 = vpop.f32.mrf.mxu1 }
 0x198   :  { %26562 = vst [vmem:[#allocation15_spill] sm:$0xff] %v19536_v47 }
 0x199   :  { %569 = vmatmul.f32.gmra.mxu0 %v121_v39  ;;  %v128_v39 = vld [vmem:[%s26482_s0 + $0x328] sm:$0xff] }
 0x19a   :  { %11929 = vmatmul.msk.f32.gmra.mxu1 %vm195_vm0, %v126_v56  ;;  %v125_v56 = vld [vmem:[%s26482_s0 + $0x310] sm:$0xff] }
 0x19e   :  { %v19542_v7 = vpop.f32.mrf.mxu0 }
 0x19f   :  { %26563 = vst [vmem:[#allocation16_spill] sm:$0xff] %v19542_v7  ;;  %v19547_v15 = vpop.f32.mrf.mxu1 }
 0x1a0   :  { %26564 = vst [vmem:[#allocation17_spill] sm:$0xff] %v19547_v15 }
 0x1a1   :  { %572 = vmatmul.f32.gmra.mxu0 %v123_v23  ;;  %v130_v23 = vld [vmem:[%s26482_s0 + $0x338] sm:$0xff] }
 0x1a2   :  { %11930 = vmatmul.msk.f32.gmra.mxu1 %vm195_vm0, %v128_v39  ;;  %v127_v39 = vld [vmem:[%s26482_s0 + $0x320] sm:$0xff] }
 0x1a6   :  { %v19553_v47 = vpop.f32.mrf.mxu0 }
 0x1a7   :  { %26565 = vst [vmem:[#allocation18_spill] sm:$0xff] %v19553_v47  ;;  %v19558_v7 = vpop.f32.mrf.mxu1 }
 0x1a8   :  { %26566 = vst [vmem:[#allocation19_spill] sm:$0xff] %v19558_v7 }
 0x1a9   :  { %575 = vmatmul.f32.gmra.mxu0 %v125_v56  ;;  %v132_v56 = vld [vmem:[%s26482_s0 + $0x348] sm:$0xff] }
 0x1aa   :  { %11931 = vmatmul.msk.f32.gmra.mxu1 %vm195_vm0, %v130_v23  ;;  %v129_v23 = vld [vmem:[%s26482_s0 + $0x330] sm:$0xff] }
 0x1ae   :  { %v19564_v15 = vpop.f32.mrf.mxu0 }
 0x1af   :  { %26567 = vst [vmem:[#allocation20_spill] sm:$0xff] %v19564_v15  ;;  %v19569_v47 = vpop.f32.mrf.mxu1 }
 0x1b0   :  { %26568 = vst [vmem:[#allocation21_spill] sm:$0xff] %v19569_v47 }
 0x1b1   :  { %578 = vmatmul.f32.gmra.mxu0 %v127_v39  ;;  %v134_v39 = vld [vmem:[%s26482_s0 + $0x358] sm:$0xff] }
 0x1b2   :  { %11932 = vmatmul.msk.f32.gmra.mxu1 %vm195_vm0, %v132_v56  ;;  %v131_v56 = vld [vmem:[%s26482_s0 + $0x340] sm:$0xff] }
 0x1b6   :  { %v19575_v7 = vpop.f32.mrf.mxu0 }
 0x1b7   :  { %26569 = vst [vmem:[#allocation22_spill] sm:$0xff] %v19575_v7  ;;  %v19580_v15 = vpop.f32.mrf.mxu1 }
 0x1b8   :  { %26570 = vst [vmem:[#allocation23_spill] sm:$0xff] %v19580_v15 }
 0x1b9   :  { %581 = vmatmul.f32.gmra.mxu0 %v129_v23  ;;  %v136_v23 = vld [vmem:[%s26482_s0 + $0x368] sm:$0xff] }
 0x1ba   :  { %11933 = vmatmul.msk.f32.gmra.mxu1 %vm195_vm0, %v134_v39  ;;  %v133_v39 = vld [vmem:[%s26482_s0 + $0x350] sm:$0xff] }
 0x1be   :  { %v19586_v47 = vpop.f32.mrf.mxu0 }
 0x1bf   :  { %26571 = vst [vmem:[#allocation24_spill] sm:$0xff] %v19586_v47  ;;  %v19591_v7 = vpop.f32.mrf.mxu1 }
 0x1c0   :  { %26572 = vst [vmem:[#allocation25_spill] sm:$0xff] %v19591_v7 }
 0x1c1   :  { %584 = vmatmul.f32.gmra.mxu0 %v131_v56  ;;  %v138_v56 = vld [vmem:[%s26482_s0 + $0x378] sm:$0xff] }
 0x1c2   :  { %11934 = vmatmul.msk.f32.gmra.mxu1 %vm195_vm0, %v136_v23  ;;  %v135_v23 = vld [vmem:[%s26482_s0 + $0x360] sm:$0xff] }
 0x1c6   :  { %v19597_v15 = vpop.f32.mrf.mxu0 }
 0x1c7   :  { %26573 = vst [vmem:[#allocation26_spill] sm:$0xff] %v19597_v15  ;;  %v19602_v47 = vpop.f32.mrf.mxu1 }
 0x1c8   :  { %26574 = vst [vmem:[#allocation27_spill] sm:$0xff] %v19602_v47 }
 0x1c9   :  { %587 = vmatmul.f32.gmra.mxu0 %v133_v39  ;;  %v140_v39 = vld [vmem:[%s26482_s0 + $0x388] sm:$0xff] }
 0x1ca   :  { %11935 = vmatmul.msk.f32.gmra.mxu1 %vm195_vm0, %v138_v56  ;;  %v137_v56 = vld [vmem:[%s26482_s0 + $0x370] sm:$0xff] }
 0x1ce   :  { %v19608_v7 = vpop.f32.mrf.mxu0 }
 0x1cf   :  { %26575 = vst [vmem:[#allocation28_spill] sm:$0xff] %v19608_v7  ;;  %v19613_v15 = vpop.f32.mrf.mxu1 }
 0x1d0   :  { %26576 = vst [vmem:[#allocation29_spill] sm:$0xff] %v19613_v15 }
 0x1d1   :  { %590 = vmatmul.f32.gmra.mxu0 %v135_v23  ;;  %v142_v23 = vld [vmem:[%s26482_s0 + $0x398] sm:$0xff] }
 0x1d2   :  { %11936 = vmatmul.msk.f32.gmra.mxu1 %vm195_vm0, %v140_v39  ;;  %v139_v39 = vld [vmem:[%s26482_s0 + $0x380] sm:$0xff] }
 0x1d6   :  { %v19619_v47 = vpop.f32.mrf.mxu0 }
 0x1d7   :  { %26577 = vst [vmem:[#allocation30_spill] sm:$0xff] %v19619_v47  ;;  %v19624_v7 = vpop.f32.mrf.mxu1 }
 0x1d8   :  { %26578 = vst [vmem:[#allocation31_spill] sm:$0xff] %v19624_v7 }
 0x1d9   :  { %593 = vmatmul.f32.gmra.mxu0 %v137_v56  ;;  %v144_v56 = vld [vmem:[%s26482_s0 + $0x3a8] sm:$0xff] }
 0x1da   :  { %11937 = vmatmul.msk.f32.gmra.mxu1 %vm195_vm0, %v142_v23  ;;  %v141_v23 = vld [vmem:[%s26482_s0 + $0x390] sm:$0xff] }
 0x1de   :  { %v19630_v15 = vpop.f32.mrf.mxu0 }
 0x1df   :  { %26579 = vst [vmem:[#allocation32_spill] sm:$0xff] %v19630_v15  ;;  %v19635_v47 = vpop.f32.mrf.mxu1 }
 0x1e0   :  { %26580 = vst [vmem:[#allocation33_spill] sm:$0xff] %v19635_v47 }
 0x1e1   :  { %596 = vmatmul.f32.gmra.mxu0 %v139_v39  ;;  %v146_v39 = vld [vmem:[%s26482_s0 + $0x3b8] sm:$0xff] }
 0x1e2   :  { %11938 = vmatmul.msk.f32.gmra.mxu1 %vm195_vm0, %v144_v56  ;;  %v143_v56 = vld [vmem:[%s26482_s0 + $0x3a0] sm:$0xff] }
 0x1e6   :  { %v19641_v7 = vpop.f32.mrf.mxu0 }
 0x1e7   :  { %26581 = vst [vmem:[#allocation34_spill] sm:$0xff] %v19641_v7  ;;  %v19646_v15 = vpop.f32.mrf.mxu1 }
 0x1e8   :  { %26582 = vst [vmem:[#allocation35_spill] sm:$0xff] %v19646_v15 }
 0x1e9   :  { %599 = vmatmul.f32.gmra.mxu0 %v141_v23  ;;  %v148_v23 = vld [vmem:[%s26482_s0 + $0x3c8] sm:$0xff] }
 0x1ea   :  { %11939 = vmatmul.msk.f32.gmra.mxu1 %vm195_vm0, %v146_v39  ;;  %v145_v39 = vld [vmem:[%s26482_s0 + $0x3b0] sm:$0xff] }
 0x1ee   :  { %v19652_v47 = vpop.f32.mrf.mxu0 }
 0x1ef   :  { %26583 = vst [vmem:[#allocation36_spill] sm:$0xff] %v19652_v47  ;;  %v19657_v7 = vpop.f32.mrf.mxu1 }
 0x1f0   :  { %26584 = vst [vmem:[#allocation37_spill] sm:$0xff] %v19657_v7 }
 0x1f1   :  { %602 = vmatmul.f32.gmra.mxu0 %v143_v56  ;;  %v150_v56 = vld [vmem:[%s26482_s0 + $0x3d8] sm:$0xff] }
 0x1f2   :  { %11940 = vmatmul.msk.f32.gmra.mxu1 %vm195_vm0, %v148_v23  ;;  %v147_v23 = vld [vmem:[%s26482_s0 + $0x3c0] sm:$0xff] }
 0x1f6   :  { %v19663_v15 = vpop.f32.mrf.mxu0 }
 0x1f7   :  { %26585 = vst [vmem:[#allocation38_spill] sm:$0xff] %v19663_v15  ;;  %v19668_v47 = vpop.f32.mrf.mxu1 }
 0x1f8   :  { %26586 = vst [vmem:[#allocation39_spill] sm:$0xff] %v19668_v47 }
 0x1f9   :  { %605 = vmatmul.f32.gmra.mxu0 %v145_v39  ;;  %v152_v39 = vld [vmem:[%s26482_s0 + $0x3e8] sm:$0xff] }
 0x1fa   :  { %11941 = vmatmul.msk.f32.gmra.mxu1 %vm195_vm0, %v150_v56  ;;  %v149_v56 = vld [vmem:[%s26482_s0 + $0x3d0] sm:$0xff] }
 0x1fe   :  { %v19674_v7 = vpop.f32.mrf.mxu0 }
 0x1ff   :  { %26587 = vst [vmem:[#allocation40_spill] sm:$0xff] %v19674_v7  ;;  %v19679_v15 = vpop.f32.mrf.mxu1 }
 0x200   :  { %26588 = vst [vmem:[#allocation41_spill] sm:$0xff] %v19679_v15 }
 0x201   :  { %608 = vmatmul.f32.gmra.mxu0 %v147_v23  ;;  %v154_v23 = vld [vmem:[%s26482_s0 + $0x3f8] sm:$0xff] }
 0x202   :  { %11942 = vmatmul.msk.f32.gmra.mxu1 %vm195_vm0, %v152_v39  ;;  %v151_v39 = vld [vmem:[%s26482_s0 + $0x3e0] sm:$0xff] }
 0x206   :  { %v19685_v47 = vpop.f32.mrf.mxu0 }
 0x207   :  { %26589 = vst [vmem:[#allocation42_spill] sm:$0xff] %v19685_v47  ;;  %v19690_v7 = vpop.f32.mrf.mxu1 }
 0x208   :  { %26590 = vst [vmem:[#allocation43_spill] sm:$0xff] %v19690_v7 }
 0x209   :  { %611 = vmatmul.f32.gmra.mxu0 %v149_v56  ;;  %v156_v56 = vld [vmem:[%s26482_s0 + $0x408] sm:$0xff] }
 0x20a   :  { %11943 = vmatmul.msk.f32.gmra.mxu1 %vm195_vm0, %v154_v23  ;;  %v153_v23 = vld [vmem:[%s26482_s0 + $0x3f0] sm:$0xff] }
 0x20e   :  { %v19696_v15 = vpop.f32.mrf.mxu0 }
 0x20f   :  { %26591 = vst [vmem:[#allocation44_spill] sm:$0xff] %v19696_v15  ;;  %v806_v47 = vpop.f32.mrf.mxu1 }
 0x211   :  { %614 = vmatmul.f32.gmra.mxu0 %v151_v39  ;;  %v158_v39 = vld [vmem:[%s26482_s0 + $0x418] sm:$0xff] }
 0x212   :  { %11944 = vmatmul.msk.f32.gmra.mxu1 %vm195_vm0, %v156_v56  ;;  %v155_v56 = vld [vmem:[%s26482_s0 + $0x400] sm:$0xff] }
 0x216   :  { %v19705_v7 = vpop.f32.mrf.mxu0 }
 0x217   :  { %26592 = vst [vmem:[#allocation45_spill] sm:$0xff] %v19705_v7  ;;  %v19710_v15 = vpop.f32.mrf.mxu1 }
 0x218   :  { %26593 = vst [vmem:[#allocation46_spill] sm:$0xff] %v19710_v15 }
 0x219   :  { %617 = vmatmul.f32.gmra.mxu0 %v153_v23  ;;  %v160_v23 = vld [vmem:[%s26482_s0 + $0x428] sm:$0xff] }
 0x21a   :  { %11945 = vmatmul.msk.f32.gmra.mxu1 %vm195_vm0, %v158_v39  ;;  %v157_v39 = vld [vmem:[%s26482_s0 + $0x410] sm:$0xff] }
 0x21e   :  { %v573_v51 = vpop.f32.mrf.mxu0 }
 0x21f   :  { %v19719_v31 = vadd.f32 %v806_v47, %v573_v51  ;;  %v812_v7 = vpop.f32.mrf.mxu1  ;;  %v162_v51 = vld [vmem:[%s26482_s0 + $0x438] sm:$0xff] }
 0x221   :  { %26594 = vst [vmem:[#allocation47_spill] sm:$0xff] %v19719_v31  ;;  %620 = vmatmul.f32.gmra.mxu0 %v155_v56  ;;  %v159_v56 = vld [vmem:[%s26482_s0 + $0x420] sm:$0xff] }
 0x222   :  { %11946 = vmatmul.msk.f32.gmra.mxu1 %vm195_vm0, %v160_v23 }
 0x226   :  { %v19725_v15 = vpop.f32.mrf.mxu0 }
 0x227   :  { %26595 = vst [vmem:[#allocation48_spill] sm:$0xff] %v19725_v15  ;;  %v19730_v35 = vpop.f32.mrf.mxu1 }
 0x228   :  { %26596 = vst [vmem:[#allocation49_spill] sm:$0xff] %v19730_v35 }
 0x229   :  { %623 = vmatmul.f32.gmra.mxu0 %v157_v39  ;;  %v164_v39 = vld [vmem:[%s26482_s0 + $0x448] sm:$0xff] }
 0x22a   :  { %11947 = vmatmul.msk.f32.gmra.mxu1 %vm195_vm0, %v162_v51  ;;  %v161_v51 = vld [vmem:[%s26482_s0 + $0x430] sm:$0xff] }
 0x22e   :  { %v579_v47 = vpop.f32.mrf.mxu0 }
 0x22f   :  { %v19739_v23 = vadd.f32 %v812_v7, %v579_v47  ;;  %v818_v31 = vpop.f32.mrf.mxu1  ;;  %v166_v7 = vld [vmem:[%s26482_s0 + $0x458] sm:$0xff] }
 0x231   :  { %26597 = vst [vmem:[#allocation50_spill] sm:$0xff] %v19739_v23  ;;  %626 = vmatmul.f32.gmra.mxu0 %v159_v56  ;;  %v163_v56 = vld [vmem:[%s26482_s0 + $0x440] sm:$0xff] }
 0x232   :  { %11948 = vmatmul.msk.f32.gmra.mxu1 %vm195_vm0, %v164_v39 }
 0x236   :  { %v19745_v35 = vpop.f32.mrf.mxu0 }
 0x237   :  { %26598 = vst [vmem:[#allocation51_spill] sm:$0xff] %v19745_v35  ;;  %v19750_v15 = vpop.f32.mrf.mxu1  ;;  %v19772_v35 = vadd.f32 %v19184_v58, %v19201_v0  ;;  %v19792_v0 = vadd.f32 %v19206_v2, %v19223_v8 }
 0x238   :  { %26599 = vst [vmem:[#allocation52_spill] sm:$0xff] %v19750_v15 }
 0x239   :  { %629 = vmatmul.f32.gmra.mxu0 %v161_v51  ;;  %v168_v51 = vld [vmem:[%s26482_s0 + $0x468] sm:$0xff]  ;;  %26600 = vst [vmem:[#allocation53_spill] sm:$0xff] %v19772_v35 }
 0x23a   :  { %11949 = vmatmul.msk.f32.gmra.mxu1 %vm195_vm0, %v166_v7  ;;  %v165_v7 = vld [vmem:[%s26482_s0 + $0x450] sm:$0xff] }
 0x23e   :  { %v585_v47 = vpop.f32.mrf.mxu0 }
 0x23f   :  { %v19759_v39 = vadd.f32 %v818_v31, %v585_v47  ;;  %v824_v23 = vpop.f32.mrf.mxu1  ;;  %v170_v47 = vld [vmem:[%s26482_s0 + $0x478] sm:$0xff] }
 0x241   :  { %632 = vmatmul.f32.gmra.mxu0 %v163_v56  ;;  %v19781_v56 = vadd.f32 %v19175_v55, %v19190_v60  ;;  %v19800_v60 = vadd.f32 %v19217_v6, %v19234_v12  ;;  %v19817_v6 = vadd.f32 %v19250_v18, %v19267_v24 }
 0x242   :  { %11950 = vmatmul.msk.f32.gmra.mxu1 %vm195_vm0, %v168_v51  ;;  %v19785_v51 = vadd.f32 %v19195_v62, %v19212_v4 }
 0x243   :  { %v878_v58 = vadd.f32 %v19772_v35, %v19781_v56  ;;  %v19812_v35 = vadd.f32 %v19239_v14, %v19256_v20  ;;  %v19832_v20 = vadd.f32 %v19272_v26, %v19289_v32  ;;  %v19849_v26 = vadd.f32 %v19305_v38, %v19322_v44 }
 0x244   :  { %v19866_v38 = vadd.f32 %v19338_v50, %v19355_v57  ;;  %v19885_v50 = vadd.f32 %v19371_v5, %v19388_v17  ;;  %v19902_v5 = vadd.f32 %v19404_v29, %v19421_v41  ;;  %v19919_v29 = vadd.f32 %v19437_v53, %v19454_v11 }
 0x245   :  { %v879_v55 = vadd.f32 %v878_v58, %v19785_v51 }
 0x246   :  { %v19765_v15 = vpop.f32.mrf.mxu0 }
 0x247   :  { %v19774_v31 = vpop.f32.mrf.mxu1  ;;  %v880_v4 = vadd.f32 %v879_v55, %v19792_v0 }
 0x248   :  { %26601 = vst [vmem:[#allocation54_spill] sm:$0xff] %v19774_v31  ;;  %v167_v31 = vld [vmem:[%s26482_s0 + $0x460] sm:$0xff] }
 0x249   :  { %635 = vmatmul.f32.gmra.mxu0 %v165_v7  ;;  %v881_v8 = vadd.f32 %v880_v4, %v19800_v60 }
 0x24a   :  { %11951 = vmatmul.msk.f32.gmra.mxu1 %vm195_vm0, %v170_v47  ;;  %v19807_v47 = vadd.f32 %v19228_v10, %v19245_v16  ;;  %v169_v10 = vld [vmem:[%s26482_s0 + $0x470] sm:$0xff] }
 0x24c   :  { %v882_v58 = vadd.f32 %v881_v8, %v19807_v47 }
 0x24e   :  { %v591_v7 = vpop.f32.mrf.mxu0  ;;  %v883_v16 = vadd.f32 %v882_v58, %v19812_v35 }
 0x24f   :  { %v19802_v62 = vadd.f32 %v824_v23, %v591_v7  ;;  %v830_v2 = vpop.f32.mrf.mxu1  ;;  %v19827_v23 = vadd.f32 %v19261_v22, %v19278_v28  ;;  %v19844_v22 = vadd.f32 %v19294_v34, %v19311_v40  ;;  %v19861_v34 = vadd.f32 %v19327_v46, %v19344_v52 }
 0x250   :  { %v884_v14 = vadd.f32 %v883_v16, %v19817_v6  ;;  %v19878_v46 = vadd.f32 %v19360_v61, %v19377_v9  ;;  %v19895_v61 = vadd.f32 %v19393_v21, %v19410_v33  ;;  %v19912_v21 = vadd.f32 %v19426_v45, %v19443_v59 }
 0x251   :  { %638 = vmatmul.f32.gmra.mxu0 %v167_v31  ;;  %v19839_v31 = vadd.f32 %v19283_v30, %v19300_v36  ;;  %v19856_v30 = vadd.f32 %v19316_v42, %v19333_v48  ;;  %v19873_v42 = vadd.f32 %v19349_v54, %v19366_v1  ;;  %v19890_v54 = vadd.f32 %v19382_v13, %v19399_v25 }
 0x252   :  { %v885_v24 = vadd.f32 %v884_v14, %v19827_v23  ;;  %v19907_v13 = vadd.f32 %v19415_v37, %v19432_v49  ;;  %v19924_v37 = vadd.f32 %v19448_v3, %v19465_v27  ;;  %v19931_v45 = vadd.f32 %v19459_v19, %v19476_v43  ;;  %v26607_v3 = vld [vmem:[#allocation6_spill] sm:$0xff]  ;;  %v26611_v19 = vld [vmem:[#allocation7_spill] sm:$0xff] }
 0x254   :  { %v886_v7 = vadd.f32 %v885_v24, %v19832_v20  ;;  %26602 = vst [vmem:[#allocation55_spill] sm:$0xff] %v19924_v37 }
 0x255   :  { %26603 = vst [vmem:[#allocation56_spill] sm:$0xff] %v19931_v45 }
 0x256   :  { %v19819_v12 = vpop.f32.mrf.mxu0  ;;  %v887_v55 = vadd.f32 %v886_v7, %v19839_v31 }
 0x257   :  { %v19834_v18 = vpop.f32.mrf.mxu1 }
 0x258   :  { %v888_v4 = vadd.f32 %v887_v55, %v19844_v22 }
 0x259   :  { %641 = vmatmul.f32.gmra.mxu0 %v169_v10 }
 0x25a   :  { %v889_v8 = vadd.f32 %v888_v4, %v19849_v26  ;;  %v26606_v4 = vld [vmem:[#allocation8_spill] sm:$0xff] }
 0x25b   :  { %v19941_v27 = vadd.f32 %v26607_v3, %v26606_v4 }
 0x25c   :  { %v890_v40 = vadd.f32 %v889_v8, %v19856_v30 }
 0x25d   :  { %26608 = vst [vmem:[#allocation8_spill] sm:$0xff] %v19941_v27 }
 0x25e   :  { %v597_v28 = vpop.f32.mrf.mxu0 }
 0x25f   :  { %v19851_v32 = vadd.f32 %v830_v2, %v597_v28  ;;  %v836_v36 = vpop.f32.mrf.mxu1  ;;  %v891_v2 = vadd.f32 %v890_v40, %v19861_v34  ;;  %v26604_v28 = vld [vmem:[#allocation5_spill] sm:$0xff]  ;;  %v26610_v40 = vld [vmem:[#allocation10_spill] sm:$0xff] }
 0x260   :  { %v19936_v53 = vadd.f32 %v26604_v28, %v19487_v63  ;;  %v19948_v43 = vadd.f32 %v26611_v19, %v26610_v40  ;;  %v26622_v28 = vld [vmem:[#allocation18_spill] sm:$0xff]  ;;  %v26626_v40 = vld [vmem:[#allocation17_spill] sm:$0xff] }
 0x261   :  { %v892_v48 = vadd.f32 %v891_v2, %v19866_v38 }
 0x262   :  { %26605 = vst [vmem:[#allocation5_spill] sm:$0xff] %v19936_v53 }
 0x263   :  { %v893_v58 = vadd.f32 %v892_v48, %v19873_v42  ;;  %26612 = vst [vmem:[#allocation10_spill] sm:$0xff] %v19948_v43  ;;  %v26613_v48 = vld [vmem:[#allocation12_spill] sm:$0xff] }
 0x265   :  { %v894_v57 = vadd.f32 %v893_v58, %v19878_v46  ;;  %v26614_v58 = vld [vmem:[#allocation9_spill] sm:$0xff] }
 0x266   :  { %v19868_v44 = vpop.f32.mrf.mxu0 }
 0x267   :  { %v19880_v52 = vpop.f32.mrf.mxu1  ;;  %v895_v10 = vadd.f32 %v894_v57, %v19885_v50  ;;  %v19955_v57 = vadd.f32 %v26614_v58, %v26613_v48  ;;  %v26628_v48 = vld [vmem:[#allocation22_spill] sm:$0xff]  ;;  %v26629_v58 = vld [vmem:[#allocation19_spill] sm:$0xff] }
 0x269   :  { %v896_v16 = vadd.f32 %v895_v10, %v19890_v54  ;;  %26615 = vst [vmem:[#allocation7_spill] sm:$0xff] %v19955_v57  ;;  %v26616_v10 = vld [vmem:[#allocation14_spill] sm:$0xff] }
 0x26b   :  { %v897_v14 = vadd.f32 %v896_v16, %v19895_v61  ;;  %v26617_v16 = vld [vmem:[#allocation11_spill] sm:$0xff] }
 0x26d   :  { %v898_v25 = vadd.f32 %v897_v14, %v19902_v5 }
 0x26e   :  { %v603_v1 = vpop.f32.mrf.mxu0 }
 0x26f   :  { %v19897_v9 = vadd.f32 %v836_v36, %v603_v1  ;;  %v842_v17 = vpop.f32.mrf.mxu1  ;;  %v899_v24 = vadd.f32 %v898_v25, %v19907_v13 }
 0x271   :  { %v900_v41 = vadd.f32 %v899_v24, %v19912_v21  ;;  %v26619_v24 = vld [vmem:[#allocation16_spill] sm:$0xff] }
 0x273   :  { %v901_v7 = vadd.f32 %v900_v41, %v19919_v29  ;;  %v26620_v41 = vld [vmem:[#allocation13_spill] sm:$0xff] }
 0x275   :  { %v902_v59 = vadd.f32 %v901_v7, %v19924_v37  ;;  %v19967_v7 = vadd.f32 %v26620_v41, %v26619_v24  ;;  %v26632_v24 = vld [vmem:[#allocation21_spill] sm:$0xff] }
 0x276   :  { %v19914_v33 = vpop.f32.mrf.mxu0 }
 0x277   :  { %v19926_v49 = vpop.f32.mrf.mxu1  ;;  %v903_v55 = vadd.f32 %v902_v59, %v19931_v45  ;;  %26621 = vst [vmem:[#allocation9_spill] sm:$0xff] %v19967_v7 }
 0x279   :  { %v904_v8 = vadd.f32 %v903_v55, %v19936_v53 }
 0x27b   :  { %v905_v63 = vadd.f32 %v904_v8, %v19941_v27  ;;  %v26625_v8 = vld [vmem:[#allocation20_spill] sm:$0xff] }
 0x27c   :  { %v19979_v19 = vadd.f32 %v26626_v40, %v26625_v8  ;;  %v26637_v40 = vld [vmem:[#allocation28_spill] sm:$0xff] }
 0x27d   :  { %v906_v1 = vadd.f32 %v905_v63, %v19948_v43 }
 0x27e   :  { %v609_v11 = vpop.f32.mrf.mxu0  ;;  %26627 = vst [vmem:[#allocation11_spill] sm:$0xff] %v19979_v19 }
 0x27f   :  { %v19943_v36 = vadd.f32 %v842_v17, %v609_v11  ;;  %v19950_v2 = vpop.f32.mrf.mxu1  ;;  %v19960_v17 = vadd.f32 %v26617_v16, %v26616_v10  ;;  %v907_v25 = vadd.f32 %v906_v1, %v19955_v57  ;;  %v26623_v11 = vld [vmem:[#allocation15_spill] sm:$0xff]  ;;  %v19984_v1 = vadd.f32 %v26629_v58, %v26628_v48 }
 0x280   :  { %v19972_v55 = vadd.f32 %v26623_v11, %v26622_v28  ;;  %v26635_v11 = vld [vmem:[#allocation23_spill] sm:$0xff] }
 0x281   :  { %26609 = vst [vmem:[#allocation6_spill] sm:$0xff] %v19943_v36  ;;  %v908_v59 = vadd.f32 %v907_v25, %v19960_v17  ;;  %v26631_v25 = vld [vmem:[#allocation24_spill] sm:$0xff] }
 0x282   :  { %26618 = vst [vmem:[#allocation12_spill] sm:$0xff] %v19960_v17  ;;  %v19989_v41 = vadd.f32 %v26632_v24, %v26631_v25  ;;  %v26643_v24 = vld [vmem:[#allocation32_spill] sm:$0xff] }
 0x283   :  { %26624 = vst [vmem:[#allocation14_spill] sm:$0xff] %v19972_v55  ;;  %v909_v3 = vadd.f32 %v908_v59, %v19967_v7  ;;  %v26634_v59 = vld [vmem:[#allocation26_spill] sm:$0xff] }
 0x284   :  { %26630 = vst [vmem:[#allocation16_spill] sm:$0xff] %v19984_v1  ;;  %v19994_v7 = vadd.f32 %v26635_v11, %v26634_v59 }
 0x285   :  { %v910_v63 = vadd.f32 %v909_v3, %v19972_v55  ;;  %26633 = vst [vmem:[#allocation13_spill] sm:$0xff] %v19989_v41  ;;  %v26638_v55 = vld [vmem:[#allocation25_spill] sm:$0xff] }
 0x286   :  { %v19962_v14 = vpop.f32.mrf.mxu0  ;;  %26636 = vst [vmem:[#allocation18_spill] sm:$0xff] %v19994_v7  ;;  %v19999_v48 = vadd.f32 %v26638_v55, %v26637_v40  ;;  %v26649_v40 = vld [vmem:[#allocation36_spill] sm:$0xff] }
 0x287   :  { %v19974_v4 = vpop.f32.mrf.mxu1  ;;  %v911_v16 = vadd.f32 %v910_v63, %v19979_v19  ;;  %v26640_v63 = vld [vmem:[#allocation30_spill] sm:$0xff]  ;;  %v26641_v19 = vld [vmem:[#allocation27_spill] sm:$0xff] }
 0x288   :  { %26639 = vst [vmem:[#allocation15_spill] sm:$0xff] %v19999_v48  ;;  %v20004_v17 = vadd.f32 %v26641_v19, %v26640_v63 }
 0x289   :  { %v912_v28 = vadd.f32 %v911_v16, %v19984_v1  ;;  %v26644_v1 = vld [vmem:[#allocation29_spill] sm:$0xff] }
 0x28a   :  { %26642 = vst [vmem:[#allocation20_spill] sm:$0xff] %v20004_v17  ;;  %v20009_v59 = vadd.f32 %v26644_v1, %v26643_v24  ;;  %v26655_v24 = vld [vmem:[#allocation40_spill] sm:$0xff] }
 0x28b   :  { %v913_v3 = vadd.f32 %v912_v28, %v19989_v41  ;;  %v26646_v28 = vld [vmem:[#allocation34_spill] sm:$0xff]  ;;  %v26647_v41 = vld [vmem:[#allocation31_spill] sm:$0xff] }
 0x28c   :  { %26645 = vst [vmem:[#allocation17_spill] sm:$0xff] %v20009_v59  ;;  %v20014_v57 = vadd.f32 %v26647_v41, %v26646_v28 }
 0x28d   :  { %v914_v58 = vadd.f32 %v913_v3, %v19994_v7  ;;  %v26650_v7 = vld [vmem:[#allocation33_spill] sm:$0xff] }
 0x28e   :  { %v615_v10 = vpop.f32.mrf.mxu0  ;;  %26648 = vst [vmem:[#allocation22_spill] sm:$0xff] %v20014_v57  ;;  %v20019_v19 = vadd.f32 %v26650_v7, %v26649_v40  ;;  %v26661_v40 = vld [vmem:[#allocation44_spill] sm:$0xff] }
 0x28f   :  { %v854_v8 = vpop.f32.mrf.mxu1  ;;  %v915_v16 = vadd.f32 %v914_v58, %v19999_v48  ;;  %v26652_v58 = vld [vmem:[#allocation38_spill] sm:$0xff]  ;;  %v26653_v48 = vld [vmem:[#allocation35_spill] sm:$0xff] }
 0x290   :  { %26651 = vst [vmem:[#allocation19_spill] sm:$0xff] %v20019_v19  ;;  %v20024_v43 = vadd.f32 %v26653_v48, %v26652_v58 }
 0x291   :  { %v916_v11 = vadd.f32 %v915_v16, %v20004_v17  ;;  %v26656_v17 = vld [vmem:[#allocation37_spill] sm:$0xff] }
 0x292   :  { %26654 = vst [vmem:[#allocation24_spill] sm:$0xff] %v20024_v43  ;;  %v20029_v41 = vadd.f32 %v26656_v17, %v26655_v24 }
 0x293   :  { %v917_v3 = vadd.f32 %v916_v11, %v20009_v59  ;;  %v26658_v11 = vld [vmem:[#allocation42_spill] sm:$0xff]  ;;  %v26659_v59 = vld [vmem:[#allocation39_spill] sm:$0xff] }
 0x294   :  { %26657 = vst [vmem:[#allocation21_spill] sm:$0xff] %v20029_v41  ;;  %v20034_v27 = vadd.f32 %v26659_v59, %v26658_v11  ;;  %v26666_v59 = vld [vmem:[#allocation48_spill] sm:$0xff]  ;;  %v26667_v11 = vld [vmem:[#allocation46_spill] sm:$0xff] }
 0x295   :  { %v918_v63 = vadd.f32 %v917_v3, %v20014_v57  ;;  %v26662_v57 = vld [vmem:[#allocation41_spill] sm:$0xff] }
 0x296   :  { %v618_v25 = vpop.f32.mrf.mxu0  ;;  %26660 = vst [vmem:[#allocation26_spill] sm:$0xff] %v20034_v27  ;;  %v20039_v48 = vadd.f32 %v26662_v57, %v26661_v40  ;;  %v26670_v40 = vld [vmem:[#allocation51_spill] sm:$0xff] }
 0x297   :  { %v857_v55 = vpop.f32.mrf.mxu1  ;;  %v919_v16 = vadd.f32 %v918_v63, %v20019_v19  ;;  %v26663_v63 = vld [vmem:[#allocation45_spill] sm:$0xff]  ;;  %v26664_v19 = vld [vmem:[#allocation43_spill] sm:$0xff] }
 0x298   :  { %v20044_v53 = vadd.f32 %v26664_v19, %v26663_v63  ;;  %v26672_v63 = vld [vmem:[#allocation50_spill] sm:$0xff] }
 0x299   :  { %v920_v28 = vadd.f32 %v919_v16, %v20024_v43  ;;  %v20050_v43 = vadd.f32 %v26667_v11, %v26666_v59  ;;  %v26674_v11 = vld [vmem:[#allocation54_spill] sm:$0xff] }
 0x29a   :  { %26665 = vst [vmem:[#allocation23_spill] sm:$0xff] %v20044_v53 }
 0x29b   :  { %v921_v3 = vadd.f32 %v920_v28, %v20029_v41  ;;  %26668 = vst [vmem:[#allocation28_spill] sm:$0xff] %v20050_v43  ;;  %v26669_v28 = vld [vmem:[#allocation47_spill] sm:$0xff] }
 0x29d   :  { %v922_v58 = vadd.f32 %v921_v3, %v20034_v27  ;;  %v26671_v3 = vld [vmem:[#allocation49_spill] sm:$0xff] }
 0x29e   :  { %v621_v1 = vpop.f32.mrf.mxu0  ;;  %v20056_v27 = vadd.f32 %v26671_v3, %v26670_v40 }
 0x29f   :  { %v860_v7 = vpop.f32.mrf.mxu1  ;;  %v923_v16 = vadd.f32 %v922_v58, %v20039_v48 }
 0x2a1   :  { %v924_v24 = vadd.f32 %v923_v16, %v20044_v53  ;;  %v26673_v16 = vld [vmem:[#allocation52_spill] sm:$0xff] }
 0x2a2   :  { %v20062_v53 = vadd.f32 %v26673_v16, %v19765_v15  ;;  %v20080_v16 = vadd.f32 %v19880_v52, %v19914_v33  ;;  %v20094_v52 = vadd.f32 %v19974_v4, %v618_v25 }
 0x2a3   :  { %v925_v41 = vadd.f32 %v924_v24, %v26669_v28 }
 0x2a4   :  { %26675 = vst [vmem:[#allocation25_spill] sm:$0xff] %v20080_v16 }
 0x2a5   :  { %v926_v57 = vadd.f32 %v925_v41, %v20050_v43  ;;  %v20068_v41 = vadd.f32 %v26674_v11, %v19819_v12  ;;  %26678 = vst [vmem:[#allocation32_spill] sm:$0xff] %v20094_v52 }
 0x2a6   :  { %v624_v17 = vpop.f32.mrf.mxu0 }
 0x2a7   :  { %v863_v45 = vpop.f32.mrf.mxu1  ;;  %v927_v37 = vadd.f32 %v926_v57, %v26672_v63 }
 0x2a9   :  { %v928_v58 = vadd.f32 %v927_v37, %v20056_v27  ;;  %v20074_v37 = vadd.f32 %v19834_v18, %v19868_v44  ;;  %v20090_v44 = vadd.f32 %v19950_v2, %v615_v10 }
 0x2ab   :  { %v929_v59 = vadd.f32 %v928_v58, %v19759_v39  ;;  %26677 = vst [vmem:[#allocation27_spill] sm:$0xff] %v20090_v44 }
 0x2ad   :  { %v930_v24 = vadd.f32 %v929_v59, %v20062_v53 }
 0x2ae   :  { %v627_v19 = vpop.f32.mrf.mxu0 }
 0x2af   :  { %v866_v40 = vpop.f32.mrf.mxu1  ;;  %v931_v3 = vadd.f32 %v930_v24, %v19802_v62 }
 0x2b1   :  { %v932_v57 = vadd.f32 %v931_v3, %v20068_v41  ;;  %v20086_v3 = vadd.f32 %v19926_v49, %v19962_v14 }
 0x2b3   :  { %v933_v15 = vadd.f32 %v932_v57, %v19851_v32  ;;  %26676 = vst [vmem:[#allocation30_spill] sm:$0xff] %v20086_v3 }
 0x2b5   :  { %v934_v58 = vadd.f32 %v933_v15, %v20074_v37 }
 0x2b6   :  { %v630_v43 = vpop.f32.mrf.mxu0 }
 0x2b7   :  { %v935_v59 = vadd.f32 %v934_v58, %v19897_v9  ;;  %v869_v11 = vpop.f32.mrf.mxu1  ;;  %v20097_v58 = vadd.f32 %v854_v8, %v621_v1  ;;  %v864_v10 = vadd.f32 %v863_v45, %v630_v43 }
 0x2b9   :  { %v936_v24 = vadd.f32 %v935_v59, %v20080_v16  ;;  %v20100_v16 = vadd.f32 %v857_v55, %v624_v17 }
 0x2bb   :  { %v937_v18 = vadd.f32 %v936_v24, %v19943_v36  ;;  %26679 = vst [vmem:[#allocation29_spill] sm:$0xff] %v20100_v16  ;;  %v20103_v24 = vadd.f32 %v860_v7, %v627_v19 }
 0x2bd   :  { %v938_v57 = vadd.f32 %v937_v18, %v20086_v3 }
 0x2be   :  { %v633_v12 = vpop.f32.mrf.mxu0 }
 0x2bf   :  { %v939_v15 = vadd.f32 %v938_v57, %v20090_v44  ;;  %v872_v49 = vpop.f32.mrf.mxu1  ;;  %v867_v25 = vadd.f32 %v866_v40, %v633_v12 }
 0x2c1   :  { %v940_v59 = vadd.f32 %v939_v15, %v20094_v52 }
 0x2c3   :  { %v941_v14 = vadd.f32 %v940_v59, %v20097_v58  ;;  %v18952_v59 = vmov 576.0  }
 0x2c4   :  { %18916 = vrcp.f32 %v18952_v59 }
 0x2c5   :  { %v942_v2 = vadd.f32 %v941_v14, %v20100_v16 }
 0x2c6   :  { %v636_v33 = vpop.f32.mrf.mxu0 }
 0x2c7   :  { %v943_v4 = vadd.f32 %v942_v2, %v20103_v24  ;;  %v870_v57 = vadd.f32 %v869_v11, %v636_v33  ;;  %v875_v44 = vpop.f32.mrf.mxu1 }
 0x2c9   :  { %v944_v3 = vadd.f32 %v943_v4, %v864_v10 }
 0x2ca   :  { %v18917_v19 = vpop.eup %18916 }
 0x2cb   :  { %v945_v8 = vadd.f32 %v944_v3, %v867_v25  ;;  %v956_v45 = vmul.f32 576.0, %v18917_v19  ;;  %vm960_vm1 = vweird.f32 %v18917_v19 }
 0x2cd   :  { %v946_v15 = vadd.f32 %v945_v8, %v870_v57  ;;  %v957_v16 = vsub.f32 1.0, %v956_v45 }
 0x2ce   :  { %v639_v18 = vpop.f32.mrf.mxu0 }
 0x2cf   :  { %v873_v1 = vadd.f32 %v872_v49, %v639_v18  ;;  %v958_v40 = vmul.f32 %v18917_v19, %v957_v16 }
 0x2d1   :  { %v947_v17 = vadd.f32 %v946_v15, %v873_v1  ;;  %v959_v11 = vadd.f32 %v18917_v19, %v958_v40  ;;  %v26681_v15 = vld [vmem:[#allocation53_spill] sm:$0xff] }
 0x2d3   :  { %v20107_v33 = vsel %vm960_vm1, %v18917_v19, %v959_v11 }
 0x2d6   :  { %v642_v55 = vpop.f32.mrf.mxu0 }
 0x2d7   :  { %v876_v52 = vadd.f32 %v875_v44, %v642_v55 }
 0x2d9   :  { %v948_v36 = vadd.f32 %v947_v17, %v876_v52 }
 0x2db   :  { %v949_v7 = vrot.slane %v948_v36, 4 }
 0x2dd   :  { %v950_v14 = vadd.f32 %v949_v7, %v948_v36 }
 0x2df   :  { %v951_v43 = vrot.slane %v950_v14, 2 }
 0x2e1   :  { %v952_v2 = vadd.f32 %v951_v43, %v950_v14 }
 0x2e3   :  { %v953_v12 = vrot.slane %v952_v2, 1 }
 0x2e5   :  { %v954_v3 = vadd.f32 %v953_v12, %v952_v2 }
 0x2e7   :  { %v20110_v49 = vmul.f32 %v20107_v33, %v954_v3 }
 0x2e9   :  { %v20113_v44 = vsub.f32 %v864_v10, %v20110_v49  ;;  %v20116_v18 = vsub.f32 %v867_v25, %v20110_v49  ;;  %v20119_v36 = vsub.f32 %v870_v57, %v20110_v49  ;;  %v20122_v16 = vsub.f32 %v873_v1, %v20110_v49 }
 0x2ea   :  { %v20125_v4 = vsub.f32 %v876_v52, %v20110_v49  ;;  %v20129_v8 = vsub.f32 %v19781_v56, %v20110_v49  ;;  %v20133_v10 = vsub.f32 %v26681_v15, %v20110_v49  ;;  %v20137_v25 = vsub.f32 %v19785_v51, %v20110_v49 }
 0x2eb   :  { %v20145_v52 = vsub.f32 %v19792_v0, %v20110_v49  ;;  %v20149_v56 = vsub.f32 %v19800_v60, %v20110_v49  ;;  %v20155_v51 = vsub.f32 %v19807_v47, %v20110_v49  ;;  %v20161_v0 = vsub.f32 %v19812_v35, %v20110_v49 }
 0x2ec   :  { %26680 = vst [vmem:[#allocation34_spill] sm:$0xff] %v20125_v4  ;;  %v1035_v57 = vmul.f32 %v20129_v8, %v20129_v8  ;;  %v1036_v1 = vmul.f32 %v20133_v10, %v20133_v10  ;;  %v1037_v55 = vmul.f32 %v20137_v25, %v20137_v25  ;;  %v20167_v14 = vsub.f32 %v19817_v6, %v20110_v49 }
 0x2ed   :  { %v1038_v59 = vmul.f32 %v20145_v52, %v20145_v52  ;;  %v1039_v60 = vmul.f32 %v20149_v56, %v20149_v56  ;;  %v1040_v47 = vmul.f32 %v20155_v51, %v20155_v51  ;;  %v20173_v43 = vsub.f32 %v19827_v23, %v20110_v49 }
 0x2ee   :  { %v1107_v17 = vadd.f32 %v1036_v1, %v1035_v57  ;;  %v1041_v35 = vmul.f32 %v20161_v0, %v20161_v0  ;;  %v20179_v40 = vsub.f32 %v19832_v20, %v20110_v49  ;;  %v1042_v6 = vmul.f32 %v20167_v14, %v20167_v14 }
 0x2ef   :  { %v20185_v11 = vsub.f32 %v19839_v31, %v20110_v49  ;;  %v1043_v23 = vmul.f32 %v20173_v43, %v20173_v43  ;;  %v20191_v15 = vsub.f32 %v19844_v22, %v20110_v49  ;;  %v20197_v1 = vsub.f32 %v19849_v26, %v20110_v49 }
 0x2f0   :  { %v1108_v7 = vadd.f32 %v1107_v17, %v1037_v55  ;;  %v1044_v20 = vmul.f32 %v20179_v40, %v20179_v40  ;;  %v20203_v17 = vsub.f32 %v19856_v30, %v20110_v49 }
 0x2f1   :  { %v1045_v31 = vmul.f32 %v20185_v11, %v20185_v11  ;;  %v1046_v22 = vmul.f32 %v20191_v15, %v20191_v15  ;;  %v1047_v26 = vmul.f32 %v20197_v1, %v20197_v1 }
 0x2f2   :  { %v1109_v19 = vadd.f32 %v1108_v7, %v1038_v59  ;;  %v20209_v7 = vsub.f32 %v19861_v34, %v20110_v49  ;;  %v1048_v30 = vmul.f32 %v20203_v17, %v20203_v17 }
 0x2f4   :  { %v1110_v45 = vadd.f32 %v1109_v19, %v1039_v60  ;;  %v20215_v19 = vsub.f32 %v19866_v38, %v20110_v49  ;;  %v1049_v34 = vmul.f32 %v20209_v7, %v20209_v7 }
 0x2f6   :  { %v1111_v2 = vadd.f32 %v1110_v45, %v1040_v47  ;;  %v20221_v45 = vsub.f32 %v19873_v42, %v20110_v49  ;;  %v1050_v38 = vmul.f32 %v20215_v19, %v20215_v19 }
 0x2f8   :  { %v1112_v12 = vadd.f32 %v1111_v2, %v1041_v35  ;;  %v20227_v2 = vsub.f32 %v19878_v46, %v20110_v49  ;;  %v1051_v42 = vmul.f32 %v20221_v45, %v20221_v45 }
 0x2fa   :  { %v1113_v3 = vadd.f32 %v1112_v12, %v1042_v6  ;;  %v20233_v12 = vsub.f32 %v19885_v50, %v20110_v49  ;;  %v1052_v46 = vmul.f32 %v20227_v2, %v20227_v2 }
 0x2fc   :  { %v1114_v57 = vadd.f32 %v1113_v3, %v1043_v23  ;;  %26682 = vst [vmem:[#allocation31_spill] sm:$0xff] %v20233_v12  ;;  %v20239_v3 = vsub.f32 %v19890_v54, %v20110_v49  ;;  %v1053_v50 = vmul.f32 %v20233_v12, %v20233_v12 }
 0x2fe   :  { %v1115_v55 = vadd.f32 %v1114_v57, %v1044_v20  ;;  %26683 = vst [vmem:[#allocation36_spill] sm:$0xff] %v20239_v3  ;;  %v20245_v57 = vsub.f32 %v19895_v61, %v20110_v49  ;;  %v1054_v54 = vmul.f32 %v20239_v3, %v20239_v3 }
 0x300   :  { %v1116_v59 = vadd.f32 %v1115_v55, %v1045_v31  ;;  %26684 = vst [vmem:[#allocation33_spill] sm:$0xff] %v20245_v57  ;;  %v20251_v55 = vsub.f32 %v19902_v5, %v20110_v49  ;;  %v1055_v61 = vmul.f32 %v20245_v57, %v20245_v57 }
 0x302   :  { %v1117_v60 = vadd.f32 %v1116_v59, %v1046_v22  ;;  %26685 = vst [vmem:[#allocation38_spill] sm:$0xff] %v20251_v55  ;;  %v20257_v59 = vsub.f32 %v19907_v13, %v20110_v49  ;;  %v1056_v5 = vmul.f32 %v20251_v55, %v20251_v55 }
 0x304   :  { %v1118_v47 = vadd.f32 %v1117_v60, %v1047_v26  ;;  %26686 = vst [vmem:[#allocation35_spill] sm:$0xff] %v20257_v59  ;;  %v20263_v60 = vsub.f32 %v19912_v21, %v20110_v49  ;;  %v1057_v13 = vmul.f32 %v20257_v59, %v20257_v59 }
 0x306   :  { %v1119_v35 = vadd.f32 %v1118_v47, %v1048_v30  ;;  %26687 = vst [vmem:[#allocation40_spill] sm:$0xff] %v20263_v60  ;;  %v20269_v47 = vsub.f32 %v19919_v29, %v20110_v49  ;;  %v1058_v21 = vmul.f32 %v20263_v60, %v20263_v60 }
 0x308   :  { %v1120_v6 = vadd.f32 %v1119_v35, %v1049_v34  ;;  %26688 = vst [vmem:[#allocation37_spill] sm:$0xff] %v20269_v47  ;;  %v26689_v35 = vld [vmem:[#allocation55_spill] sm:$0xff]  ;;  %v1059_v29 = vmul.f32 %v20269_v47, %v20269_v47  ;;  %v26730_v47 = vld [vmem:[#allocation30_spill] sm:$0xff] }
 0x30a   :  { %v1121_v23 = vadd.f32 %v1120_v6, %v1050_v38  ;;  %v20275_v38 = vsub.f32 %v26689_v35, %v20110_v49 }
 0x30c   :  { %v1122_v20 = vadd.f32 %v1121_v23, %v1051_v42  ;;  %26690 = vst [vmem:[#allocation42_spill] sm:$0xff] %v20275_v38  ;;  %v26691_v42 = vld [vmem:[#allocation56_spill] sm:$0xff] }
 0x30d   :  { %v20281_v23 = vsub.f32 %v26691_v42, %v20110_v49 }
 0x30e   :  { %v1123_v31 = vadd.f32 %v1122_v20, %v1052_v46  ;;  %v26693_v20 = vld [vmem:[#allocation5_spill] sm:$0xff] }
 0x30f   :  { %26692 = vst [vmem:[#allocation39_spill] sm:$0xff] %v20281_v23 }
 0x310   :  { %v1124_v22 = vadd.f32 %v1123_v31, %v1053_v50  ;;  %v20287_v50 = vsub.f32 %v26693_v20, %v20110_v49  ;;  %v1060_v31 = vmul.f32 %v20275_v38, %v20275_v38 }
 0x312   :  { %v1125_v26 = vadd.f32 %v1124_v22, %v1054_v54  ;;  %26694 = vst [vmem:[#allocation44_spill] sm:$0xff] %v20287_v50  ;;  %v26695_v22 = vld [vmem:[#allocation8_spill] sm:$0xff] }
 0x314   :  { %v1126_v30 = vadd.f32 %v1125_v26, %v1055_v61  ;;  %v20293_v61 = vsub.f32 %v26695_v22, %v20110_v49  ;;  %v1061_v26 = vmul.f32 %v20281_v23, %v20281_v23  ;;  %v26703_v22 = vld [vmem:[#allocation9_spill] sm:$0xff] }
 0x316   :  { %v1127_v34 = vadd.f32 %v1126_v30, %v1056_v5  ;;  %26696 = vst [vmem:[#allocation41_spill] sm:$0xff] %v20293_v61  ;;  %v26697_v30 = vld [vmem:[#allocation10_spill] sm:$0xff]  ;;  %v1063_v42 = vmul.f32 %v20293_v61, %v20293_v61 }
 0x318   :  { %v1128_v6 = vadd.f32 %v1127_v34, %v1057_v13  ;;  %v20299_v13 = vsub.f32 %v26697_v30, %v20110_v49  ;;  %v1062_v34 = vmul.f32 %v20287_v50, %v20287_v50  ;;  %v20317_v30 = vsub.f32 %v26703_v22, %v20110_v49  ;;  %v26709_v22 = vld [vmem:[#allocation16_spill] sm:$0xff] }
 0x31a   :  { %v1129_v46 = vadd.f32 %v1128_v6, %v1058_v21  ;;  %26698 = vst [vmem:[#allocation45_spill] sm:$0xff] %v20299_v13  ;;  %v26699_v21 = vld [vmem:[#allocation7_spill] sm:$0xff] }
 0x31b   :  { %v20305_v6 = vsub.f32 %v26699_v21, %v20110_v49  ;;  %26704 = vst [vmem:[#allocation46_spill] sm:$0xff] %v20317_v30  ;;  %v26705_v21 = vld [vmem:[#allocation14_spill] sm:$0xff] }
 0x31c   :  { %v1130_v54 = vadd.f32 %v1129_v46, %v1059_v29  ;;  %v26701_v46 = vld [vmem:[#allocation12_spill] sm:$0xff]  ;;  %v20323_v50 = vsub.f32 %v26705_v21, %v20110_v49  ;;  %v26711_v21 = vld [vmem:[#allocation13_spill] sm:$0xff] }
 0x31d   :  { %26700 = vst [vmem:[#allocation43_spill] sm:$0xff] %v20305_v6  ;;  %v20311_v20 = vsub.f32 %v26701_v46, %v20110_v49  ;;  %v26707_v46 = vld [vmem:[#allocation11_spill] sm:$0xff] }
 0x31e   :  { %v1131_v5 = vadd.f32 %v1130_v54, %v1060_v31  ;;  %v1064_v31 = vmul.f32 %v20299_v13, %v20299_v13  ;;  %26706 = vst [vmem:[#allocation47_spill] sm:$0xff] %v20323_v50  ;;  %v20329_v13 = vsub.f32 %v26707_v46, %v20110_v49  ;;  %v26713_v46 = vld [vmem:[#allocation18_spill] sm:$0xff] }
 0x31f   :  { %26702 = vst [vmem:[#allocation48_spill] sm:$0xff] %v20311_v20 }
 0x320   :  { %v1132_v35 = vadd.f32 %v1131_v5, %v1061_v26  ;;  %v1065_v26 = vmul.f32 %v20305_v6, %v20305_v6  ;;  %26708 = vst [vmem:[#allocation51_spill] sm:$0xff] %v20329_v13  ;;  %v20335_v6 = vsub.f32 %v26709_v22, %v20110_v49  ;;  %v26715_v22 = vld [vmem:[#allocation15_spill] sm:$0xff] }
 0x322   :  { %v1133_v29 = vadd.f32 %v1132_v35, %v1062_v34  ;;  %v1066_v34 = vmul.f32 %v20311_v20, %v20311_v20  ;;  %26710 = vst [vmem:[#allocation49_spill] sm:$0xff] %v20335_v6  ;;  %v20341_v20 = vsub.f32 %v26711_v21, %v20110_v49  ;;  %v26717_v21 = vld [vmem:[#allocation20_spill] sm:$0xff] }
 0x324   :  { %v1134_v54 = vadd.f32 %v1133_v29, %v1063_v42  ;;  %v1067_v42 = vmul.f32 %v20317_v30, %v20317_v30  ;;  %26712 = vst [vmem:[#allocation50_spill] sm:$0xff] %v20341_v20  ;;  %v20347_v30 = vsub.f32 %v26713_v46, %v20110_v49  ;;  %v26718_v46 = vld [vmem:[#allocation17_spill] sm:$0xff] }
 0x326   :  { %v1135_v5 = vadd.f32 %v1134_v54, %v1064_v31  ;;  %v1068_v31 = vmul.f32 %v20323_v50, %v20323_v50  ;;  %26714 = vst [vmem:[#allocation52_spill] sm:$0xff] %v20347_v30  ;;  %v20353_v50 = vsub.f32 %v26715_v22, %v20110_v49  ;;  %v26719_v22 = vld [vmem:[#allocation22_spill] sm:$0xff] }
 0x328   :  { %v1136_v35 = vadd.f32 %v1135_v5, %v1065_v26  ;;  %v1069_v26 = vmul.f32 %v20329_v13, %v20329_v13  ;;  %26716 = vst [vmem:[#allocation54_spill] sm:$0xff] %v20353_v50  ;;  %v20359_v13 = vsub.f32 %v26717_v21, %v20110_v49  ;;  %v26720_v21 = vld [vmem:[#allocation19_spill] sm:$0xff] }
 0x32a   :  { %v1137_v29 = vadd.f32 %v1136_v35, %v1066_v34  ;;  %v1070_v34 = vmul.f32 %v20335_v6, %v20335_v6  ;;  %v20365_v6 = vsub.f32 %v26718_v46, %v20110_v49  ;;  %v26721_v46 = vld [vmem:[#allocation24_spill] sm:$0xff] }
 0x32c   :  { %v1138_v54 = vadd.f32 %v1137_v29, %v1067_v42  ;;  %v1071_v42 = vmul.f32 %v20341_v20, %v20341_v20  ;;  %v20371_v20 = vsub.f32 %v26719_v22, %v20110_v49  ;;  %v26722_v22 = vld [vmem:[#allocation21_spill] sm:$0xff] }
 0x32d   :  { %v20389_v61 = vsub.f32 %v26722_v22, %v20110_v49  ;;  %v26725_v22 = vld [vmem:[#allocation23_spill] sm:$0xff] }
 0x32e   :  { %v1139_v5 = vadd.f32 %v1138_v54, %v1068_v31  ;;  %v1072_v31 = vmul.f32 %v20347_v30, %v20347_v30  ;;  %v20377_v30 = vsub.f32 %v26720_v21, %v20110_v49  ;;  %v26724_v21 = vld [vmem:[#allocation26_spill] sm:$0xff]  ;;  %v20407_v38 = vsub.f32 %v26725_v22, %v20110_v49 }
 0x32f   :  { %26723 = vst [vmem:[#allocation53_spill] sm:$0xff] %v20389_v61  ;;  %v20395_v23 = vsub.f32 %v26724_v21, %v20110_v49  ;;  %v20413_v21 = vsub.f32 %v26669_v28, %v20110_v49  ;;  %v20425_v22 = vsub.f32 %v26672_v63, %v20110_v49 }
 0x330   :  { %v1140_v35 = vadd.f32 %v1139_v5, %v1069_v26  ;;  %v1073_v26 = vmul.f32 %v20353_v50, %v20353_v50  ;;  %v20383_v50 = vsub.f32 %v26721_v46, %v20110_v49  ;;  %v20401_v46 = vsub.f32 %v20039_v48, %v20110_v49 }
 0x331   :  { %v1083_v28 = vmul.f32 %v20413_v21, %v20413_v21  ;;  %v1085_v63 = vmul.f32 %v20425_v22, %v20425_v22 }
 0x332   :  { %v1141_v29 = vadd.f32 %v1140_v35, %v1070_v34  ;;  %v1074_v34 = vmul.f32 %v20359_v13, %v20359_v13  ;;  %v1081_v48 = vmul.f32 %v20401_v46, %v20401_v46 }
 0x334   :  { %v1142_v54 = vadd.f32 %v1141_v29, %v1071_v42  ;;  %v1075_v42 = vmul.f32 %v20365_v6, %v20365_v6 }
 0x336   :  { %v1143_v5 = vadd.f32 %v1142_v54, %v1072_v31  ;;  %v1076_v31 = vmul.f32 %v20371_v20, %v20371_v20 }
 0x338   :  { %v1144_v35 = vadd.f32 %v1143_v5, %v1073_v26  ;;  %v1077_v26 = vmul.f32 %v20377_v30, %v20377_v30 }
 0x33a   :  { %v1145_v29 = vadd.f32 %v1144_v35, %v1074_v34  ;;  %v1078_v34 = vmul.f32 %v20383_v50, %v20383_v50 }
 0x33c   :  { %v1146_v54 = vadd.f32 %v1145_v29, %v1075_v42  ;;  %v1079_v42 = vmul.f32 %v20389_v61, %v20389_v61 }
 0x33e   :  { %v1147_v5 = vadd.f32 %v1146_v54, %v1076_v31  ;;  %v1080_v31 = vmul.f32 %v20395_v23, %v20395_v23 }
 0x340   :  { %v1148_v35 = vadd.f32 %v1147_v5, %v1077_v26  ;;  %v26726_v5 = vld [vmem:[#allocation28_spill] sm:$0xff] }
 0x341   :  { %v20419_v61 = vsub.f32 %v26726_v5, %v20110_v49  ;;  %v20437_v5 = vsub.f32 %v19759_v39, %v20110_v49 }
 0x342   :  { %v1149_v29 = vadd.f32 %v1148_v35, %v1078_v34  ;;  %v1082_v34 = vmul.f32 %v20407_v38, %v20407_v38 }
 0x343   :  { %v1087_v39 = vmul.f32 %v20437_v5, %v20437_v5 }
 0x344   :  { %v1150_v54 = vadd.f32 %v1149_v29, %v1079_v42  ;;  %v20431_v29 = vsub.f32 %v20056_v27, %v20110_v49 }
 0x346   :  { %v1151_v26 = vadd.f32 %v1150_v54, %v1080_v31  ;;  %v1084_v31 = vmul.f32 %v20419_v61, %v20419_v61  ;;  %v1086_v27 = vmul.f32 %v20431_v29, %v20431_v29 }
 0x348   :  { %v1152_v35 = vadd.f32 %v1151_v26, %v1081_v48  ;;  %v20443_v26 = vsub.f32 %v20062_v53, %v20110_v49 }
 0x34a   :  { %v1153_v42 = vadd.f32 %v1152_v35, %v1082_v34  ;;  %26727 = vst [vmem:[#allocation55_spill] sm:$0xff] %v20443_v26  ;;  %v20449_v35 = vsub.f32 %v19802_v62, %v20110_v49  ;;  %v1088_v53 = vmul.f32 %v20443_v26, %v20443_v26  ;;  %v20463_v62 = vsub.f32 %v19851_v32, %v20110_v49 }
 0x34c   :  { %v1154_v54 = vadd.f32 %v1153_v42, %v1083_v28  ;;  %v20455_v42 = vsub.f32 %v20068_v41, %v20110_v49  ;;  %v20469_v41 = vsub.f32 %v20074_v37, %v20110_v49  ;;  %v26728_v37 = vld [vmem:[#allocation25_spill] sm:$0xff] }
 0x34e   :  { %v1155_v48 = vadd.f32 %v1154_v54, %v1084_v31  ;;  %v1089_v54 = vmul.f32 %v20449_v35, %v20449_v35  ;;  %v1092_v32 = vmul.f32 %v20469_v41, %v20469_v41 }
 0x350   :  { %v1156_v34 = vadd.f32 %v1155_v48, %v1085_v63  ;;  %v1090_v48 = vmul.f32 %v20455_v42, %v20455_v42 }
 0x352   :  { %v1157_v28 = vadd.f32 %v1156_v34, %v1086_v27 }
 0x354   :  { %v1158_v31 = vadd.f32 %v1157_v28, %v1087_v39  ;;  %v1091_v39 = vmul.f32 %v20463_v62, %v20463_v62 }
 0x356   :  { %v1159_v63 = vadd.f32 %v1158_v31, %v1088_v53  ;;  %v20475_v53 = vsub.f32 %v19897_v9, %v20110_v49  ;;  %v17831_v31 = vld [vmem:[%s26486_s4 + $0x38] sm:$0xff]  ;;  %v26729_v9 = vld [vmem:[#allocation6_spill] sm:$0xff] }
 0x357   :  { %1651 = vmatpush.bf16.msra.mxu3 %v17831_v31 }
 0x358   :  { %v1160_v27 = vadd.f32 %v1159_v63, %v1089_v54  ;;  %v20484_v63 = vsub.f32 %v26728_v37, %v20110_v49  ;;  %v26731_v37 = vld [vmem:[#allocation27_spill] sm:$0xff] }
 0x359   :  { %v20502_v60 = vsub.f32 %v26731_v37, %v20110_v49 }
 0x35a   :  { %v1161_v34 = vadd.f32 %v1160_v27, %v1090_v48  ;;  %v1093_v48 = vmul.f32 %v20475_v53, %v20475_v53 }
 0x35b   :  { %26732 = vst [vmem:[#allocation56_spill] sm:$0xff] %v20502_v60 }
 0x35c   :  { %v1162_v28 = vadd.f32 %v1161_v34, %v1091_v39  ;;  %v20490_v34 = vsub.f32 %v26729_v9, %v20110_v49  ;;  %v1094_v39 = vmul.f32 %v20484_v63, %v20484_v63  ;;  %v26733_v9 = vld [vmem:[#allocation32_spill] sm:$0xff] }
 0x35e   :  { %v1163_v54 = vadd.f32 %v1162_v28, %v1092_v32  ;;  %v20496_v28 = vsub.f32 %v26730_v47, %v20110_v49  ;;  %v1095_v32 = vmul.f32 %v20490_v34, %v20490_v34  ;;  %v20511_v47 = vsub.f32 %v26733_v9, %v20110_v49 }
 0x360   :  { %v1164_v27 = vadd.f32 %v1163_v54, %v1093_v48  ;;  %v1096_v54 = vmul.f32 %v20496_v28, %v20496_v28 }
 0x362   :  { %v1165_v26 = vadd.f32 %v1164_v27, %v1094_v39  ;;  %v18119_v27 = vld [vmem:[%s26486_s4 + $0x938] sm:$0xff]  ;;  %v1097_v39 = vmul.f32 %v20502_v60, %v20502_v60 }
 0x363   :  { %4778 = vmatpush.bf16.msrb.mxu1 %v18119_v27  ;;  %v20529_v27 = vsub.f32 %v20103_v24, %v20110_v49  ;;  %v1103_v24 = vmul.f32 %v20116_v18, %v20116_v18 }
 0x364   :  { %v1166_v31 = vadd.f32 %v1165_v26, %v1095_v32  ;;  %v20517_v32 = vsub.f32 %v20097_v58, %v20110_v49 }
 0x366   :  { %v1167_v48 = vadd.f32 %v1166_v31, %v1096_v54  ;;  %v1098_v31 = vmul.f32 %v20511_v47, %v20511_v47  ;;  %v26734_v54 = vld [vmem:[#allocation29_spill] sm:$0xff]  ;;  %v1099_v9 = vmul.f32 %v20517_v32, %v20517_v32 }
 0x367   :  { %v20523_v59 = vsub.f32 %v26734_v54, %v20110_v49 }
 0x368   :  { %v1168_v26 = vadd.f32 %v1167_v48, %v1097_v39  ;;  %v17830_v39 = vld [vmem:[%s26486_s4 + $0x30] sm:$0xff] }
 0x369   :  { %v1100_v58 = vmul.f32 %v20523_v59, %v20523_v59  ;;  %1652 = vmatpush.bf16.msra.mxu3 %v17830_v39  ;;  %v1105_v39 = vmul.f32 %v20122_v16, %v20122_v16 }
 0x36a   :  { %v1169_v37 = vadd.f32 %v1168_v26, %v1098_v31  ;;  %v1101_v26 = vmul.f32 %v20529_v27, %v20529_v27 }
 0x36c   :  { %v1170_v55 = vadd.f32 %v1169_v37, %v1099_v9  ;;  %v1102_v37 = vmul.f32 %v20113_v44, %v20113_v44 }
 0x36e   :  { %v1171_v48 = vadd.f32 %v1170_v55, %v1100_v58  ;;  %v1104_v55 = vmul.f32 %v20119_v36, %v20119_v36  ;;  %v17839_v58 = vld [vmem:[%s26486_s4 + $0x78] sm:$0xff] }
 0x36f   :  { %1585 = vmatpush.bf16.msra.mxu2 %v17839_v58  ;;  %v17838_v58 = vld [vmem:[%s26486_s4 + $0x70] sm:$0xff] }
 0x370   :  { %v1172_v31 = vadd.f32 %v1171_v48, %v1101_v26  ;;  %v1106_v26 = vmul.f32 %v20125_v4, %v20125_v4 }
 0x372   :  { %v1173_v54 = vadd.f32 %v1172_v31, %v1102_v37 }
 0x373   :  { %1586 = vmatpush.bf16.msra.mxu2 %v17838_v58  ;;  %v18115_v58 = vld [vmem:[%s26486_s4 + $0x918] sm:$0xff] }
 0x374   :  { %v1174_v49 = vadd.f32 %v1173_v54, %v1103_v24  ;;  %v18118_v54 = vld [vmem:[%s26486_s4 + $0x930] sm:$0xff] }
 0x375   :  { %4779 = vmatpush.bf16.msrb.mxu1 %v18118_v54  ;;  %v18116_v54 = vld [vmem:[%s26486_s4 + $0x920] sm:$0xff] }
 0x376   :  { %v1175_v9 = vadd.f32 %v1174_v49, %v1104_v55  ;;  %v18127_v49 = vld [vmem:[%s26486_s4 + $0x978] sm:$0xff] }
 0x377   :  { %4871 = vmatpush.bf16.msrb.mxu0 %v18127_v49  ;;  %v18125_v49 = vld [vmem:[%s26486_s4 + $0x968] sm:$0xff] }
 0x378   :  { %v1176_v48 = vadd.f32 %v1175_v9, %v1105_v39  ;;  %v17829_v9 = vld [vmem:[%s26486_s4 + $0x28] sm:$0xff] }
 0x379   :  { %1653 = vmatpush.bf16.msra.mxu3 %v17829_v9  ;;  %v18117_v39 = vld [vmem:[%s26486_s4 + $0x928] sm:$0xff]  ;;  %v17836_v9 = vld [vmem:[%s26486_s4 + $0x60] sm:$0xff] }
 0x37a   :  { %v1177_v31 = vadd.f32 %v1176_v48, %v1106_v26  ;;  %v18126_v48 = vld [vmem:[%s26486_s4 + $0x970] sm:$0xff]  ;;  %4780 = vmatpush.bf16.msrb.mxu1 %v18117_v39  ;;  %v18124_v39 = vld [vmem:[%s26486_s4 + $0x960] sm:$0xff] }
 0x37b   :  { %4872 = vmatpush.bf16.msrb.mxu0 %v18126_v48 }
 0x37c   :  { %v1178_v37 = vrot.slane %v1177_v31, 4 }
 0x37e   :  { %v1179_v24 = vadd.f32 %v1178_v37, %v1177_v31  ;;  %v17828_v31 = vld [vmem:[%s26486_s4 + $0x20] sm:$0xff]  ;;  %v17837_v37 = vld [vmem:[%s26486_s4 + $0x68] sm:$0xff]  ;;  %4781 = vmatpush.bf16.msrb.mxu1 %v18116_v54  ;;  %v18114_v54 = vld [vmem:[%s26486_s4 + $0x910] sm:$0xff] }
 0x37f   :  { %1654 = vmatpush.bf16.msra.mxu3 %v17828_v31  ;;  %1587 = vmatpush.bf16.msra.mxu2 %v17837_v37  ;;  %v17826_v31 = vld [vmem:[%s26486_s4 + $0x10] sm:$0xff]  ;;  %v17835_v37 = vld [vmem:[%s26486_s4 + $0x58] sm:$0xff] }
 0x380   :  { %v1180_v55 = vrot.slane %v1179_v24, 2  ;;  %4873 = vmatpush.bf16.msrb.mxu0 %v18125_v49  ;;  %v18123_v49 = vld [vmem:[%s26486_s4 + $0x958] sm:$0xff] }
 0x382   :  { %v1181_v26 = vadd.f32 %v1180_v55, %v1179_v24  ;;  %v17827_v55 = vld [vmem:[%s26486_s4 + $0x18] sm:$0xff]  ;;  %4782 = vmatpush.bf16.msrb.mxu1 %v18115_v58  ;;  %v17824_v58 = vld [vmem:[%s26486_s4] sm:$0xff] }
 0x383   :  { %1655 = vmatpush.bf16.msra.mxu3 %v17827_v55  ;;  %1588 = vmatpush.bf16.msra.mxu2 %v17836_v9  ;;  %v17834_v55 = vld [vmem:[%s26486_s4 + $0x50] sm:$0xff]  ;;  %v18113_v9 = vld [vmem:[%s26486_s4 + $0x908] sm:$0xff] }
 0x384   :  { %v1182_v24 = vrot.slane %v1181_v26, 1  ;;  %4874 = vmatpush.bf16.msrb.mxu0 %v18124_v39  ;;  %v17855_v39 = vld [vmem:[%s26486_s4 + $0xf8] sm:$0xff] }
 0x386   :  { %v1183_v48 = vadd.f32 %v1182_v24, %v1181_v26  ;;  %v17825_v24 = vld [vmem:[%s26486_s4 + $0x8] sm:$0xff]  ;;  %4783 = vmatpush.bf16.msrb.mxu1 %v18114_v54  ;;  %v18151_v54 = vld [vmem:[%s26486_s4 + $0xa38] sm:$0xff] }
 0x387   :  { %1656 = vmatpush.bf16.msra.mxu3 %v17826_v31  ;;  %1589 = vmatpush.bf16.msra.mxu2 %v17835_v37  ;;  %v18112_v31 = vld [vmem:[%s26486_s4 + $0x900] sm:$0xff]  ;;  %v18121_v37 = vld [vmem:[%s26486_s4 + $0x948] sm:$0xff] }
 0x388   :  { %v20606_v26 = vmul.f32 %v1183_v48, %v20107_v33  ;;  %4875 = vmatpush.bf16.msrb.mxu0 %v18123_v49  ;;  %v18122_v33 = vld [vmem:[%s26486_s4 + $0x950] sm:$0xff]  ;;  %v17833_v48 = vld [vmem:[%s26486_s4 + $0x48] sm:$0xff] }
 0x389   :  { %v17854_v49 = vld [vmem:[%s26486_s4 + $0xf0] sm:$0xff] }
 0x38a   :  { %18918 = vrsqrt.f32 %v20606_v26  ;;  %4784 = vmatpush.bf16.msrb.mxu1 %v18113_v9  ;;  %v18120_v9 = vld [vmem:[%s26486_s4 + $0x940] sm:$0xff]  ;;  %vm1191_vm3 = vweird.f32 %v20606_v26 }
 0x38b   :  { %1657 = vmatpush.bf16.msra.mxu3 %v17825_v24  ;;  %1590 = vmatpush.bf16.msra.mxu2 %v17834_v55  ;;  %v17832_v55 = vld [vmem:[%s26486_s4 + $0x40] sm:$0xff] }
 0x38c   :  { %4876 = vmatpush.bf16.msrb.mxu0 %v18122_v33  ;;  %v17847_v33 = vld [vmem:[%s26486_s4 + $0xb8] sm:$0xff] }
 0x38e   :  { %4785 = vmatpush.bf16.msrb.mxu1 %v18112_v31  ;;  %v17853_v31 = vld [vmem:[%s26486_s4 + $0xe8] sm:$0xff] }
 0x38f   :  { %1658 = vmatpush.bf16.msra.mxu3 %v17824_v58  ;;  %1591 = vmatpush.bf16.msra.mxu2 %v17833_v48  ;;  %v18159_v48 = vld [vmem:[%s26486_s4 + $0xa78] sm:$0xff] }
 0x390   :  { %v18919_v24 = vpop.eup %18918  ;;  %4877 = vmatpush.bf16.msrb.mxu0 %v18121_v37  ;;  %v17846_v37 = vld [vmem:[%s26486_s4 + $0xb0] sm:$0xff] }
 0x391   :  { %v1186_v58 = vmul.f32 %v18919_v24, %v20606_v26  ;;  %vm1192_vm2 = vweird.f32 %v18919_v24  ;;  %v18154_v26 = vld [vmem:[%s26486_s4 + $0xa50] sm:$0xff] }
 0x392   :  { %5137 = vmatpush.bf16.msra.mxu1 %v18151_v54  ;;  %vm1193_vm4 = vmor %vm1191_vm3, %vm1192_vm2 }
 0x393   :  { %1828 = vmatpush.bf16.msrb.mxu3 %v17855_v39  ;;  %v18150_v39 = vld [vmem:[%s26486_s4 + $0xa30] sm:$0xff]  ;;  %1592 = vmatpush.bf16.msra.mxu2 %v17832_v55  ;;  %v1187_v54 = vmul.f32 %v18919_v24, %v1186_v58 }
 0x394   :  { %4878 = vmatpush.bf16.msrb.mxu0 %v18120_v9  ;;  %v18158_v55 = vld [vmem:[%s26486_s4 + $0xa70] sm:$0xff]  ;;  %v17852_v9 = vld [vmem:[%s26486_s4 + $0xe0] sm:$0xff] }
 0x395   :  { %v1188_v58 = vmul.f32 0.5, %v1187_v54 }
 0x396   :  { %5138 = vmatpush.bf16.msra.mxu1 %v18150_v39  ;;  %v18148_v39 = vld [vmem:[%s26486_s4 + $0xa20] sm:$0xff] }
 0x397   :  { %1829 = vmatpush.bf16.msrb.mxu3 %v17854_v49  ;;  %1735 = vmatpush.bf16.msrb.mxu2 %v17847_v33  ;;  %v18149_v49 = vld [vmem:[%s26486_s4 + $0xa28] sm:$0xff]  ;;  %v1189_v54 = vsub.f32 1.5, %v1188_v58 }
 0x398   :  { %5229 = vmatpush.bf16.msra.mxu0 %v18159_v48  ;;  %v17845_v33 = vld [vmem:[%s26486_s4 + $0xa8] sm:$0xff] }
 0x399   :  { %v18157_v48 = vld [vmem:[%s26486_s4 + $0xa68] sm:$0xff]  ;;  %v1190_v58 = vmul.f32 %v18919_v24, %v1189_v54 }
 0x39a   :  { %5139 = vmatpush.bf16.msra.mxu1 %v18149_v49  ;;  %v18147_v49 = vld [vmem:[%s26486_s4 + $0xa18] sm:$0xff] }
 0x39b   :  { %1830 = vmatpush.bf16.msrb.mxu3 %v17853_v31  ;;  %1736 = vmatpush.bf16.msrb.mxu2 %v17846_v37  ;;  %v17851_v31 = vld [vmem:[%s26486_s4 + $0xd8] sm:$0xff]  ;;  %v17844_v37 = vld [vmem:[%s26486_s4 + $0xa0] sm:$0xff]  ;;  %v20713_v54 = vsel %vm1193_vm4, %v18919_v24, %v1190_v58 }
 0x39c   :  { %5230 = vmatpush.bf16.msra.mxu0 %v18158_v55  ;;  %v18156_v55 = vld [vmem:[%s26486_s4 + $0xa60] sm:$0xff]  ;;  %v1199_v60 = vmul.f32 %v20713_v54, %v20149_v56 }
 0x39d   :  { %v20727_v24 = vld [vmem:[%s26484_s2] ss:$0 sm:$0xff] }
 0x39e   :  { %5140 = vmatpush.bf16.msra.mxu1 %v18148_v39  ;;  %v18146_v39 = vld [vmem:[%s26486_s4 + $0xa10] sm:$0xff]  ;;  %v18152_v56 = vld [vmem:[%s26486_s4 + $0xa40] sm:$0xff] }
 0x39f   :  { %1831 = vmatpush.bf16.msrb.mxu3 %v17852_v9  ;;  %1737 = vmatpush.bf16.msrb.mxu2 %v17845_v33  ;;  %v17850_v9 = vld [vmem:[%s26486_s4 + $0xd0] sm:$0xff]  ;;  %v17843_v33 = vld [vmem:[%s26486_s4 + $0x98] sm:$0xff] }
 0x3a0   :  { %5231 = vmatpush.bf16.msra.mxu0 %v18157_v48  ;;  %v18155_v48 = vld [vmem:[%s26486_s4 + $0xa58] sm:$0xff] }
 0x3a2   :  { %5141 = vmatpush.bf16.msra.mxu1 %v18147_v49  ;;  %v18145_v49 = vld [vmem:[%s26486_s4 + $0xa08] sm:$0xff] }
 0x3a3   :  { %1832 = vmatpush.bf16.msrb.mxu3 %v17851_v31  ;;  %1738 = vmatpush.bf16.msrb.mxu2 %v17844_v37  ;;  %v17849_v31 = vld [vmem:[%s26486_s4 + $0xc8] sm:$0xff]  ;;  %v17842_v37 = vld [vmem:[%s26486_s4 + $0x90] sm:$0xff] }
 0x3a4   :  { %5232 = vmatpush.bf16.msra.mxu0 %v18156_v55  ;;  %v17848_v55 = vld [vmem:[%s26486_s4 + $0xc0] sm:$0xff] }
 0x3a6   :  { %5142 = vmatpush.bf16.msra.mxu1 %v18146_v39  ;;  %v1242_v39 = vmul.f32 %v20713_v54, %v20407_v38  ;;  %v1253_v38 = vmul.f32 %v20713_v54, %v20475_v53  ;;  %v17841_v53 = vld [vmem:[%s26486_s4 + $0x88] sm:$0xff] }
 0x3a7   :  { %1833 = vmatpush.bf16.msrb.mxu3 %v17850_v9  ;;  %1739 = vmatpush.bf16.msrb.mxu2 %v17843_v33  ;;  %v1265_v9 = vmul.f32 %v20713_v54, %v20122_v16  ;;  %v20734_v33 = vld [vmem:[%s26485_s3] ss:$0 sm:$0xff]  ;;  %v1244_v16 = vmul.f32 %v20713_v54, %v20419_v61  ;;  %v1261_v61 = vmul.f32 %v20713_v54, %v20529_v27 }
 0x3a8   :  { %5233 = vmatpush.bf16.msra.mxu0 %v18155_v48  ;;  %v1243_v48 = vmul.f32 %v20713_v54, %v20413_v21  ;;  %v1260_v21 = vmul.f32 %v20713_v54, %v20523_v59  ;;  %v18144_v59 = vld [vmem:[%s26486_s4 + $0xa00] sm:$0xff]  ;;  %v1198_v27 = vmul.f32 %v20713_v54, %v20145_v52  ;;  %v1329_v4 = vmul.f32 %v20727_v24, %v1253_v38 }
 0x3a9   :  { %v1341_v58 = vmul.f32 %v20727_v24, %v1265_v9  ;;  %v1337_v12 = vmul.f32 %v20727_v24, %v1261_v61  ;;  %v17840_v38 = vld [vmem:[%s26486_s4 + $0x80] sm:$0xff]  ;;  %v1237_v61 = vmul.f32 %v20713_v54, %v20377_v30 }
 0x3aa   :  { %5143 = vmatpush.bf16.msra.mxu1 %v18145_v49  ;;  %v1319_v9 = vmul.f32 %v20727_v24, %v1243_v48 }
 0x3ab   :  { %1834 = vmatpush.bf16.msrb.mxu3 %v17849_v31  ;;  %1740 = vmatpush.bf16.msrb.mxu2 %v17842_v37  ;;  %v1246_v31 = vmul.f32 %v20713_v54, %v20431_v29  ;;  %v1247_v37 = vmul.f32 %v20713_v54, %v20437_v5  ;;  %v1417_v49 = vadd.f32 %v20734_v33, %v1341_v58 }
 0x3ac   :  { %5234 = vmatpush.bf16.msra.mxu0 %v18154_v26  ;;  %v1252_v26 = vmul.f32 %v20713_v54, %v20469_v41  ;;  %v1262_v29 = vmul.f32 %v20713_v54, %v20113_v44  ;;  %v1264_v5 = vmul.f32 %v20713_v54, %v20119_v36  ;;  %v1320_v41 = vmul.f32 %v20727_v24, %v1244_v16  ;;  %v18153_v44 = vld [vmem:[%s26486_s4 + $0xa48] sm:$0xff] }
 0x3ad   :  { %v20774_v36 = vmul.f32 %v20713_v54, %v20137_v25  ;;  %v1322_v58 = vmul.f32 %v20727_v24, %v1246_v31  ;;  %v1489_v48 = vpack.c.bf16 %v1417_v49, %v1417_v49  ;;  %v1336_v25 = vmul.f32 %v20727_v24, %v1260_v21 }
 0x3ae   :  { %v1328_v16 = vmul.f32 %v20727_v24, %v1252_v26  ;;  %5144 = vmatpush.bf16.msra.mxu1 %v18144_v59  ;;  %v1338_v52 = vmul.f32 %v20727_v24, %v1262_v29  ;;  %v1340_v31 = vmul.f32 %v20727_v24, %v1264_v5  ;;  %v1395_v49 = vadd.f32 %v20734_v33, %v1319_v9 }
 0x3af   :  { %1835 = vmatpush.bf16.msrb.mxu3 %v17848_v55  ;;  %v1318_v55 = vmul.f32 %v20727_v24, %v1242_v39  ;;  %v1323_v39 = vmul.f32 %v20727_v24, %v1247_v37  ;;  %1741 = vmatpush.bf16.msrb.mxu2 %v17841_v53  ;;  %v1396_v26 = vadd.f32 %v20734_v33, %v1320_v41 }
 0x3b0   :  { %5235 = vmatpush.bf16.msra.mxu0 %v18153_v44  ;;  %v1234_v21 = vmul.f32 %v20713_v54, %v20359_v13  ;;  %v1398_v29 = vadd.f32 %v20734_v33, %v1322_v58  ;;  %v1235_v9 = vmul.f32 %v20713_v54, %v20365_v6  ;;  %v1404_v41 = vadd.f32 %v20734_v33, %v1328_v16 }
 0x3b1   :  { %v1394_v37 = vadd.f32 %v20734_v33, %v1318_v55  ;;  %v1399_v5 = vadd.f32 %v20734_v33, %v1323_v39  ;;  %v20803_v55 = vunpack.c.l.b16 %v1489_v48  ;;  %v1405_v53 = vadd.f32 %v20734_v33, %v1329_v4 }
 0x3b2   :  { %v1236_v13 = vmul.f32 %v20713_v54, %v20371_v20  ;;  %v1412_v59 = vadd.f32 %v20734_v33, %v1336_v25  ;;  %v1413_v30 = vadd.f32 %v20734_v33, %v1337_v12  ;;  %v1414_v44 = vadd.f32 %v20734_v33, %v1338_v52 }
 0x3b3   :  { %26735 = vst [vmem:[#allocation5_spill] sm:$0xff] %v20803_v55  ;;  %1742 = vmatpush.bf16.msrb.mxu2 %v17840_v38  ;;  %v1416_v58 = vadd.f32 %v20734_v33, %v1340_v31  ;;  %v1466_v39 = vpack.c.bf16 %v1394_v37, %v1394_v37  ;;  %v1467_v48 = vpack.c.bf16 %v1395_v49, %v1395_v49 }
 0x3b4   :  { %5236 = vmatpush.bf16.msra.mxu0 %v18152_v56  ;;  %v1468_v6 = vpack.c.bf16 %v1396_v26, %v1396_v26  ;;  %v1310_v16 = vmul.f32 %v20727_v24, %v1234_v21  ;;  %v1313_v4 = vmul.f32 %v20727_v24, %v1237_v61  ;;  %v1470_v38 = vpack.c.bf16 %v1398_v29, %v1398_v29 }
 0x3b5   :  { %v1471_v57 = vpack.c.bf16 %v1399_v5, %v1399_v5  ;;  %v1241_v20 = vmul.f32 %v20713_v54, %v20401_v46  ;;  %v1311_v25 = vmul.f32 %v20727_v24, %v1235_v9  ;;  %v1476_v12 = vpack.c.bf16 %v1404_v41, %v1404_v41 }
 0x3b6   :  { %v1477_v3 = vpack.c.bf16 %v1405_v53, %v1405_v53  ;;  %v1312_v52 = vmul.f32 %v20727_v24, %v1236_v13  ;;  %v1484_v56 = vpack.c.bf16 %v1412_v59, %v1412_v59  ;;  %v1485_v31 = vpack.c.bf16 %v1413_v30, %v1413_v30 }
 0x3b7   :  { %v1486_v37 = vpack.c.bf16 %v1414_v44, %v1414_v44  ;;  %v1488_v49 = vpack.c.bf16 %v1416_v58, %v1416_v58  ;;  %v20821_v26 = vunpack.c.l.b16 %v1466_v39  ;;  %v20823_v21 = vunpack.c.l.b16 %v1467_v48 }
 0x3b8   :  { %v20825_v61 = vunpack.c.l.b16 %v1468_v6  ;;  %v1386_v29 = vadd.f32 %v20734_v33, %v1310_v16  ;;  %v1389_v46 = vadd.f32 %v20734_v33, %v1313_v4  ;;  %v20829_v5 = vunpack.c.l.b16 %v1470_v38 }
 0x3b9   :  { %v20831_v9 = vunpack.c.l.b16 %v1471_v57  ;;  %v1274_v41 = vmul.f32 %v20727_v24, %v1198_v27  ;;  %v1387_v53 = vadd.f32 %v20734_v33, %v1311_v25  ;;  %v20835_v13 = vunpack.c.l.b16 %v1476_v12 }
 0x3ba   :  { %v20837_v59 = vunpack.c.l.b16 %v1477_v3  ;;  %v1388_v30 = vadd.f32 %v20734_v33, %v1312_v52  ;;  %v20840_v44 = vunpack.c.l.b16 %v1484_v56  ;;  %v20842_v58 = vunpack.c.l.b16 %v1485_v31 }
 0x3bb   :  { %v20844_v39 = vunpack.c.l.b16 %v1486_v37  ;;  %v1275_v48 = vmul.f32 %v20727_v24, %v1199_v60  ;;  %v20847_v57 = vunpack.c.l.b16 %v1488_v49  ;;  %v20853_v6 = vpack.c.b16 %v20825_v61, %v20823_v21 }
 0x3bc   :  { %26736 = vst [vmem:[#allocation8_spill] sm:$0xff] %v20842_v58  ;;  %v1195_v3 = vmul.f32 %v20713_v54, %v20129_v8  ;;  %v1458_v16 = vpack.c.bf16 %v1386_v29, %v1386_v29  ;;  %v1461_v4 = vpack.c.bf16 %v1389_v46, %v1389_v46  ;;  %v1196_v60 = vmul.f32 %v20713_v54, %v20133_v10 }
 0x3bd   :  { %v1273_v25 = vmul.f32 %v20727_v24, %v20774_v36  ;;  %v1317_v12 = vmul.f32 %v20727_v24, %v1241_v20  ;;  %v20866_v52 = vpack.c.b16 %v20837_v59, %v20835_v13  ;;  %v1459_v56 = vpack.c.bf16 %v1387_v53, %v1387_v53 }
 0x3be   :  { %v1460_v31 = vpack.c.bf16 %v1388_v30, %v1388_v30  ;;  %v20872_v37 = vpack.c.b16 %v20844_v39, %v20842_v58  ;;  %v1350_v10 = vadd.f32 %v20734_v33, %v1274_v41  ;;  %v1351_v49 = vadd.f32 %v20734_v33, %v1275_v48 }
 0x3bf   :  { %26737 = vst [vmem:[#allocation10_spill] sm:$0xff] %v20866_v52  ;;  %v20878_v20 = vunpack.c.l.b16 %v1458_v16  ;;  %v20880_v29 = vunpack.c.l.b16 %v1461_v4  ;;  %v1240_v46 = vmul.f32 %v20713_v54, %v20395_v23  ;;  %v1271_v53 = vmul.f32 %v20727_v24, %v1195_v3 }
 0x3c0   :  { %26738 = vst [vmem:[#allocation7_spill] sm:$0xff] %v20872_v37  ;;  %v1272_v30 = vmul.f32 %v20727_v24, %v1196_v60  ;;  %v1393_v8 = vadd.f32 %v20734_v33, %v1317_v12  ;;  %v4633_v38 = vunpack.c.l.b16 %v1459_v56  ;;  %v4726_v41 = vunpack.c.l.b16 %v1460_v31  ;;  %v18183_v12 = vld [vmem:[%s26486_s4 + $0xb38] sm:$0xff] }
 0x3c1   :  { %v1349_v48 = vadd.f32 %v20734_v33, %v1273_v25  ;;  %v1422_v27 = vpack.c.bf16 %v1350_v10, %v1350_v10  ;;  %v1423_v58 = vpack.c.bf16 %v1351_v49, %v1351_v49  ;;  %v1347_v16 = vadd.f32 %v20734_v33, %v1271_v53 }
 0x3c2   :  { %v1348_v4 = vadd.f32 %v20734_v33, %v1272_v30  ;;  %v20891_v36 = vpack.c.b16 %v4633_v38, %v20878_v20  ;;  %v4727_v23 = vpack.c.b16 %v4726_v41, %v4633_v38  ;;  %v4813_v3 = vpack.c.b16 %v20880_v29, %v4726_v41 }
 0x3c3   :  { %v1421_v55 = vpack.c.bf16 %v1349_v48, %v1349_v48  ;;  %v1419_v60 = vpack.c.bf16 %v1347_v16, %v1347_v16  ;;  %v1316_v25 = vmul.f32 %v20727_v24, %v1240_v46  ;;  %v1465_v56 = vpack.c.bf16 %v1393_v8, %v1393_v8  ;;  %v17871_v48 = vld [vmem:[%s26486_s4 + $0x178] sm:$0xff] }
 0x3c4   :  { %v1420_v37 = vpack.c.bf16 %v1348_v4, %v1348_v4  ;;  %v4728_v31 = vrot.slane %v4727_v23, 2  ;;  %v4815_v30 = vshrl.u32 %v4813_v3, 16  ;;  %v4818_v52 = vshll.u32 %v4813_v3, 16  ;;  %v18191_v23 = vld [vmem:[%s26486_s4 + $0xb78] sm:$0xff] }
 0x3c5   :  { %v20898_v10 = vunpack.c.l.b16 %v1421_v55  ;;  %v1600_v53 = vunpack.c.l.b16 %v1419_v60  ;;  %v1200_v38 = vmul.f32 %v20713_v54, %v20155_v51  ;;  %v1201_v41 = vmul.f32 %v20713_v54, %v20161_v0  ;;  %v18182_v51 = vld [vmem:[%s26486_s4 + $0xb30] sm:$0xff] }
 0x3c6   :  { %v1526_v49 = vunpack.c.l.b16 %v1420_v37  ;;  %4786 = vmatmul.bf16.vlgmr.msrb.gmra.mxu1 %v4728_v31  ;;  %v20907_v46 = vunpack.c.l.b16 %v1422_v27  ;;  %v20909_v8 = vunpack.c.l.b16 %v1423_v58  ;;  %v4817_v16 = vrot.slane %v4815_v30, 2  ;;  %v17863_v30 = vld [vmem:[%s26486_s4 + $0x138] sm:$0xff] }
 0x3c7   :  { %5494 = vmatpush.bf16.msrb.mxu1 %v18183_v12  ;;  %v4820_v4 = vrot.slane %v4818_v52, 3  ;;  %v1392_v0 = vadd.f32 %v20734_v33, %v1316_v25  ;;  %v1245_v58 = vmul.f32 %v20713_v54, %v20425_v22  ;;  %v5086_v27 = vunpack.c.l.b16 %v1465_v56  ;;  %v17870_v52 = vld [vmem:[%s26486_s4 + $0x170] sm:$0xff]  ;;  %v18181_v22 = vld [vmem:[%s26486_s4 + $0xb28] sm:$0xff] }
 0x3c8   :  { %v1601_v55 = vpack.c.b16 %v1526_v49, %v1600_v53  ;;  %v1528_v37 = vpack.c.b16 %v20898_v10, %v1526_v49  ;;  %v1276_v12 = vmul.f32 %v20727_v24, %v1200_v38  ;;  %v1277_v25 = vmul.f32 %v20727_v24, %v1201_v41  ;;  %v18190_v38 = vld [vmem:[%s26486_s4 + $0xb70] sm:$0xff] }
 0x3c9   :  { %v4821_v60 = vor.u32 %v4820_v4, %v4817_v16  ;;  %v1770_v56 = vpack.c.b16 %v20909_v8, %v20907_v46  ;;  %v1464_v53 = vpack.c.bf16 %v1392_v0, %v1392_v0  ;;  %v1321_v41 = vmul.f32 %v20727_v24, %v1245_v58 }
 0x3ca   :  { %1659 = vmatmul.bf16.vlgmr.msra.gmra.mxu3 %v1601_v55  ;;  %v1532_v3 = vshll.u32 %v1528_v37, 16  ;;  %v1530_v31 = vshrl.u32 %v1528_v37, 16  ;;  %v17869_v37 = vld [vmem:[%s26486_s4 + $0x168] sm:$0xff]  ;;  %v1352_v16 = vadd.f32 %v20734_v33, %v1276_v12  ;;  %v1353_v4 = vadd.f32 %v20734_v33, %v1277_v25  ;;  %v17868_v25 = vld [vmem:[%s26486_s4 + $0x160] sm:$0xff] }
 0x3cb   :  { %2007 = vmatpush.bf16.msra.mxu3 %v17871_v48  ;;  %4879 = vmatmul.bf16.vlgmr.msrb.gmra.mxu0 %v4821_v60  ;;  %v5172_v48 = vpack.c.b16 %v20821_v26, %v5086_v27  ;;  %v1772_v0 = vshrl.u32 %v1770_v56, 16  ;;  %v5085_v58 = vunpack.c.l.b16 %v1464_v53  ;;  %v18189_v60 = vld [vmem:[%s26486_s4 + $0xb68] sm:$0xff]  ;;  %v1397_v12 = vadd.f32 %v20734_v33, %v1321_v41  ;;  %v18179_v53 = vld [vmem:[%s26486_s4 + $0xb18] sm:$0xff]  ;;  %v18188_v41 = vld [vmem:[%s26486_s4 + $0xb60] sm:$0xff] }
 0x3cc   :  { %v1534_v49 = vrot.slane %v1532_v3, 1  ;;  %5495 = vmatpush.bf16.msrb.mxu1 %v18182_v51  ;;  %5587 = vmatpush.bf16.msrb.mxu0 %v18191_v23  ;;  %v18180_v51 = vld [vmem:[%s26486_s4 + $0xb20] sm:$0xff]  ;;  %v1775_v23 = vshll.u32 %v1770_v56, 16  ;;  %v17862_v3 = vld [vmem:[%s26486_s4 + $0x130] sm:$0xff] }
 0x3ce   :  { %v1535_v55 = vor.u32 %v1534_v49, %v1530_v31  ;;  %v1424_v31 = vpack.c.bf16 %v1352_v16, %v1352_v16  ;;  %v1425_v49 = vpack.c.bf16 %v1353_v4, %v1353_v4  ;;  %v1777_v56 = vrot.slane %v1775_v23, 2  ;;  %v17867_v16 = vld [vmem:[%s26486_s4 + $0x158] sm:$0xff] }
 0x3cf   :  { %2008 = vmatpush.bf16.msra.mxu3 %v17870_v52  ;;  %v5176_v52 = vshll.u32 %v5172_v48, 16  ;;  %v5174_v23 = vshrl.u32 %v5172_v48, 16  ;;  %v1684_v48 = vpack.c.b16 %v20907_v46, %v20898_v10  ;;  %v17859_v10 = vld [vmem:[%s26486_s4 + $0x118] sm:$0xff]  ;;  %v18186_v46 = vld [vmem:[%s26486_s4 + $0xb50] sm:$0xff] }
 0x3d0   :  { %1593 = vmatmul.bf16.vlgmr.msra.gmra.mxu2 %v1535_v55  ;;  %5496 = vmatpush.bf16.msrb.mxu1 %v18181_v22  ;;  %v1774_v22 = vrot.slane %v1772_v0, 1  ;;  %v1469_v55 = vpack.c.bf16 %v1397_v12, %v1397_v12  ;;  %v20969_v4 = vunpack.c.l.b16 %v1424_v31  ;;  %v18177_v31 = vld [vmem:[%s26486_s4 + $0xb08] sm:$0xff] }
 0x3d1   :  { %1914 = vmatpush.bf16.msra.mxu2 %v17863_v30  ;;  %5588 = vmatpush.bf16.msrb.mxu0 %v18190_v38  ;;  %v17861_v30 = vld [vmem:[%s26486_s4 + $0x128] sm:$0xff]  ;;  %v5087_v38 = vpack.c.b16 %v5086_v27, %v5085_v58  ;;  %v18178_v27 = vld [vmem:[%s26486_s4 + $0xb10] sm:$0xff]  ;;  %v17860_v58 = vld [vmem:[%s26486_s4 + $0x120] sm:$0xff] }
 0x3d2   :  { %v1778_v0 = vor.u32 %v1777_v56, %v1774_v22  ;;  %v5442_v12 = vunpack.c.l.b16 %v1469_v55  ;;  %v1685_v56 = vrot.slane %v1684_v48, 1  ;;  %v18176_v55 = vld [vmem:[%s26486_s4 + $0xb00] sm:$0xff]  ;;  %v17887_v48 = vld [vmem:[%s26486_s4 + $0x1f8] sm:$0xff] }
 0x3d3   :  { %2009 = vmatpush.bf16.msra.mxu3 %v17869_v37  ;;  %v5178_v37 = vrot.slane %v5176_v52, 1 }
 0x3d4   :  { %5497 = vmatpush.bf16.msrb.mxu1 %v18180_v51  ;;  %v20971_v51 = vunpack.c.l.b16 %v1425_v49  ;;  %v5529_v22 = vpack.c.b16 %v20829_v5, %v5442_v12 }
 0x3d5   :  { %1915 = vmatpush.bf16.msra.mxu2 %v17862_v3  ;;  %5589 = vmatpush.bf16.msrb.mxu0 %v18189_v60  ;;  %v18187_v3 = vld [vmem:[%s26486_s4 + $0xb58] sm:$0xff]  ;;  %v1238_v60 = vmul.f32 %v20713_v54, %v20383_v50  ;;  %v5179_v52 = vor.u32 %v5178_v37, %v5174_v23 }
 0x3d6   :  { %5145 = vmatmul.bf16.vlgmr.msra.gmra.mxu1 %v5087_v38  ;;  %v1949_v50 = vpack.c.b16 %v20971_v51, %v20969_v4  ;;  %v1255_v38 = vmul.f32 %v20713_v54, %v20490_v34  ;;  %v18185_v34 = vld [vmem:[%s26486_s4 + $0xb48] sm:$0xff]  ;;  %v18215_v23 = vld [vmem:[%s26486_s4 + $0xc38] sm:$0xff] }
 0x3d7   :  { %2010 = vmatpush.bf16.msra.mxu3 %v17868_v25  ;;  %v17866_v25 = vld [vmem:[%s26486_s4 + $0x150] sm:$0xff]  ;;  %v1314_v49 = vmul.f32 %v20727_v24, %v1238_v60 }
 0x3d8   :  { %5498 = vmatpush.bf16.msrb.mxu1 %v18179_v53  ;;  %v1251_v53 = vmul.f32 %v20713_v54, %v20463_v62  ;;  %v1951_v37 = vshrl.u32 %v1949_v50, 16  ;;  %v5443_v62 = vpack.c.b16 %v5442_v12, %v20825_v61  ;;  %v1331_v60 = vmul.f32 %v20727_v24, %v1255_v38 }
 0x3d9   :  { %1916 = vmatpush.bf16.msra.mxu2 %v17861_v30  ;;  %5590 = vmatpush.bf16.msrb.mxu0 %v18188_v41  ;;  %v17865_v30 = vld [vmem:[%s26486_s4 + $0x148] sm:$0xff]  ;;  %v1256_v41 = vmul.f32 %v20713_v54, %v20496_v28  ;;  %v1390_v28 = vadd.f32 %v20734_v33, %v1314_v49  ;;  %v18184_v49 = vld [vmem:[%s26486_s4 + $0xb40] sm:$0xff]  ;;  %v1250_v38 = vmul.f32 %v20713_v54, %v20455_v42 }
 0x3da   :  { %1836 = vmatmul.bf16.vlgmr.msrb.gmra.mxu3 %v1778_v0  ;;  %v17858_v0 = vld [vmem:[%s26486_s4 + $0x110] sm:$0xff]  ;;  %v1327_v61 = vmul.f32 %v20727_v24, %v1251_v53 }
 0x3db   :  { %2011 = vmatpush.bf16.msra.mxu3 %v17867_v16  ;;  %5237 = vmatmul.bf16.vlgmr.msra.gmra.mxu0 %v5179_v52  ;;  %v1954_v16 = vshll.u32 %v1949_v50, 16  ;;  %v1332_v12 = vmul.f32 %v20727_v24, %v1256_v41  ;;  %v1953_v52 = vrot.slane %v1951_v37, 2  ;;  %v1203_v50 = vmul.f32 %v20713_v54, %v20173_v43 }
 0x3dc   :  { %5499 = vmatpush.bf16.msrb.mxu1 %v18178_v27  ;;  %v5531_v27 = vshrl.u32 %v5529_v22, 16  ;;  %v1403_v43 = vadd.f32 %v20734_v33, %v1327_v61  ;;  %v1407_v41 = vadd.f32 %v20734_v33, %v1331_v60  ;;  %v1326_v60 = vmul.f32 %v20727_v24, %v1250_v38  ;;  %v17877_v38 = vld [vmem:[%s26486_s4 + $0x1a8] sm:$0xff] }
 0x3dd   :  { %1917 = vmatpush.bf16.msra.mxu2 %v17860_v58  ;;  %5591 = vmatpush.bf16.msrb.mxu0 %v18187_v3  ;;  %v5534_v58 = vshll.u32 %v5529_v22, 16  ;;  %v17864_v3 = vld [vmem:[%s26486_s4 + $0x140] sm:$0xff]  ;;  %v1462_v22 = vpack.c.bf16 %v1390_v28, %v1390_v28  ;;  %v17879_v28 = vld [vmem:[%s26486_s4 + $0x1b8] sm:$0xff] }
 0x3de   :  { %v1475_v61 = vpack.c.bf16 %v1403_v43, %v1403_v43  ;;  %v17884_v43 = vld [vmem:[%s26486_s4 + $0x1e0] sm:$0xff] }
 0x3df   :  { %2012 = vmatpush.bf16.msra.mxu3 %v17866_v25  ;;  %v1956_v25 = vrot.slane %v1954_v16, 3  ;;  %v5536_v53 = vrot.slane %v5534_v58, 3  ;;  %v17886_v16 = vld [vmem:[%s26486_s4 + $0x1f0] sm:$0xff]  ;;  %v21063_v42 = vunpack.c.l.b16 %v1462_v22  ;;  %v18213_v58 = vld [vmem:[%s26486_s4 + $0xc28] sm:$0xff] }
 0x3e0   :  { %1743 = vmatmul.bf16.vlgmr.msrb.gmra.mxu2 %v1685_v56  ;;  %5500 = vmatpush.bf16.msrb.mxu1 %v18177_v31  ;;  %v1202_v31 = vmul.f32 %v20713_v54, %v20167_v14  ;;  %v18214_v14 = vld [vmem:[%s26486_s4 + $0xc30] sm:$0xff]  ;;  %v5533_v56 = vrot.slane %v5531_v27, 2  ;;  %v18221_v22 = vld [vmem:[%s26486_s4 + $0xc68] sm:$0xff] }
 0x3e1   :  { %1918 = vmatpush.bf16.msra.mxu2 %v17859_v10  ;;  %5592 = vmatpush.bf16.msrb.mxu0 %v18186_v46  ;;  %v17857_v10 = vld [vmem:[%s26486_s4 + $0x108] sm:$0xff]  ;;  %v5444_v46 = vrot.slane %v5443_v62, 2  ;;  %v1957_v37 = vor.u32 %v1956_v25, %v1953_v52 }
 0x3e2   :  { %v1278_v62 = vmul.f32 %v20727_v24, %v1202_v31  ;;  %v5537_v27 = vor.u32 %v5536_v53, %v5533_v56  ;;  %v17878_v31 = vld [vmem:[%s26486_s4 + $0x1b0] sm:$0xff] }
 0x3e3   :  { %2013 = vmatpush.bf16.msra.mxu3 %v17865_v30  ;;  %v18223_v30 = vld [vmem:[%s26486_s4 + $0xc78] sm:$0xff] }
 0x3e4   :  { %5501 = vmatpush.bf16.msrb.mxu1 %v18176_v55  ;;  %v1408_v55 = vadd.f32 %v20734_v33, %v1332_v12  ;;  %v1479_v12 = vpack.c.bf16 %v1407_v41, %v1407_v41  ;;  %v18211_v41 = vld [vmem:[%s26486_s4 + $0xc18] sm:$0xff] }
 0x3e5   :  { %1919 = vmatpush.bf16.msra.mxu2 %v17858_v0  ;;  %5593 = vmatpush.bf16.msrb.mxu0 %v18185_v34  ;;  %v1279_v0 = vmul.f32 %v20727_v24, %v1203_v50  ;;  %v17856_v34 = vld [vmem:[%s26486_s4 + $0x100] sm:$0xff] }
 0x3e6   :  { %v18212_v50 = vld [vmem:[%s26486_s4 + $0xc20] sm:$0xff]  ;;  %v21098_v56 = vunpack.c.l.b16 %v1479_v12  ;;  %v17882_v12 = vld [vmem:[%s26486_s4 + $0x1d0] sm:$0xff] }
 0x3e7   :  { %2014 = vmatpush.bf16.msra.mxu3 %v17864_v3  ;;  %5502 = vmatmul.bf16.vlgmr.msrb.gmra.mxu1 %v5444_v46  ;;  %v18222_v3 = vld [vmem:[%s26486_s4 + $0xc70] sm:$0xff]  ;;  %v1355_v52 = vadd.f32 %v20734_v33, %v1279_v0  ;;  %v1249_v46 = vmul.f32 %v20713_v54, %v20449_v35  ;;  %v17883_v0 = vld [vmem:[%s26486_s4 + $0x1d8] sm:$0xff] }
 0x3e8   :  { %5853 = vmatpush.bf16.msra.mxu1 %v18215_v23  ;;  %v1863_v23 = vpack.c.b16 %v20969_v4, %v20909_v8  ;;  %v17885_v8 = vld [vmem:[%s26486_s4 + $0x1e8] sm:$0xff]  ;;  %v1354_v4 = vadd.f32 %v20734_v33, %v1278_v62 }
 0x3e9   :  { %1920 = vmatpush.bf16.msra.mxu2 %v17857_v10  ;;  %5594 = vmatpush.bf16.msrb.mxu0 %v18184_v49  ;;  %v4906_v10 = vpack.c.b16 %v21063_v42, %v20880_v29  ;;  %v21092_v49 = vunpack.c.l.b16 %v1475_v61  ;;  %v18171_v29 = vld [vmem:[%s26486_s4 + $0xad8] sm:$0xff] }
 0x3ea   :  { %2015 = vmatmul.bf16.vlgmr.msra.gmra.mxu3 %v1957_v37  ;;  %v1864_v25 = vrot.slane %v1863_v23, 2  ;;  %v1426_v35 = vpack.c.bf16 %v1354_v4, %v1354_v4  ;;  %v18220_v37 = vld [vmem:[%s26486_s4 + $0xc60] sm:$0xff]  ;;  %v18209_v4 = vld [vmem:[%s26486_s4 + $0xc08] sm:$0xff] }
 0x3eb   :  { %2186 = vmatpush.bf16.msrb.mxu3 %v17887_v48  ;;  %v1480_v48 = vpack.c.bf16 %v1408_v55, %v1408_v55  ;;  %v1325_v55 = vmul.f32 %v20727_v24, %v1249_v46 }
 0x3ec   :  { %5854 = vmatpush.bf16.msra.mxu1 %v18214_v14  ;;  %5595 = vmatmul.bf16.vlgmr.msrb.gmra.mxu0 %v5537_v27  ;;  %v1402_v14 = vadd.f32 %v20734_v33, %v1326_v60  ;;  %v17876_v27 = vld [vmem:[%s26486_s4 + $0x1a0] sm:$0xff] }
 0x3ed   :  { %5945 = vmatpush.bf16.msra.mxu0 %v18223_v30  ;;  %1921 = vmatpush.bf16.msra.mxu2 %v17856_v34  ;;  %v21100_v53 = vunpack.c.l.b16 %v1480_v48  ;;  %v1427_v30 = vpack.c.bf16 %v1355_v52, %v1355_v52  ;;  %v1401_v61 = vadd.f32 %v20734_v33, %v1325_v55  ;;  %v17880_v55 = vld [vmem:[%s26486_s4 + $0x1c0] sm:$0xff] }
 0x3ee   :  { %v1474_v62 = vpack.c.bf16 %v1402_v14, %v1402_v14  ;;  %v17874_v14 = vld [vmem:[%s26486_s4 + $0x190] sm:$0xff] }
 0x3ef   :  { %2187 = vmatpush.bf16.msrb.mxu3 %v17886_v16  ;;  %v5980_v16 = vpack.c.b16 %v20835_v13, %v21092_v49  ;;  %v6338_v34 = vpack.c.b16 %v21100_v53, %v21098_v56  ;;  %v2127_v23 = vunpack.c.l.b16 %v1427_v30  ;;  %v1473_v52 = vpack.c.bf16 %v1401_v61, %v1401_v61  ;;  %v18217_v30 = vld [vmem:[%s26486_s4 + $0xc48] sm:$0xff]  ;;  %v18267_v13 = vld [vmem:[%s26486_s4 + $0xdd8] sm:$0xff] }
 0x3f0   :  { %5855 = vmatpush.bf16.msra.mxu1 %v18213_v58  ;;  %1922 = vmatmul.bf16.vlgmr.msra.gmra.mxu2 %v1864_v25  ;;  %v18210_v58 = vld [vmem:[%s26486_s4 + $0xc10] sm:$0xff]  ;;  %v5802_v60 = vunpack.c.l.b16 %v1474_v62 }
 0x3f1   :  { %2093 = vmatpush.bf16.msrb.mxu2 %v17879_v28  ;;  %5946 = vmatpush.bf16.msra.mxu0 %v18222_v3  ;;  %v21122_v28 = vunpack.c.l.b16 %v1426_v35  ;;  %v18219_v3 = vld [vmem:[%s26486_s4 + $0xc58] sm:$0xff]  ;;  %v18218_v25 = vld [vmem:[%s26486_s4 + $0xc50] sm:$0xff]  ;;  %v5801_v35 = vunpack.c.l.b16 %v1473_v52 }
 0x3f3   :  { %2188 = vmatpush.bf16.msrb.mxu3 %v17885_v8  ;;  %v2128_v48 = vpack.c.b16 %v2127_v23, %v21122_v28  ;;  %v17875_v8 = vld [vmem:[%s26486_s4 + $0x198] sm:$0xff]  ;;  %v1205_v23 = vmul.f32 %v20713_v54, %v20185_v11  ;;  %v5803_v61 = vpack.c.b16 %v5802_v60, %v5801_v35  ;;  %v18246_v11 = vld [vmem:[%s26486_s4 + $0xd30] sm:$0xff]  ;;  %v17901_v35 = vld [vmem:[%s26486_s4 + $0x268] sm:$0xff] }
 0x3f4   :  { %5856 = vmatpush.bf16.msra.mxu1 %v18212_v50  ;;  %v17881_v50 = vld [vmem:[%s26486_s4 + $0x1c8] sm:$0xff] }
 0x3f5   :  { %2094 = vmatpush.bf16.msrb.mxu2 %v17878_v31  ;;  %5947 = vmatpush.bf16.msra.mxu0 %v18221_v22  ;;  %v5888_v31 = vpack.c.b16 %v21092_v49, %v5802_v60  ;;  %v2130_v46 = vshrl.u32 %v2128_v48, 16  ;;  %v2133_v22 = vshll.u32 %v2128_v48, 16  ;;  %v1254_v48 = vmul.f32 %v20713_v54, %v20484_v63  ;;  %v17902_v60 = vld [vmem:[%s26486_s4 + $0x270] sm:$0xff]  ;;  %v17895_v63 = vld [vmem:[%s26486_s4 + $0x238] sm:$0xff] }
 0x3f7   :  { %2189 = vmatpush.bf16.msrb.mxu3 %v17884_v43  ;;  %v18208_v43 = vld [vmem:[%s26486_s4 + $0xc00] sm:$0xff]  ;;  %v2132_v62 = vrot.slane %v2130_v46, 3  ;;  %v2042_v46 = vpack.c.b16 %v21122_v28, %v20971_v51 }
 0x3f8   :  { %5857 = vmatpush.bf16.msra.mxu1 %v18211_v41  ;;  %v5892_v41 = vshll.u32 %v5888_v31, 16 }
 0x3f9   :  { %2095 = vmatpush.bf16.msrb.mxu2 %v17877_v38  ;;  %5948 = vmatpush.bf16.msra.mxu0 %v18220_v37  ;;  %v18247_v38 = vld [vmem:[%s26486_s4 + $0xd38] sm:$0xff] }
 0x3fa   :  { %v17903_v37 = vld [vmem:[%s26486_s4 + $0x278] sm:$0xff] }
 0x3fb   :  { %2190 = vmatpush.bf16.msrb.mxu3 %v17883_v0  ;;  %v2135_v0 = vrot.slane %v2133_v22, 4 }
 0x3fc   :  { %5858 = vmatpush.bf16.msra.mxu1 %v18210_v58  ;;  %v17873_v58 = vld [vmem:[%s26486_s4 + $0x188] sm:$0xff] }
 0x3fd   :  { %2096 = vmatpush.bf16.msrb.mxu2 %v17876_v27  ;;  %5949 = vmatpush.bf16.msra.mxu0 %v18219_v3  ;;  %v1206_v27 = vmul.f32 %v20713_v54, %v20191_v15  ;;  %v18216_v3 = vld [vmem:[%s26486_s4 + $0xc40] sm:$0xff]  ;;  %v18255_v15 = vld [vmem:[%s26486_s4 + $0xd78] sm:$0xff] }
 0x3ff   :  { %2191 = vmatpush.bf16.msrb.mxu3 %v17882_v12  ;;  %v5894_v12 = vrot.slane %v5892_v41, 1  ;;  %v1282_v52 = vmul.f32 %v20727_v24, %v1206_v27  ;;  %v18244_v41 = vld [vmem:[%s26486_s4 + $0xd20] sm:$0xff]  ;;  %v17893_v27 = vld [vmem:[%s26486_s4 + $0x228] sm:$0xff] }
 0x400   :  { %5859 = vmatpush.bf16.msra.mxu1 %v18209_v4  ;;  %v1281_v4 = vmul.f32 %v20727_v24, %v1205_v23 }
 0x401   :  { %2097 = vmatpush.bf16.msrb.mxu2 %v17875_v8  ;;  %5950 = vmatpush.bf16.msra.mxu0 %v18218_v25  ;;  %v2136_v8 = vor.u32 %v2135_v0, %v2132_v62  ;;  %v5890_v25 = vshrl.u32 %v5888_v31, 16  ;;  %v18245_v31 = vld [vmem:[%s26486_s4 + $0xd28] sm:$0xff]  ;;  %v1358_v28 = vadd.f32 %v20734_v33, %v1282_v52  ;;  %v17900_v62 = vld [vmem:[%s26486_s4 + $0x260] sm:$0xff] }
 0x402   :  { %v1357_v51 = vadd.f32 %v20734_v33, %v1281_v4  ;;  %v18251_v4 = vld [vmem:[%s26486_s4 + $0xd58] sm:$0xff] }
 0x403   :  { %2192 = vmatpush.bf16.msrb.mxu3 %v17881_v50  ;;  %v17872_v50 = vld [vmem:[%s26486_s4 + $0x180] sm:$0xff]  ;;  %v5895_v22 = vor.u32 %v5894_v12, %v5890_v25  ;;  %v1430_v23 = vpack.c.bf16 %v1358_v28, %v1358_v28  ;;  %v17898_v25 = vld [vmem:[%s26486_s4 + $0x250] sm:$0xff] }
 0x404   :  { %5860 = vmatpush.bf16.msra.mxu1 %v18208_v43  ;;  %v1330_v43 = vmul.f32 %v20727_v24, %v1254_v48  ;;  %v1429_v0 = vpack.c.bf16 %v1357_v51, %v1357_v51  ;;  %v17892_v48 = vld [vmem:[%s26486_s4 + $0x220] sm:$0xff] }
 0x405   :  { %2098 = vmatpush.bf16.msrb.mxu2 %v17874_v14  ;;  %5951 = vmatpush.bf16.msra.mxu0 %v18217_v30  ;;  %v18254_v14 = vld [vmem:[%s26486_s4 + $0xd70] sm:$0xff]  ;;  %v2043_v30 = vrot.slane %v2042_v46, 3  ;;  %v21239_v12 = vunpack.c.l.b16 %v1430_v23  ;;  %v18241_v46 = vld [vmem:[%s26486_s4 + $0xd08] sm:$0xff]  ;;  %v18240_v28 = vld [vmem:[%s26486_s4 + $0xd00] sm:$0xff] }
 0x407   :  { %2193 = vmatpush.bf16.msrb.mxu3 %v17880_v55  ;;  %5861 = vmatmul.bf16.vlgmr.msra.gmra.mxu1 %v5803_v61  ;;  %v18253_v55 = vld [vmem:[%s26486_s4 + $0xd68] sm:$0xff]  ;;  %v18252_v61 = vld [vmem:[%s26486_s4 + $0xd60] sm:$0xff] }
 0x408   :  { %6210 = vmatpush.bf16.msrb.mxu1 %v18247_v38  ;;  %v17894_v38 = vld [vmem:[%s26486_s4 + $0x230] sm:$0xff] }
 0x409   :  { %2099 = vmatpush.bf16.msrb.mxu2 %v17873_v58  ;;  %5952 = vmatpush.bf16.msra.mxu0 %v18216_v3  ;;  %v18243_v58 = vld [vmem:[%s26486_s4 + $0xd18] sm:$0xff] }
 0x40a   :  { %2194 = vmatmul.bf16.vlgmr.msrb.gmra.mxu3 %v2136_v8  ;;  %v1204_v8 = vmul.f32 %v20713_v54, %v20179_v40  ;;  %v17891_v40 = vld [vmem:[%s26486_s4 + $0x218] sm:$0xff] }
 0x40b   :  { %2365 = vmatpush.bf16.msra.mxu3 %v17903_v37  ;;  %v1406_v37 = vadd.f32 %v20734_v33, %v1330_v43 }
 0x40c   :  { %6211 = vmatpush.bf16.msrb.mxu1 %v18246_v11  ;;  %5953 = vmatmul.bf16.vlgmr.msra.gmra.mxu0 %v5895_v22  ;;  %v17899_v11 = vld [vmem:[%s26486_s4 + $0x258] sm:$0xff]  ;;  %v18250_v22 = vld [vmem:[%s26486_s4 + $0xd50] sm:$0xff] }
 0x40d   :  { %6303 = vmatpush.bf16.msrb.mxu0 %v18255_v15  ;;  %2100 = vmatpush.bf16.msrb.mxu2 %v17872_v50  ;;  %v1478_v3 = vpack.c.bf16 %v1406_v37, %v1406_v37  ;;  %v21237_v15 = vunpack.c.l.b16 %v1429_v0  ;;  %v18279_v37 = vld [vmem:[%s26486_s4 + $0xe38] sm:$0xff] }
 0x40e   :  { %v17919_v0 = vld [vmem:[%s26486_s4 + $0x2f8] sm:$0xff] }
 0x40f   :  { %2366 = vmatpush.bf16.msra.mxu3 %v17902_v60  ;;  %v18242_v60 = vld [vmem:[%s26486_s4 + $0xd10] sm:$0xff]  ;;  %v6158_v52 = vunpack.c.l.b16 %v1478_v3  ;;  %v2308_v50 = vpack.c.b16 %v21239_v12, %v21237_v15 }
 0x410   :  { %6212 = vmatpush.bf16.msrb.mxu1 %v18245_v31  ;;  %2101 = vmatmul.bf16.vlgmr.msrb.gmra.mxu2 %v2043_v30  ;;  %v18249_v30 = vld [vmem:[%s26486_s4 + $0xd48] sm:$0xff] }
 0x411   :  { %2273 = vmatpush.bf16.msra.mxu2 %v17895_v63  ;;  %6304 = vmatpush.bf16.msrb.mxu0 %v18254_v14  ;;  %v1280_v63 = vmul.f32 %v20727_v24, %v1204_v8  ;;  %v6245_v31 = vpack.c.b16 %v21098_v56, %v6158_v52  ;;  %v17897_v14 = vld [vmem:[%s26486_s4 + $0x248] sm:$0xff]  ;;  %v2312_v43 = vshll.u32 %v2308_v50, 16  ;;  %v2310_v3 = vshrl.u32 %v2308_v50, 16  ;;  %v18299_v56 = vld [vmem:[%s26486_s4 + $0xed8] sm:$0xff] }
 0x413   :  { %2367 = vmatpush.bf16.msra.mxu3 %v17901_v35  ;;  %v17890_v35 = vld [vmem:[%s26486_s4 + $0x210] sm:$0xff]  ;;  %v1356_v51 = vadd.f32 %v20734_v33, %v1280_v63  ;;  %v2314_v23 = vrot.slane %v2312_v43, 1  ;;  %v17888_v63 = vld [vmem:[%s26486_s4 + $0x200] sm:$0xff] }
 0x414   :  { %6213 = vmatpush.bf16.msrb.mxu1 %v18244_v41  ;;  %v6250_v41 = vshll.u32 %v6245_v31, 16 }
 0x415   :  { %2274 = vmatpush.bf16.msra.mxu2 %v17894_v38  ;;  %6305 = vmatpush.bf16.msrb.mxu0 %v18253_v55  ;;  %v6247_v38 = vshrl.u32 %v6245_v31, 16  ;;  %v17896_v55 = vld [vmem:[%s26486_s4 + $0x240] sm:$0xff]  ;;  %v18286_v31 = vld [vmem:[%s26486_s4 + $0xe70] sm:$0xff] }
 0x417   :  { %2368 = vmatpush.bf16.msra.mxu3 %v17900_v62  ;;  %v6159_v62 = vpack.c.b16 %v6158_v52, %v20837_v59  ;;  %v18248_v59 = vld [vmem:[%s26486_s4 + $0xd40] sm:$0xff]  ;;  %v6249_v8 = vrot.slane %v6247_v38, 2  ;;  %v2315_v52 = vor.u32 %v2314_v23, %v2310_v3 }
 0x418   :  { %6214 = vmatpush.bf16.msrb.mxu1 %v18243_v58  ;;  %v1208_v58 = vmul.f32 %v20713_v54, %v20203_v17  ;;  %v18287_v17 = vld [vmem:[%s26486_s4 + $0xe78] sm:$0xff] }
 0x419   :  { %2275 = vmatpush.bf16.msra.mxu2 %v17893_v27  ;;  %6306 = vmatpush.bf16.msrb.mxu0 %v18252_v61  ;;  %v1207_v27 = vmul.f32 %v20713_v54, %v20197_v1  ;;  %v17889_v61 = vld [vmem:[%s26486_s4 + $0x208] sm:$0xff]  ;;  %v18278_v1 = vld [vmem:[%s26486_s4 + $0xe30] sm:$0xff] }
 0x41b   :  { %2369 = vmatpush.bf16.msra.mxu3 %v17899_v11  ;;  %v1428_v11 = vpack.c.bf16 %v1356_v51, %v1356_v51  ;;  %v1283_v50 = vmul.f32 %v20727_v24, %v1207_v27  ;;  %v17909_v27 = vld [vmem:[%s26486_s4 + $0x2a8] sm:$0xff] }
 0x41c   :  { %6215 = vmatpush.bf16.msrb.mxu1 %v18242_v60  ;;  %v6252_v60 = vrot.slane %v6250_v41, 3  ;;  %v17910_v41 = vld [vmem:[%s26486_s4 + $0x2b0] sm:$0xff] }
 0x41d   :  { %2276 = vmatpush.bf16.msra.mxu2 %v17892_v48  ;;  %6307 = vmatpush.bf16.msrb.mxu0 %v18251_v4  ;;  %v6160_v48 = vrot.slane %v6159_v62, 2  ;;  %v1259_v4 = vmul.f32 %v20713_v54, %v20517_v32  ;;  %v17911_v32 = vld [vmem:[%s26486_s4 + $0x2b8] sm:$0xff]  ;;  %v1359_v51 = vadd.f32 %v20734_v33, %v1283_v50  ;;  %v18276_v33 = vld [vmem:[%s26486_s4 + $0xe20] sm:$0xff] }
 0x41e   :  { %v17907_v50 = vld [vmem:[%s26486_s4 + $0x298] sm:$0xff] }
 0x41f   :  { %2370 = vmatpush.bf16.msra.mxu3 %v17898_v25  ;;  %v17918_v25 = vld [vmem:[%s26486_s4 + $0x2f0] sm:$0xff] }
 0x420   :  { %6216 = vmatpush.bf16.msrb.mxu1 %v18241_v46  ;;  %v2221_v46 = vunpack.c.l.b16 %v1428_v11 }
 0x421   :  { %2277 = vmatpush.bf16.msra.mxu2 %v17891_v40  ;;  %6308 = vmatpush.bf16.msrb.mxu0 %v18250_v22  ;;  %v1284_v40 = vmul.f32 %v20727_v24, %v1208_v58  ;;  %v6253_v22 = vor.u32 %v6252_v60, %v6249_v8  ;;  %v18277_v24 = vld [vmem:[%s26486_s4 + $0xe28] sm:$0xff]  ;;  %v18284_v58 = vld [vmem:[%s26486_s4 + $0xe60] sm:$0xff]  ;;  %v18283_v8 = vld [vmem:[%s26486_s4 + $0xe58] sm:$0xff] }
 0x422   :  { %v2223_v38 = vpack.c.b16 %v21237_v15, %v2221_v46  ;;  %v17916_v15 = vld [vmem:[%s26486_s4 + $0x2e0] sm:$0xff] }
 0x423   :  { %2371 = vmatpush.bf16.msra.mxu3 %v17897_v14  ;;  %v21329_v14 = vld [vmem:[%s26484_s2] ss:$0 sm:$0xff] }
 0x424   :  { %6217 = vmatpush.bf16.msrb.mxu1 %v18240_v28  ;;  %v1335_v43 = vmul.f32 %v21329_v14, %v1259_v4  ;;  %v21339_v28 = vld [vmem:[%s26485_s3] ss:$0 sm:$0xff] }
 0x425   :  { %2278 = vmatpush.bf16.msra.mxu2 %v17890_v35  ;;  %6309 = vmatpush.bf16.msrb.mxu0 %v18249_v30  ;;  %v17917_v35 = vld [vmem:[%s26486_s4 + $0x2e8] sm:$0xff]  ;;  %v1360_v30 = vadd.f32 %v21339_v28, %v1284_v40 }
 0x426   :  { %v1411_v62 = vadd.f32 %v21339_v28, %v1335_v43  ;;  %v18273_v40 = vld [vmem:[%s26486_s4 + $0xe08] sm:$0xff]  ;;  %v17906_v43 = vld [vmem:[%s26486_s4 + $0x290] sm:$0xff] }
 0x427   :  { %2372 = vmatpush.bf16.msra.mxu3 %v17896_v55  ;;  %6218 = vmatmul.bf16.vlgmr.msrb.gmra.mxu1 %v6160_v48  ;;  %v18285_v55 = vld [vmem:[%s26486_s4 + $0xe68] sm:$0xff]  ;;  %v1432_v23 = vpack.c.bf16 %v1360_v30, %v1360_v30 }
 0x428   :  { %6569 = vmatpush.bf16.msra.mxu1 %v18279_v37  ;;  %v1258_v37 = vmul.f32 %v20713_v54, %v20511_v47  ;;  %v18275_v47 = vld [vmem:[%s26486_s4 + $0xe18] sm:$0xff]  ;;  %v1483_v3 = vpack.c.bf16 %v1411_v62, %v1411_v62 }
 0x429   :  { %2279 = vmatpush.bf16.msra.mxu2 %v17889_v61  ;;  %6310 = vmatpush.bf16.msrb.mxu0 %v18248_v59  ;;  %v17915_v59 = vld [vmem:[%s26486_s4 + $0x2d8] sm:$0xff]  ;;  %v21373_v48 = vunpack.c.l.b16 %v1432_v23  ;;  %v17905_v23 = vld [vmem:[%s26486_s4 + $0x288] sm:$0xff] }
 0x42a   :  { %2373 = vmatmul.bf16.vlgmr.msra.gmra.mxu3 %v2315_v52  ;;  %v1334_v61 = vmul.f32 %v21329_v14, %v1258_v37  ;;  %v6518_v4 = vunpack.c.l.b16 %v1483_v3  ;;  %v17914_v52 = vld [vmem:[%s26486_s4 + $0x2d0] sm:$0xff] }
 0x42b   :  { %2544 = vmatpush.bf16.msrb.mxu3 %v17919_v0  ;;  %v1431_v0 = vpack.c.bf16 %v1359_v51, %v1359_v51  ;;  %v18281_v51 = vld [vmem:[%s26486_s4 + $0xe48] sm:$0xff] }
 0x42c   :  { %6570 = vmatpush.bf16.msra.mxu1 %v18278_v1  ;;  %6311 = vmatmul.bf16.vlgmr.msrb.gmra.mxu0 %v6253_v22  ;;  %v17908_v1 = vld [vmem:[%s26486_s4 + $0x2a0] sm:$0xff]  ;;  %v1410_v60 = vadd.f32 %v21339_v28, %v1334_v61  ;;  %v6604_v46 = vpack.c.b16 %v20840_v44, %v6518_v4  ;;  %v17913_v22 = vld [vmem:[%s26486_s4 + $0x2c8] sm:$0xff]  ;;  %v1263_v61 = vmul.f32 %v20713_v54, %v20116_v18  ;;  %v17927_v18 = vld [vmem:[%s26486_s4 + $0x338] sm:$0xff] }
 0x42d   :  { %6661 = vmatpush.bf16.msra.mxu0 %v18287_v17  ;;  %2280 = vmatpush.bf16.msra.mxu2 %v17888_v63  ;;  %v21371_v11 = vunpack.c.l.b16 %v1431_v0  ;;  %v18274_v17 = vld [vmem:[%s26486_s4 + $0xe10] sm:$0xff]  ;;  %v1210_v0 = vmul.f32 %v20713_v54, %v20215_v19  ;;  %v18319_v19 = vld [vmem:[%s26486_s4 + $0xf78] sm:$0xff] }
 0x42e   :  { %v18282_v63 = vld [vmem:[%s26486_s4 + $0xe50] sm:$0xff] }
 0x42f   :  { %2545 = vmatpush.bf16.msrb.mxu3 %v17918_v25  ;;  %v2486_v25 = vpack.c.b16 %v21373_v48, %v21371_v11 }
 0x430   :  { %6571 = vmatpush.bf16.msra.mxu1 %v18277_v24  ;;  %2281 = vmatmul.bf16.vlgmr.msra.gmra.mxu2 %v2223_v38  ;;  %v17912_v38 = vld [vmem:[%s26486_s4 + $0x2c0] sm:$0xff] }
 0x431   :  { %2451 = vmatpush.bf16.msrb.mxu2 %v17911_v32  ;;  %6662 = vmatpush.bf16.msra.mxu0 %v18286_v31  ;;  %v1482_v32 = vpack.c.bf16 %v1410_v60, %v1410_v60  ;;  %v2488_v24 = vshrl.u32 %v2486_v25, 16  ;;  %v2491_v31 = vshll.u32 %v2486_v25, 16  ;;  %v6606_v60 = vshrl.u32 %v6604_v46, 16  ;;  %v18309_v25 = vld [vmem:[%s26486_s4 + $0xf28] sm:$0xff] }
 0x433   :  { %2546 = vmatpush.bf16.msrb.mxu3 %v17917_v35  ;;  %v18272_v35 = vld [vmem:[%s26486_s4 + $0xe00] sm:$0xff]  ;;  %v6517_v30 = vunpack.c.l.b16 %v1482_v32  ;;  %v2490_v37 = vrot.slane %v2488_v24, 1  ;;  %v2493_v62 = vrot.slane %v2491_v31, 2  ;;  %v18317_v24 = vld [vmem:[%s26486_s4 + $0xf68] sm:$0xff] }
 0x434   :  { %6572 = vmatpush.bf16.msra.mxu1 %v18276_v33  ;;  %v6608_v33 = vshll.u32 %v6604_v46, 16  ;;  %v17926_v46 = vld [vmem:[%s26486_s4 + $0x330] sm:$0xff] }
 0x435   :  { %2452 = vmatpush.bf16.msrb.mxu2 %v17910_v41  ;;  %6663 = vmatpush.bf16.msra.mxu0 %v18285_v55  ;;  %v18311_v41 = vld [vmem:[%s26486_s4 + $0xf38] sm:$0xff]  ;;  %v2494_v3 = vor.u32 %v2493_v62, %v2490_v37 }
 0x436   :  { %v17935_v55 = vld [vmem:[%s26486_s4 + $0x378] sm:$0xff] }
 0x437   :  { %2547 = vmatpush.bf16.msrb.mxu3 %v17916_v15  ;;  %v1209_v15 = vmul.f32 %v20713_v54, %v20209_v7  ;;  %v18310_v7 = vld [vmem:[%s26486_s4 + $0xf30] sm:$0xff] }
 0x438   :  { %6573 = vmatpush.bf16.msra.mxu1 %v18275_v47  ;;  %v6519_v47 = vpack.c.b16 %v6518_v4, %v6517_v30  ;;  %v2400_v4 = vpack.c.b16 %v21371_v11, %v21239_v12  ;;  %v17925_v30 = vld [vmem:[%s26486_s4 + $0x328] sm:$0xff] }
 0x439   :  { %2453 = vmatpush.bf16.msrb.mxu2 %v17909_v27  ;;  %6664 = vmatpush.bf16.msra.mxu0 %v18284_v58  ;;  %v18280_v27 = vld [vmem:[%s26486_s4 + $0xe40] sm:$0xff]  ;;  %v6610_v58 = vrot.slane %v6608_v33, 1 }
 0x43a   :  { %v2401_v32 = vrot.slane %v2400_v4, 1  ;;  %v17922_v4 = vld [vmem:[%s26486_s4 + $0x310] sm:$0xff] }
 0x43b   :  { %2548 = vmatpush.bf16.msrb.mxu3 %v17915_v59  ;;  %v17934_v59 = vld [vmem:[%s26486_s4 + $0x370] sm:$0xff] }
 0x43c   :  { %6574 = vmatpush.bf16.msra.mxu1 %v18274_v17  ;;  %v1286_v17 = vmul.f32 %v21329_v14, %v1210_v0  ;;  %v17924_v0 = vld [vmem:[%s26486_s4 + $0x320] sm:$0xff] }
 0x43d   :  { %2454 = vmatpush.bf16.msrb.mxu2 %v17908_v1  ;;  %6665 = vmatpush.bf16.msra.mxu0 %v18283_v8  ;;  %v1285_v1 = vmul.f32 %v21329_v14, %v1209_v15  ;;  %v17904_v8 = vld [vmem:[%s26486_s4 + $0x280] sm:$0xff] }
 0x43e   :  { %v1362_v11 = vadd.f32 %v21339_v28, %v1286_v17  ;;  %v17929_v17 = vld [vmem:[%s26486_s4 + $0x348] sm:$0xff] }
 0x43f   :  { %2549 = vmatpush.bf16.msrb.mxu3 %v17914_v52  ;;  %v6611_v52 = vor.u32 %v6610_v58, %v6606_v60  ;;  %v1361_v12 = vadd.f32 %v21339_v28, %v1285_v1  ;;  %v17923_v58 = vld [vmem:[%s26486_s4 + $0x318] sm:$0xff] }
 0x440   :  { %6575 = vmatpush.bf16.msra.mxu1 %v18273_v40  ;;  %v1339_v40 = vmul.f32 %v21329_v14, %v1263_v61  ;;  %v18305_v61 = vld [vmem:[%s26486_s4 + $0xf08] sm:$0xff] }
 0x441   :  { %2455 = vmatpush.bf16.msrb.mxu2 %v17907_v50  ;;  %6666 = vmatpush.bf16.msra.mxu0 %v18282_v63  ;;  %v18318_v50 = vld [vmem:[%s26486_s4 + $0xf70] sm:$0xff]  ;;  %v17933_v63 = vld [vmem:[%s26486_s4 + $0x368] sm:$0xff] }
 0x442   :  { %v1415_v31 = vadd.f32 %v21339_v28, %v1339_v40 }
 0x443   :  { %2550 = vmatpush.bf16.msrb.mxu3 %v17913_v22  ;;  %v18308_v22 = vld [vmem:[%s26486_s4 + $0xf20] sm:$0xff] }
 0x444   :  { %6576 = vmatpush.bf16.msra.mxu1 %v18272_v35  ;;  %v1433_v35 = vpack.c.bf16 %v1361_v12, %v1361_v12  ;;  %v1487_v33 = vpack.c.bf16 %v1415_v31, %v1415_v31  ;;  %v17921_v31 = vld [vmem:[%s26486_s4 + $0x308] sm:$0xff] }
 0x445   :  { %2456 = vmatpush.bf16.msrb.mxu2 %v17906_v43  ;;  %6667 = vmatpush.bf16.msra.mxu0 %v18281_v51  ;;  %v17932_v43 = vld [vmem:[%s26486_s4 + $0x360] sm:$0xff]  ;;  %v1434_v51 = vpack.c.bf16 %v1362_v11, %v1362_v11 }
 0x446   :  { %v21489_v37 = vunpack.c.l.b16 %v1433_v35 }
 0x447   :  { %2551 = vmatpush.bf16.msrb.mxu3 %v17912_v38  ;;  %6577 = vmatmul.bf16.vlgmr.msra.gmra.mxu1 %v6519_v47  ;;  %v18307_v38 = vld [vmem:[%s26486_s4 + $0xf18] sm:$0xff]  ;;  %v21491_v62 = vunpack.c.l.b16 %v1434_v51  ;;  %v6874_v47 = vunpack.c.l.b16 %v1487_v33 }
 0x448   :  { %6926 = vmatpush.bf16.msrb.mxu1 %v18311_v41  ;;  %v18316_v41 = vld [vmem:[%s26486_s4 + $0xf60] sm:$0xff] }
 0x449   :  { %2457 = vmatpush.bf16.msrb.mxu2 %v17905_v23  ;;  %6668 = vmatpush.bf16.msra.mxu0 %v18280_v27  ;;  %v18306_v23 = vld [vmem:[%s26486_s4 + $0xf10] sm:$0xff]  ;;  %v18315_v27 = vld [vmem:[%s26486_s4 + $0xf58] sm:$0xff] }
 0x44a   :  { %2552 = vmatmul.bf16.vlgmr.msrb.gmra.mxu3 %v2494_v3  ;;  %v18314_v3 = vld [vmem:[%s26486_s4 + $0xf50] sm:$0xff] }
 0x44b   :  { %2723 = vmatpush.bf16.msra.mxu3 %v17935_v55  ;;  %v17931_v55 = vld [vmem:[%s26486_s4 + $0x358] sm:$0xff] }
 0x44c   :  { %6927 = vmatpush.bf16.msrb.mxu1 %v18310_v7  ;;  %6669 = vmatmul.bf16.vlgmr.msra.gmra.mxu0 %v6611_v52  ;;  %v17930_v7 = vld [vmem:[%s26486_s4 + $0x350] sm:$0xff]  ;;  %v18304_v52 = vld [vmem:[%s26486_s4 + $0xf00] sm:$0xff] }
 0x44d   :  { %7019 = vmatpush.bf16.msrb.mxu0 %v18319_v19  ;;  %2458 = vmatpush.bf16.msrb.mxu2 %v17904_v8  ;;  %v1660_v15 = vpop.f32.mrf.mxu3  ;;  %v2665_v19 = vpack.c.b16 %v21491_v62, %v21489_v37 }
 0x44f   :  { %2724 = vmatpush.bf16.msra.mxu3 %v17934_v59  ;;  %v6961_v59 = vpack.c.b16 %v20847_v57, %v6874_v47  ;;  %v2667_v60 = vshrl.u32 %v2665_v19, 16 }
 0x450   :  { %6928 = vmatpush.bf16.msrb.mxu1 %v18309_v25  ;;  %2459 = vmatmul.bf16.vlgmr.msrb.gmra.mxu2 %v2401_v32  ;;  %v18313_v25 = vld [vmem:[%s26486_s4 + $0xf48] sm:$0xff]  ;;  %v17951_v32 = vld [vmem:[%s26486_s4 + $0x3f8] sm:$0xff] }
 0x451   :  { %2630 = vmatpush.bf16.msra.mxu2 %v17927_v18  ;;  %7020 = vmatpush.bf16.msrb.mxu0 %v18318_v50  ;;  %v2670_v18 = vshll.u32 %v2665_v19, 16  ;;  %v6875_v50 = vpack.c.b16 %v6874_v47, %v20844_v39  ;;  %v6963_v12 = vshrl.u32 %v6961_v59, 16  ;;  %v6966_v11 = vshll.u32 %v6961_v59, 16 }
 0x452   :  { %v1212_v39 = vmul.f32 %v20713_v54, %v20227_v2  ;;  %v17950_v2 = vld [vmem:[%s26486_s4 + $0x3f0] sm:$0xff] }
 0x453   :  { %2725 = vmatpush.bf16.msra.mxu3 %v17933_v63  ;;  %v1594_v1 = vpop.f32.mrf.mxu2  ;;  %v17928_v63 = vld [vmem:[%s26486_s4 + $0x340] sm:$0xff]  ;;  %v6876_v51 = vrot.slane %v6875_v50, 2 }
 0x454   :  { %6929 = vmatpush.bf16.msrb.mxu1 %v18308_v22  ;;  %v1661_v8 = vadd.f32 %v1660_v15, %v1594_v1  ;;  %v2672_v22 = vrot.slane %v2670_v18, 3  ;;  %v1288_v33 = vmul.f32 %v21329_v14, %v1212_v39  ;;  %v17943_v15 = vld [vmem:[%s26486_s4 + $0x3b8] sm:$0xff] }
 0x455   :  { %2631 = vmatpush.bf16.msra.mxu2 %v17926_v46  ;;  %7021 = vmatpush.bf16.msrb.mxu0 %v18317_v24  ;;  %v21530_v40 = vpop.f32.mrf.mxu3  ;;  %v2669_v46 = vrot.slane %v2667_v60, 2  ;;  %v1211_v24 = vmul.f32 %v20713_v54, %v20221_v45  ;;  %v6968_v45 = vrot.slane %v6966_v11, 3  ;;  %v17947_v18 = vld [vmem:[%s26486_s4 + $0x3d8] sm:$0xff] }
 0x456   :  { %v17939_v11 = vld [vmem:[%s26486_s4 + $0x398] sm:$0xff] }
 0x457   :  { %2726 = vmatpush.bf16.msra.mxu3 %v17932_v43  ;;  %v18312_v43 = vld [vmem:[%s26486_s4 + $0xf40] sm:$0xff] }
 0x458   :  { %6930 = vmatpush.bf16.msrb.mxu1 %v18307_v38  ;;  %v2673_v38 = vor.u32 %v2672_v22, %v2669_v46 }
 0x459   :  { %2632 = vmatpush.bf16.msra.mxu2 %v17925_v30  ;;  %7022 = vmatpush.bf16.msrb.mxu0 %v18316_v41  ;;  %v6965_v30 = vrot.slane %v6963_v12, 2  ;;  %v1287_v41 = vmul.f32 %v21329_v14, %v1211_v24  ;;  %v17938_v24 = vld [vmem:[%s26486_s4 + $0x390] sm:$0xff] }
 0x45b   :  { %2727 = vmatpush.bf16.msra.mxu3 %v17931_v55  ;;  %v21548_v35 = vpop.f32.mrf.mxu2  ;;  %v17920_v55 = vld [vmem:[%s26486_s4 + $0x300] sm:$0xff]  ;;  %v1363_v47 = vadd.f32 %v21339_v28, %v1287_v41 }
 0x45c   :  { %6931 = vmatpush.bf16.msrb.mxu1 %v18306_v23  ;;  %v6969_v23 = vor.u32 %v6968_v45, %v6965_v30  ;;  %v17967_v30 = vld [vmem:[%s26486_s4 + $0x478] sm:$0xff] }
 0x45d   :  { %2633 = vmatpush.bf16.msra.mxu2 %v17924_v0  ;;  %7023 = vmatpush.bf16.msrb.mxu0 %v18315_v27  ;;  %v2579_v0 = vpack.c.b16 %v21489_v37, %v21373_v48  ;;  %v17949_v27 = vld [vmem:[%s26486_s4 + $0x3e8] sm:$0xff]  ;;  %v1837_v19 = vpop.f32.mrf.mxu3  ;;  %v1435_v59 = vpack.c.bf16 %v1363_v47, %v1363_v47 }
 0x45f   :  { %2728 = vmatpush.bf16.msra.mxu3 %v17930_v7  ;;  %v1364_v7 = vadd.f32 %v21339_v28, %v1288_v33  ;;  %v26740_v33 = vld [vmem:[#allocation33_spill] sm:$0xff] }
 0x460   :  { %6932 = vmatpush.bf16.msrb.mxu1 %v18305_v61  ;;  %v17942_v61 = vld [vmem:[%s26486_s4 + $0x3b0] sm:$0xff] }
 0x461   :  { %2634 = vmatpush.bf16.msra.mxu2 %v17923_v58  ;;  %7024 = vmatpush.bf16.msrb.mxu0 %v18314_v3  ;;  %v2580_v58 = vrot.slane %v2579_v0, 2  ;;  %v17948_v3 = vld [vmem:[%s26486_s4 + $0x3e0] sm:$0xff]  ;;  %v1436_v1 = vpack.c.bf16 %v1364_v7, %v1364_v7 }
 0x463   :  { %2729 = vmatpush.bf16.msra.mxu3 %v17929_v17  ;;  %v1744_v48 = vpop.f32.mrf.mxu2  ;;  %v17941_v17 = vld [vmem:[%s26486_s4 + $0x3a8] sm:$0xff] }
 0x464   :  { %6933 = vmatpush.bf16.msrb.mxu1 %v18304_v52  ;;  %v1749_v37 = vadd.f32 %v1744_v48, %v1661_v8  ;;  %v2757_v8 = vunpack.c.l.b16 %v1435_v59  ;;  %v17940_v52 = vld [vmem:[%s26486_s4 + $0x3a0] sm:$0xff]  ;;  %v17965_v48 = vld [vmem:[%s26486_s4 + $0x468] sm:$0xff] }
 0x465   :  { %2635 = vmatpush.bf16.msra.mxu2 %v17922_v4  ;;  %7025 = vmatpush.bf16.msrb.mxu0 %v18313_v25  ;;  %v2843_v4 = vunpack.c.l.b16 %v1436_v1  ;;  %v21583_v25 = vpop.f32.mrf.mxu3  ;;  %v17958_v1 = vld [vmem:[%s26486_s4 + $0x430] sm:$0xff] }
 0x466   :  { %v1842_v60 = vadd.f32 %v1837_v19, %v1749_v37  ;;  %v17936_v19 = vld [vmem:[%s26486_s4 + $0x380] sm:$0xff] }
 0x467   :  { %2730 = vmatpush.bf16.msra.mxu3 %v17928_v63  ;;  %6934 = vmatmul.bf16.vlgmr.msrb.gmra.mxu1 %v6876_v51  ;;  %v17946_v63 = vld [vmem:[%s26486_s4 + $0x3d0] sm:$0xff]  ;;  %v2844_v12 = vpack.c.b16 %v2843_v4, %v2757_v8 }
 0x469   :  { %2636 = vmatpush.bf16.msra.mxu2 %v17921_v31  ;;  %7026 = vmatpush.bf16.msrb.mxu0 %v18312_v43  ;;  %v2846_v46 = vshrl.u32 %v2844_v12, 16  ;;  %v2849_v22 = vshll.u32 %v2844_v12, 16  ;;  %v17944_v43 = vld [vmem:[%s26486_s4 + $0x3c0] sm:$0xff]  ;;  %v26741_v12 = vld [vmem:[#allocation31_spill] sm:$0xff] }
 0x46a   :  { %2731 = vmatmul.bf16.vlgmr.msra.gmra.mxu3 %v2673_v38 }
 0x46b   :  { %2902 = vmatpush.bf16.msrb.mxu3 %v17951_v32  ;;  %v21585_v50 = vpop.f32.mrf.mxu2  ;;  %v17945_v32 = vld [vmem:[%s26486_s4 + $0x3c8] sm:$0xff]  ;;  %v2848_v45 = vrot.slane %v2846_v46, 3  ;;  %v2851_v38 = vrot.slane %v2849_v22, 4  ;;  %v17962_v46 = vld [vmem:[%s26486_s4 + $0x450] sm:$0xff] }
 0x46c   :  { %7027 = vmatmul.bf16.vlgmr.msrb.gmra.mxu0 %v6969_v23 }
 0x46d   :  { %2637 = vmatpush.bf16.msra.mxu2 %v17920_v55  ;;  %v2016_v51 = vpop.f32.mrf.mxu3  ;;  %v1215_v55 = vmul.f32 %v20713_v54, %v26740_v33  ;;  %v2852_v23 = vor.u32 %v2851_v38, %v2848_v45 }
 0x46f   :  { %2903 = vmatpush.bf16.msrb.mxu3 %v17950_v2  ;;  %v26739_v2 = vld [vmem:[#allocation36_spill] sm:$0xff]  ;;  %v1291_v7 = vmul.f32 %v21329_v14, %v1215_v55  ;;  %v17983_v55 = vld [vmem:[%s26486_s4 + $0x4f8] sm:$0xff] }
 0x470   :  { %2638 = vmatmul.bf16.vlgmr.msra.gmra.mxu2 %v2580_v58  ;;  %v1214_v41 = vmul.f32 %v20713_v54, %v26739_v2  ;;  %v17959_v58 = vld [vmem:[%s26486_s4 + $0x438] sm:$0xff] }
 0x471   :  { %2809 = vmatpush.bf16.msrb.mxu2 %v17943_v15  ;;  %v17937_v15 = vld [vmem:[%s26486_s4 + $0x388] sm:$0xff] }
 0x472   :  { %v1290_v47 = vmul.f32 %v21329_v14, %v1214_v41  ;;  %v17960_v41 = vld [vmem:[%s26486_s4 + $0x440] sm:$0xff] }
 0x473   :  { %2904 = vmatpush.bf16.msrb.mxu3 %v17949_v27  ;;  %v1923_v39 = vpop.f32.mrf.mxu2  ;;  %v17966_v27 = vld [vmem:[%s26486_s4 + $0x470] sm:$0xff] }
 0x474   :  { %v1928_v31 = vadd.f32 %v1923_v39, %v1842_v60  ;;  %v1366_v37 = vadd.f32 %v21339_v28, %v1290_v47  ;;  %v17955_v39 = vld [vmem:[%s26486_s4 + $0x418] sm:$0xff] }
 0x475   :  { %2810 = vmatpush.bf16.msrb.mxu2 %v17942_v61  ;;  %v2758_v61 = vpack.c.b16 %v2757_v8, %v21491_v62  ;;  %v17964_v62 = vld [vmem:[%s26486_s4 + $0x460] sm:$0xff]  ;;  %v17963_v8 = vld [vmem:[%s26486_s4 + $0x458] sm:$0xff]  ;;  %v21653_v22 = vpop.f32.mrf.mxu3 }
 0x476   :  { %v2021_v0 = vadd.f32 %v2016_v51, %v1928_v31  ;;  %v26743_v47 = vld [vmem:[#allocation35_spill] sm:$0xff] }
 0x477   :  { %2905 = vmatpush.bf16.msrb.mxu3 %v17948_v3  ;;  %v1367_v3 = vadd.f32 %v21339_v28, %v1291_v7  ;;  %v2759_v59 = vrot.slane %v2758_v61, 3  ;;  %v1217_v7 = vmul.f32 %v20713_v54, %v26743_v47 }
 0x479   :  { %2811 = vmatpush.bf16.msrb.mxu2 %v17941_v17  ;;  %v1438_v17 = vpack.c.bf16 %v1366_v37, %v1366_v37  ;;  %v1439_v60 = vpack.c.bf16 %v1367_v3, %v1367_v3  ;;  %v17982_v37 = vld [vmem:[%s26486_s4 + $0x4f0] sm:$0xff] }
 0x47b   :  { %2906 = vmatpush.bf16.msrb.mxu3 %v17947_v18  ;;  %v17957_v18 = vld [vmem:[%s26486_s4 + $0x428] sm:$0xff]  ;;  %v2938_v4 = vunpack.c.l.b16 %v1438_v17 }
 0x47d   :  { %2812 = vmatpush.bf16.msrb.mxu2 %v17940_v52  ;;  %v21641_v52 = vunpack.c.l.b16 %v1439_v60  ;;  %v17981_v60 = vld [vmem:[%s26486_s4 + $0x4e8] sm:$0xff] }
 0x47f   :  { %2907 = vmatpush.bf16.msrb.mxu3 %v17946_v63  ;;  %v17956_v63 = vld [vmem:[%s26486_s4 + $0x420] sm:$0xff] }
 0x481   :  { %2813 = vmatpush.bf16.msrb.mxu2 %v17939_v11  ;;  %v1213_v11 = vmul.f32 %v20713_v54, %v26741_v12  ;;  %v17974_v12 = vld [vmem:[%s26486_s4 + $0x4b0] sm:$0xff] }
 0x483   :  { %2908 = vmatpush.bf16.msrb.mxu3 %v17945_v32  ;;  %v21648_v32 = vpop.f32.mrf.mxu2  ;;  %v1289_v31 = vmul.f32 %v21329_v14, %v1213_v11  ;;  %v17980_v11 = vld [vmem:[%s26486_s4 + $0x4e0] sm:$0xff] }
 0x485   :  { %2814 = vmatpush.bf16.msrb.mxu2 %v17938_v24  ;;  %v3024_v24 = vpack.c.b16 %v21641_v52, %v2938_v4  ;;  %v1365_v45 = vadd.f32 %v21339_v28, %v1289_v31 }
 0x487   :  { %2909 = vmatpush.bf16.msrb.mxu3 %v17944_v43  ;;  %v17961_v43 = vld [vmem:[%s26486_s4 + $0x448] sm:$0xff]  ;;  %v3028_v51 = vshll.u32 %v3024_v24, 16  ;;  %v1437_v61 = vpack.c.bf16 %v1365_v45, %v1365_v45  ;;  %v17978_v45 = vld [vmem:[%s26486_s4 + $0x4d0] sm:$0xff] }
 0x489   :  { %2815 = vmatpush.bf16.msrb.mxu2 %v17937_v15  ;;  %v3030_v15 = vrot.slane %v3028_v51, 1  ;;  %v2937_v17 = vunpack.c.l.b16 %v1437_v61  ;;  %v17972_v51 = vld [vmem:[%s26486_s4 + $0x4a0] sm:$0xff] }
 0x48a   :  { %2910 = vmatmul.bf16.vlgmr.msrb.gmra.mxu3 %v2852_v23  ;;  %v26742_v23 = vld [vmem:[#allocation38_spill] sm:$0xff] }
 0x48b   :  { %3081 = vmatpush.bf16.msra.mxu3 %v17967_v30  ;;  %v17954_v30 = vld [vmem:[%s26486_s4 + $0x410] sm:$0xff] }
 0x48d   :  { %2816 = vmatpush.bf16.msrb.mxu2 %v17936_v19  ;;  %v2195_v33 = vpop.f32.mrf.mxu3 }
 0x48f   :  { %3082 = vmatpush.bf16.msra.mxu3 %v17966_v27  ;;  %v1216_v27 = vmul.f32 %v20713_v54, %v26742_v23  ;;  %v17970_v23 = vld [vmem:[%s26486_s4 + $0x490] sm:$0xff] }
 0x490   :  { %2817 = vmatmul.bf16.vlgmr.msrb.gmra.mxu2 %v2759_v59  ;;  %v1293_v59 = vmul.f32 %v21329_v14, %v1217_v7  ;;  %v17976_v7 = vld [vmem:[%s26486_s4 + $0x4c0] sm:$0xff] }
 0x491   :  { %2989 = vmatpush.bf16.msra.mxu2 %v17959_v58  ;;  %v3026_v58 = vshrl.u32 %v3024_v24, 16  ;;  %v1292_v3 = vmul.f32 %v21329_v14, %v1216_v27 }
 0x493   :  { %3083 = vmatpush.bf16.msra.mxu3 %v17965_v48  ;;  %v2102_v38 = vpop.f32.mrf.mxu2  ;;  %v3031_v48 = vor.u32 %v3030_v15, %v3026_v58  ;;  %v17999_v58 = vld [vmem:[%s26486_s4 + $0x578] sm:$0xff] }
 0x494   :  { %v2107_v2 = vadd.f32 %v2102_v38, %v2021_v0  ;;  %v17953_v0 = vld [vmem:[%s26486_s4 + $0x408] sm:$0xff] }
 0x495   :  { %2990 = vmatpush.bf16.msra.mxu2 %v17958_v1  ;;  %v17952_v1 = vld [vmem:[%s26486_s4 + $0x400] sm:$0xff]  ;;  %v21718_v38 = vpop.f32.mrf.mxu3 }
 0x496   :  { %v2200_v19 = vadd.f32 %v2195_v33, %v2107_v2  ;;  %v17977_v33 = vld [vmem:[%s26486_s4 + $0x4c8] sm:$0xff] }
 0x497   :  { %3084 = vmatpush.bf16.msra.mxu3 %v17964_v62  ;;  %v17975_v62 = vld [vmem:[%s26486_s4 + $0x4b8] sm:$0xff] }
 0x499   :  { %2991 = vmatpush.bf16.msra.mxu2 %v17957_v18  ;;  %v1368_v18 = vadd.f32 %v21339_v28, %v1292_v3 }
 0x49b   :  { %3085 = vmatpush.bf16.msra.mxu3 %v17963_v8  ;;  %v1369_v8 = vadd.f32 %v21339_v28, %v1293_v59  ;;  %v26745_v59 = vld [vmem:[#allocation37_spill] sm:$0xff] }
 0x49d   :  { %2992 = vmatpush.bf16.msra.mxu2 %v17956_v63  ;;  %v2939_v63 = vpack.c.b16 %v2938_v4, %v2937_v17  ;;  %v1441_v24 = vpack.c.bf16 %v1369_v8, %v1369_v8  ;;  %v17979_v4 = vld [vmem:[%s26486_s4 + $0x4d8] sm:$0xff] }
 0x49f   :  { %3086 = vmatpush.bf16.msra.mxu3 %v17962_v46  ;;  %v1440_v46 = vpack.c.bf16 %v1368_v18, %v1368_v18 }
 0x4a1   :  { %2993 = vmatpush.bf16.msra.mxu2 %v17955_v39  ;;  %v17973_v39 = vld [vmem:[%s26486_s4 + $0x4a8] sm:$0xff]  ;;  %v3115_v31 = vunpack.c.l.b16 %v1440_v46 }
 0x4a2   :  { %v17997_v46 = vld [vmem:[%s26486_s4 + $0x568] sm:$0xff] }
 0x4a3   :  { %3087 = vmatpush.bf16.msra.mxu3 %v17961_v43  ;;  %v21708_v43 = vunpack.c.l.b16 %v1441_v24 }
 0x4a5   :  { %2994 = vmatpush.bf16.msra.mxu2 %v17954_v30  ;;  %v21713_v30 = vpop.f32.mrf.mxu2  ;;  %v3202_v2 = vpack.c.b16 %v21708_v43, %v3115_v31 }
 0x4a7   :  { %3088 = vmatpush.bf16.msra.mxu3 %v17960_v41  ;;  %v17971_v41 = vld [vmem:[%s26486_s4 + $0x498] sm:$0xff]  ;;  %v3207_v15 = vshll.u32 %v3202_v2, 16 }
 0x4a9   :  { %2995 = vmatpush.bf16.msra.mxu2 %v17953_v0 }
 0x4aa   :  { %3089 = vmatmul.bf16.vlgmr.msra.gmra.mxu3 %v3031_v48  ;;  %v3209_v48 = vrot.slane %v3207_v15, 2  ;;  %v17988_v15 = vld [vmem:[%s26486_s4 + $0x520] sm:$0xff] }
 0x4ab   :  { %3260 = vmatpush.bf16.msrb.mxu3 %v17983_v55  ;;  %v3204_v55 = vshrl.u32 %v3202_v2, 16  ;;  %v17989_v2 = vld [vmem:[%s26486_s4 + $0x528] sm:$0xff] }
 0x4ad   :  { %2996 = vmatpush.bf16.msra.mxu2 %v17952_v1  ;;  %v2374_v0 = vpop.f32.mrf.mxu3  ;;  %v3206_v61 = vrot.slane %v3204_v55, 1  ;;  %v1219_v1 = vmul.f32 %v20713_v54, %v26745_v59 }
 0x4af   :  { %3261 = vmatpush.bf16.msrb.mxu3 %v17982_v37  ;;  %v26744_v37 = vld [vmem:[#allocation40_spill] sm:$0xff]  ;;  %v3210_v17 = vor.u32 %v3209_v48, %v3206_v61  ;;  %v1295_v8 = vmul.f32 %v21329_v14, %v1219_v1 }
 0x4b0   :  { %2997 = vmatmul.bf16.vlgmr.msra.gmra.mxu2 %v2939_v63  ;;  %v1218_v3 = vmul.f32 %v20713_v54, %v26744_v37  ;;  %v17968_v63 = vld [vmem:[%s26486_s4 + $0x480] sm:$0xff]  ;;  %v17986_v37 = vld [vmem:[%s26486_s4 + $0x510] sm:$0xff] }
 0x4b1   :  { %3167 = vmatpush.bf16.msrb.mxu2 %v17975_v62  ;;  %v17992_v1 = vld [vmem:[%s26486_s4 + $0x540] sm:$0xff] }
 0x4b2   :  { %v1294_v18 = vmul.f32 %v21329_v14, %v1218_v3 }
 0x4b3   :  { %3262 = vmatpush.bf16.msrb.mxu3 %v17981_v60  ;;  %v2282_v27 = vpop.f32.mrf.mxu2  ;;  %v17998_v60 = vld [vmem:[%s26486_s4 + $0x570] sm:$0xff] }
 0x4b4   :  { %v2287_v47 = vadd.f32 %v2282_v27, %v2200_v19  ;;  %v17969_v19 = vld [vmem:[%s26486_s4 + $0x488] sm:$0xff]  ;;  %v1370_v24 = vadd.f32 %v21339_v28, %v1294_v18  ;;  %v17994_v27 = vld [vmem:[%s26486_s4 + $0x550] sm:$0xff] }
 0x4b5   :  { %3168 = vmatpush.bf16.msrb.mxu2 %v17974_v12  ;;  %v17991_v12 = vld [vmem:[%s26486_s4 + $0x538] sm:$0xff] }
 0x4b6   :  { %v2379_v62 = vadd.f32 %v2374_v0, %v2287_v47  ;;  %v21782_v47 = vpop.f32.mrf.mxu3  ;;  %v17987_v0 = vld [vmem:[%s26486_s4 + $0x518] sm:$0xff] }
 0x4b7   :  { %3263 = vmatpush.bf16.msrb.mxu3 %v17980_v11  ;;  %v3116_v11 = vpack.c.b16 %v3115_v31, %v21641_v52  ;;  %v17996_v52 = vld [vmem:[%s26486_s4 + $0x560] sm:$0xff]  ;;  %v1442_v31 = vpack.c.bf16 %v1370_v24, %v1370_v24 }
 0x4b9   :  { %3169 = vmatpush.bf16.msrb.mxu2 %v17973_v39  ;;  %v1371_v39 = vadd.f32 %v21339_v28, %v1295_v8  ;;  %v26746_v8 = vld [vmem:[#allocation42_spill] sm:$0xff] }
 0x4bb   :  { %3264 = vmatpush.bf16.msrb.mxu3 %v17979_v4  ;;  %v3117_v4 = vrot.slane %v3116_v11, 1 }
 0x4bd   :  { %3170 = vmatpush.bf16.msrb.mxu2 %v17972_v51  ;;  %v17990_v51 = vld [vmem:[%s26486_s4 + $0x530] sm:$0xff] }
 0x4bf   :  { %3265 = vmatpush.bf16.msrb.mxu3 %v17978_v45  ;;  %v1443_v45 = vpack.c.bf16 %v1371_v39, %v1371_v39  ;;  %v18014_v39 = vld [vmem:[%s26486_s4 + $0x5f0] sm:$0xff] }
 0x4c1   :  { %3171 = vmatpush.bf16.msrb.mxu2 %v17971_v41  ;;  %v17995_v41 = vld [vmem:[%s26486_s4 + $0x558] sm:$0xff]  ;;  %v21772_v55 = vunpack.c.l.b16 %v1443_v45 }
 0x4c3   :  { %3266 = vmatpush.bf16.msrb.mxu3 %v17977_v33  ;;  %v3294_v33 = vunpack.c.l.b16 %v1442_v31  ;;  %v18007_v31 = vld [vmem:[%s26486_s4 + $0x5b8] sm:$0xff] }
 0x4c5   :  { %3172 = vmatpush.bf16.msrb.mxu2 %v17970_v23  ;;  %v21777_v23 = vpop.f32.mrf.mxu2  ;;  %v3295_v45 = vpack.c.b16 %v3294_v33, %v21708_v43  ;;  %v18012_v43 = vld [vmem:[%s26486_s4 + $0x5e0] sm:$0xff] }
 0x4c7   :  { %3267 = vmatpush.bf16.msrb.mxu3 %v17976_v7  ;;  %v3381_v7 = vpack.c.b16 %v21772_v55, %v3294_v33 }
 0x4c9   :  { %3173 = vmatpush.bf16.msrb.mxu2 %v17969_v19  ;;  %v3383_v61 = vshrl.u32 %v3381_v7, 16  ;;  %v3386_v48 = vshll.u32 %v3381_v7, 16  ;;  %v18006_v7 = vld [vmem:[%s26486_s4 + $0x5b0] sm:$0xff] }
 0x4ca   :  { %3268 = vmatmul.bf16.vlgmr.msrb.gmra.mxu3 %v3210_v17  ;;  %v18015_v17 = vld [vmem:[%s26486_s4 + $0x5f8] sm:$0xff] }
 0x4cb   :  { %3439 = vmatpush.bf16.msra.mxu3 %v17999_v58  ;;  %v17993_v58 = vld [vmem:[%s26486_s4 + $0x548] sm:$0xff]  ;;  %v3388_v18 = vrot.slane %v3386_v48, 3 }
 0x4cd   :  { %3174 = vmatpush.bf16.msrb.mxu2 %v17968_v63  ;;  %v2553_v19 = vpop.f32.mrf.mxu3  ;;  %v1220_v63 = vmul.f32 %v20713_v54, %v26746_v8 }
 0x4cf   :  { %3440 = vmatpush.bf16.msra.mxu3 %v17998_v60  ;;  %v3385_v60 = vrot.slane %v3383_v61, 2  ;;  %v18011_v61 = vld [vmem:[%s26486_s4 + $0x5d8] sm:$0xff] }
 0x4d0   :  { %3175 = vmatmul.bf16.vlgmr.msrb.gmra.mxu2 %v3117_v4  ;;  %v1296_v4 = vmul.f32 %v21329_v14, %v1220_v63 }
 0x4d1   :  { %3346 = vmatpush.bf16.msra.mxu2 %v17991_v12  ;;  %v26747_v12 = vld [vmem:[#allocation39_spill] sm:$0xff]  ;;  %v3389_v24 = vor.u32 %v3388_v18, %v3385_v60  ;;  %v18009_v18 = vld [vmem:[%s26486_s4 + $0x5c8] sm:$0xff] }
 0x4d2   :  { %v1221_v11 = vmul.f32 %v20713_v54, %v26747_v12  ;;  %v18003_v60 = vld [vmem:[%s26486_s4 + $0x598] sm:$0xff]  ;;  %v18002_v12 = vld [vmem:[%s26486_s4 + $0x590] sm:$0xff] }
 0x4d3   :  { %3441 = vmatpush.bf16.msra.mxu3 %v17997_v46  ;;  %v2460_v3 = vpop.f32.mrf.mxu2 }
 0x4d4   :  { %v2465_v59 = vadd.f32 %v2460_v3, %v2379_v62  ;;  %v17985_v62 = vld [vmem:[%s26486_s4 + $0x508] sm:$0xff]  ;;  %v18004_v3 = vld [vmem:[%s26486_s4 + $0x5a0] sm:$0xff] }
 0x4d5   :  { %3347 = vmatpush.bf16.msra.mxu2 %v17990_v51  ;;  %v1297_v51 = vmul.f32 %v21329_v14, %v1221_v11 }
 0x4d6   :  { %v2558_v46 = vadd.f32 %v2553_v19, %v2465_v59  ;;  %v21844_v19 = vpop.f32.mrf.mxu3 }
 0x4d7   :  { %3442 = vmatpush.bf16.msra.mxu3 %v17996_v52  ;;  %v17984_v52 = vld [vmem:[%s26486_s4 + $0x500] sm:$0xff] }
 0x4d9   :  { %3348 = vmatpush.bf16.msra.mxu2 %v17989_v2  ;;  %v18013_v2 = vld [vmem:[%s26486_s4 + $0x5e8] sm:$0xff] }
 0x4db   :  { %3443 = vmatpush.bf16.msra.mxu3 %v17995_v41  ;;  %v1372_v41 = vadd.f32 %v21339_v28, %v1296_v4  ;;  %v21839_v59 = vpop.f32.mrf.mxu2  ;;  %v18031_v4 = vld [vmem:[%s26486_s4 + $0x678] sm:$0xff] }
 0x4dd   :  { %3349 = vmatpush.bf16.msra.mxu2 %v17988_v15  ;;  %v1373_v15 = vadd.f32 %v21339_v28, %v1297_v51  ;;  %v1444_v33 = vpack.c.bf16 %v1372_v41, %v1372_v41 }
 0x4df   :  { %3444 = vmatpush.bf16.msra.mxu3 %v17994_v27  ;;  %v3296_v27 = vrot.slane %v3295_v45, 2  ;;  %v3473_v48 = vunpack.c.l.b16 %v1444_v33 }
 0x4e1   :  { %3350 = vmatpush.bf16.msra.mxu2 %v17987_v0  ;;  %v1445_v0 = vpack.c.bf16 %v1373_v15, %v1373_v15 }
 0x4e3   :  { %3445 = vmatpush.bf16.msra.mxu3 %v17993_v58  ;;  %v18005_v58 = vld [vmem:[%s26486_s4 + $0x5a8] sm:$0xff] }
 0x4e5   :  { %3351 = vmatpush.bf16.msra.mxu2 %v17986_v37  ;;  %v3559_v37 = vunpack.c.l.b16 %v1445_v0  ;;  %v18000_v0 = vld [vmem:[%s26486_s4 + $0x580] sm:$0xff] }
 0x4e7   :  { %3446 = vmatpush.bf16.msra.mxu3 %v17992_v1  ;;  %v18010_v1 = vld [vmem:[%s26486_s4 + $0x5d0] sm:$0xff] }
 0x4e9   :  { %3352 = vmatpush.bf16.msra.mxu2 %v17985_v62 }
 0x4ea   :  { %3447 = vmatmul.bf16.vlgmr.msra.gmra.mxu3 %v3389_v24  ;;  %v18008_v24 = vld [vmem:[%s26486_s4 + $0x5c0] sm:$0xff] }
 0x4eb   :  { %3618 = vmatpush.bf16.msrb.mxu3 %v18015_v17  ;;  %v3560_v17 = vpack.c.b16 %v3559_v37, %v3473_v48  ;;  %v18029_v37 = vld [vmem:[%s26486_s4 + $0x668] sm:$0xff] }
 0x4ed   :  { %3353 = vmatpush.bf16.msra.mxu2 %v17984_v52  ;;  %v3562_v8 = vshrl.u32 %v3560_v17, 16  ;;  %v3565_v63 = vshll.u32 %v3560_v17, 16  ;;  %v18022_v17 = vld [vmem:[%s26486_s4 + $0x630] sm:$0xff] }
 0x4ef   :  { %3619 = vmatpush.bf16.msrb.mxu3 %v18014_v39  ;;  %v2732_v39 = vpop.f32.mrf.mxu3  ;;  %v3564_v51 = vrot.slane %v3562_v8, 3  ;;  %v3567_v52 = vrot.slane %v3565_v63, 4 }
 0x4f0   :  { %3354 = vmatmul.bf16.vlgmr.msra.gmra.mxu2 %v3296_v27 }
 0x4f1   :  { %3525 = vmatpush.bf16.msrb.mxu2 %v18007_v31  ;;  %v26748_v31 = vld [vmem:[#allocation41_spill] sm:$0xff]  ;;  %v3568_v27 = vor.u32 %v3567_v52, %v3564_v51  ;;  %v18019_v52 = vld [vmem:[%s26486_s4 + $0x618] sm:$0xff] }
 0x4f2   :  { %v1223_v45 = vmul.f32 %v20713_v54, %v26748_v31  ;;  %v21918_v31 = vld [vmem:[%s26484_s2] ss:$0 sm:$0xff] }
 0x4f3   :  { %3620 = vmatpush.bf16.msrb.mxu3 %v18013_v2  ;;  %v2639_v11 = vpop.f32.mrf.mxu2  ;;  %v26749_v2 = vld [vmem:[#allocation45_spill] sm:$0xff] }
 0x4f4   :  { %v2644_v62 = vadd.f32 %v2639_v11, %v2558_v46  ;;  %v1224_v41 = vmul.f32 %v20713_v54, %v26749_v2  ;;  %v18001_v46 = vld [vmem:[%s26486_s4 + $0x588] sm:$0xff]  ;;  %v26750_v11 = vld [vmem:[#allocation44_spill] sm:$0xff] }
 0x4f5   :  { %3526 = vmatpush.bf16.msrb.mxu2 %v18006_v7  ;;  %v18030_v7 = vld [vmem:[%s26486_s4 + $0x670] sm:$0xff]  ;;  %v18025_v2 = vld [vmem:[%s26486_s4 + $0x648] sm:$0xff] }
 0x4f6   :  { %v2737_v15 = vadd.f32 %v2732_v39, %v2644_v62  ;;  %v1300_v33 = vmul.f32 %v21329_v14, %v1224_v41  ;;  %v1222_v62 = vmul.f32 %v20713_v54, %v26750_v11  ;;  %v18026_v39 = vld [vmem:[%s26486_s4 + $0x650] sm:$0xff] }
 0x4f7   :  { %3621 = vmatpush.bf16.msrb.mxu3 %v18012_v43  ;;  %v1299_v43 = vmul.f32 %v21329_v14, %v1223_v45  ;;  %v21910_v51 = vpop.f32.mrf.mxu3 }
 0x4f8   :  { %v1376_v14 = vadd.f32 %v21339_v28, %v1300_v33  ;;  %v1298_v45 = vmul.f32 %v21918_v31, %v1222_v62  ;;  %v18016_v62 = vld [vmem:[%s26486_s4 + $0x600] sm:$0xff] }
 0x4f9   :  { %3527 = vmatpush.bf16.msrb.mxu2 %v18005_v58  ;;  %v18023_v58 = vld [vmem:[%s26486_s4 + $0x638] sm:$0xff] }
 0x4fb   :  { %3622 = vmatpush.bf16.msrb.mxu3 %v18011_v61  ;;  %v3474_v61 = vpack.c.b16 %v3473_v48, %v21772_v55  ;;  %v18028_v55 = vld [vmem:[%s26486_s4 + $0x660] sm:$0xff] }
 0x4fd   :  { %3528 = vmatpush.bf16.msrb.mxu2 %v18004_v3  ;;  %v1375_v3 = vadd.f32 %v21339_v28, %v1299_v43  ;;  %v18021_v28 = vld [vmem:[%s26486_s4 + $0x628] sm:$0xff] }
 0x4ff   :  { %3623 = vmatpush.bf16.msrb.mxu3 %v18010_v1  ;;  %v3475_v1 = vrot.slane %v3474_v61, 3  ;;  %v1447_v48 = vpack.c.bf16 %v1375_v3, %v1375_v3  ;;  %v18047_v61 = vld [vmem:[%s26486_s4 + $0x6f8] sm:$0xff] }
 0x500   :  { %v26751_v3 = vld [vmem:[#allocation43_spill] sm:$0xff] }
 0x501   :  { %3529 = vmatpush.bf16.msrb.mxu2 %v18003_v60  ;;  %v1448_v60 = vpack.c.bf16 %v1376_v14, %v1376_v14  ;;  %v3654_v8 = vunpack.c.l.b16 %v1447_v48  ;;  %v1225_v14 = vmul.f32 %v20713_v54, %v26751_v3 }
 0x503   :  { %3624 = vmatpush.bf16.msrb.mxu3 %v18009_v18  ;;  %v18027_v18 = vld [vmem:[%s26486_s4 + $0x658] sm:$0xff]  ;;  %v21897_v63 = vunpack.c.l.b16 %v1448_v60 }
 0x505   :  { %3530 = vmatpush.bf16.msrb.mxu2 %v18002_v12  ;;  %v18020_v12 = vld [vmem:[%s26486_s4 + $0x620] sm:$0xff] }
 0x507   :  { %3625 = vmatpush.bf16.msrb.mxu3 %v18008_v24  ;;  %v21904_v24 = vpop.f32.mrf.mxu2 }
 0x509   :  { %3531 = vmatpush.bf16.msrb.mxu2 %v18001_v46  ;;  %v18018_v46 = vld [vmem:[%s26486_s4 + $0x610] sm:$0xff] }
 0x50a   :  { %3626 = vmatmul.bf16.vlgmr.msrb.gmra.mxu3 %v3568_v27  ;;  %v21930_v27 = vld [vmem:[%s26485_s3] ss:$0 sm:$0xff] }
 0x50b   :  { %3797 = vmatpush.bf16.msra.mxu3 %v18031_v4  ;;  %v3740_v4 = vpack.c.b16 %v21897_v63, %v3654_v8 }
 0x50d   :  { %3532 = vmatpush.bf16.msrb.mxu2 %v18000_v0  ;;  %v3744_v41 = vshll.u32 %v3740_v4, 16  ;;  %v18024_v0 = vld [vmem:[%s26486_s4 + $0x640] sm:$0xff]  ;;  %v3742_v60 = vshrl.u32 %v3740_v4, 16  ;;  %v18039_v4 = vld [vmem:[%s26486_s4 + $0x6b8] sm:$0xff] }
 0x50f   :  { %3798 = vmatpush.bf16.msra.mxu3 %v18030_v7  ;;  %v1374_v7 = vadd.f32 %v21930_v27, %v1298_v45 }
 0x510   :  { %3533 = vmatmul.bf16.vlgmr.msrb.gmra.mxu2 %v3475_v1  ;;  %v26752_v1 = vld [vmem:[#allocation48_spill] sm:$0xff] }
 0x511   :  { %3705 = vmatpush.bf16.msra.mxu2 %v18023_v58  ;;  %v2911_v58 = vpop.f32.mrf.mxu3  ;;  %v1446_v48 = vpack.c.bf16 %v1374_v7, %v1374_v7  ;;  %v18044_v7 = vld [vmem:[%s26486_s4 + $0x6e0] sm:$0xff] }
 0x513   :  { %3799 = vmatpush.bf16.msra.mxu3 %v18029_v37  ;;  %v2818_v43 = vpop.f32.mrf.mxu2  ;;  %v3746_v37 = vrot.slane %v3744_v41, 1 }
 0x514   :  { %v2823_v33 = vadd.f32 %v2818_v43, %v2737_v15  ;;  %v18017_v15 = vld [vmem:[%s26486_s4 + $0x608] sm:$0xff] }
 0x515   :  { %3706 = vmatpush.bf16.msra.mxu2 %v18022_v17  ;;  %v1226_v17 = vmul.f32 %v20713_v54, %v26752_v1 }
 0x517   :  { %3800 = vmatpush.bf16.msra.mxu3 %v18028_v55  ;;  %v2916_v55 = vadd.f32 %v2911_v58, %v2823_v33  ;;  %v1302_v11 = vmul.f32 %v21918_v31, %v1226_v17 }
 0x519   :  { %3707 = vmatpush.bf16.msra.mxu2 %v18021_v28  ;;  %v3747_v28 = vor.u32 %v3746_v37, %v3742_v60  ;;  %v18036_v37 = vld [vmem:[%s26486_s4 + $0x6a0] sm:$0xff]  ;;  %v21985_v17 = vpop.f32.mrf.mxu3 }
 0x51b   :  { %3801 = vmatpush.bf16.msra.mxu3 %v18027_v18  ;;  %v18046_v18 = vld [vmem:[%s26486_s4 + $0x6f0] sm:$0xff]  ;;  %v21979_v3 = vpop.f32.mrf.mxu2 }
 0x51d   :  { %3708 = vmatpush.bf16.msra.mxu2 %v18020_v12  ;;  %v1301_v12 = vmul.f32 %v21918_v31, %v1225_v14  ;;  %v18042_v14 = vld [vmem:[%s26486_s4 + $0x6d0] sm:$0xff] }
 0x51f   :  { %3802 = vmatpush.bf16.msra.mxu3 %v18026_v39  ;;  %v3653_v39 = vunpack.c.l.b16 %v1446_v48  ;;  %v1377_v45 = vadd.f32 %v21930_v27, %v1301_v12  ;;  %v18041_v48 = vld [vmem:[%s26486_s4 + $0x6c8] sm:$0xff] }
 0x521   :  { %3709 = vmatpush.bf16.msra.mxu2 %v18019_v52  ;;  %v18045_v52 = vld [vmem:[%s26486_s4 + $0x6e8] sm:$0xff]  ;;  %v3655_v41 = vpack.c.b16 %v3654_v8, %v3653_v39  ;;  %v1449_v43 = vpack.c.bf16 %v1377_v45, %v1377_v45  ;;  %v18043_v8 = vld [vmem:[%s26486_s4 + $0x6d8] sm:$0xff] }
 0x523   :  { %3803 = vmatpush.bf16.msra.mxu3 %v18025_v2  ;;  %v1378_v2 = vadd.f32 %v21930_v27, %v1302_v11  ;;  %v3831_v58 = vunpack.c.l.b16 %v1449_v43 }
 0x525   :  { %3710 = vmatpush.bf16.msra.mxu2 %v18018_v46  ;;  %v18038_v46 = vld [vmem:[%s26486_s4 + $0x6b0] sm:$0xff]  ;;  %v1450_v33 = vpack.c.bf16 %v1378_v2, %v1378_v2 }
 0x526   :  { %v26753_v2 = vld [vmem:[#allocation46_spill] sm:$0xff] }
 0x527   :  { %3804 = vmatpush.bf16.msra.mxu3 %v18024_v0  ;;  %v18037_v0 = vld [vmem:[%s26486_s4 + $0x6a8] sm:$0xff] }
 0x529   :  { %3711 = vmatpush.bf16.msra.mxu2 %v18017_v15  ;;  %v18035_v15 = vld [vmem:[%s26486_s4 + $0x698] sm:$0xff] }
 0x52a   :  { %3805 = vmatmul.bf16.vlgmr.msra.gmra.mxu3 %v3747_v28 }
 0x52b   :  { %3976 = vmatpush.bf16.msrb.mxu3 %v18047_v61  ;;  %v21974_v61 = vunpack.c.l.b16 %v1450_v33 }
 0x52d   :  { %3712 = vmatpush.bf16.msra.mxu2 %v18016_v62  ;;  %v3918_v1 = vpack.c.b16 %v21974_v61, %v3831_v58  ;;  %v18040_v62 = vld [vmem:[%s26486_s4 + $0x6c0] sm:$0xff]  ;;  %v3090_v39 = vpop.f32.mrf.mxu3 }
 0x52f   :  { %3977 = vmatpush.bf16.msrb.mxu3 %v18046_v18  ;;  %v3920_v60 = vshrl.u32 %v3918_v1, 16  ;;  %v3923_v28 = vshll.u32 %v3918_v1, 16  ;;  %v18034_v18 = vld [vmem:[%s26486_s4 + $0x690] sm:$0xff]  ;;  %v18055_v1 = vld [vmem:[%s26486_s4 + $0x738] sm:$0xff] }
 0x530   :  { %3713 = vmatmul.bf16.vlgmr.msra.gmra.mxu2 %v3655_v41  ;;  %v1227_v41 = vmul.f32 %v20713_v54, %v26753_v2 }
 0x531   :  { %3883 = vmatpush.bf16.msrb.mxu2 %v18039_v4  ;;  %v18063_v4 = vld [vmem:[%s26486_s4 + $0x778] sm:$0xff]  ;;  %v3925_v45 = vrot.slane %v3923_v28, 2 }
 0x533   :  { %3978 = vmatpush.bf16.msrb.mxu3 %v18045_v52  ;;  %v2998_v12 = vpop.f32.mrf.mxu2  ;;  %v3922_v52 = vrot.slane %v3920_v60, 1 }
 0x534   :  { %v3003_v11 = vadd.f32 %v2998_v12, %v2916_v55  ;;  %v18033_v55 = vld [vmem:[%s26486_s4 + $0x688] sm:$0xff]  ;;  %v18054_v12 = vld [vmem:[%s26486_s4 + $0x730] sm:$0xff] }
 0x535   :  { %3884 = vmatpush.bf16.msrb.mxu2 %v18038_v46  ;;  %v26754_v46 = vld [vmem:[#allocation47_spill] sm:$0xff]  ;;  %v3926_v33 = vor.u32 %v3925_v45, %v3922_v52  ;;  %v18052_v45 = vld [vmem:[%s26486_s4 + $0x720] sm:$0xff] }
 0x536   :  { %v3095_v43 = vadd.f32 %v3090_v39, %v3003_v11  ;;  %v18059_v39 = vld [vmem:[%s26486_s4 + $0x758] sm:$0xff] }
 0x537   :  { %3979 = vmatpush.bf16.msrb.mxu3 %v18044_v7  ;;  %v1228_v7 = vmul.f32 %v20713_v54, %v26754_v46 }
 0x539   :  { %3885 = vmatpush.bf16.msrb.mxu2 %v18037_v0  ;;  %v18062_v0 = vld [vmem:[%s26486_s4 + $0x770] sm:$0xff] }
 0x53b   :  { %3980 = vmatpush.bf16.msrb.mxu3 %v18043_v8  ;;  %v1303_v8 = vmul.f32 %v21918_v31, %v1227_v41  ;;  %v22043_v2 = vpop.f32.mrf.mxu2  ;;  %v18058_v41 = vld [vmem:[%s26486_s4 + $0x750] sm:$0xff] }
 0x53d   :  { %3886 = vmatpush.bf16.msrb.mxu2 %v18036_v37  ;;  %v1304_v37 = vmul.f32 %v21918_v31, %v1228_v7  ;;  %v1379_v60 = vadd.f32 %v21930_v27, %v1303_v8  ;;  %v22049_v7 = vpop.f32.mrf.mxu3 }
 0x53f   :  { %3981 = vmatpush.bf16.msrb.mxu3 %v18042_v14  ;;  %v18032_v14 = vld [vmem:[%s26486_s4 + $0x680] sm:$0xff]  ;;  %v1380_v28 = vadd.f32 %v21930_v27, %v1304_v37  ;;  %v18050_v37 = vld [vmem:[%s26486_s4 + $0x710] sm:$0xff] }
 0x541   :  { %3887 = vmatpush.bf16.msrb.mxu2 %v18035_v15  ;;  %v3832_v15 = vpack.c.b16 %v3831_v58, %v21897_v63  ;;  %v18060_v63 = vld [vmem:[%s26486_s4 + $0x760] sm:$0xff]  ;;  %v1451_v58 = vpack.c.bf16 %v1379_v60, %v1379_v60  ;;  %v1452_v11 = vpack.c.bf16 %v1380_v28, %v1380_v28  ;;  %v18079_v60 = vld [vmem:[%s26486_s4 + $0x7f8] sm:$0xff] }
 0x543   :  { %3982 = vmatpush.bf16.msrb.mxu3 %v18041_v48  ;;  %v18061_v48 = vld [vmem:[%s26486_s4 + $0x768] sm:$0xff]  ;;  %v22038_v52 = vunpack.c.l.b16 %v1452_v11 }
 0x545   :  { %3888 = vmatpush.bf16.msrb.mxu2 %v18034_v18  ;;  %v3833_v18 = vrot.slane %v3832_v15, 1  ;;  %v18056_v15 = vld [vmem:[%s26486_s4 + $0x740] sm:$0xff] }
 0x547   :  { %3983 = vmatpush.bf16.msrb.mxu3 %v18040_v62  ;;  %v18053_v62 = vld [vmem:[%s26486_s4 + $0x728] sm:$0xff] }
 0x549   :  { %3889 = vmatpush.bf16.msrb.mxu2 %v18033_v55  ;;  %v18051_v55 = vld [vmem:[%s26486_s4 + $0x718] sm:$0xff] }
 0x54a   :  { %3984 = vmatmul.bf16.vlgmr.msrb.gmra.mxu3 %v3926_v33  ;;  %v18057_v33 = vld [vmem:[%s26486_s4 + $0x748] sm:$0xff] }
 0x54b   :  { %4155 = vmatpush.bf16.msra.mxu3 %v18063_v4  ;;  %v4010_v4 = vunpack.c.l.b16 %v1451_v58  ;;  %v26756_v58 = vld [vmem:[#allocation49_spill] sm:$0xff] }
 0x54c   :  { %v1230_v11 = vmul.f32 %v20713_v54, %v26756_v58 }
 0x54d   :  { %3890 = vmatpush.bf16.msrb.mxu2 %v18032_v14  ;;  %v4097_v46 = vpack.c.b16 %v22038_v52, %v4010_v4 }
 0x54f   :  { %4156 = vmatpush.bf16.msra.mxu3 %v18062_v0  ;;  %v4099_v0 = vshrl.u32 %v4097_v46, 16  ;;  %v4102_v8 = vshll.u32 %v4097_v46, 16  ;;  %v1306_v46 = vmul.f32 %v21918_v31, %v1230_v11  ;;  %v18074_v11 = vld [vmem:[%s26486_s4 + $0x7d0] sm:$0xff] }
 0x550   :  { %3891 = vmatmul.bf16.vlgmr.msrb.gmra.mxu2 %v3833_v18 }
 0x551   :  { %4062 = vmatpush.bf16.msra.mxu2 %v18055_v1  ;;  %v4101_v28 = vrot.slane %v4099_v0, 2  ;;  %v4104_v18 = vrot.slane %v4102_v8, 3  ;;  %v4011_v0 = vpack.c.b16 %v4010_v4, %v21974_v61  ;;  %v18077_v8 = vld [vmem:[%s26486_s4 + $0x7e8] sm:$0xff]  ;;  %v18076_v61 = vld [vmem:[%s26486_s4 + $0x7e0] sm:$0xff] }
 0x553   :  { %4157 = vmatpush.bf16.msra.mxu3 %v18061_v48  ;;  %v3176_v14 = vpop.f32.mrf.mxu2  ;;  %v3269_v48 = vpop.f32.mrf.mxu3 }
 0x554   :  { %v3181_v1 = vadd.f32 %v3176_v14, %v3095_v43  ;;  %v18049_v43 = vld [vmem:[%s26486_s4 + $0x708] sm:$0xff]  ;;  %v1382_v14 = vadd.f32 %v21930_v27, %v1306_v46 }
 0x555   :  { %4063 = vmatpush.bf16.msra.mxu2 %v18054_v12  ;;  %v26755_v12 = vld [vmem:[#allocation51_spill] sm:$0xff] }
 0x557   :  { %4158 = vmatpush.bf16.msra.mxu3 %v18060_v63  ;;  %v1229_v63 = vmul.f32 %v20713_v54, %v26755_v12 }
 0x559   :  { %4064 = vmatpush.bf16.msra.mxu2 %v18053_v62  ;;  %v3274_v62 = vadd.f32 %v3269_v48, %v3181_v1  ;;  %v4012_v1 = vrot.slane %v4011_v0, 2  ;;  %v1454_v48 = vpack.c.bf16 %v1382_v14, %v1382_v14 }
 0x55b   :  { %4159 = vmatpush.bf16.msra.mxu3 %v18059_v39  ;;  %v4105_v39 = vor.u32 %v4104_v18, %v4101_v28  ;;  %v18075_v28 = vld [vmem:[%s26486_s4 + $0x7d8] sm:$0xff]  ;;  %v4275_v12 = vunpack.c.l.b16 %v1454_v48  ;;  %v22105_v58 = vpop.f32.mrf.mxu2 }
 0x55d   :  { %4065 = vmatpush.bf16.msra.mxu2 %v18052_v45  ;;  %v18078_v45 = vld [vmem:[%s26486_s4 + $0x7f0] sm:$0xff] }
 0x55f   :  { %4160 = vmatpush.bf16.msra.mxu3 %v18058_v41  ;;  %v1305_v41 = vmul.f32 %v21918_v31, %v1229_v63  ;;  %v18068_v63 = vld [vmem:[%s26486_s4 + $0x7a0] sm:$0xff] }
 0x561   :  { %4066 = vmatpush.bf16.msra.mxu2 %v18051_v55  ;;  %v18048_v55 = vld [vmem:[%s26486_s4 + $0x700] sm:$0xff] }
 0x563   :  { %4161 = vmatpush.bf16.msra.mxu3 %v18057_v33  ;;  %v18071_v33 = vld [vmem:[%s26486_s4 + $0x7b8] sm:$0xff] }
 0x565   :  { %4067 = vmatpush.bf16.msra.mxu2 %v18050_v37  ;;  %v1381_v37 = vadd.f32 %v21930_v27, %v1305_v41  ;;  %v18073_v41 = vld [vmem:[%s26486_s4 + $0x7c8] sm:$0xff] }
 0x567   :  { %4162 = vmatpush.bf16.msra.mxu3 %v18056_v15  ;;  %v18070_v15 = vld [vmem:[%s26486_s4 + $0x7b0] sm:$0xff]  ;;  %v1453_v4 = vpack.c.bf16 %v1381_v37, %v1381_v37  ;;  %v18072_v37 = vld [vmem:[%s26486_s4 + $0x7c0] sm:$0xff] }
 0x569   :  { %4068 = vmatpush.bf16.msra.mxu2 %v18049_v43  ;;  %v4189_v18 = vunpack.c.l.b16 %v1453_v4  ;;  %v26757_v4 = vld [vmem:[#allocation52_spill] sm:$0xff] }
 0x56a   :  { %4163 = vmatmul.bf16.vlgmr.msra.gmra.mxu3 %v4105_v39  ;;  %v22110_v39 = vpop.f32.mrf.mxu3  ;;  %v1232_v48 = vmul.f32 %v20713_v54, %v26757_v4 }
 0x56b   :  { %4334 = vmatpush.bf16.msrb.mxu3 %v18079_v60  ;;  %v18069_v60 = vld [vmem:[%s26486_s4 + $0x7a8] sm:$0xff]  ;;  %v4276_v43 = vpack.c.b16 %v4275_v12, %v4189_v18 }
 0x56d   :  { %4069 = vmatpush.bf16.msra.mxu2 %v18048_v55  ;;  %v4278_v46 = vshrl.u32 %v4276_v43, 16  ;;  %v4281_v55 = vshll.u32 %v4276_v43, 16  ;;  %v1308_v43 = vmul.f32 %v21918_v31, %v1232_v48 }
 0x56f   :  { %4335 = vmatpush.bf16.msrb.mxu3 %v18078_v45  ;;  %v18067_v45 = vld [vmem:[%s26486_s4 + $0x798] sm:$0xff] }
 0x570   :  { %4070 = vmatmul.bf16.vlgmr.msra.gmra.mxu2 %v4012_v1  ;;  %v18095_v1 = vld [vmem:[%s26486_s4 + $0x878] sm:$0xff] }
 0x571   :  { %4241 = vmatpush.bf16.msrb.mxu2 %v18071_v33  ;;  %v18066_v33 = vld [vmem:[%s26486_s4 + $0x790] sm:$0xff] }
 0x572   :  { %v3448_v14 = vpop.f32.mrf.mxu3 }
 0x573   :  { %4336 = vmatpush.bf16.msrb.mxu3 %v18077_v8  ;;  %v3355_v0 = vpop.f32.mrf.mxu2 }
 0x574   :  { %v3360_v8 = vadd.f32 %v3355_v0, %v3274_v62  ;;  %v18065_v62 = vld [vmem:[%s26486_s4 + $0x788] sm:$0xff]  ;;  %v1384_v0 = vadd.f32 %v21930_v27, %v1308_v43 }
 0x575   :  { %4242 = vmatpush.bf16.msrb.mxu2 %v18070_v15  ;;  %v4280_v15 = vrot.slane %v4278_v46, 3  ;;  %v18087_v46 = vld [vmem:[%s26486_s4 + $0x838] sm:$0xff] }
 0x576   :  { %v3453_v12 = vadd.f32 %v3448_v14, %v3360_v8  ;;  %v18086_v14 = vld [vmem:[%s26486_s4 + $0x830] sm:$0xff] }
 0x577   :  { %4337 = vmatpush.bf16.msrb.mxu3 %v18076_v61  ;;  %v4283_v61 = vrot.slane %v4281_v55, 4  ;;  %v4190_v55 = vpack.c.b16 %v4189_v18, %v22038_v52  ;;  %v18092_v52 = vld [vmem:[%s26486_s4 + $0x860] sm:$0xff]  ;;  %v1456_v18 = vpack.c.bf16 %v1384_v0, %v1384_v0  ;;  %v18082_v0 = vld [vmem:[%s26486_s4 + $0x810] sm:$0xff] }
 0x579   :  { %4243 = vmatpush.bf16.msrb.mxu2 %v18069_v60  ;;  %v26758_v60 = vld [vmem:[#allocation54_spill] sm:$0xff]  ;;  %v4370_v4 = vunpack.c.l.b16 %v1456_v18 }
 0x57b   :  { %4338 = vmatpush.bf16.msrb.mxu3 %v18075_v28  ;;  %v1233_v28 = vmul.f32 %v20713_v54, %v26758_v60  ;;  %v18084_v60 = vld [vmem:[%s26486_s4 + $0x820] sm:$0xff] }
 0x57d   :  { %4244 = vmatpush.bf16.msrb.mxu2 %v18068_v63  ;;  %v4284_v63 = vor.u32 %v4283_v61, %v4280_v15  ;;  %v18085_v15 = vld [vmem:[%s26486_s4 + $0x828] sm:$0xff]  ;;  %v18091_v61 = vld [vmem:[%s26486_s4 + $0x858] sm:$0xff] }
 0x57f   :  { %4339 = vmatpush.bf16.msrb.mxu3 %v18074_v11  ;;  %v18094_v11 = vld [vmem:[%s26486_s4 + $0x870] sm:$0xff] }
 0x581   :  { %4245 = vmatpush.bf16.msrb.mxu2 %v18067_v45  ;;  %v1309_v45 = vmul.f32 %v21918_v31, %v1233_v28  ;;  %v26759_v28 = vld [vmem:[#allocation50_spill] sm:$0xff] }
 0x583   :  { %4340 = vmatpush.bf16.msrb.mxu3 %v18073_v41  ;;  %v18064_v41 = vld [vmem:[%s26486_s4 + $0x780] sm:$0xff]  ;;  %v1385_v8 = vadd.f32 %v21930_v27, %v1309_v45  ;;  %v22176_v45 = vpop.f32.mrf.mxu3 }
 0x585   :  { %4246 = vmatpush.bf16.msrb.mxu2 %v18066_v33  ;;  %v18093_v33 = vld [vmem:[%s26486_s4 + $0x868] sm:$0xff] }
 0x587   :  { %4341 = vmatpush.bf16.msrb.mxu3 %v18072_v37  ;;  %v4191_v37 = vrot.slane %v4190_v55, 3  ;;  %v18089_v55 = vld [vmem:[%s26486_s4 + $0x848] sm:$0xff] }
 0x589   :  { %4247 = vmatpush.bf16.msrb.mxu2 %v18065_v62  ;;  %v1231_v62 = vmul.f32 %v20713_v54, %v26759_v28 }
 0x58a   :  { %4342 = vmatmul.bf16.vlgmr.msrb.gmra.mxu3 %v4284_v63  ;;  %v22170_v63 = vpop.f32.mrf.mxu2 }
 0x58b   :  { %4513 = vmatpush.bf16.msra.mxu3 %v18095_v1  ;;  %v1457_v1 = vpack.c.bf16 %v1385_v8, %v1385_v8 }
 0x58d   :  { %4248 = vmatpush.bf16.msrb.mxu2 %v18064_v41  ;;  %v22163_v48 = vunpack.c.l.b16 %v1457_v1  ;;  %v18083_v41 = vld [vmem:[%s26486_s4 + $0x818] sm:$0xff]  ;;  %v3627_v18 = vpop.f32.mrf.mxu3 }
 0x58e   :  { %v18111_v1 = vld [vmem:[%s26486_s4 + $0x8f8] sm:$0xff] }
 0x58f   :  { %4514 = vmatpush.bf16.msra.mxu3 %v18094_v11  ;;  %v18090_v11 = vld [vmem:[%s26486_s4 + $0x850] sm:$0xff]  ;;  %v4456_v43 = vpack.c.b16 %v22163_v48, %v4370_v4 }
 0x590   :  { %4249 = vmatmul.bf16.vlgmr.msrb.gmra.mxu2 %v4191_v37 }
 0x591   :  { %4421 = vmatpush.bf16.msra.mxu2 %v18087_v46  ;;  %v1307_v46 = vmul.f32 %v21918_v31, %v1231_v62  ;;  %v4458_v62 = vshrl.u32 %v4456_v43, 16 }
 0x593   :  { %4515 = vmatpush.bf16.msra.mxu3 %v18093_v33  ;;  %v4460_v33 = vshll.u32 %v4456_v43, 16  ;;  %v1383_v8 = vadd.f32 %v21930_v27, %v1307_v46  ;;  %v3534_v37 = vpop.f32.mrf.mxu2  ;;  %v18109_v43 = vld [vmem:[%s26486_s4 + $0x8e8] sm:$0xff] }
 0x595   :  { %4422 = vmatpush.bf16.msra.mxu2 %v18086_v14  ;;  %v3539_v14 = vadd.f32 %v3534_v37, %v3453_v12  ;;  %v1455_v28 = vpack.c.bf16 %v1383_v8, %v1383_v8  ;;  %v18108_v8 = vld [vmem:[%s26486_s4 + $0x8e0] sm:$0xff]  ;;  %v18101_v37 = vld [vmem:[%s26486_s4 + $0x8a8] sm:$0xff] }
 0x597   :  { %4516 = vmatpush.bf16.msra.mxu3 %v18092_v52  ;;  %v18088_v52 = vld [vmem:[%s26486_s4 + $0x840] sm:$0xff]  ;;  %v4369_v46 = vunpack.c.l.b16 %v1455_v28  ;;  %v4636_v28 = vshrl.u32 %v20891_v36, 16 }
 0x599   :  { %4423 = vmatpush.bf16.msra.mxu2 %v18085_v15  ;;  %v4462_v15 = vrot.slane %v4460_v33, 1  ;;  %v4371_v33 = vpack.c.b16 %v4370_v4, %v4369_v46  ;;  %v18107_v4 = vld [vmem:[%s26486_s4 + $0x8d8] sm:$0xff]  ;;  %v18104_v46 = vld [vmem:[%s26486_s4 + $0x8c0] sm:$0xff] }
 0x59b   :  { %4517 = vmatpush.bf16.msra.mxu3 %v18091_v61  ;;  %v18081_v61 = vld [vmem:[%s26486_s4 + $0x808] sm:$0xff]  ;;  %v4463_v12 = vor.u32 %v4462_v15, %v4458_v62  ;;  %v18099_v15 = vld [vmem:[%s26486_s4 + $0x898] sm:$0xff]  ;;  %v4639_v62 = vshll.u32 %v20891_v36, 16 }
 0x59c   :  { %v26760_v36 = vld [vmem:[#allocation53_spill] sm:$0xff] }
 0x59d   :  { %4424 = vmatpush.bf16.msra.mxu2 %v18084_v60  ;;  %v3632_v60 = vadd.f32 %v3627_v18, %v3539_v14  ;;  %v18100_v14 = vld [vmem:[%s26486_s4 + $0x8a0] sm:$0xff]  ;;  %v18106_v18 = vld [vmem:[%s26486_s4 + $0x8d0] sm:$0xff] }
 0x59f   :  { %4518 = vmatpush.bf16.msra.mxu3 %v18090_v11  ;;  %v18110_v11 = vld [vmem:[%s26486_s4 + $0x8f0] sm:$0xff] }
 0x5a1   :  { %4425 = vmatpush.bf16.msra.mxu2 %v18083_v41  ;;  %v18080_v41 = vld [vmem:[%s26486_s4 + $0x800] sm:$0xff] }
 0x5a3   :  { %4519 = vmatpush.bf16.msra.mxu3 %v18089_v55  ;;  %v18103_v55 = vld [vmem:[%s26486_s4 + $0x8b8] sm:$0xff] }
 0x5a5   :  { %4426 = vmatpush.bf16.msra.mxu2 %v18082_v0  ;;  %v18102_v0 = vld [vmem:[%s26486_s4 + $0x8b0] sm:$0xff] }
 0x5a7   :  { %4520 = vmatpush.bf16.msra.mxu3 %v18088_v52  ;;  %v22225_v52 = vpop.f32.mrf.mxu2 }
 0x5a9   :  { %4427 = vmatpush.bf16.msra.mxu2 %v18081_v61  ;;  %v18105_v61 = vld [vmem:[%s26486_s4 + $0x8c8] sm:$0xff] }
 0x5aa   :  { %4521 = vmatmul.bf16.vlgmr.msra.gmra.mxu3 %v4463_v12  ;;  %v18098_v12 = vld [vmem:[%s26486_s4 + $0x890] sm:$0xff] }
 0x5ab   :  { %4692 = vmatpush.bf16.msrb.mxu3 %v18111_v1  ;;  %v22230_v1 = vpop.f32.mrf.mxu3 }
 0x5ad   :  { %4428 = vmatpush.bf16.msra.mxu2 %v18080_v41 }
 0x5af   :  { %4693 = vmatpush.bf16.msrb.mxu3 %v18110_v11 }
 0x5b0   :  { %4429 = vmatmul.bf16.vlgmr.msra.gmra.mxu2 %v4371_v33  ;;  %v4638_v33 = vrot.slane %v4636_v28, 1  ;;  %v4548_v28 = vpack.c.b16 %v20878_v20, %v22163_v48  ;;  %v18140_v20 = vld [vmem:[%s26486_s4 + $0x9e0] sm:$0xff] }
 0x5b1   :  { %4599 = vmatpush.bf16.msrb.mxu2 %v18103_v55 }
 0x5b3   :  { %4694 = vmatpush.bf16.msrb.mxu3 %v18109_v43  ;;  %v3714_v11 = vpop.f32.mrf.mxu2  ;;  %v3806_v55 = vpop.f32.mrf.mxu3  ;;  %v18143_v43 = vld [vmem:[%s26486_s4 + $0x9f8] sm:$0xff] }
 0x5b4   :  { %v3719_v41 = vadd.f32 %v3714_v11, %v3632_v60  ;;  %v18097_v60 = vld [vmem:[%s26486_s4 + $0x888] sm:$0xff]  ;;  %v4549_v11 = vrot.slane %v4548_v28, 1 }
 0x5b5   :  { %4600 = vmatpush.bf16.msrb.mxu2 %v18102_v0  ;;  %v4641_v0 = vrot.slane %v4639_v62, 2  ;;  %v18141_v62 = vld [vmem:[%s26486_s4 + $0x9e8] sm:$0xff] }
 0x5b7   :  { %4695 = vmatpush.bf16.msrb.mxu3 %v18108_v8  ;;  %v1239_v8 = vmul.f32 %v20713_v54, %v26760_v36  ;;  %v18138_v36 = vld [vmem:[%s26486_s4 + $0x9d0] sm:$0xff] }
 0x5b9   :  { %4601 = vmatpush.bf16.msrb.mxu2 %v18101_v37  ;;  %v3811_v37 = vadd.f32 %v3806_v55, %v3719_v41  ;;  %v18134_v41 = vld [vmem:[%s26486_s4 + $0x9b0] sm:$0xff]  ;;  %v18139_v55 = vld [vmem:[%s26486_s4 + $0x9d8] sm:$0xff] }
 0x5bb   :  { %4696 = vmatpush.bf16.msrb.mxu3 %v18107_v4  ;;  %v4642_v4 = vor.u32 %v4641_v0, %v4638_v33  ;;  %v18132_v33 = vld [vmem:[%s26486_s4 + $0x9a0] sm:$0xff]  ;;  %v22285_v0 = vpop.f32.mrf.mxu2 }
 0x5bd   :  { %4602 = vmatpush.bf16.msrb.mxu2 %v18100_v14  ;;  %v18142_v14 = vld [vmem:[%s26486_s4 + $0x9f0] sm:$0xff] }
 0x5bf   :  { %4697 = vmatpush.bf16.msrb.mxu3 %v18106_v18  ;;  %v1315_v18 = vmul.f32 %v21918_v31, %v1239_v8 }
 0x5c1   :  { %4603 = vmatpush.bf16.msrb.mxu2 %v18099_v15  ;;  %v18096_v15 = vld [vmem:[%s26486_s4 + $0x880] sm:$0xff] }
 0x5c3   :  { %4698 = vmatpush.bf16.msrb.mxu3 %v18105_v61  ;;  %v18135_v61 = vld [vmem:[%s26486_s4 + $0x9b8] sm:$0xff] }
 0x5c5   :  { %4604 = vmatpush.bf16.msrb.mxu2 %v18098_v12  ;;  %v1391_v12 = vadd.f32 %v21930_v27, %v1315_v18 }
 0x5c7   :  { %4699 = vmatpush.bf16.msrb.mxu3 %v18104_v46  ;;  %v1463_v48 = vpack.c.bf16 %v1391_v12, %v1391_v12  ;;  %v18133_v46 = vld [vmem:[%s26486_s4 + $0x9a8] sm:$0xff]  ;;  %v18136_v12 = vld [vmem:[%s26486_s4 + $0x9c0] sm:$0xff] }
 0x5c9   :  { %4605 = vmatpush.bf16.msrb.mxu2 %v18097_v60  ;;  %v22291_v60 = vpop.f32.mrf.mxu3 }
 0x5ca   :  { %4700 = vmatmul.bf16.vlgmr.msrb.gmra.mxu3 %v4642_v4  ;;  %v18131_v4 = vld [vmem:[%s26486_s4 + $0x998] sm:$0xff] }
 0x5cb   :  { %5050 = vmatpush.bf16.msra.mxu3 %v18143_v43  ;;  %v4991_v43 = vunpack.c.l.b16 %v1463_v48 }
 0x5cd   :  { %4606 = vmatpush.bf16.msrb.mxu2 %v18096_v15  ;;  %v4992_v8 = vpack.c.b16 %v4991_v43, %v21063_v42  ;;  %v18174_v43 = vld [vmem:[%s26486_s4 + $0xaf0] sm:$0xff]  ;;  %v18164_v42 = vld [vmem:[%s26486_s4 + $0xaa0] sm:$0xff] }
 0x5cf   :  { %5051 = vmatpush.bf16.msra.mxu3 %v18142_v14  ;;  %v18137_v14 = vld [vmem:[%s26486_s4 + $0x9c8] sm:$0xff]  ;;  %v4994_v18 = vshrl.u32 %v4992_v8, 16  ;;  %v4997_v15 = vshll.u32 %v4992_v8, 16 }
 0x5d0   :  { %4607 = vmatmul.bf16.vlgmr.msrb.gmra.mxu2 %v4549_v11  ;;  %v18173_v8 = vld [vmem:[%s26486_s4 + $0xae8] sm:$0xff] }
 0x5d1   :  { %4957 = vmatpush.bf16.msra.mxu2 %v18135_v61  ;;  %v18130_v61 = vld [vmem:[%s26486_s4 + $0x990] sm:$0xff]  ;;  %v3985_v11 = vpop.f32.mrf.mxu3  ;;  %v4999_v48 = vrot.slane %v4997_v15, 4  ;;  %v18165_v15 = vld [vmem:[%s26486_s4 + $0xaa8] sm:$0xff] }
 0x5d3   :  { %5052 = vmatpush.bf16.msra.mxu3 %v18141_v62  ;;  %v3892_v28 = vpop.f32.mrf.mxu2 }
 0x5d4   :  { %v3897_v62 = vadd.f32 %v3892_v28, %v3811_v37 }
 0x5d5   :  { %4958 = vmatpush.bf16.msra.mxu2 %v18134_v41  ;;  %v18175_v41 = vld [vmem:[%s26486_s4 + $0xaf8] sm:$0xff] }
 0x5d7   :  { %5053 = vmatpush.bf16.msra.mxu3 %v18140_v20  ;;  %v4996_v20 = vrot.slane %v4994_v18, 3  ;;  %v18172_v18 = vld [vmem:[%s26486_s4 + $0xae0] sm:$0xff] }
 0x5d9   :  { %4959 = vmatpush.bf16.msra.mxu2 %v18133_v46  ;;  %v18129_v46 = vld [vmem:[%s26486_s4 + $0x988] sm:$0xff]  ;;  %v5000_v37 = vor.u32 %v4999_v48, %v4996_v20  ;;  %v22346_v28 = vpop.f32.mrf.mxu3  ;;  %v18162_v20 = vld [vmem:[%s26486_s4 + $0xa90] sm:$0xff] }
 0x5db   :  { %5054 = vmatpush.bf16.msra.mxu3 %v18139_v55  ;;  %v3990_v55 = vadd.f32 %v3985_v11, %v3897_v62  ;;  %v18163_v62 = vld [vmem:[%s26486_s4 + $0xa98] sm:$0xff]  ;;  %v5352_v11 = vshrl.u32 %v20853_v6, 16 }
 0x5dd   :  { %4960 = vmatpush.bf16.msra.mxu2 %v18132_v33  ;;  %v18128_v33 = vld [vmem:[%s26486_s4 + $0x980] sm:$0xff] }
 0x5df   :  { %5055 = vmatpush.bf16.msra.mxu3 %v18138_v36  ;;  %v18167_v36 = vld [vmem:[%s26486_s4 + $0xab8] sm:$0xff] }
 0x5e1   :  { %4961 = vmatpush.bf16.msra.mxu2 %v18131_v4  ;;  %v4907_v4 = vrot.slane %v4906_v10, 3  ;;  %v22341_v10 = vpop.f32.mrf.mxu2 }
 0x5e3   :  { %5056 = vmatpush.bf16.msra.mxu3 %v18137_v14  ;;  %v18166_v14 = vld [vmem:[%s26486_s4 + $0xab0] sm:$0xff] }
 0x5e5   :  { %4962 = vmatpush.bf16.msra.mxu2 %v18130_v61  ;;  %v18170_v61 = vld [vmem:[%s26486_s4 + $0xad0] sm:$0xff] }
 0x5e7   :  { %5057 = vmatpush.bf16.msra.mxu3 %v18136_v12  ;;  %v18169_v12 = vld [vmem:[%s26486_s4 + $0xac8] sm:$0xff] }
 0x5e9   :  { %4963 = vmatpush.bf16.msra.mxu2 %v18129_v46 }
 0x5ea   :  { %5058 = vmatmul.bf16.vlgmr.msra.gmra.mxu3 %v5000_v37  ;;  %v18168_v37 = vld [vmem:[%s26486_s4 + $0xac0] sm:$0xff] }
 0x5eb   :  { %5408 = vmatpush.bf16.msrb.mxu3 %v18175_v41  ;;  %v5355_v41 = vshll.u32 %v20853_v6, 16  ;;  %v26761_v6 = vld [vmem:[#allocation55_spill] sm:$0xff] }
 0x5ed   :  { %4964 = vmatpush.bf16.msra.mxu2 %v18128_v33  ;;  %v18207_v33 = vld [vmem:[%s26486_s4 + $0xbf8] sm:$0xff] }
 0x5ef   :  { %5409 = vmatpush.bf16.msrb.mxu3 %v18174_v43  ;;  %v4164_v43 = vpop.f32.mrf.mxu3 }
 0x5f0   :  { %4965 = vmatmul.bf16.vlgmr.msra.gmra.mxu2 %v4907_v4  ;;  %v1248_v4 = vmul.f32 %v20713_v54, %v26761_v6 }
 0x5f1   :  { %5315 = vmatpush.bf16.msrb.mxu2 %v18167_v36  ;;  %v5354_v36 = vrot.slane %v5352_v11, 1  ;;  %v26762_v11 = vpack.c.b16 %v20823_v21, %v20821_v26  ;;  %v18203_v26 = vld [vmem:[%s26486_s4 + $0xbd8] sm:$0xff] }
 0x5f3   :  { %5410 = vmatpush.bf16.msrb.mxu3 %v18173_v8  ;;  %v4071_v48 = vpop.f32.mrf.mxu2  ;;  %v5357_v8 = vrot.slane %v5355_v41, 2  ;;  %v5265_v41 = vrot.slane %v26762_v11, 1  ;;  %v18239_v11 = vld [vmem:[%s26486_s4 + $0xcf8] sm:$0xff] }
 0x5f4   :  { %v4076_v46 = vadd.f32 %v4071_v48, %v3990_v55  ;;  %v18161_v55 = vld [vmem:[%s26486_s4 + $0xa88] sm:$0xff]  ;;  %v18204_v48 = vld [vmem:[%s26486_s4 + $0xbe0] sm:$0xff] }
 0x5f5   :  { %5316 = vmatpush.bf16.msrb.mxu2 %v18166_v14 }
 0x5f6   :  { %v4169_v14 = vadd.f32 %v4164_v43, %v4076_v46  ;;  %v18196_v43 = vld [vmem:[%s26486_s4 + $0xba0] sm:$0xff] }
 0x5f7   :  { %5411 = vmatpush.bf16.msrb.mxu3 %v18172_v18  ;;  %v5358_v18 = vor.u32 %v5357_v8, %v5354_v36  ;;  %v18202_v36 = vld [vmem:[%s26486_s4 + $0xbd0] sm:$0xff]  ;;  %v22408_v6 = vpop.f32.mrf.mxu3 }
 0x5f9   :  { %5317 = vmatpush.bf16.msrb.mxu2 %v18165_v15  ;;  %v18206_v15 = vld [vmem:[%s26486_s4 + $0xbf0] sm:$0xff] }
 0x5fb   :  { %5412 = vmatpush.bf16.msrb.mxu3 %v18171_v29  ;;  %v1324_v29 = vmul.f32 %v21918_v31, %v1248_v4  ;;  %v18195_v4 = vld [vmem:[%s26486_s4 + $0xb98] sm:$0xff] }
 0x5fd   :  { %5318 = vmatpush.bf16.msrb.mxu2 %v18164_v42  ;;  %v18160_v42 = vld [vmem:[%s26486_s4 + $0xa80] sm:$0xff] }
 0x5ff   :  { %5413 = vmatpush.bf16.msrb.mxu3 %v18170_v61  ;;  %v18199_v61 = vld [vmem:[%s26486_s4 + $0xbb8] sm:$0xff] }
 0x601   :  { %5319 = vmatpush.bf16.msrb.mxu2 %v18163_v62  ;;  %v18205_v62 = vld [vmem:[%s26486_s4 + $0xbe8] sm:$0xff] }
 0x603   :  { %5414 = vmatpush.bf16.msrb.mxu3 %v18169_v12  ;;  %v1400_v12 = vadd.f32 %v21930_v27, %v1324_v29  ;;  %v18194_v29 = vld [vmem:[%s26486_s4 + $0xb90] sm:$0xff] }
 0x605   :  { %5320 = vmatpush.bf16.msrb.mxu2 %v18162_v20  ;;  %v18198_v20 = vld [vmem:[%s26486_s4 + $0xbb0] sm:$0xff]  ;;  %v1472_v46 = vpack.c.bf16 %v1400_v12, %v1400_v12 }
 0x607   :  { %5415 = vmatpush.bf16.msrb.mxu3 %v18168_v37  ;;  %v18197_v37 = vld [vmem:[%s26486_s4 + $0xba8] sm:$0xff]  ;;  %v5707_v21 = vunpack.c.l.b16 %v1472_v46 }
 0x609   :  { %5321 = vmatpush.bf16.msrb.mxu2 %v18161_v55  ;;  %v5708_v8 = vpack.c.b16 %v5707_v21, %v20831_v9  ;;  %v18201_v55 = vld [vmem:[%s26486_s4 + $0xbc8] sm:$0xff]  ;;  %v18231_v21 = vld [vmem:[%s26486_s4 + $0xcb8] sm:$0xff] }
 0x60a   :  { %5416 = vmatmul.bf16.vlgmr.msrb.gmra.mxu3 %v5358_v18 }
 0x60b   :  { %5766 = vmatpush.bf16.msra.mxu3 %v18207_v33  ;;  %v22402_v33 = vpop.f32.mrf.mxu2  ;;  %v5710_v18 = vshrl.u32 %v5708_v8, 16 }
 0x60d   :  { %5322 = vmatpush.bf16.msrb.mxu2 %v18160_v42  ;;  %v4343_v12 = vpop.f32.mrf.mxu3 }
 0x60f   :  { %5767 = vmatpush.bf16.msra.mxu3 %v18206_v15  ;;  %v5713_v15 = vshll.u32 %v5708_v8, 16 }
 0x610   :  { %5323 = vmatmul.bf16.vlgmr.msrb.gmra.mxu2 %v5265_v41  ;;  %v5712_v41 = vrot.slane %v5710_v18, 3  ;;  %v18229_v18 = vld [vmem:[%s26486_s4 + $0xca8] sm:$0xff] }
 0x611   :  { %5673 = vmatpush.bf16.msra.mxu2 %v18199_v61 }
 0x613   :  { %5768 = vmatpush.bf16.msra.mxu3 %v18205_v62  ;;  %v4250_v42 = vpop.f32.mrf.mxu2  ;;  %v18200_v62 = vld [vmem:[%s26486_s4 + $0xbc0] sm:$0xff] }
 0x614   :  { %v4255_v61 = vadd.f32 %v4250_v42, %v4169_v14 }
 0x615   :  { %5674 = vmatpush.bf16.msra.mxu2 %v18198_v20  ;;  %v5715_v20 = vrot.slane %v5713_v15, 4  ;;  %v22463_v42 = vpop.f32.mrf.mxu3 }
 0x616   :  { %v4348_v46 = vadd.f32 %v4343_v12, %v4255_v61  ;;  %v18227_v61 = vld [vmem:[%s26486_s4 + $0xc98] sm:$0xff]  ;;  %v26764_v12 = vld [vmem:[#allocation10_spill] sm:$0xff] }
 0x617   :  { %5769 = vmatpush.bf16.msra.mxu3 %v18204_v48  ;;  %v18193_v48 = vld [vmem:[%s26486_s4 + $0xb88] sm:$0xff]  ;;  %v5716_v14 = vor.u32 %v5715_v20, %v5712_v41  ;;  %v6071_v41 = vshll.u32 %v26764_v12, 16  ;;  %v18226_v20 = vld [vmem:[%s26486_s4 + $0xc90] sm:$0xff] }
 0x619   :  { %5675 = vmatpush.bf16.msra.mxu2 %v18197_v37  ;;  %v18238_v37 = vld [vmem:[%s26486_s4 + $0xcf0] sm:$0xff] }
 0x61b   :  { %5770 = vmatpush.bf16.msra.mxu3 %v18203_v26  ;;  %v18192_v26 = vld [vmem:[%s26486_s4 + $0xb80] sm:$0xff]  ;;  %v22458_v15 = vpop.f32.mrf.mxu2 }
 0x61d   :  { %5676 = vmatpush.bf16.msra.mxu2 %v18196_v43  ;;  %v18237_v43 = vld [vmem:[%s26486_s4 + $0xce8] sm:$0xff] }
 0x61f   :  { %5771 = vmatpush.bf16.msra.mxu3 %v18202_v36  ;;  %v26763_v36 = vpack.c.b16 %v20831_v9, %v20829_v5  ;;  %v18235_v5 = vld [vmem:[%s26486_s4 + $0xcd8] sm:$0xff]  ;;  %v18228_v9 = vld [vmem:[%s26486_s4 + $0xca0] sm:$0xff] }
 0x621   :  { %5677 = vmatpush.bf16.msra.mxu2 %v18195_v4  ;;  %v5623_v8 = vrot.slane %v26763_v36, 3  ;;  %v18230_v4 = vld [vmem:[%s26486_s4 + $0xcb0] sm:$0xff]  ;;  %v6073_v36 = vrot.slane %v6071_v41, 2  ;;  %v18268_v41 = vld [vmem:[%s26486_s4 + $0xde0] sm:$0xff] }
 0x623   :  { %5772 = vmatpush.bf16.msra.mxu3 %v18201_v55  ;;  %v18236_v55 = vld [vmem:[%s26486_s4 + $0xce0] sm:$0xff] }
 0x625   :  { %5678 = vmatpush.bf16.msra.mxu2 %v18194_v29  ;;  %v18234_v29 = vld [vmem:[%s26486_s4 + $0xcd0] sm:$0xff] }
 0x627   :  { %5773 = vmatpush.bf16.msra.mxu3 %v18200_v62  ;;  %v18233_v62 = vld [vmem:[%s26486_s4 + $0xcc8] sm:$0xff] }
 0x629   :  { %5679 = vmatpush.bf16.msra.mxu2 %v18193_v48 }
 0x62a   :  { %5774 = vmatmul.bf16.vlgmr.msra.gmra.mxu3 %v5716_v14 }
 0x62b   :  { %6124 = vmatpush.bf16.msrb.mxu3 %v18239_v11  ;;  %v6068_v11 = vshrl.u32 %v26764_v12, 16 }
 0x62d   :  { %5680 = vmatpush.bf16.msra.mxu2 %v18192_v26  ;;  %v4522_v26 = vpop.f32.mrf.mxu3 }
 0x62f   :  { %6125 = vmatpush.bf16.msrb.mxu3 %v18238_v37  ;;  %v18232_v37 = vld [vmem:[%s26486_s4 + $0xcc0] sm:$0xff] }
 0x630   :  { %5681 = vmatmul.bf16.vlgmr.msra.gmra.mxu2 %v5623_v8  ;;  %v26765_v8 = vld [vmem:[#allocation56_spill] sm:$0xff] }
 0x631   :  { %6031 = vmatpush.bf16.msrb.mxu2 %v18231_v21  ;;  %v18271_v21 = vld [vmem:[%s26486_s4 + $0xdf8] sm:$0xff] }
 0x633   :  { %6126 = vmatpush.bf16.msrb.mxu3 %v18237_v43  ;;  %v4430_v48 = vpop.f32.mrf.mxu2  ;;  %v6070_v43 = vrot.slane %v6068_v11, 1  ;;  %v18262_v11 = vld [vmem:[%s26486_s4 + $0xdb0] sm:$0xff] }
 0x634   :  { %v4435_v14 = vadd.f32 %v4430_v48, %v4348_v46  ;;  %v18225_v46 = vld [vmem:[%s26486_s4 + $0xc88] sm:$0xff]  ;;  %v18266_v48 = vld [vmem:[%s26486_s4 + $0xdd0] sm:$0xff] }
 0x635   :  { %6032 = vmatpush.bf16.msrb.mxu2 %v18230_v4  ;;  %v1257_v4 = vmul.f32 %v20713_v54, %v26765_v8  ;;  %v18264_v8 = vld [vmem:[%s26486_s4 + $0xdc0] sm:$0xff] }
 0x637   :  { %6127 = vmatpush.bf16.msrb.mxu3 %v18236_v55  ;;  %v22487_v55 = vadd.f32 %v4522_v26, %v4435_v14  ;;  %v18265_v26 = vld [vmem:[%s26486_s4 + $0xdc8] sm:$0xff] }
 0x639   :  { %6033 = vmatpush.bf16.msrb.mxu2 %v18229_v18  ;;  %v6074_v18 = vor.u32 %v6073_v36, %v6070_v43  ;;  %v18258_v36 = vld [vmem:[%s26486_s4 + $0xd90] sm:$0xff] }
 0x63b   :  { %6128 = vmatpush.bf16.msrb.mxu3 %v18235_v5  ;;  %v18270_v5 = vld [vmem:[%s26486_s4 + $0xdf0] sm:$0xff] }
 0x63d   :  { %6034 = vmatpush.bf16.msrb.mxu2 %v18228_v9  ;;  %v1333_v9 = vmul.f32 %v21918_v31, %v1257_v4  ;;  %v5981_v31 = vrot.slane %v5980_v16, 1  ;;  %v18260_v16 = vld [vmem:[%s26486_s4 + $0xda0] sm:$0xff]  ;;  %v18303_v4 = vld [vmem:[%s26486_s4 + $0xef8] sm:$0xff] }
 0x63f   :  { %6129 = vmatpush.bf16.msrb.mxu3 %v18234_v29  ;;  %v18224_v29 = vld [vmem:[%s26486_s4 + $0xc80] sm:$0xff]  ;;  %v1409_v12 = vadd.f32 %v21930_v27, %v1333_v9  ;;  %v18261_v27 = vld [vmem:[%s26486_s4 + $0xda8] sm:$0xff] }
 0x641   :  { %6035 = vmatpush.bf16.msrb.mxu2 %v18227_v61  ;;  %v18263_v61 = vld [vmem:[%s26486_s4 + $0xdb8] sm:$0xff] }
 0x643   :  { %6130 = vmatpush.bf16.msrb.mxu3 %v18233_v62  ;;  %v18269_v62 = vld [vmem:[%s26486_s4 + $0xde8] sm:$0xff] }
 0x645   :  { %6036 = vmatpush.bf16.msrb.mxu2 %v18226_v20  ;;  %v1481_v20 = vpack.c.bf16 %v1409_v12, %v1409_v12  ;;  %v18301_v12 = vld [vmem:[%s26486_s4 + $0xee8] sm:$0xff] }
 0x647   :  { %6131 = vmatpush.bf16.msrb.mxu3 %v18232_v37  ;;  %v6423_v49 = vunpack.c.l.b16 %v1481_v20  ;;  %v18259_v37 = vld [vmem:[%s26486_s4 + $0xd98] sm:$0xff]  ;;  %v18293_v20 = vld [vmem:[%s26486_s4 + $0xea8] sm:$0xff] }
 0x649   :  { %6037 = vmatpush.bf16.msrb.mxu2 %v18225_v46  ;;  %v6424_v14 = vpack.c.b16 %v6423_v49, %v21100_v53  ;;  %v18292_v53 = vld [vmem:[%s26486_s4 + $0xea0] sm:$0xff]  ;;  %v26766_v49 = vld [vmem:[#allocation7_spill] sm:$0xff] }
 0x64a   :  { %6132 = vmatmul.bf16.vlgmr.msrb.gmra.mxu3 %v6074_v18 }
 0x64b   :  { %6482 = vmatpush.bf16.msra.mxu3 %v18271_v21  ;;  %v6426_v21 = vshrl.u32 %v6424_v14, 16  ;;  %v6429_v43 = vshll.u32 %v6424_v14, 16  ;;  %v18290_v14 = vld [vmem:[%s26486_s4 + $0xe90] sm:$0xff] }
 0x64d   :  { %6038 = vmatpush.bf16.msrb.mxu2 %v18224_v29  ;;  %v6428_v46 = vrot.slane %v6426_v21, 3  ;;  %v6431_v18 = vrot.slane %v6429_v43, 4  ;;  %v18302_v29 = vld [vmem:[%s26486_s4 + $0xef0] sm:$0xff] }
 0x64f   :  { %6483 = vmatpush.bf16.msra.mxu3 %v18270_v5  ;;  %v18257_v5 = vld [vmem:[%s26486_s4 + $0xd88] sm:$0xff]  ;;  %v6432_v9 = vor.u32 %v6431_v18, %v6428_v46  ;;  %v18334_v18 = vld [vmem:[%s26486_s4 + $0xff0] sm:$0xff] }
 0x650   :  { %6039 = vmatmul.bf16.vlgmr.msrb.gmra.mxu2 %v5981_v31  ;;  %v6339_v31 = vrot.slane %v6338_v34, 3  ;;  %v18298_v34 = vld [vmem:[%s26486_s4 + $0xed0] sm:$0xff] }
 0x651   :  { %6389 = vmatpush.bf16.msra.mxu2 %v18263_v61  ;;  %v18256_v61 = vld [vmem:[%s26486_s4 + $0xd80] sm:$0xff] }
 0x653   :  { %6484 = vmatpush.bf16.msra.mxu3 %v18269_v62  ;;  %v18295_v62 = vld [vmem:[%s26486_s4 + $0xeb8] sm:$0xff] }
 0x655   :  { %6390 = vmatpush.bf16.msra.mxu2 %v18262_v11  ;;  %v18294_v11 = vld [vmem:[%s26486_s4 + $0xeb0] sm:$0xff] }
 0x657   :  { %6485 = vmatpush.bf16.msra.mxu3 %v18268_v41  ;;  %v18300_v41 = vld [vmem:[%s26486_s4 + $0xee0] sm:$0xff] }
 0x659   :  { %6391 = vmatpush.bf16.msra.mxu2 %v18261_v27  ;;  %v18291_v27 = vld [vmem:[%s26486_s4 + $0xe98] sm:$0xff] }
 0x65b   :  { %6486 = vmatpush.bf16.msra.mxu3 %v18267_v13  ;;  %v18297_v13 = vld [vmem:[%s26486_s4 + $0xec8] sm:$0xff] }
 0x65d   :  { %6392 = vmatpush.bf16.msra.mxu2 %v18260_v16  ;;  %v6784_v16 = vshrl.u32 %v26766_v49, 16 }
 0x65f   :  { %6487 = vmatpush.bf16.msra.mxu3 %v18266_v48  ;;  %v6787_v48 = vshll.u32 %v26766_v49, 16  ;;  %v6786_v21 = vrot.slane %v6784_v16, 1  ;;  %v18330_v49 = vld [vmem:[%s26486_s4 + $0xfd0] sm:$0xff]  ;;  %v26770_v16 = vld [vmem:[#allocation5_spill] sm:$0xff] }
 0x661   :  { %6393 = vmatpush.bf16.msra.mxu2 %v18259_v37  ;;  %v18296_v37 = vld [vmem:[%s26486_s4 + $0xec0] sm:$0xff]  ;;  %v6789_v43 = vrot.slane %v6787_v48, 2 }
 0x663   :  { %6488 = vmatpush.bf16.msra.mxu3 %v18265_v26  ;;  %v18335_v26 = vld [vmem:[%s26486_s4 + $0xff8] sm:$0xff]  ;;  %v6790_v46 = vor.u32 %v6789_v43, %v6786_v21  ;;  %v18322_v43 = vld [vmem:[%s26486_s4 + $0xf90] sm:$0xff] }
 0x665   :  { %6394 = vmatpush.bf16.msra.mxu2 %v18258_v36  ;;  %v26767_v36 = vld [vmem:[#allocation34_spill] sm:$0xff] }
 0x667   :  { %6489 = vmatpush.bf16.msra.mxu3 %v18264_v8  ;;  %v1266_v8 = vmul.f32 %v20713_v54, %v26767_v36  ;;  %v18288_v54 = vld [vmem:[%s26486_s4 + $0xe80] sm:$0xff] }
 0x668   :  { %v18328_v36 = vld [vmem:[%s26486_s4 + $0xfc0] sm:$0xff] }
 0x669   :  { %6395 = vmatpush.bf16.msra.mxu2 %v18257_v5  ;;  %v18924_v5 = vld [vmem:[%s26484_s2] ss:$0 sm:$0xff] }
 0x66a   :  { %6490 = vmatmul.bf16.vlgmr.msra.gmra.mxu3 %v6432_v9  ;;  %v1342_v9 = vmul.f32 %v18924_v5, %v1266_v8  ;;  %v18320_v5 = vld [vmem:[%s26486_s4 + $0xf80] sm:$0xff] }
 0x66b   :  { %6840 = vmatpush.bf16.msrb.mxu3 %v18303_v4  ;;  %v18289_v4 = vld [vmem:[%s26486_s4 + $0xe88] sm:$0xff] }
 0x66d   :  { %6396 = vmatpush.bf16.msra.mxu2 %v18256_v61  ;;  %v18333_v61 = vld [vmem:[%s26486_s4 + $0xfe8] sm:$0xff] }
 0x66f   :  { %6841 = vmatpush.bf16.msrb.mxu3 %v18302_v29  ;;  %v18327_v29 = vld [vmem:[%s26486_s4 + $0xfb8] sm:$0xff] }
 0x670   :  { %6397 = vmatmul.bf16.vlgmr.msra.gmra.mxu2 %v6339_v31  ;;  %v26768_v31 = vld [vmem:[#allocation8_spill] sm:$0xff] }
 0x671   :  { %6747 = vmatpush.bf16.msrb.mxu2 %v18295_v62  ;;  %v18925_v62 = vld [vmem:[%s26485_s3] ss:$0 sm:$0xff] }
 0x673   :  { %6842 = vmatpush.bf16.msrb.mxu3 %v18301_v12  ;;  %v1418_v12 = vadd.f32 %v18925_v62, %v1342_v9  ;;  %v22656_v9 = vpop.f32.mrf.mxu2 }
 0x675   :  { %6748 = vmatpush.bf16.msrb.mxu2 %v18294_v11  ;;  %v26769_v11 = vpack.c.b16 %v26768_v31, %v20840_v44  ;;  %v18331_v44 = vld [vmem:[%s26486_s4 + $0xfd8] sm:$0xff]  ;;  %v4787_v31 = vpop.f32.mrf.mxu1 }
 0x677   :  { %6843 = vmatpush.bf16.msrb.mxu3 %v18300_v41  ;;  %v6697_v41 = vrot.slane %v26769_v11, 1 }
 0x679   :  { %6749 = vmatpush.bf16.msrb.mxu2 %v18293_v20  ;;  %v18326_v20 = vld [vmem:[%s26486_s4 + $0xfb0] sm:$0xff] }
 0x67b   :  { %6844 = vmatpush.bf16.msrb.mxu3 %v18299_v56  ;;  %v18332_v56 = vld [vmem:[%s26486_s4 + $0xfe0] sm:$0xff]  ;;  %v4608_v62 = vpop.f32.mrf.mxu2 }
 0x67d   :  { %6750 = vmatpush.bf16.msrb.mxu2 %v18292_v53  ;;  %v1490_v53 = vpack.c.bf16 %v1418_v12, %v1418_v12 }
 0x67f   :  { %6845 = vmatpush.bf16.msrb.mxu3 %v18298_v34  ;;  %v18325_v34 = vld [vmem:[%s26486_s4 + $0xfa8] sm:$0xff] }
 0x681   :  { %6751 = vmatpush.bf16.msrb.mxu2 %v18291_v27  ;;  %v7139_v27 = vunpack.c.l.b16 %v1490_v53 }
 0x683   :  { %6846 = vmatpush.bf16.msrb.mxu3 %v18297_v13  ;;  %v18324_v13 = vld [vmem:[%s26486_s4 + $0xfa0] sm:$0xff]  ;;  %v7140_v48 = vpack.c.b16 %v7139_v27, %v26770_v16  ;;  %v22663_v11 = vpop.f32.mrf.mxu2 }
 0x684   :  { %26772 = vst [vmem:[#allocation12_spill] sm:$0xff] %v22663_v11  ;;  %v18640_v11 = vld [vmem:[%s26487_s5 + $0x984] sm:$0xf] }
 0x685   :  { %6752 = vmatpush.bf16.msrb.mxu2 %v18290_v14  ;;  %v18323_v14 = vld [vmem:[%s26486_s4 + $0xf98] sm:$0xff]  ;;  %v7145_v21 = vshll.u32 %v7140_v48, 16 }
 0x687   :  { %6847 = vmatpush.bf16.msrb.mxu3 %v18296_v37  ;;  %v18329_v37 = vld [vmem:[%s26486_s4 + $0xfc8] sm:$0xff] }
 0x689   :  { %6753 = vmatpush.bf16.msrb.mxu2 %v18289_v4  ;;  %v7147_v4 = vrot.slane %v7145_v21, 4 }
 0x68a   :  { %6848 = vmatmul.bf16.vlgmr.msrb.gmra.mxu3 %v6790_v46  ;;  %v18321_v46 = vld [vmem:[%s26486_s4 + $0xf88] sm:$0xff]  ;;  %s11871_s4 = sshll.u32 %s26489_s7, 4  ;;  %s11872_s4 = int_to_ptr.hbm [resolvable:$true] %s11871_s4 }
 0x68b   :  { %7198 = vmatpush.bf16.msra.mxu3 %v18335_v26  ;;  %v7142_v26 = vshrl.u32 %v7140_v48, 16  ;;  %v4966_v53 = vpop.f32.mrf.mxu2 }
 0x68d   :  { %6754 = vmatpush.bf16.msrb.mxu2 %v18288_v54  ;;  %v7144_v8 = vrot.slane %v7142_v26, 3  ;;  %v26771_v54 = vpack.c.b16 %v26770_v16, %v20847_v57 }
 0x68f   :  { %7199 = vmatpush.bf16.msra.mxu3 %v18334_v18  ;;  %v7148_v18 = vor.u32 %v7147_v4, %v7144_v8  ;;  %v15236_v4 = vld [vmem:[%s26487_s5 + $0x1e0] sm:$0xf0] }
 0x690   :  { %6755 = vmatmul.bf16.vlgmr.msrb.gmra.mxu2 %v6697_v41  ;;  %v4880_v41 = vpop.f32.mrf.mxu0 }
 0x691   :  { %7105 = vmatpush.bf16.msra.mxu2 %v18327_v29  ;;  %v7055_v29 = vrot.slane %v26771_v54, 3 }
 0x693   :  { %7200 = vmatpush.bf16.msra.mxu3 %v18333_v61  ;;  %v22661_v61 = vpop.f32.mrf.mxu3  ;;  %v22671_v57 = vpop.f32.mrf.mxu2 }
 0x694   :  { %26776 = vst [vmem:[#allocation16_spill] sm:$0xff] %v22671_v57 }
 0x695   :  { %7106 = vmatpush.bf16.msra.mxu2 %v18326_v20 }
 0x697   :  { %7201 = vmatpush.bf16.msra.mxu3 %v18332_v56  ;;  %v22667_v56 = vpop.f32.mrf.mxu1 }
 0x698   :  { %26774 = vst [vmem:[#allocation14_spill] sm:$0xff] %v22667_v56 }
 0x699   :  { %7107 = vmatpush.bf16.msra.mxu2 %v18325_v34 }
 0x69b   :  { %7202 = vmatpush.bf16.msra.mxu3 %v18331_v44  ;;  %v4701_v12 = vpop.f32.mrf.mxu3  ;;  %v22669_v44 = vpop.f32.mrf.mxu0 }
 0x69c   :  { %26775 = vst [vmem:[#allocation11_spill] sm:$0xff] %v22669_v44  ;;  %v18512_v44 = vld [vmem:[%s26487_s5 + $0x584] sm:$0xf] }
 0x69d   :  { %7108 = vmatpush.bf16.msra.mxu2 %v18324_v13  ;;  %v4613_v13 = vadd.f32 %v4608_v62, %v22487_v55  ;;  %v18396_v55 = vld [vmem:[%s26487_s5 + $0x1dc] sm:$0xf0]  ;;  %v18393_v62 = vld [vmem:[%s26487_s5 + $0x1cc] sm:$0xf] }
 0x69f   :  { %7203 = vmatpush.bf16.msra.mxu3 %v18330_v49  ;;  %v5146_v27 = vpop.f32.mrf.mxu1  ;;  %v4706_v48 = vadd.f32 %v4701_v12, %v4613_v13  ;;  %v15244_v12 = vld [vmem:[%s26487_s5 + $0x1e8] sm:$0xf0] }
 0x6a0   :  { %v15247_v13 = vor.u32 %v18393_v62, %v15244_v12  ;;  %v15212_v62 = vld [vmem:[%s26487_s5 + $0x1a8] sm:$0xf0]  ;;  %v15170_v12 = vld [vmem:[%s26487_s5 + $0x140] sm:$0xf] }
 0x6a1   :  { %7109 = vmatpush.bf16.msra.mxu2 %v18323_v14  ;;  %v22678_v14 = vpop.f32.mrf.mxu2 }
 0x6a3   :  { %7204 = vmatpush.bf16.msra.mxu3 %v18329_v37  ;;  %v22665_v20 = vpop.f32.mrf.mxu3  ;;  %v22676_v16 = vpop.f32.mrf.mxu0  ;;  %v4792_v37 = vadd.f32 %v4787_v31, %v4706_v48 }
 0x6a4   :  { %26773 = vst [vmem:[#allocation9_spill] sm:$0xff] %v22665_v20 }
 0x6a5   :  { %7110 = vmatpush.bf16.msra.mxu2 %v18322_v43  ;;  %v15234_v43 = vld [vmem:[%s26487_s5 + $0x1c0] sm:$0xf] }
 0x6a6   :  { %v15235_v8 = vor.u32 %v18396_v55, %v15234_v43  ;;  %v18388_v55 = vld [vmem:[%s26487_s5 + $0x19c] sm:$0xf0] }
 0x6a7   :  { %7205 = vmatpush.bf16.msra.mxu3 %v18328_v36  ;;  %v22680_v26 = vpop.f32.mrf.mxu1  ;;  %v18392_v36 = vld [vmem:[%s26487_s5 + $0x1c4] sm:$0xf] }
 0x6a8   :  { %26778 = vst [vmem:[#allocation18_spill] sm:$0xff] %v22680_v26  ;;  %v15239_v54 = vor.u32 %v18392_v36, %v15236_v4  ;;  %7601 = vmatpush.bf16.msra.mxu1 %v15235_v8  ;;  %v18384_v36 = vld [vmem:[%s26487_s5 + $0x184] sm:$0xf] }
 0x6a9   :  { %7111 = vmatpush.bf16.msra.mxu2 %v18321_v46  ;;  %v15242_v46 = vld [vmem:[%s26487_s5 + $0x1c8] sm:$0xf]  ;;  %v22710_v43 = vpop.f32.mrf.mxu2 }
 0x6aa   :  { %7206 = vmatmul.bf16.vlgmr.msra.gmra.mxu3 %v7148_v18  ;;  %v18397_v18 = vld [vmem:[%s26487_s5 + $0x1e4] sm:$0xf0]  ;;  %7614 = vmatpush.bf16.msra.mxu0 %v15239_v54  ;;  %26780 = vst [vmem:[#allocation20_spill] sm:$0xff] %v22710_v43 }
 0x6ab   :  { %v5059_v34 = vpop.f32.mrf.mxu3  ;;  %v22708_v31 = vpop.f32.mrf.mxu0  ;;  %7640 = vmatpush.bf16.msrb.mxu3 %v15247_v13 }
 0x6ac   :  { %26779 = vst [vmem:[#allocation15_spill] sm:$0xff] %v22708_v31 }
 0x6ad   :  { %7112 = vmatpush.bf16.msra.mxu2 %v18320_v5  ;;  %v4885_v5 = vadd.f32 %v4880_v41, %v4792_v37  ;;  %v15202_v37 = vld [vmem:[%s26487_s5 + $0x180] sm:$0xf] }
 0x6ae   :  { %v15203_v4 = vor.u32 %v18388_v55, %v15202_v37  ;;  %v18376_v37 = vld [vmem:[%s26487_s5 + $0x144] sm:$0xf] }
 0x6af   :  { %v4971_v48 = vadd.f32 %v4966_v53, %v4885_v5  ;;  %v22721_v8 = vpop.f32.mrf.mxu1  ;;  %v15172_v55 = vld [vmem:[%s26487_s5 + $0x160] sm:$0xf0] }
 0x6b0   :  { %7113 = vmatmul.bf16.vlgmr.msra.gmra.mxu2 %v7055_v29  ;;  %v15243_v29 = vor.u32 %v18397_v18, %v15242_v46  ;;  %v15210_v46 = vld [vmem:[%s26487_s5 + $0x188] sm:$0xf]  ;;  %7602 = vmatpush.bf16.msra.mxu1 %v15203_v4 }
 0x6b1   :  { %v5064_v41 = vadd.f32 %v5059_v34, %v4971_v48  ;;  %v15204_v34 = vld [vmem:[%s26487_s5 + $0x1a0] sm:$0xf0]  ;;  %v18389_v18 = vld [vmem:[%s26487_s5 + $0x1a4] sm:$0xf0]  ;;  %v18380_v48 = vld [vmem:[%s26487_s5 + $0x15c] sm:$0xf0] }
 0x6b2   :  { %7627 = vmatpush.bf16.msrb.mxu2 %v15243_v29  ;;  %v15207_v5 = vor.u32 %v18384_v36, %v15204_v34  ;;  %v15211_v54 = vor.u32 %v18389_v18, %v15210_v46  ;;  %v18385_v29 = vld [vmem:[%s26487_s5 + $0x18c] sm:$0xf]  ;;  %v15171_v34 = vor.u32 %v18380_v48, %v15170_v12  ;;  %v15175_v46 = vor.u32 %v18376_v37, %v15172_v55  ;;  %v15178_v4 = vld [vmem:[%s26487_s5 + $0x148] sm:$0xf]  ;;  %v18368_v48 = vld [vmem:[%s26487_s5 + $0x104] sm:$0xf] }
 0x6b3   :  { %v22674_v49 = vpop.f32.mrf.mxu3  ;;  %v15215_v13 = vor.u32 %v18385_v29, %v15212_v62  ;;  %v5151_v36 = vadd.f32 %v5146_v27, %v5064_v41  ;;  %v18381_v18 = vld [vmem:[%s26487_s5 + $0x164] sm:$0xf0]  ;;  %v18377_v29 = vld [vmem:[%s26487_s5 + $0x14c] sm:$0xf]  ;;  %v22761_v62 = vpop.f32.mrf.mxu0 }
 0x6b4   :  { %26777 = vst [vmem:[#allocation13_spill] sm:$0xff] %v22674_v49  ;;  %7615 = vmatpush.bf16.msra.mxu0 %v15207_v5  ;;  %v15179_v27 = vor.u32 %v18381_v18, %v15178_v4  ;;  %v15180_v41 = vld [vmem:[%s26487_s5 + $0x168] sm:$0xf0]  ;;  %v15138_v5 = vld [vmem:[%s26487_s5 + $0x100] sm:$0xf]  ;;  %v22781_v55 = vpop.f32.mrf.mxu2  ;;  %7603 = vmatpush.bf16.msra.mxu1 %v15171_v34 }
 0x6b5   :  { %7641 = vmatpush.bf16.msrb.mxu3 %v15215_v13  ;;  %v15183_v12 = vor.u32 %v18377_v29, %v15180_v41  ;;  %v15140_v13 = vld [vmem:[%s26487_s5 + $0x120] sm:$0xf0]  ;;  %v15146_v37 = vld [vmem:[%s26487_s5 + $0x108] sm:$0xf]  ;;  %v18369_v29 = vld [vmem:[%s26487_s5 + $0x10c] sm:$0xf] }
 0x6b6   :  { %7628 = vmatpush.bf16.msrb.mxu2 %v15211_v54  ;;  %v18372_v54 = vld [vmem:[%s26487_s5 + $0x11c] sm:$0xf0]  ;;  %v18373_v18 = vld [vmem:[%s26487_s5 + $0x124] sm:$0xf0]  ;;  %v15148_v41 = vld [vmem:[%s26487_s5 + $0x128] sm:$0xf0]  ;;  %v15143_v43 = vor.u32 %v18368_v48, %v15140_v13 }
 0x6b7   :  { %v15139_v4 = vor.u32 %v18372_v54, %v15138_v5  ;;  %v15147_v31 = vor.u32 %v18373_v18, %v15146_v37  ;;  %v15151_v5 = vor.u32 %v18369_v29, %v15148_v41  ;;  %v22796_v26 = vpop.f32.mrf.mxu1  ;;  %v15106_v49 = vld [vmem:[%s26487_s5 + $0xc0] sm:$0xf]  ;;  %v15116_v48 = vld [vmem:[%s26487_s5 + $0xe8] sm:$0xf0]  ;;  %v18352_v18 = vld [vmem:[%s26487_s5 + $0x84] sm:$0xf] }
 0x6b8   :  { %7616 = vmatpush.bf16.msra.mxu0 %v15175_v46  ;;  %26782 = vst [vmem:[#allocation22_spill] sm:$0xff] %v22796_v26  ;;  %v15074_v13 = vld [vmem:[%s26487_s5 + $0x80] sm:$0xf]  ;;  %v15076_v29 = vld [vmem:[%s26487_s5 + $0xa0] sm:$0xf0] }
 0x6b9   :  { %7642 = vmatpush.bf16.msrb.mxu3 %v15183_v12  ;;  %7604 = vmatpush.bf16.msra.mxu1 %v15139_v4 }
 0x6ba   :  { %7629 = vmatpush.bf16.msrb.mxu2 %v15179_v27 }
 0x6bb   :  { %v22682_v21 = vpop.f32.mrf.mxu3  ;;  %v22826_v37 = vpop.f32.mrf.mxu0 }
 0x6bc   :  { %7617 = vmatpush.bf16.msra.mxu0 %v15143_v43  ;;  %v18365_v43 = vld [vmem:[%s26487_s5 + $0xe4] sm:$0xf0]  ;;  %26783 = vst [vmem:[#allocation19_spill] sm:$0xff] %v22826_v37  ;;  %v18366_v37 = vld [vmem:[%s26487_s5 + $0xec] sm:$0xf0] }
 0x6bd   :  { %7643 = vmatpush.bf16.msrb.mxu3 %v15151_v5  ;;  %v15079_v5 = vor.u32 %v18352_v18, %v15076_v29  ;;  %v15050_v18 = vld [vmem:[%s26487_s5 + $0x48] sm:$0xf] }
 0x6be   :  { %7630 = vmatpush.bf16.msrb.mxu2 %v15147_v31  ;;  %v15114_v31 = vld [vmem:[%s26487_s5 + $0xc8] sm:$0xf] }
 0x6bf   :  { %v15115_v12 = vor.u32 %v18365_v43, %v15114_v31  ;;  %v15084_v31 = vld [vmem:[%s26487_s5 + $0xa8] sm:$0xf0]  ;;  %v18349_v29 = vld [vmem:[%s26487_s5 + $0x64] sm:$0xf0] }
 0x6c2   :  { %7631 = vmatpush.bf16.msrb.mxu2 %v15115_v12  ;;  %v22852_v12 = vpop.f32.mrf.mxu1 }
 0x6c3   :  { %v22723_v53 = vpop.f32.mrf.mxu3 }
 0x6c4   :  { %26781 = vst [vmem:[#allocation17_spill] sm:$0xff] %v22723_v53  ;;  %v5243_v53 = vadd.f32 %v22676_v16, %v5151_v36  ;;  %v18364_v16 = vld [vmem:[%s26487_s5 + $0xdc] sm:$0xf0]  ;;  %v18360_v36 = vld [vmem:[%s26487_s5 + $0xc4] sm:$0xf] }
 0x6c5   :  { %v15107_v46 = vor.u32 %v18364_v16, %v15106_v49  ;;  %v18361_v49 = vld [vmem:[%s26487_s5 + $0xcc] sm:$0xf]  ;;  %v18357_v16 = vld [vmem:[%s26487_s5 + $0xa4] sm:$0xf0] }
 0x6c6   :  { %v5329_v54 = vadd.f32 %v22678_v14, %v5243_v53  ;;  %v15108_v14 = vld [vmem:[%s26487_s5 + $0xe0] sm:$0xf0]  ;;  %v15119_v4 = vor.u32 %v18361_v49, %v15116_v48  ;;  %v15042_v48 = vld [vmem:[%s26487_s5 + $0x40] sm:$0xf] }
 0x6c7   :  { %v15111_v27 = vor.u32 %v18360_v36, %v15108_v14  ;;  %7605 = vmatpush.bf16.msra.mxu1 %v15107_v46  ;;  %v18353_v36 = vld [vmem:[%s26487_s5 + $0x8c] sm:$0xf]  ;;  %v22846_v46 = vpop.f32.mrf.mxu2 }
 0x6c8   :  { %v5422_v53 = vadd.f32 %v22682_v21, %v5329_v54  ;;  %v18356_v21 = vld [vmem:[%s26487_s5 + $0x9c] sm:$0xf0]  ;;  %v15082_v54 = vld [vmem:[%s26487_s5 + $0x88] sm:$0xf]  ;;  %26784 = vst [vmem:[#allocation24_spill] sm:$0xff] %v22846_v46  ;;  %7644 = vmatpush.bf16.msrb.mxu3 %v15119_v4 }
 0x6c9   :  { %7618 = vmatpush.bf16.msra.mxu0 %v15111_v27  ;;  %v15075_v41 = vor.u32 %v18356_v21, %v15074_v13  ;;  %v15083_v14 = vor.u32 %v18357_v16, %v15082_v54  ;;  %v15087_v27 = vor.u32 %v18353_v36, %v15084_v31  ;;  %v18348_v13 = vld [vmem:[%s26487_s5 + $0x5c] sm:$0xf0]  ;;  %v15044_v21 = vld [vmem:[%s26487_s5 + $0x60] sm:$0xf0]  ;;  %v15051_v54 = vor.u32 %v18349_v29, %v15050_v18  ;;  %v15052_v16 = vld [vmem:[%s26487_s5 + $0x68] sm:$0xf0] }
 0x6ca   :  { %v5508_v43 = vadd.f32 %v22721_v8, %v5422_v53  ;;  %v18344_v8 = vld [vmem:[%s26487_s5 + $0x44] sm:$0xf]  ;;  %v15043_v4 = vor.u32 %v18348_v13, %v15042_v48  ;;  %v15010_v36 = vld [vmem:[%s26487_s5] sm:$0xf]  ;;  %v15020_v29 = vld [vmem:[%s26487_s5 + $0x28] sm:$0xf0] }
 0x6cb   :  { %v22793_v34 = vpop.f32.mrf.mxu3  ;;  %7606 = vmatpush.bf16.msra.mxu1 %v15075_v41  ;;  %7632 = vmatpush.bf16.msrb.mxu2 %v15083_v14  ;;  %v22875_v41 = vpop.f32.mrf.mxu0  ;;  %v15012_v48 = vld [vmem:[%s26487_s5 + $0x20] sm:$0xf0] }
 0x6cc   :  { %7645 = vmatpush.bf16.msrb.mxu3 %v15087_v27  ;;  %v5601_v53 = vadd.f32 %v22761_v62, %v5508_v43  ;;  %v18345_v62 = vld [vmem:[%s26487_s5 + $0x4c] sm:$0xf]  ;;  %v18340_v43 = vld [vmem:[%s26487_s5 + $0x1c] sm:$0xf0]  ;;  %v18336_v27 = vld [vmem:[%s26487_s5 + $0x4] sm:$0xf] }
 0x6cd   :  { %7619 = vmatpush.bf16.msra.mxu0 %v15079_v5  ;;  %v15047_v5 = vor.u32 %v18344_v8, %v15044_v21  ;;  %v15055_v31 = vor.u32 %v18345_v62, %v15052_v16  ;;  %v15011_v8 = vor.u32 %v18340_v43, %v15010_v36  ;;  %v18337_v21 = vld [vmem:[%s26487_s5 + $0xc] sm:$0xf]  ;;  %v15252_v43 = vld [vmem:[%s26487_s5 + $0x1f0] sm:$0xf0] }
 0x6ce   :  { %v5687_v14 = vadd.f32 %v22781_v55, %v5601_v53  ;;  %v15015_v55 = vor.u32 %v18336_v27, %v15012_v48  ;;  %v15018_v53 = vld [vmem:[%s26487_s5 + $0x8] sm:$0xf]  ;;  %v15023_v16 = vor.u32 %v18337_v21, %v15020_v29  ;;  %v15258_v27 = vld [vmem:[%s26487_s5 + $0x1d8] sm:$0xf]  ;;  %v18395_v21 = vld [vmem:[%s26487_s5 + $0x1dc] sm:$0xf] }
 0x6cf   :  { %7607 = vmatpush.bf16.msra.mxu1 %v15043_v4  ;;  %7633 = vmatpush.bf16.msrb.mxu2 %v15051_v54  ;;  %v18341_v4 = vld [vmem:[%s26487_s5 + $0x24] sm:$0xf0]  ;;  %v18398_v54 = vld [vmem:[%s26487_s5 + $0x1ec] sm:$0xf0]  ;;  %v15260_v29 = vld [vmem:[%s26487_s5 + $0x1f8] sm:$0xf0] }
 0x6d0   :  { %7646 = vmatpush.bf16.msrb.mxu3 %v15055_v31  ;;  %v15019_v18 = vor.u32 %v18341_v4, %v15018_v53  ;;  %v18394_v31 = vld [vmem:[%s26487_s5 + $0x1d4] sm:$0xf]  ;;  %v5780_v48 = vadd.f32 %v22793_v34, %v5687_v14  ;;  %v18399_v4 = vld [vmem:[%s26487_s5 + $0x1f4] sm:$0xf0]  ;;  %v15263_v34 = vor.u32 %v18395_v21, %v15260_v29  ;;  %v15218_v14 = vld [vmem:[%s26487_s5 + $0x190] sm:$0xf] }
 0x6d1   :  { %7620 = vmatpush.bf16.msra.mxu0 %v15047_v5  ;;  %v15250_v5 = vld [vmem:[%s26487_s5 + $0x1d0] sm:$0xf]  ;;  %v15255_v53 = vor.u32 %v18394_v31, %v15252_v43  ;;  %v18386_v31 = vld [vmem:[%s26487_s5 + $0x194] sm:$0xf] }
 0x6d2   :  { %v15251_v36 = vor.u32 %v18398_v54, %v15250_v5  ;;  %v22937_v5 = vpop.f32.mrf.mxu1  ;;  %v15259_v54 = vor.u32 %v18399_v4, %v15258_v27  ;;  %v18391_v27 = vld [vmem:[%s26487_s5 + $0x1b4] sm:$0xf0]  ;;  %v15186_v29 = vld [vmem:[%s26487_s5 + $0x150] sm:$0xf] }
 0x6d3   :  { %v22854_v49 = vpop.f32.mrf.mxu3  ;;  %v22896_v13 = vpop.f32.mrf.mxu2  ;;  %7608 = vmatpush.bf16.msra.mxu1 %v15011_v8  ;;  %26786 = vst [vmem:[#allocation26_spill] sm:$0xff] %v22937_v5  ;;  %7634 = vmatpush.bf16.msrb.mxu2 %v15019_v18  ;;  %v18390_v8 = vld [vmem:[%s26487_s5 + $0x1ac] sm:$0xf0]  ;;  %v15226_v18 = vld [vmem:[%s26487_s5 + $0x198] sm:$0xf] }
 0x6d4   :  { %26785 = vst [vmem:[#allocation21_spill] sm:$0xff] %v22854_v49  ;;  %7647 = vmatpush.bf16.msrb.mxu3 %v15023_v16  ;;  %v15219_v43 = vor.u32 %v18390_v8, %v15218_v14  ;;  %v15227_v21 = vor.u32 %v18391_v27, %v15226_v18  ;;  %v18387_v16 = vld [vmem:[%s26487_s5 + $0x19c] sm:$0xf]  ;;  %v5867_v14 = vadd.f32 %v22852_v12, %v5780_v48  ;;  %v15194_v12 = vld [vmem:[%s26487_s5 + $0x158] sm:$0xf] }
 0x6d5   :  { %7621 = vmatpush.bf16.msra.mxu0 %v15015_v55  ;;  %v15220_v55 = vld [vmem:[%s26487_s5 + $0x1b0] sm:$0xf0]  ;;  %v18383_v48 = vld [vmem:[%s26487_s5 + $0x174] sm:$0xf0]  ;;  %v15196_v27 = vld [vmem:[%s26487_s5 + $0x178] sm:$0xf0] }
 0x6d6   :  { %v15223_v4 = vor.u32 %v18386_v31, %v15220_v55  ;;  %v15188_v31 = vld [vmem:[%s26487_s5 + $0x170] sm:$0xf0]  ;;  %v22976_v55 = vpop.f32.mrf.mxu0  ;;  %v15154_v5 = vld [vmem:[%s26487_s5 + $0x110] sm:$0xf] }
 0x6d7   :  { %7653 = vmatpush.bf16.msrb.mxu1 %v15251_v36  ;;  %7679 = vmatpush.bf16.msra.mxu2 %v15259_v54  ;;  %v15228_v36 = vld [vmem:[%s26487_s5 + $0x1b8] sm:$0xf0]  ;;  %v18378_v54 = vld [vmem:[%s26487_s5 + $0x154] sm:$0xf]  ;;  %26787 = vst [vmem:[#allocation23_spill] sm:$0xff] %v22976_v55  ;;  %v15195_v55 = vor.u32 %v18383_v48, %v15194_v12 }
 0x6d8   :  { %7692 = vmatpush.bf16.msra.mxu3 %v15263_v34  ;;  %v15231_v8 = vor.u32 %v18387_v16, %v15228_v36  ;;  %v18379_v34 = vld [vmem:[%s26487_s5 + $0x15c] sm:$0xf]  ;;  %v15191_v36 = vor.u32 %v18378_v54, %v15188_v31  ;;  %v18374_v49 = vld [vmem:[%s26487_s5 + $0x12c] sm:$0xf0]  ;;  %v18375_v54 = vld [vmem:[%s26487_s5 + $0x134] sm:$0xf0] }
 0x6d9   :  { %7666 = vmatpush.bf16.msrb.mxu0 %v15255_v53  ;;  %v18382_v53 = vld [vmem:[%s26487_s5 + $0x16c] sm:$0xf0]  ;;  %v15155_v48 = vor.u32 %v18374_v49, %v15154_v5 }
 0x6da   :  { %v15187_v18 = vor.u32 %v18382_v53, %v15186_v29  ;;  %v5959_v29 = vadd.f32 %v22875_v41, %v5867_v14  ;;  %v15199_v53 = vor.u32 %v18379_v34, %v15196_v27  ;;  %v6219_v31 = vpop.f32.mrf.mxu1  ;;  %v18371_v41 = vld [vmem:[%s26487_s5 + $0x11c] sm:$0xf] }
 0x6db   :  { %v22916_v62 = vpop.f32.mrf.mxu3  ;;  %7654 = vmatpush.bf16.msrb.mxu1 %v15219_v43  ;;  %v22990_v16 = vpop.f32.mrf.mxu2  ;;  %7680 = vmatpush.bf16.msra.mxu2 %v15227_v21  ;;  %v18370_v43 = vld [vmem:[%s26487_s5 + $0x114] sm:$0xf]  ;;  %v15162_v21 = vld [vmem:[%s26487_s5 + $0x118] sm:$0xf]  ;;  %v15164_v14 = vld [vmem:[%s26487_s5 + $0x138] sm:$0xf0] }
 0x6dc   :  { %26788 = vst [vmem:[#allocation28_spill] sm:$0xff] %v22990_v16  ;;  %7693 = vmatpush.bf16.msra.mxu3 %v15231_v8  ;;  %v6045_v8 = vadd.f32 %v22896_v13, %v5959_v29  ;;  %v15163_v27 = vor.u32 %v18375_v54, %v15162_v21  ;;  %v15167_v16 = vor.u32 %v18371_v41, %v15164_v14  ;;  %v18362_v13 = vld [vmem:[%s26487_s5 + $0xd4] sm:$0xf]  ;;  %v18358_v54 = vld [vmem:[%s26487_s5 + $0xac] sm:$0xf0] }
 0x6dd   :  { %7667 = vmatpush.bf16.msrb.mxu0 %v15223_v4  ;;  %v15156_v4 = vld [vmem:[%s26487_s5 + $0x130] sm:$0xf0] }
 0x6de   :  { %v15159_v34 = vor.u32 %v18370_v43, %v15156_v4  ;;  %v6312_v46 = vpop.f32.mrf.mxu0  ;;  %v6138_v49 = vadd.f32 %v22916_v62, %v6045_v8  ;;  %v15132_v62 = vld [vmem:[%s26487_s5 + $0xf8] sm:$0xf0]  ;;  %v15090_v4 = vld [vmem:[%s26487_s5 + $0x90] sm:$0xf]  ;;  %v15092_v41 = vld [vmem:[%s26487_s5 + $0xb0] sm:$0xf0] }
 0x6df   :  { %7655 = vmatpush.bf16.msrb.mxu1 %v15187_v18  ;;  %7681 = vmatpush.bf16.msra.mxu2 %v15195_v55  ;;  %v15124_v55 = vld [vmem:[%s26487_s5 + $0xf0] sm:$0xf0]  ;;  %v15130_v18 = vld [vmem:[%s26487_s5 + $0xd8] sm:$0xf] }
 0x6e0   :  { %7694 = vmatpush.bf16.msra.mxu3 %v15199_v53  ;;  %v15127_v29 = vor.u32 %v18362_v13, %v15124_v55  ;;  %v15098_v8 = vld [vmem:[%s26487_s5 + $0x98] sm:$0xf]  ;;  %v15100_v13 = vld [vmem:[%s26487_s5 + $0xb8] sm:$0xf0] }
 0x6e1   :  { %7668 = vmatpush.bf16.msrb.mxu0 %v15191_v36  ;;  %v18367_v36 = vld [vmem:[%s26487_s5 + $0xf4] sm:$0xf0] }
 0x6e2   :  { %v15131_v53 = vor.u32 %v18367_v36, %v15130_v18  ;;  %v23069_v55 = vpop.f32.mrf.mxu1 }
 0x6e3   :  { %v23011_v12 = vpop.f32.mrf.mxu3  ;;  %7656 = vmatpush.bf16.msrb.mxu1 %v15155_v48  ;;  %7682 = vmatpush.bf16.msra.mxu2 %v15163_v27  ;;  %v18355_v48 = vld [vmem:[%s26487_s5 + $0x9c] sm:$0xf]  ;;  %v15091_v27 = vor.u32 %v18358_v54, %v15090_v4  ;;  %26790 = vst [vmem:[#allocation6_spill] sm:$0xff] %v23069_v55 }
 0x6e4   :  { %26789 = vst [vmem:[#allocation25_spill] sm:$0xff] %v23011_v12  ;;  %v15122_v12 = vld [vmem:[%s26487_s5 + $0xd0] sm:$0xf]  ;;  %7695 = vmatpush.bf16.msra.mxu3 %v15167_v16  ;;  %v18359_v16 = vld [vmem:[%s26487_s5 + $0xb4] sm:$0xf0] }
 0x6e5   :  { %v15123_v5 = vor.u32 %v18366_v37, %v15122_v12  ;;  %7669 = vmatpush.bf16.msrb.mxu0 %v15159_v34  ;;  %v18363_v37 = vld [vmem:[%s26487_s5 + $0xdc] sm:$0xf]  ;;  %v18354_v12 = vld [vmem:[%s26487_s5 + $0x94] sm:$0xf]  ;;  %v6224_v34 = vadd.f32 %v6219_v31, %v6138_v49  ;;  %v15099_v36 = vor.u32 %v18359_v16, %v15098_v8 }
 0x6e6   :  { %v15135_v21 = vor.u32 %v18363_v37, %v15132_v62  ;;  %v15095_v18 = vor.u32 %v18354_v12, %v15092_v41  ;;  %v15103_v37 = vor.u32 %v18355_v48, %v15100_v13  ;;  %v23071_v26 = vpop.f32.mrf.mxu0  ;;  %v15060_v12 = vld [vmem:[%s26487_s5 + $0x70] sm:$0xf0]  ;;  %v15066_v41 = vld [vmem:[%s26487_s5 + $0x58] sm:$0xf]  ;;  %v15026_v13 = vld [vmem:[%s26487_s5 + $0x10] sm:$0xf] }
 0x6e7   :  { %7657 = vmatpush.bf16.msrb.mxu1 %v15123_v5  ;;  %7683 = vmatpush.bf16.msra.mxu2 %v15131_v53  ;;  %v6317_v62 = vadd.f32 %v6312_v46, %v6224_v34  ;;  %26791 = vst [vmem:[#allocation30_spill] sm:$0xff] %v23071_v26  ;;  %v18350_v46 = vld [vmem:[%s26487_s5 + $0x6c] sm:$0xf0]  ;;  %v18346_v53 = vld [vmem:[%s26487_s5 + $0x54] sm:$0xf] }
 0x6e8   :  { %7696 = vmatpush.bf16.msra.mxu3 %v15135_v21  ;;  %v15063_v16 = vor.u32 %v18346_v53, %v15060_v12  ;;  %v18347_v34 = vld [vmem:[%s26487_s5 + $0x5c] sm:$0xf] }
 0x6e9   :  { %7670 = vmatpush.bf16.msrb.mxu0 %v15127_v29  ;;  %v15058_v29 = vld [vmem:[%s26487_s5 + $0x50] sm:$0xf]  ;;  %v18339_v53 = vld [vmem:[%s26487_s5 + $0x1c] sm:$0xf] }
 0x6ea   :  { %v6578_v5 = vpop.f32.mrf.mxu1  ;;  %v15059_v21 = vor.u32 %v18350_v46, %v15058_v29  ;;  %v15034_v29 = vld [vmem:[%s26487_s5 + $0x18] sm:$0xf] }
 0x6eb   :  { %7658 = vmatpush.bf16.msrb.mxu1 %v15091_v27  ;;  %7684 = vmatpush.bf16.msra.mxu2 %v15099_v36  ;;  %v15068_v27 = vld [vmem:[%s26487_s5 + $0x78] sm:$0xf0]  ;;  %v18343_v46 = vld [vmem:[%s26487_s5 + $0x34] sm:$0xf0] }
 0x6ec   :  { %7697 = vmatpush.bf16.msra.mxu3 %v15103_v37  ;;  %v15071_v36 = vor.u32 %v18347_v34, %v15068_v27  ;;  %v18342_v37 = vld [vmem:[%s26487_s5 + $0x2c] sm:$0xf0]  ;;  %v15035_v12 = vor.u32 %v18343_v46, %v15034_v29 }
 0x6ed   :  { %v6491_v14 = vpop.f32.mrf.mxu3  ;;  %7671 = vmatpush.bf16.msrb.mxu0 %v15095_v18 }
 0x6ef   :  { %7659 = vmatpush.bf16.msrb.mxu1 %v15059_v21 }
 0x6f0   :  { %7698 = vmatpush.bf16.msra.mxu3 %v15071_v36 }
 0x6f1   :  { %7672 = vmatpush.bf16.msrb.mxu0 %v15063_v16 }
 0x6f3   :  { %v6398_v43 = vpop.f32.mrf.mxu2 }
 0x6f4   :  { %v6403_v31 = vadd.f32 %v6398_v43, %v6317_v62  ;;  %v6670_v43 = vpop.f32.mrf.mxu0  ;;  %v18338_v62 = vld [vmem:[%s26487_s5 + $0x14] sm:$0xf] }
 0x6f5   :  { %v23075_v4 = vpop.f32.mrf.mxu3 }
 0x6f6   :  { %26793 = vst [vmem:[#allocation32_spill] sm:$0xff] %v23075_v4  ;;  %v6496_v54 = vadd.f32 %v6491_v14, %v6403_v31  ;;  %v18351_v14 = vld [vmem:[%s26487_s5 + $0x74] sm:$0xf0]  ;;  %v15028_v31 = vld [vmem:[%s26487_s5 + $0x30] sm:$0xf0] }
 0x6f7   :  { %v15067_v48 = vor.u32 %v18351_v14, %v15066_v41  ;;  %v15036_v41 = vld [vmem:[%s26487_s5 + $0x38] sm:$0xf0] }
 0x6f8   :  { %v6583_v8 = vadd.f32 %v6578_v5, %v6496_v54  ;;  %v15027_v5 = vor.u32 %v18342_v37, %v15026_v13  ;;  %v15031_v54 = vor.u32 %v18338_v62, %v15028_v31  ;;  %v15039_v16 = vor.u32 %v18339_v53, %v15036_v41  ;;  %v18456_v53 = vld [vmem:[%s26487_s5 + $0x3c4] sm:$0xf]  ;;  %v18459_v4 = vld [vmem:[%s26487_s5 + $0x3dc] sm:$0xf] }
 0x6f9   :  { %7685 = vmatpush.bf16.msra.mxu2 %v15067_v48  ;;  %v23125_v48 = vpop.f32.mrf.mxu1 }
 0x6fa   :  { %v6675_v14 = vadd.f32 %v6670_v43, %v6583_v8  ;;  %26794 = vst [vmem:[#allocation29_spill] sm:$0xff] %v23125_v48  ;;  %7660 = vmatpush.bf16.msrb.mxu1 %v15027_v5  ;;  %7673 = vmatpush.bf16.msrb.mxu0 %v15031_v54  ;;  %v18460_v5 = vld [vmem:[%s26487_s5 + $0x3dc] sm:$0xf0] }
 0x6fb   :  { %v23073_v49 = vpop.f32.mrf.mxu2  ;;  %7699 = vmatpush.bf16.msra.mxu3 %v15039_v16  ;;  %v18457_v16 = vld [vmem:[%s26487_s5 + $0x3cc] sm:$0xf] }
 0x6fc   :  { %26792 = vst [vmem:[#allocation27_spill] sm:$0xff] %v23073_v49  ;;  %v23127_v27 = vpop.f32.mrf.mxu0  ;;  %v15580_v49 = vld [vmem:[%s26487_s5 + $0x3f8] sm:$0xf0] }
 0x6fd   :  { %7686 = vmatpush.bf16.msra.mxu2 %v15035_v12  ;;  %26795 = vst [vmem:[#allocation36_spill] sm:$0xff] %v23127_v27  ;;  %v15562_v12 = vld [vmem:[%s26487_s5 + $0x3c8] sm:$0xf]  ;;  %v18440_v27 = vld [vmem:[%s26487_s5 + $0x344] sm:$0xf]  ;;  %v15583_v57 = vor.u32 %v18459_v4, %v15580_v49 }
 0x6fe   :  { %v18451_v49 = vld [vmem:[%s26487_s5 + $0x39c] sm:$0xf] }
 0x6ff   :  { %v15548_v4 = vld [vmem:[%s26487_s5 + $0x3b8] sm:$0xf0] }
 0x701   :  { %v6935_v36 = vpop.f32.mrf.mxu1 }
 0x704   :  { %v7028_v29 = vpop.f32.mrf.mxu0 }
 0x70d   :  { %v6849_v21 = vpop.f32.mrf.mxu3 }
 0x713   :  { %v6756_v18 = vpop.f32.mrf.mxu2 }
 0x714   :  { %v6761_v34 = vadd.f32 %v6756_v18, %v6675_v14  ;;  %v15554_v18 = vld [vmem:[%s26487_s5 + $0x3c0] sm:$0xf]  ;;  %v18461_v14 = vld [vmem:[%s26487_s5 + $0x3e4] sm:$0xf0] }
 0x715   :  { %v23131_v62 = vpop.f32.mrf.mxu3 }
 0x716   :  { %v6854_v13 = vadd.f32 %v6849_v21, %v6761_v34  ;;  %26797 = vst [vmem:[#allocation31_spill] sm:$0xff] %v23131_v62  ;;  %v15556_v21 = vld [vmem:[%s26487_s5 + $0x3e0] sm:$0xf0]  ;;  %v15564_v34 = vld [vmem:[%s26487_s5 + $0x3e8] sm:$0xf0] }
 0x718   :  { %v6940_v31 = vadd.f32 %v6935_v36, %v6854_v13  ;;  %v15555_v36 = vor.u32 %v18460_v5, %v15554_v18  ;;  %v15530_v18 = vld [vmem:[%s26487_s5 + $0x388] sm:$0xf] }
 0x719   :  { %v18453_v5 = vld [vmem:[%s26487_s5 + $0x3a4] sm:$0xf0] }
 0x71a   :  { %v7033_v46 = vadd.f32 %v7028_v29, %v6940_v31  ;;  %v15559_v31 = vor.u32 %v18456_v53, %v15556_v21  ;;  %v15522_v29 = vld [vmem:[%s26487_s5 + $0x380] sm:$0xf]  ;;  %v18449_v53 = vld [vmem:[%s26487_s5 + $0x38c] sm:$0xf]  ;;  %v15531_v62 = vor.u32 %v18453_v5, %v15530_v18 }
 0x71b   :  { %v23129_v37 = vpop.f32.mrf.mxu2  ;;  %v15532_v21 = vld [vmem:[%s26487_s5 + $0x3a8] sm:$0xf0]  ;;  %v18436_v18 = vld [vmem:[%s26487_s5 + $0x31c] sm:$0xf0] }
 0x71c   :  { %26796 = vst [vmem:[#allocation33_spill] sm:$0xff] %v23129_v37  ;;  %v15535_v37 = vor.u32 %v18449_v53, %v15532_v21  ;;  %v18432_v21 = vld [vmem:[%s26487_s5 + $0x304] sm:$0xf] }
 0x72d   :  { %v7207_v54 = vpop.f32.mrf.mxu3 }
 0x733   :  { %v7114_v43 = vpop.f32.mrf.mxu2 }
 0x734   :  { %v7119_v8 = vadd.f32 %v7114_v43, %v7033_v46  ;;  %v18452_v46 = vld [vmem:[%s26487_s5 + $0x39c] sm:$0xf0]  ;;  %v15563_v43 = vor.u32 %v18461_v14, %v15562_v12 }
 0x735   :  { %v15523_v12 = vor.u32 %v18452_v46, %v15522_v29  ;;  %v18445_v29 = vld [vmem:[%s26487_s5 + $0x364] sm:$0xf0]  ;;  %v18441_v46 = vld [vmem:[%s26487_s5 + $0x34c] sm:$0xf] }
 0x736   :  { %v7212_v41 = vadd.f32 %v7207_v54, %v7119_v8  ;;  %v15567_v8 = vor.u32 %v18457_v16, %v15564_v34  ;;  %v18448_v54 = vld [vmem:[%s26487_s5 + $0x384] sm:$0xf]  ;;  %v15490_v16 = vld [vmem:[%s26487_s5 + $0x340] sm:$0xf] }
 0x737   :  { %v18444_v34 = vld [vmem:[%s26487_s5 + $0x35c] sm:$0xf0] }
 0x738   :  { %v23157_v13 = vpack.c.bf16 %v7212_v41, %v7212_v41  ;;  %v15524_v41 = vld [vmem:[%s26487_s5 + $0x3a0] sm:$0xf0] }
 0x739   :  { %v15527_v14 = vor.u32 %v18448_v54, %v15524_v41  ;;  %v15458_v41 = vld [vmem:[%s26487_s5 + $0x300] sm:$0xf] }
 0x73a   :  { %7609 = vmatmul.bf16.vlgmr.msra.gmra.mxu1 %v23157_v13  ;;  %7622 = vmatmul.bf16.vlgmr.msra.gmra.mxu0 %v23157_v13 }
 0x73b   :  { %7635 = vmatmul.bf16.vlgmr.msrb.gmra.mxu2 %v23157_v13  ;;  %7648 = vmatmul.bf16.vlgmr.msrb.gmra.mxu3 %v23157_v13 }
 0x73c   :  { %8128 = vmatpush.bf16.msra.mxu1 %v15555_v36  ;;  %8141 = vmatpush.bf16.msra.mxu0 %v15559_v31  ;;  %v15492_v36 = vld [vmem:[%s26487_s5 + $0x360] sm:$0xf0]  ;;  %v15498_v31 = vld [vmem:[%s26487_s5 + $0x348] sm:$0xf] }
 0x73d   :  { %8154 = vmatpush.bf16.msrb.mxu2 %v15563_v43  ;;  %8167 = vmatpush.bf16.msrb.mxu3 %v15567_v8  ;;  %v15500_v43 = vld [vmem:[%s26487_s5 + $0x368] sm:$0xf0]  ;;  %v15491_v8 = vor.u32 %v18444_v34, %v15490_v16  ;;  %v15495_v54 = vor.u32 %v18440_v27, %v15492_v36  ;;  %v15499_v5 = vor.u32 %v18445_v29, %v15498_v31  ;;  %v15460_v27 = vld [vmem:[%s26487_s5 + $0x320] sm:$0xf0]  ;;  %v15426_v36 = vld [vmem:[%s26487_s5 + $0x2c0] sm:$0xf] }
 0x73e   :  { %v15503_v53 = vor.u32 %v18441_v46, %v15500_v43  ;;  %v15459_v16 = vor.u32 %v18436_v18, %v15458_v41  ;;  %v15463_v34 = vor.u32 %v18432_v21, %v15460_v27  ;;  %v18428_v31 = vld [vmem:[%s26487_s5 + $0x2dc] sm:$0xf0]  ;;  %v18424_v43 = vld [vmem:[%s26487_s5 + $0x2c4] sm:$0xf]  ;;  %v18429_v41 = vld [vmem:[%s26487_s5 + $0x2e4] sm:$0xf0] }
 0x73f   :  { %v18425_v18 = vld [vmem:[%s26487_s5 + $0x2cc] sm:$0xf]  ;;  %v15394_v27 = vld [vmem:[%s26487_s5 + $0x280] sm:$0xf] }
 0x740   :  { %8129 = vmatpush.bf16.msra.mxu1 %v15523_v12  ;;  %8142 = vmatpush.bf16.msra.mxu0 %v15527_v14  ;;  %v15466_v12 = vld [vmem:[%s26487_s5 + $0x308] sm:$0xf] }
 0x741   :  { %8155 = vmatpush.bf16.msrb.mxu2 %v15531_v62  ;;  %8168 = vmatpush.bf16.msrb.mxu3 %v15535_v37  ;;  %v18437_v14 = vld [vmem:[%s26487_s5 + $0x324] sm:$0xf0]  ;;  %v18433_v37 = vld [vmem:[%s26487_s5 + $0x30c] sm:$0xf] }
 0x742   :  { %v15468_v62 = vld [vmem:[%s26487_s5 + $0x328] sm:$0xf0]  ;;  %v15467_v29 = vor.u32 %v18437_v14, %v15466_v12  ;;  %v18420_v12 = vld [vmem:[%s26487_s5 + $0x29c] sm:$0xf0] }
 0x743   :  { %v15471_v46 = vor.u32 %v18433_v37, %v15468_v62  ;;  %v18416_v62 = vld [vmem:[%s26487_s5 + $0x284] sm:$0xf] }
 0x744   :  { %8130 = vmatpush.bf16.msra.mxu1 %v15491_v8  ;;  %8143 = vmatpush.bf16.msra.mxu0 %v15495_v54  ;;  %v15428_v8 = vld [vmem:[%s26487_s5 + $0x2e0] sm:$0xf0]  ;;  %v15434_v54 = vld [vmem:[%s26487_s5 + $0x2c8] sm:$0xf] }
 0x745   :  { %8156 = vmatpush.bf16.msrb.mxu2 %v15499_v5  ;;  %8169 = vmatpush.bf16.msrb.mxu3 %v15503_v53  ;;  %v15436_v5 = vld [vmem:[%s26487_s5 + $0x2e8] sm:$0xf0]  ;;  %v15427_v53 = vor.u32 %v18428_v31, %v15426_v36  ;;  %v15431_v21 = vor.u32 %v18424_v43, %v15428_v8  ;;  %v15435_v14 = vor.u32 %v18429_v41, %v15434_v54  ;;  %v18421_v36 = vld [vmem:[%s26487_s5 + $0x2a4] sm:$0xf0]  ;;  %v15362_v8 = vld [vmem:[%s26487_s5 + $0x240] sm:$0xf] }
 0x746   :  { %v15439_v37 = vor.u32 %v18425_v18, %v15436_v5  ;;  %v18417_v31 = vld [vmem:[%s26487_s5 + $0x28c] sm:$0xf]  ;;  %v18412_v54 = vld [vmem:[%s26487_s5 + $0x25c] sm:$0xf0]  ;;  %v18408_v5 = vld [vmem:[%s26487_s5 + $0x244] sm:$0xf] }
 0x748   :  { %8131 = vmatpush.bf16.msra.mxu1 %v15459_v16  ;;  %8144 = vmatpush.bf16.msra.mxu0 %v15463_v34  ;;  %v15396_v16 = vld [vmem:[%s26487_s5 + $0x2a0] sm:$0xf0]  ;;  %v15402_v34 = vld [vmem:[%s26487_s5 + $0x288] sm:$0xf] }
 0x749   :  { %8157 = vmatpush.bf16.msrb.mxu2 %v15467_v29  ;;  %8170 = vmatpush.bf16.msrb.mxu3 %v15471_v46  ;;  %v15404_v29 = vld [vmem:[%s26487_s5 + $0x2a8] sm:$0xf0]  ;;  %v15395_v46 = vor.u32 %v18420_v12, %v15394_v27  ;;  %v15399_v43 = vor.u32 %v18416_v62, %v15396_v16  ;;  %v15403_v41 = vor.u32 %v18421_v36, %v15402_v34  ;;  %v18413_v27 = vld [vmem:[%s26487_s5 + $0x264] sm:$0xf0]  ;;  %v18404_v34 = vld [vmem:[%s26487_s5 + $0x21c] sm:$0xf0] }
 0x74a   :  { %7661 = vmatmul.bf16.vlgmr.msrb.gmra.mxu1 %v23157_v13  ;;  %7674 = vmatmul.bf16.vlgmr.msrb.gmra.mxu0 %v23157_v13  ;;  %v15407_v18 = vor.u32 %v18417_v31, %v15404_v29  ;;  %v18409_v12 = vld [vmem:[%s26487_s5 + $0x24c] sm:$0xf]  ;;  %v15363_v62 = vor.u32 %v18412_v54, %v15362_v8  ;;  %v18400_v36 = vld [vmem:[%s26487_s5 + $0x204] sm:$0xf]  ;;  %v7802_v54 = vunpack.c.l.b16 %v23157_v13 }
 0x74b   :  { %7687 = vmatmul.bf16.vlgmr.msra.gmra.mxu2 %v23157_v13  ;;  %7700 = vmatmul.bf16.vlgmr.msra.gmra.mxu3 %v23157_v13  ;;  %v15332_v31 = vld [vmem:[%s26487_s5 + $0x220] sm:$0xf0]  ;;  %v18401_v8 = vld [vmem:[%s26487_s5 + $0x20c] sm:$0xf]  ;;  %v15572_v13 = vld [vmem:[%s26487_s5 + $0x3f0] sm:$0xf0] }
 0x74c   :  { %8132 = vmatpush.bf16.msra.mxu1 %v15427_v53  ;;  %8145 = vmatpush.bf16.msra.mxu0 %v15431_v21  ;;  %v15364_v53 = vld [vmem:[%s26487_s5 + $0x260] sm:$0xf0]  ;;  %v15370_v21 = vld [vmem:[%s26487_s5 + $0x248] sm:$0xf] }
 0x74d   :  { %8158 = vmatpush.bf16.msrb.mxu2 %v15435_v14  ;;  %8171 = vmatpush.bf16.msrb.mxu3 %v15439_v37  ;;  %v15372_v14 = vld [vmem:[%s26487_s5 + $0x268] sm:$0xf0]  ;;  %v15330_v37 = vld [vmem:[%s26487_s5 + $0x200] sm:$0xf]  ;;  %v15367_v16 = vor.u32 %v18408_v5, %v15364_v53  ;;  %v15371_v29 = vor.u32 %v18413_v27, %v15370_v21  ;;  %v18462_v5 = vld [vmem:[%s26487_s5 + $0x3ec] sm:$0xf0] }
 0x74e   :  { %v15375_v48 = vor.u32 %v18409_v12, %v15372_v14  ;;  %v18458_v53 = vld [vmem:[%s26487_s5 + $0x3d4] sm:$0xf]  ;;  %v15578_v21 = vld [vmem:[%s26487_s5 + $0x3d8] sm:$0xf]  ;;  %v15331_v27 = vor.u32 %v18404_v34, %v15330_v37  ;;  %v15335_v12 = vor.u32 %v18400_v36, %v15332_v31  ;;  %v15538_v34 = vld [vmem:[%s26487_s5 + $0x390] sm:$0xf] }
 0x74f   :  { %v18463_v14 = vld [vmem:[%s26487_s5 + $0x3f4] sm:$0xf0]  ;;  %v18454_v36 = vld [vmem:[%s26487_s5 + $0x3ac] sm:$0xf0] }
 0x750   :  { %8133 = vmatpush.bf16.msra.mxu1 %v15395_v46  ;;  %8146 = vmatpush.bf16.msra.mxu0 %v15399_v43  ;;  %v15338_v46 = vld [vmem:[%s26487_s5 + $0x208] sm:$0xf]  ;;  %v15579_v31 = vor.u32 %v18463_v14, %v15578_v21  ;;  %v15514_v21 = vld [vmem:[%s26487_s5 + $0x358] sm:$0xf] }
 0x751   :  { %8159 = vmatpush.bf16.msrb.mxu2 %v15403_v41  ;;  %8172 = vmatpush.bf16.msrb.mxu3 %v15407_v18  ;;  %v18405_v43 = vld [vmem:[%s26487_s5 + $0x224] sm:$0xf0]  ;;  %v15340_v41 = vld [vmem:[%s26487_s5 + $0x228] sm:$0xf0]  ;;  %v15570_v18 = vld [vmem:[%s26487_s5 + $0x3d0] sm:$0xf] }
 0x752   :  { %v15339_v26 = vor.u32 %v18405_v43, %v15338_v46  ;;  %v15343_v55 = vor.u32 %v18401_v8, %v15340_v41  ;;  %v15571_v37 = vor.u32 %v18462_v5, %v15570_v18  ;;  %v15546_v46 = vld [vmem:[%s26487_s5 + $0x398] sm:$0xf]  ;;  %v15506_v18 = vld [vmem:[%s26487_s5 + $0x350] sm:$0xf] }
 0x753   :  { %v18455_v43 = vld [vmem:[%s26487_s5 + $0x3b4] sm:$0xf0]  ;;  %v18446_v5 = vld [vmem:[%s26487_s5 + $0x36c] sm:$0xf0] }
 0x754   :  { %8134 = vmatpush.bf16.msra.mxu1 %v15363_v62  ;;  %8147 = vmatpush.bf16.msra.mxu0 %v15367_v16  ;;  %v23360_v62 = vpack.c.b16 %v7802_v54, %v7802_v54  ;;  %v15575_v16 = vor.u32 %v18458_v53, %v15572_v13  ;;  %v15539_v54 = vor.u32 %v18454_v36, %v15538_v34  ;;  %v15508_v13 = vld [vmem:[%s26487_s5 + $0x370] sm:$0xf0]  ;;  %v18438_v34 = vld [vmem:[%s26487_s5 + $0x32c] sm:$0xf0] }
 0x755   :  { %8160 = vmatpush.bf16.msrb.mxu2 %v15371_v29  ;;  %8173 = vmatpush.bf16.msrb.mxu3 %v15375_v48  ;;  %v18450_v48 = vld [vmem:[%s26487_s5 + $0x394] sm:$0xf]  ;;  %v15547_v53 = vor.u32 %v18455_v43, %v15546_v46  ;;  %v15507_v14 = vor.u32 %v18446_v5, %v15506_v18  ;;  %v15482_v46 = vld [vmem:[%s26487_s5 + $0x318] sm:$0xf]  ;;  %v15442_v18 = vld [vmem:[%s26487_s5 + $0x2d0] sm:$0xf] }
 0x756   :  { %v15540_v29 = vld [vmem:[%s26487_s5 + $0x3b0] sm:$0xf0]  ;;  %v23387_v8 = vshrl.u32 %v23360_v62, 16  ;;  %v18439_v43 = vld [vmem:[%s26487_s5 + $0x334] sm:$0xf0] }
 0x757   :  { %v15543_v41 = vor.u32 %v18450_v48, %v15540_v29  ;;  %v18434_v48 = vld [vmem:[%s26487_s5 + $0x314] sm:$0xf]  ;;  %v18430_v5 = vld [vmem:[%s26487_s5 + $0x2ec] sm:$0xf0] }
 0x758   :  { %8135 = vmatpush.bf16.msra.mxu1 %v15331_v27  ;;  %8148 = vmatpush.bf16.msra.mxu0 %v15335_v12  ;;  %v18443_v27 = vld [vmem:[%s26487_s5 + $0x35c] sm:$0xf]  ;;  %v15476_v29 = vld [vmem:[%s26487_s5 + $0x330] sm:$0xf0] }
 0x759   :  { %8161 = vmatpush.bf16.msrb.mxu2 %v15339_v26  ;;  %8174 = vmatpush.bf16.msrb.mxu3 %v15343_v55  ;;  %v15551_v26 = vor.u32 %v18451_v49, %v15548_v4  ;;  %v18442_v55 = vld [vmem:[%s26487_s5 + $0x354] sm:$0xf]  ;;  %v15516_v12 = vld [vmem:[%s26487_s5 + $0x378] sm:$0xf0] }
 0x75a   :  { %v18435_v49 = vld [vmem:[%s26487_s5 + $0x31c] sm:$0xf] }
 0x75b   :  { %8136 = vmatmul.bf16.vlgmr.msra.gmra.mxu1 %v23387_v8  ;;  %8149 = vmatmul.bf16.vlgmr.msra.gmra.mxu0 %v23387_v8  ;;  %v15484_v4 = vld [vmem:[%s26487_s5 + $0x338] sm:$0xf0] }
 0x75c   :  { %8180 = vmatpush.bf16.msrb.mxu1 %v15571_v37  ;;  %8193 = vmatpush.bf16.msrb.mxu0 %v15575_v16  ;;  %v15511_v37 = vor.u32 %v18442_v55, %v15508_v13  ;;  %v15474_v16 = vld [vmem:[%s26487_s5 + $0x310] sm:$0xf]  ;;  %v18426_v55 = vld [vmem:[%s26487_s5 + $0x2d4] sm:$0xf] }
 0x75d   :  { %8206 = vmatpush.bf16.msra.mxu2 %v15579_v31  ;;  %8219 = vmatpush.bf16.msra.mxu3 %v15583_v57  ;;  %v18447_v57 = vld [vmem:[%s26487_s5 + $0x374] sm:$0xf0]  ;;  %v15519_v31 = vor.u32 %v18443_v27, %v15516_v12  ;;  %v15444_v13 = vld [vmem:[%s26487_s5 + $0x2f0] sm:$0xf0]  ;;  %v18427_v27 = vld [vmem:[%s26487_s5 + $0x2dc] sm:$0xf] }
 0x75e   :  { %8162 = vmatmul.bf16.vlgmr.msrb.gmra.mxu2 %v23387_v8  ;;  %8175 = vmatmul.bf16.vlgmr.msrb.gmra.mxu3 %v23387_v8  ;;  %v15515_v36 = vor.u32 %v18447_v57, %v15514_v21  ;;  %v15450_v21 = vld [vmem:[%s26487_s5 + $0x2d8] sm:$0xf]  ;;  %v15452_v12 = vld [vmem:[%s26487_s5 + $0x2f8] sm:$0xf0] }
 0x75f   :  { %v18431_v57 = vld [vmem:[%s26487_s5 + $0x2f4] sm:$0xf0] }
 0x760   :  { %8181 = vmatpush.bf16.msrb.mxu1 %v15539_v54  ;;  %8194 = vmatpush.bf16.msrb.mxu0 %v15543_v41  ;;  %v15475_v54 = vor.u32 %v18438_v34, %v15474_v16  ;;  %v15479_v41 = vor.u32 %v18434_v48, %v15476_v29  ;;  %v15410_v16 = vld [vmem:[%s26487_s5 + $0x290] sm:$0xf]  ;;  %v18418_v48 = vld [vmem:[%s26487_s5 + $0x294] sm:$0xf] }
 0x761   :  { %8207 = vmatpush.bf16.msra.mxu2 %v15547_v53  ;;  %8220 = vmatpush.bf16.msra.mxu3 %v15551_v26  ;;  %v15483_v53 = vor.u32 %v18439_v43, %v15482_v46  ;;  %v15487_v26 = vor.u32 %v18435_v49, %v15484_v4  ;;  %v18422_v34 = vld [vmem:[%s26487_s5 + $0x2ac] sm:$0xf0]  ;;  %v15412_v29 = vld [vmem:[%s26487_s5 + $0x2b0] sm:$0xf0]  ;;  %v15418_v46 = vld [vmem:[%s26487_s5 + $0x298] sm:$0xf] }
 0x762   :  { %v18423_v43 = vld [vmem:[%s26487_s5 + $0x2b4] sm:$0xf0]  ;;  %v18419_v49 = vld [vmem:[%s26487_s5 + $0x29c] sm:$0xf] }
 0x763   :  { %v15420_v4 = vld [vmem:[%s26487_s5 + $0x2b8] sm:$0xf0] }
 0x764   :  { %8182 = vmatpush.bf16.msrb.mxu1 %v15507_v14  ;;  %8195 = vmatpush.bf16.msrb.mxu0 %v15511_v37  ;;  %v15443_v14 = vor.u32 %v18430_v5, %v15442_v18  ;;  %v15447_v37 = vor.u32 %v18426_v55, %v15444_v13  ;;  %v15378_v18 = vld [vmem:[%s26487_s5 + $0x250] sm:$0xf]  ;;  %v18410_v55 = vld [vmem:[%s26487_s5 + $0x254] sm:$0xf] }
 0x765   :  { %8208 = vmatpush.bf16.msra.mxu2 %v15515_v36  ;;  %8221 = vmatpush.bf16.msra.mxu3 %v15519_v31  ;;  %v15451_v36 = vor.u32 %v18431_v57, %v15450_v21  ;;  %v15455_v31 = vor.u32 %v18427_v27, %v15452_v12  ;;  %v18414_v5 = vld [vmem:[%s26487_s5 + $0x26c] sm:$0xf0]  ;;  %v15380_v13 = vld [vmem:[%s26487_s5 + $0x270] sm:$0xf0]  ;;  %v15386_v21 = vld [vmem:[%s26487_s5 + $0x258] sm:$0xf] }
 0x766   :  { %v18415_v57 = vld [vmem:[%s26487_s5 + $0x274] sm:$0xf0]  ;;  %v18411_v27 = vld [vmem:[%s26487_s5 + $0x25c] sm:$0xf] }
 0x767   :  { %v15388_v12 = vld [vmem:[%s26487_s5 + $0x278] sm:$0xf0] }
 0x768   :  { %8183 = vmatpush.bf16.msrb.mxu1 %v15475_v54  ;;  %8196 = vmatpush.bf16.msrb.mxu0 %v15479_v41  ;;  %v15411_v54 = vor.u32 %v18422_v34, %v15410_v16  ;;  %v15415_v41 = vor.u32 %v18418_v48, %v15412_v29  ;;  %v15383_v16 = vor.u32 %v18410_v55, %v15380_v13  ;;  %v18406_v34 = vld [vmem:[%s26487_s5 + $0x22c] sm:$0xf0]  ;;  %v18525_v13 = vld [vmem:[%s26487_s5 + $0x5e4] sm:$0xf0] }
 0x769   :  { %8209 = vmatpush.bf16.msra.mxu2 %v15483_v53  ;;  %8222 = vmatpush.bf16.msra.mxu3 %v15487_v26  ;;  %v15419_v53 = vor.u32 %v18423_v43, %v15418_v46  ;;  %v15423_v26 = vor.u32 %v18419_v49, %v15420_v4  ;;  %v15387_v48 = vor.u32 %v18415_v57, %v15386_v21  ;;  %v15354_v46 = vld [vmem:[%s26487_s5 + $0x218] sm:$0xf]  ;;  %v18403_v49 = vld [vmem:[%s26487_s5 + $0x21c] sm:$0xf]  ;;  %v18521_v21 = vld [vmem:[%s26487_s5 + $0x5cc] sm:$0xf] }
 0x76a   :  { %v15391_v29 = vor.u32 %v18411_v27, %v15388_v12  ;;  %v18407_v43 = vld [vmem:[%s26487_s5 + $0x234] sm:$0xf0]  ;;  %v15356_v4 = vld [vmem:[%s26487_s5 + $0x238] sm:$0xf0]  ;;  %v15884_v57 = vld [vmem:[%s26487_s5 + $0x5e8] sm:$0xf0] }
 0x76b   :  { %v15355_v27 = vor.u32 %v18407_v43, %v15354_v46  ;;  %v15359_v12 = vor.u32 %v18403_v49, %v15356_v4  ;;  %v18517_v46 = vld [vmem:[%s26487_s5 + $0x5a4] sm:$0xf0]  ;;  %v18513_v43 = vld [vmem:[%s26487_s5 + $0x58c] sm:$0xf] }
 0x76c   :  { %8184 = vmatpush.bf16.msrb.mxu1 %v15443_v14  ;;  %8197 = vmatpush.bf16.msrb.mxu0 %v15447_v37  ;;  %v15346_v14 = vld [vmem:[%s26487_s5 + $0x210] sm:$0xf]  ;;  %v15379_v37 = vor.u32 %v18414_v5, %v15378_v18  ;;  %v18520_v18 = vld [vmem:[%s26487_s5 + $0x5c4] sm:$0xf]  ;;  %v15852_v49 = vld [vmem:[%s26487_s5 + $0x5a8] sm:$0xf0] }
 0x76d   :  { %8210 = vmatpush.bf16.msra.mxu2 %v15451_v36  ;;  %8223 = vmatpush.bf16.msra.mxu3 %v15455_v31  ;;  %v18402_v36 = vld [vmem:[%s26487_s5 + $0x214] sm:$0xf]  ;;  %v15876_v5 = vld [vmem:[%s26487_s5 + $0x5e0] sm:$0xf0] }
 0x76e   :  { %v15348_v31 = vld [vmem:[%s26487_s5 + $0x230] sm:$0xf0] }
 0x76f   :  { %v15351_v55 = vor.u32 %v18402_v36, %v15348_v31  ;;  %v15887_v31 = vor.u32 %v18521_v21, %v15884_v57  ;;  %v18505_v21 = vld [vmem:[%s26487_s5 + $0x54c] sm:$0xf] }
 0x770   :  { %8185 = vmatpush.bf16.msrb.mxu1 %v15411_v54  ;;  %8198 = vmatpush.bf16.msrb.mxu0 %v15415_v41  ;;  %v15874_v54 = vld [vmem:[%s26487_s5 + $0x5c0] sm:$0xf]  ;;  %v15820_v57 = vld [vmem:[%s26487_s5 + $0x568] sm:$0xf0] }
 0x771   :  { %8211 = vmatpush.bf16.msra.mxu2 %v15419_v53  ;;  %8224 = vmatpush.bf16.msra.mxu3 %v15423_v26  ;;  %v18524_v41 = vld [vmem:[%s26487_s5 + $0x5dc] sm:$0xf0]  ;;  %v15882_v53 = vld [vmem:[%s26487_s5 + $0x5c8] sm:$0xf]  ;;  %v15347_v26 = vor.u32 %v18406_v34, %v15346_v14 }
 0x772   :  { %v15842_v14 = vld [vmem:[%s26487_s5 + $0x580] sm:$0xf]  ;;  %v15883_v36 = vor.u32 %v18525_v13, %v15882_v53  ;;  %v15855_v53 = vor.u32 %v18513_v43, %v15852_v49  ;;  %v18509_v13 = vld [vmem:[%s26487_s5 + $0x564] sm:$0xf0]  ;;  %v15788_v43 = vld [vmem:[%s26487_s5 + $0x528] sm:$0xf0] }
 0x773   :  { %v18516_v34 = vld [vmem:[%s26487_s5 + $0x59c] sm:$0xf0] }
 0x774   :  { %8186 = vmatpush.bf16.msrb.mxu1 %v15379_v37  ;;  %8199 = vmatpush.bf16.msrb.mxu0 %v15383_v16  ;;  %v15875_v37 = vor.u32 %v18524_v41, %v15874_v54  ;;  %v15879_v16 = vor.u32 %v18520_v18, %v15876_v5  ;;  %v15843_v4 = vor.u32 %v18516_v34, %v15842_v14  ;;  %v15810_v41 = vld [vmem:[%s26487_s5 + $0x540] sm:$0xf] }
 0x775   :  { %8212 = vmatpush.bf16.msra.mxu2 %v15387_v48  ;;  %8225 = vmatpush.bf16.msra.mxu3 %v15391_v29  ;;  %v15844_v48 = vld [vmem:[%s26487_s5 + $0x5a0] sm:$0xf0]  ;;  %v15850_v29 = vld [vmem:[%s26487_s5 + $0x588] sm:$0xf]  ;;  %v18508_v18 = vld [vmem:[%s26487_s5 + $0x55c] sm:$0xf0]  ;;  %v15823_v34 = vor.u32 %v18505_v21, %v15820_v57 }
 0x776   :  { %v15847_v54 = vor.u32 %v18512_v44, %v15844_v48  ;;  %v15851_v5 = vor.u32 %v18517_v46, %v15850_v29  ;;  %v15812_v44 = vld [vmem:[%s26487_s5 + $0x560] sm:$0xf0]  ;;  %v15786_v48 = vld [vmem:[%s26487_s5 + $0x508] sm:$0xf]  ;;  %v18497_v46 = vld [vmem:[%s26487_s5 + $0x50c] sm:$0xf] }
 0x777   :  { %v18501_v29 = vld [vmem:[%s26487_s5 + $0x524] sm:$0xf0]  ;;  %v15756_v21 = vld [vmem:[%s26487_s5 + $0x4e8] sm:$0xf0] }
 0x778   :  { %8187 = vmatpush.bf16.msrb.mxu1 %v15347_v26  ;;  %8200 = vmatpush.bf16.msrb.mxu0 %v15351_v55  ;;  %v18504_v26 = vld [vmem:[%s26487_s5 + $0x544] sm:$0xf]  ;;  %v15818_v55 = vld [vmem:[%s26487_s5 + $0x548] sm:$0xf] }
 0x779   :  { %8213 = vmatpush.bf16.msra.mxu2 %v15355_v27  ;;  %8226 = vmatpush.bf16.msra.mxu3 %v15359_v12  ;;  %v15811_v27 = vor.u32 %v18508_v18, %v15810_v41  ;;  %v15815_v12 = vor.u32 %v18504_v26, %v15812_v44  ;;  %v15819_v14 = vor.u32 %v18509_v13, %v15818_v55  ;;  %v18492_v41 = vld [vmem:[%s26487_s5 + $0x4dc] sm:$0xf0]  ;;  %v15748_v26 = vld [vmem:[%s26487_s5 + $0x4e0] sm:$0xf0]  ;;  %v15754_v44 = vld [vmem:[%s26487_s5 + $0x4c8] sm:$0xf] }
 0x77a   :  { %v15787_v18 = vor.u32 %v18501_v29, %v15786_v48  ;;  %v18493_v55 = vld [vmem:[%s26487_s5 + $0x4e4] sm:$0xf0]  ;;  %v18489_v13 = vld [vmem:[%s26487_s5 + $0x4cc] sm:$0xf] }
 0x77b   :  { %8188 = vmatmul.bf16.vlgmr.msrb.gmra.mxu1 %v23387_v8  ;;  %8201 = vmatmul.bf16.vlgmr.msrb.gmra.mxu0 %v23387_v8  ;;  %v18485_v48 = vld [vmem:[%s26487_s5 + $0x4a4] sm:$0xf0]  ;;  %v18481_v29 = vld [vmem:[%s26487_s5 + $0x48c] sm:$0xf] }
 0x77c   :  { %8643 = vmatpush.bf16.msra.mxu1 %v15875_v37  ;;  %8656 = vmatpush.bf16.msra.mxu0 %v15879_v16  ;;  %v15778_v37 = vld [vmem:[%s26487_s5 + $0x500] sm:$0xf] }
 0x77d   :  { %8669 = vmatpush.bf16.msrb.mxu2 %v15883_v36  ;;  %8682 = vmatpush.bf16.msrb.mxu3 %v15887_v31  ;;  %v18500_v16 = vld [vmem:[%s26487_s5 + $0x51c] sm:$0xf0]  ;;  %v18496_v36 = vld [vmem:[%s26487_s5 + $0x504] sm:$0xf] }
 0x77e   :  { %8214 = vmatmul.bf16.vlgmr.msra.gmra.mxu2 %v23387_v8  ;;  %8227 = vmatmul.bf16.vlgmr.msra.gmra.mxu3 %v23387_v8  ;;  %v15780_v31 = vld [vmem:[%s26487_s5 + $0x520] sm:$0xf0]  ;;  %v15779_v49 = vor.u32 %v18500_v16, %v15778_v37  ;;  %v18484_v37 = vld [vmem:[%s26487_s5 + $0x49c] sm:$0xf0]  ;;  %v15755_v16 = vor.u32 %v18493_v55, %v15754_v44  ;;  %v18477_v44 = vld [vmem:[%s26487_s5 + $0x464] sm:$0xf0] }
 0x77f   :  { %v18473_v55 = vld [vmem:[%s26487_s5 + $0x44c] sm:$0xf] }
 0x780   :  { %8644 = vmatpush.bf16.msra.mxu1 %v15843_v4  ;;  %8657 = vmatpush.bf16.msra.mxu0 %v15847_v54  ;;  %v15783_v4 = vor.u32 %v18496_v36, %v15780_v31  ;;  %v15746_v54 = vld [vmem:[%s26487_s5 + $0x4c0] sm:$0xf]  ;;  %v15716_v36 = vld [vmem:[%s26487_s5 + $0x4a0] sm:$0xf0]  ;;  %v15722_v31 = vld [vmem:[%s26487_s5 + $0x488] sm:$0xf] }
 0x781   :  { %8670 = vmatpush.bf16.msrb.mxu2 %v15851_v5  ;;  %8683 = vmatpush.bf16.msrb.mxu3 %v15855_v53  ;;  %v15791_v5 = vor.u32 %v18497_v46, %v15788_v43  ;;  %v18488_v53 = vld [vmem:[%s26487_s5 + $0x4c4] sm:$0xf]  ;;  %v15747_v57 = vor.u32 %v18492_v41, %v15746_v54  ;;  %v15724_v46 = vld [vmem:[%s26487_s5 + $0x4a8] sm:$0xf0]  ;;  %v18476_v54 = vld [vmem:[%s26487_s5 + $0x45c] sm:$0xf0]  ;;  %v15723_v41 = vor.u32 %v18485_v48, %v15722_v31 }
 0x782   :  { %v18469_v31 = vld [vmem:[%s26487_s5 + $0x424] sm:$0xf0]  ;;  %v18465_v48 = vld [vmem:[%s26487_s5 + $0x40c] sm:$0xf] }
 0x784   :  { %8645 = vmatpush.bf16.msra.mxu1 %v15811_v27  ;;  %8658 = vmatpush.bf16.msra.mxu0 %v15815_v12  ;;  %v15751_v27 = vor.u32 %v18488_v53, %v15748_v26  ;;  %v15714_v12 = vld [vmem:[%s26487_s5 + $0x480] sm:$0xf]  ;;  %v15684_v53 = vld [vmem:[%s26487_s5 + $0x460] sm:$0xf0]  ;;  %v15690_v26 = vld [vmem:[%s26487_s5 + $0x448] sm:$0xf] }
 0x785   :  { %8671 = vmatpush.bf16.msrb.mxu2 %v15819_v14  ;;  %8684 = vmatpush.bf16.msrb.mxu3 %v15823_v34  ;;  %v15759_v14 = vor.u32 %v18489_v13, %v15756_v21  ;;  %v18480_v34 = vld [vmem:[%s26487_s5 + $0x484] sm:$0xf]  ;;  %v15715_v43 = vor.u32 %v18484_v37, %v15714_v12  ;;  %v15692_v13 = vld [vmem:[%s26487_s5 + $0x468] sm:$0xf0]  ;;  %v15650_v21 = vld [vmem:[%s26487_s5 + $0x400] sm:$0xf] }
 0x786   :  { %v18468_v12 = vld [vmem:[%s26487_s5 + $0x41c] sm:$0xf0]  ;;  %v18464_v37 = vld [vmem:[%s26487_s5 + $0x404] sm:$0xf] }
 0x788   :  { %8646 = vmatpush.bf16.msra.mxu1 %v15779_v49  ;;  %8659 = vmatpush.bf16.msra.mxu0 %v15783_v4  ;;  %v15719_v49 = vor.u32 %v18480_v34, %v15716_v36  ;;  %v15682_v4 = vld [vmem:[%s26487_s5 + $0x440] sm:$0xf]  ;;  %v15695_v34 = vor.u32 %v18473_v55, %v15692_v13  ;;  %v15658_v36 = vld [vmem:[%s26487_s5 + $0x408] sm:$0xf] }
 0x789   :  { %8672 = vmatpush.bf16.msrb.mxu2 %v15787_v18  ;;  %8685 = vmatpush.bf16.msrb.mxu3 %v15791_v5  ;;  %v15727_v18 = vor.u32 %v18481_v29, %v15724_v46  ;;  %v18472_v5 = vld [vmem:[%s26487_s5 + $0x444] sm:$0xf]  ;;  %v15660_v29 = vld [vmem:[%s26487_s5 + $0x428] sm:$0xf0]  ;;  %v15890_v46 = vld [vmem:[%s26487_s5 + $0x5d0] sm:$0xf] }
 0x78a   :  { %v15663_v55 = vor.u32 %v18465_v48, %v15660_v29  ;;  %v15868_v48 = vld [vmem:[%s26487_s5 + $0x5b8] sm:$0xf0]  ;;  %v23782_v29 = vrot.slane %v23360_v62, 1 }
 0x78c   :  { %8647 = vmatpush.bf16.msra.mxu1 %v15747_v57  ;;  %8660 = vmatpush.bf16.msra.mxu0 %v15751_v27  ;;  %v15683_v57 = vor.u32 %v18476_v54, %v15682_v4  ;;  %v15687_v27 = vor.u32 %v18472_v5, %v15684_v53  ;;  %v15892_v4 = vld [vmem:[%s26487_s5 + $0x5f0] sm:$0xf0]  ;;  %v15898_v54 = vld [vmem:[%s26487_s5 + $0x5d8] sm:$0xf]  ;;  %v18523_v53 = vld [vmem:[%s26487_s5 + $0x5dc] sm:$0xf] }
 0x78d   :  { %8673 = vmatpush.bf16.msrb.mxu2 %v15755_v16  ;;  %8686 = vmatpush.bf16.msrb.mxu3 %v15759_v14  ;;  %v15652_v16 = vld [vmem:[%s26487_s5 + $0x420] sm:$0xf0]  ;;  %v15691_v14 = vor.u32 %v18477_v44, %v15690_v26  ;;  %v18527_v5 = vld [vmem:[%s26487_s5 + $0x5f4] sm:$0xf0]  ;;  %v15900_v26 = vld [vmem:[%s26487_s5 + $0x5f8] sm:$0xf0]  ;;  %v15659_v44 = vor.u32 %v18469_v31, %v15658_v36 }
 0x78e   :  { %v18519_v36 = vld [vmem:[%s26487_s5 + $0x5b4] sm:$0xf0]  ;;  %v18515_v31 = vld [vmem:[%s26487_s5 + $0x59c] sm:$0xf] }
 0x790   :  { %8648 = vmatpush.bf16.msra.mxu1 %v15715_v43  ;;  %8661 = vmatpush.bf16.msra.mxu0 %v15719_v49  ;;  %v18526_v43 = vld [vmem:[%s26487_s5 + $0x5ec] sm:$0xf0]  ;;  %v18522_v49 = vld [vmem:[%s26487_s5 + $0x5d4] sm:$0xf] }
 0x791   :  { %8674 = vmatpush.bf16.msrb.mxu2 %v15723_v41  ;;  %8687 = vmatpush.bf16.msrb.mxu3 %v15727_v18  ;;  %v15651_v41 = vor.u32 %v18468_v12, %v15650_v21  ;;  %v15655_v18 = vor.u32 %v18464_v37, %v15652_v16  ;;  %v15891_v13 = vor.u32 %v18526_v43, %v15890_v46  ;;  %v15858_v21 = vld [vmem:[%s26487_s5 + $0x590] sm:$0xf]  ;;  %v18514_v16 = vld [vmem:[%s26487_s5 + $0x594] sm:$0xf] }
 0x792   :  { %v15899_v12 = vor.u32 %v18527_v5, %v15898_v54  ;;  %v15903_v37 = vor.u32 %v18523_v53, %v15900_v26  ;;  %v15828_v5 = vld [vmem:[%s26487_s5 + $0x570] sm:$0xf0]  ;;  %v15834_v53 = vld [vmem:[%s26487_s5 + $0x558] sm:$0xf] }
 0x793   :  { %v18511_v26 = vld [vmem:[%s26487_s5 + $0x574] sm:$0xf0] }
 0x794   :  { %8649 = vmatpush.bf16.msra.mxu1 %v15683_v57  ;;  %8662 = vmatpush.bf16.msra.mxu0 %v15687_v27  ;;  %v15895_v57 = vor.u32 %v18522_v49, %v15892_v4  ;;  %v18518_v27 = vld [vmem:[%s26487_s5 + $0x5ac] sm:$0xf0] }
 0x795   :  { %8675 = vmatpush.bf16.msrb.mxu2 %v15691_v14  ;;  %8688 = vmatpush.bf16.msrb.mxu3 %v15695_v34  ;;  %v15860_v14 = vld [vmem:[%s26487_s5 + $0x5b0] sm:$0xf0]  ;;  %v15866_v34 = vld [vmem:[%s26487_s5 + $0x598] sm:$0xf]  ;;  %v15859_v46 = vor.u32 %v18518_v27, %v15858_v21  ;;  %v15826_v49 = vld [vmem:[%s26487_s5 + $0x550] sm:$0xf] }
 0x796   :  { %v15863_v43 = vor.u32 %v18514_v16, %v15860_v14  ;;  %v18510_v4 = vld [vmem:[%s26487_s5 + $0x56c] sm:$0xf0]  ;;  %v15867_v54 = vor.u32 %v18519_v36, %v15866_v34  ;;  %v18498_v16 = vld [vmem:[%s26487_s5 + $0x514] sm:$0xf]  ;;  %v15802_v34 = vld [vmem:[%s26487_s5 + $0x518] sm:$0xf] }
 0x797   :  { %v15794_v21 = vld [vmem:[%s26487_s5 + $0x510] sm:$0xf]  ;;  %v15796_v14 = vld [vmem:[%s26487_s5 + $0x530] sm:$0xf0]  ;;  %v18503_v36 = vld [vmem:[%s26487_s5 + $0x534] sm:$0xf0] }
 0x798   :  { %8650 = vmatpush.bf16.msra.mxu1 %v15651_v41  ;;  %8663 = vmatpush.bf16.msra.mxu0 %v15655_v18  ;;  %v15871_v41 = vor.u32 %v18515_v31, %v15868_v48  ;;  %v18506_v18 = vld [vmem:[%s26487_s5 + $0x554] sm:$0xf]  ;;  %v18502_v27 = vld [vmem:[%s26487_s5 + $0x52c] sm:$0xf0]  ;;  %v18499_v31 = vld [vmem:[%s26487_s5 + $0x51c] sm:$0xf] }
 0x799   :  { %8676 = vmatpush.bf16.msrb.mxu2 %v15659_v44  ;;  %8689 = vmatpush.bf16.msrb.mxu3 %v15663_v55  ;;  %v18507_v44 = vld [vmem:[%s26487_s5 + $0x55c] sm:$0xf] }
 0x79a   :  { %v15836_v55 = vld [vmem:[%s26487_s5 + $0x578] sm:$0xf0] }
 0x79b   :  { %8651 = vmatmul.bf16.vlgmr.msra.gmra.mxu1 %v23782_v29  ;;  %8664 = vmatmul.bf16.vlgmr.msra.gmra.mxu0 %v23782_v29  ;;  %v15804_v48 = vld [vmem:[%s26487_s5 + $0x538] sm:$0xf0] }
 0x79c   :  { %8695 = vmatpush.bf16.msrb.mxu1 %v15891_v13  ;;  %8708 = vmatpush.bf16.msrb.mxu0 %v15895_v57  ;;  %v15827_v13 = vor.u32 %v18510_v4, %v15826_v49  ;;  %v15831_v57 = vor.u32 %v18506_v18, %v15828_v5  ;;  %v15762_v49 = vld [vmem:[%s26487_s5 + $0x4d0] sm:$0xf]  ;;  %v18490_v18 = vld [vmem:[%s26487_s5 + $0x4d4] sm:$0xf] }
 0x79d   :  { %8721 = vmatpush.bf16.msra.mxu2 %v15899_v12  ;;  %8734 = vmatpush.bf16.msra.mxu3 %v15903_v37  ;;  %v15835_v12 = vor.u32 %v18511_v26, %v15834_v53  ;;  %v15839_v37 = vor.u32 %v18507_v44, %v15836_v55  ;;  %v18494_v4 = vld [vmem:[%s26487_s5 + $0x4ec] sm:$0xf0]  ;;  %v15764_v5 = vld [vmem:[%s26487_s5 + $0x4f0] sm:$0xf0]  ;;  %v15770_v53 = vld [vmem:[%s26487_s5 + $0x4d8] sm:$0xf] }
 0x79e   :  { %8677 = vmatmul.bf16.vlgmr.msrb.gmra.mxu2 %v23782_v29  ;;  %8690 = vmatmul.bf16.vlgmr.msrb.gmra.mxu3 %v23782_v29  ;;  %v18495_v26 = vld [vmem:[%s26487_s5 + $0x4f4] sm:$0xf0]  ;;  %v18491_v44 = vld [vmem:[%s26487_s5 + $0x4dc] sm:$0xf] }
 0x79f   :  { %v15772_v55 = vld [vmem:[%s26487_s5 + $0x4f8] sm:$0xf0] }
 0x7a0   :  { %8696 = vmatpush.bf16.msrb.mxu1 %v15859_v46  ;;  %8709 = vmatpush.bf16.msrb.mxu0 %v15863_v43  ;;  %v15795_v46 = vor.u32 %v18502_v27, %v15794_v21  ;;  %v15799_v43 = vor.u32 %v18498_v16, %v15796_v14  ;;  %v15730_v21 = vld [vmem:[%s26487_s5 + $0x490] sm:$0xf]  ;;  %v18482_v16 = vld [vmem:[%s26487_s5 + $0x494] sm:$0xf] }
 0x7a1   :  { %8722 = vmatpush.bf16.msra.mxu2 %v15867_v54  ;;  %8735 = vmatpush.bf16.msra.mxu3 %v15871_v41  ;;  %v15803_v54 = vor.u32 %v18503_v36, %v15802_v34  ;;  %v15807_v41 = vor.u32 %v18499_v31, %v15804_v48  ;;  %v18486_v27 = vld [vmem:[%s26487_s5 + $0x4ac] sm:$0xf0]  ;;  %v15732_v14 = vld [vmem:[%s26487_s5 + $0x4b0] sm:$0xf0]  ;;  %v15738_v34 = vld [vmem:[%s26487_s5 + $0x498] sm:$0xf] }
 0x7a2   :  { %v18487_v36 = vld [vmem:[%s26487_s5 + $0x4b4] sm:$0xf0]  ;;  %v18483_v31 = vld [vmem:[%s26487_s5 + $0x49c] sm:$0xf] }
 0x7a3   :  { %v15740_v48 = vld [vmem:[%s26487_s5 + $0x4b8] sm:$0xf0] }
 0x7a4   :  { %8697 = vmatpush.bf16.msrb.mxu1 %v15827_v13  ;;  %8710 = vmatpush.bf16.msrb.mxu0 %v15831_v57  ;;  %v15763_v13 = vor.u32 %v18494_v4, %v15762_v49  ;;  %v15767_v57 = vor.u32 %v18490_v18, %v15764_v5  ;;  %v15698_v49 = vld [vmem:[%s26487_s5 + $0x450] sm:$0xf]  ;;  %v18474_v18 = vld [vmem:[%s26487_s5 + $0x454] sm:$0xf] }
 0x7a5   :  { %8723 = vmatpush.bf16.msra.mxu2 %v15835_v12  ;;  %8736 = vmatpush.bf16.msra.mxu3 %v15839_v37  ;;  %v15771_v12 = vor.u32 %v18495_v26, %v15770_v53  ;;  %v15775_v37 = vor.u32 %v18491_v44, %v15772_v55  ;;  %v18478_v4 = vld [vmem:[%s26487_s5 + $0x46c] sm:$0xf0]  ;;  %v15700_v5 = vld [vmem:[%s26487_s5 + $0x470] sm:$0xf0]  ;;  %v15706_v53 = vld [vmem:[%s26487_s5 + $0x458] sm:$0xf] }
 0x7a6   :  { %v18479_v26 = vld [vmem:[%s26487_s5 + $0x474] sm:$0xf0]  ;;  %v18475_v44 = vld [vmem:[%s26487_s5 + $0x45c] sm:$0xf] }
 0x7a7   :  { %v15708_v55 = vld [vmem:[%s26487_s5 + $0x478] sm:$0xf0] }
 0x7a8   :  { %8698 = vmatpush.bf16.msrb.mxu1 %v15795_v46  ;;  %8711 = vmatpush.bf16.msrb.mxu0 %v15799_v43  ;;  %v15731_v46 = vor.u32 %v18486_v27, %v15730_v21  ;;  %v15735_v43 = vor.u32 %v18482_v16, %v15732_v14  ;;  %v15703_v21 = vor.u32 %v18474_v18, %v15700_v5  ;;  %v18470_v27 = vld [vmem:[%s26487_s5 + $0x42c] sm:$0xf0]  ;;  %v18589_v5 = vld [vmem:[%s26487_s5 + $0x7e4] sm:$0xf0] }
 0x7a9   :  { %8724 = vmatpush.bf16.msra.mxu2 %v15803_v54  ;;  %8737 = vmatpush.bf16.msra.mxu3 %v15807_v41  ;;  %v15739_v54 = vor.u32 %v18487_v36, %v15738_v34  ;;  %v15743_v41 = vor.u32 %v18483_v31, %v15740_v48  ;;  %v15707_v16 = vor.u32 %v18479_v26, %v15706_v53  ;;  %v15674_v34 = vld [vmem:[%s26487_s5 + $0x418] sm:$0xf]  ;;  %v18467_v31 = vld [vmem:[%s26487_s5 + $0x41c] sm:$0xf]  ;;  %v18585_v53 = vld [vmem:[%s26487_s5 + $0x7cc] sm:$0xf] }
 0x7aa   :  { %v15711_v14 = vor.u32 %v18475_v44, %v15708_v55  ;;  %v18471_v36 = vld [vmem:[%s26487_s5 + $0x434] sm:$0xf0]  ;;  %v15676_v48 = vld [vmem:[%s26487_s5 + $0x438] sm:$0xf0]  ;;  %v16204_v26 = vld [vmem:[%s26487_s5 + $0x7e8] sm:$0xf0]  ;;  %v23956_v44 = vpop.f32.mrf.mxu1  ;;  %v23958_v55 = vpop.f32.mrf.mxu0 }
 0x7ab   :  { %26798 = vst [vmem:[#allocation38_spill] sm:$0xff] %v23956_v44  ;;  %v16207_v20 = vor.u32 %v18585_v53, %v16204_v26  ;;  %v23999_v53 = vpop.f32.mrf.mxu3  ;;  %v24001_v26 = vpop.f32.mrf.mxu2 }
 0x7ac   :  { %8699 = vmatpush.bf16.msrb.mxu1 %v15763_v13  ;;  %8712 = vmatpush.bf16.msrb.mxu0 %v15767_v57  ;;  %v15666_v13 = vld [vmem:[%s26487_s5 + $0x410] sm:$0xf]  ;;  %v15699_v57 = vor.u32 %v18478_v4, %v15698_v49  ;;  %v18584_v49 = vld [vmem:[%s26487_s5 + $0x7c4] sm:$0xf]  ;;  %26799 = vst [vmem:[#allocation35_spill] sm:$0xff] %v23958_v55 }
 0x7ad   :  { %8725 = vmatpush.bf16.msra.mxu2 %v15771_v12  ;;  %8738 = vmatpush.bf16.msra.mxu3 %v15775_v37  ;;  %v18466_v12 = vld [vmem:[%s26487_s5 + $0x414] sm:$0xf]  ;;  %v16196_v4 = vld [vmem:[%s26487_s5 + $0x7e0] sm:$0xf0]  ;;  %26800 = vst [vmem:[#allocation40_spill] sm:$0xff] %v23999_v53 }
 0x7ae   :  { %v15668_v37 = vld [vmem:[%s26487_s5 + $0x430] sm:$0xf0]  ;;  %v18576_v55 = vld [vmem:[%s26487_s5 + $0x784] sm:$0xf]  ;;  %26801 = vst [vmem:[#allocation37_spill] sm:$0xff] %v24001_v26 }
 0x7af   :  { %v15671_v18 = vor.u32 %v18466_v12, %v15668_v37  ;;  %v16162_v12 = vld [vmem:[%s26487_s5 + $0x780] sm:$0xf] }
 0x7b0   :  { %8700 = vmatpush.bf16.msrb.mxu1 %v15731_v46  ;;  %8713 = vmatpush.bf16.msrb.mxu0 %v15735_v43  ;;  %v16194_v46 = vld [vmem:[%s26487_s5 + $0x7c0] sm:$0xf] }
 0x7b1   :  { %8726 = vmatpush.bf16.msra.mxu2 %v15739_v54  ;;  %8739 = vmatpush.bf16.msra.mxu3 %v15743_v41  ;;  %v18588_v43 = vld [vmem:[%s26487_s5 + $0x7dc] sm:$0xf0]  ;;  %v16202_v54 = vld [vmem:[%s26487_s5 + $0x7c8] sm:$0xf]  ;;  %v15667_v41 = vor.u32 %v18470_v27, %v15666_v13  ;;  %v15675_v13 = vor.u32 %v18471_v36, %v15674_v34  ;;  %v16199_v27 = vor.u32 %v18584_v49, %v16196_v4  ;;  %v18577_v36 = vld [vmem:[%s26487_s5 + $0x78c] sm:$0xf] }
 0x7b2   :  { %v18580_v37 = vld [vmem:[%s26487_s5 + $0x79c] sm:$0xf0]  ;;  %v16203_v56 = vor.u32 %v18589_v5, %v16202_v54  ;;  %v18581_v34 = vld [vmem:[%s26487_s5 + $0x7a4] sm:$0xf0] }
 0x7b3   :  { %v18572_v49 = vld [vmem:[%s26487_s5 + $0x75c] sm:$0xf0]  ;;  %v16138_v5 = vld [vmem:[%s26487_s5 + $0x748] sm:$0xf] }
 0x7b4   :  { %8701 = vmatpush.bf16.msrb.mxu1 %v15699_v57  ;;  %8714 = vmatpush.bf16.msrb.mxu0 %v15703_v21  ;;  %v15679_v57 = vor.u32 %v18467_v31, %v15676_v48  ;;  %v16195_v21 = vor.u32 %v18588_v43, %v16194_v46  ;;  %v16172_v31 = vld [vmem:[%s26487_s5 + $0x7a8] sm:$0xf0]  ;;  %v16163_v48 = vor.u32 %v18580_v37, %v16162_v12  ;;  %v16130_v43 = vld [vmem:[%s26487_s5 + $0x740] sm:$0xf] }
 0x7b5   :  { %8727 = vmatpush.bf16.msra.mxu2 %v15707_v16  ;;  %8740 = vmatpush.bf16.msra.mxu3 %v15711_v14  ;;  %v16164_v16 = vld [vmem:[%s26487_s5 + $0x7a0] sm:$0xf0]  ;;  %v16170_v14 = vld [vmem:[%s26487_s5 + $0x788] sm:$0xf]  ;;  %v16175_v54 = vor.u32 %v18577_v36, %v16172_v31  ;;  %v16098_v37 = vld [vmem:[%s26487_s5 + $0x700] sm:$0xf] }
 0x7b6   :  { %v16167_v46 = vor.u32 %v18576_v55, %v16164_v16  ;;  %v16171_v4 = vor.u32 %v18581_v34, %v16170_v14  ;;  %v16140_v55 = vld [vmem:[%s26487_s5 + $0x768] sm:$0xf0]  ;;  %v18564_v16 = vld [vmem:[%s26487_s5 + $0x71c] sm:$0xf0]  ;;  %v18560_v34 = vld [vmem:[%s26487_s5 + $0x704] sm:$0xf] }
 0x7b7   :  { %v16100_v36 = vld [vmem:[%s26487_s5 + $0x720] sm:$0xf0]  ;;  %v16106_v31 = vld [vmem:[%s26487_s5 + $0x708] sm:$0xf] }
 0x7b8   :  { %8702 = vmatpush.bf16.msrb.mxu1 %v15667_v41  ;;  %8715 = vmatpush.bf16.msrb.mxu0 %v15671_v18  ;;  %v18568_v41 = vld [vmem:[%s26487_s5 + $0x744] sm:$0xf] }
 0x7b9   :  { %8728 = vmatpush.bf16.msra.mxu2 %v15675_v13  ;;  %8741 = vmatpush.bf16.msra.mxu3 %v15679_v57  ;;  %v16132_v18 = vld [vmem:[%s26487_s5 + $0x760] sm:$0xf0]  ;;  %v7610_v13 = vpop.f32.mrf.mxu1  ;;  %v7623_v57 = vpop.f32.mrf.mxu0 }
 0x7ba   :  { %v7713_v12 = vrot.slane %v7623_v57, 7 }
 0x7bb   :  { %8703 = vmatmul.bf16.vlgmr.msrb.gmra.mxu1 %v23782_v29  ;;  %8716 = vmatmul.bf16.vlgmr.msrb.gmra.mxu0 %v23782_v29 }
 0x7bc   :  { %9158 = vmatpush.bf16.msra.mxu1 %v16195_v21  ;;  %9171 = vmatpush.bf16.msra.mxu0 %v16199_v27  ;;  %v16131_v21 = vor.u32 %v18572_v49, %v16130_v43  ;;  %v16135_v27 = vor.u32 %v18568_v41, %v16132_v18  ;;  %v18561_v43 = vld [vmem:[%s26487_s5 + $0x70c] sm:$0xf]  ;;  %v16066_v41 = vld [vmem:[%s26487_s5 + $0x6c0] sm:$0xf] }
 0x7bd   :  { %9184 = vmatpush.bf16.msrb.mxu2 %v16203_v56  ;;  %9197 = vmatpush.bf16.msrb.mxu3 %v16207_v20  ;;  %v18573_v20 = vld [vmem:[%s26487_s5 + $0x764] sm:$0xf0]  ;;  %v18569_v56 = vld [vmem:[%s26487_s5 + $0x74c] sm:$0xf]  ;;  %v18556_v18 = vld [vmem:[%s26487_s5 + $0x6dc] sm:$0xf0] }
 0x7be   :  { %8729 = vmatmul.bf16.vlgmr.msra.gmra.mxu2 %v23782_v29  ;;  %8742 = vmatmul.bf16.vlgmr.msra.gmra.mxu3 %v23782_v29  ;;  %v16139_v14 = vor.u32 %v18573_v20, %v16138_v5  ;;  %v16143_v29 = vor.u32 %v18569_v56, %v16140_v55  ;;  %v16108_v49 = vld [vmem:[%s26487_s5 + $0x728] sm:$0xf0]  ;;  %v18552_v56 = vld [vmem:[%s26487_s5 + $0x6c4] sm:$0xf]  ;;  %v7636_v57 = vpop.f32.mrf.mxu2 }
 0x7bf   :  { %v16111_v20 = vor.u32 %v18561_v43, %v16108_v49  ;;  %v16068_v55 = vld [vmem:[%s26487_s5 + $0x6e0] sm:$0xf0]  ;;  %v18548_v43 = vld [vmem:[%s26487_s5 + $0x69c] sm:$0xf0] }
 0x7c0   :  { %9159 = vmatpush.bf16.msra.mxu1 %v16163_v48  ;;  %9172 = vmatpush.bf16.msra.mxu0 %v16167_v46  ;;  %v7721_v48 = vsel %vm7720_vm5, %v7610_v13, %v7713_v12  ;;  %v18565_v46 = vld [vmem:[%s26487_s5 + $0x724] sm:$0xf0]  ;;  %v18553_v12 = vld [vmem:[%s26487_s5 + $0x6cc] sm:$0xf] }
 0x7c1   :  { %9185 = vmatpush.bf16.msrb.mxu2 %v16171_v4  ;;  %9198 = vmatpush.bf16.msrb.mxu3 %v16175_v54  ;;  %v16099_v4 = vor.u32 %v18564_v16, %v16098_v37  ;;  %v16103_v54 = vor.u32 %v18560_v34, %v16100_v36  ;;  %v16107_v5 = vor.u32 %v18565_v46, %v16106_v31  ;;  %v16074_v13 = vld [vmem:[%s26487_s5 + $0x6c8] sm:$0xf]  ;;  %v16076_v37 = vld [vmem:[%s26487_s5 + $0x6e8] sm:$0xf0]  ;;  %v7714_v16 = vrot.slane %v7636_v57, 6  ;;  %v7625_v34 = vpop.f32.mrf.mxu0 }
 0x7c2   :  { %v16067_v36 = vor.u32 %v18556_v18, %v16066_v41  ;;  %v16071_v31 = vor.u32 %v18552_v56, %v16068_v55  ;;  %v16034_v46 = vld [vmem:[%s26487_s5 + $0x680] sm:$0xf]  ;;  %v16042_v41 = vld [vmem:[%s26487_s5 + $0x688] sm:$0xf]  ;;  %v16044_v56 = vld [vmem:[%s26487_s5 + $0x6a8] sm:$0xf0] }
 0x7c3   :  { %v16035_v55 = vor.u32 %v18548_v43, %v16034_v46  ;;  %v18537_v46 = vld [vmem:[%s26487_s5 + $0x64c] sm:$0xf] }
 0x7c4   :  { %9160 = vmatpush.bf16.msra.mxu1 %v16131_v21  ;;  %9173 = vmatpush.bf16.msra.mxu0 %v16135_v27  ;;  %v7649_v21 = vpop.f32.mrf.mxu3  ;;  %v18557_v27 = vld [vmem:[%s26487_s5 + $0x6e4] sm:$0xf0]  ;;  %v16012_v43 = vld [vmem:[%s26487_s5 + $0x668] sm:$0xf0] }
 0x7c5   :  { %9186 = vmatpush.bf16.msrb.mxu2 %v16139_v14  ;;  %9199 = vmatpush.bf16.msrb.mxu3 %v16143_v29  ;;  %v7715_v14 = vrot.slane %v7649_v21, 5  ;;  %v7612_v29 = vpop.f32.mrf.mxu1  ;;  %v16075_v57 = vor.u32 %v18557_v27, %v16074_v13  ;;  %v16079_v21 = vor.u32 %v18553_v12, %v16076_v37  ;;  %v18540_v27 = vld [vmem:[%s26487_s5 + $0x65c] sm:$0xf0]  ;;  %v16015_v53 = vor.u32 %v18537_v46, %v16012_v43 }
 0x7c6   :  { %v16010_v29 = vld [vmem:[%s26487_s5 + $0x648] sm:$0xf]  ;;  %v7638_v34 = vpop.f32.mrf.mxu2 }
 0x7c7   :  { %v7723_v49 = vsel %vm7722_vm6, %v7714_v16, %v7715_v14  ;;  %v18536_v16 = vld [vmem:[%s26487_s5 + $0x644] sm:$0xf] }
 0x7c8   :  { %9161 = vmatpush.bf16.msra.mxu1 %v16099_v4  ;;  %9174 = vmatpush.bf16.msra.mxu0 %v16103_v54  ;;  %v18544_v4 = vld [vmem:[%s26487_s5 + $0x684] sm:$0xf]  ;;  %v24082_v18 = vsel %vm7724_vm7, %v7721_v48, %v7723_v49  ;;  %v16002_v48 = vld [vmem:[%s26487_s5 + $0x640] sm:$0xf] }
 0x7c9   :  { %9187 = vmatpush.bf16.msrb.mxu2 %v16107_v5  ;;  %9200 = vmatpush.bf16.msrb.mxu3 %v16111_v20  ;;  %v16036_v54 = vld [vmem:[%s26487_s5 + $0x6a0] sm:$0xf0]  ;;  %v18549_v5 = vld [vmem:[%s26487_s5 + $0x6a4] sm:$0xf0]  ;;  %v18545_v20 = vld [vmem:[%s26487_s5 + $0x68c] sm:$0xf] }
 0x7ca   :  { %v16039_v13 = vor.u32 %v18544_v4, %v16036_v54  ;;  %v16043_v12 = vor.u32 %v18549_v5, %v16042_v41  ;;  %v16047_v37 = vor.u32 %v18545_v20, %v16044_v56  ;;  %v16004_v14 = vld [vmem:[%s26487_s5 + $0x660] sm:$0xf0]  ;;  %v18532_v4 = vld [vmem:[%s26487_s5 + $0x61c] sm:$0xf0]  ;;  %v16003_v54 = vor.u32 %v18540_v27, %v16002_v48  ;;  %v18529_v48 = vld [vmem:[%s26487_s5 + $0x60c] sm:$0xf] }
 0x7cb   :  { %v16007_v41 = vor.u32 %v18536_v16, %v16004_v14  ;;  %v18528_v56 = vld [vmem:[%s26487_s5 + $0x604] sm:$0xf]  ;;  %v18590_v16 = vld [vmem:[%s26487_s5 + $0x7ec] sm:$0xf0]  ;;  %v18586_v14 = vld [vmem:[%s26487_s5 + $0x7d4] sm:$0xf] }
 0x7cc   :  { %9162 = vmatpush.bf16.msra.mxu1 %v16067_v36  ;;  %9175 = vmatpush.bf16.msra.mxu0 %v16071_v31  ;;  %v7651_v36 = vpop.f32.mrf.mxu3  ;;  %v18541_v31 = vld [vmem:[%s26487_s5 + $0x664] sm:$0xf0]  ;;  %v15972_v34 = vld [vmem:[%s26487_s5 + $0x620] sm:$0xf0] }
 0x7cd   :  { %9188 = vmatpush.bf16.msrb.mxu2 %v16075_v57  ;;  %9201 = vmatpush.bf16.msrb.mxu3 %v16079_v21  ;;  %v7662_v49 = vpop.f32.mrf.mxu1  ;;  %v7675_v57 = vpop.f32.mrf.mxu0  ;;  %v15970_v21 = vld [vmem:[%s26487_s5 + $0x600] sm:$0xf]  ;;  %v16011_v36 = vor.u32 %v18541_v31, %v16010_v29  ;;  %v16212_v29 = vld [vmem:[%s26487_s5 + $0x7f0] sm:$0xf0]  ;;  %v16218_v31 = vld [vmem:[%s26487_s5 + $0x7d8] sm:$0xf]  ;;  %v15975_v43 = vor.u32 %v18528_v56, %v15972_v34 }
 0x7ce   :  { %v7716_v5 = vrot.slane %v7662_v49, 4  ;;  %v7717_v20 = vrot.slane %v7675_v57, 3  ;;  %v15971_v46 = vor.u32 %v18532_v4, %v15970_v21  ;;  %v18591_v57 = vld [vmem:[%s26487_s5 + $0x7f4] sm:$0xf0]  ;;  %v16215_v4 = vor.u32 %v18586_v14, %v16212_v29  ;;  %v16178_v56 = vld [vmem:[%s26487_s5 + $0x790] sm:$0xf] }
 0x7cf   :  { %v18582_v34 = vld [vmem:[%s26487_s5 + $0x7ac] sm:$0xf0]  ;;  %v16186_v14 = vld [vmem:[%s26487_s5 + $0x798] sm:$0xf] }
 0x7d0   :  { %9163 = vmatpush.bf16.msra.mxu1 %v16035_v55  ;;  %9176 = vmatpush.bf16.msra.mxu0 %v16039_v13  ;;  %v15978_v55 = vld [vmem:[%s26487_s5 + $0x608] sm:$0xf]  ;;  %v7727_v27 = vsel %vm7726_vm8, %v7716_v5, %v7717_v20  ;;  %v18587_v5 = vld [vmem:[%s26487_s5 + $0x7dc] sm:$0xf]  ;;  %v18583_v29 = vld [vmem:[%s26487_s5 + $0x7b4] sm:$0xf0] }
 0x7d1   :  { %9189 = vmatpush.bf16.msrb.mxu2 %v16043_v12  ;;  %9202 = vmatpush.bf16.msrb.mxu3 %v16047_v37  ;;  %v18533_v13 = vld [vmem:[%s26487_s5 + $0x624] sm:$0xf0]  ;;  %v15980_v12 = vld [vmem:[%s26487_s5 + $0x628] sm:$0xf0]  ;;  %v16210_v37 = vld [vmem:[%s26487_s5 + $0x7d0] sm:$0xf] }
 0x7d2   :  { %v15979_v49 = vor.u32 %v18533_v13, %v15978_v55  ;;  %v16220_v20 = vld [vmem:[%s26487_s5 + $0x7f8] sm:$0xf0]  ;;  %v15983_v26 = vor.u32 %v18529_v48, %v15980_v12  ;;  %v16211_v21 = vor.u32 %v18590_v16, %v16210_v37  ;;  %v16180_v16 = vld [vmem:[%s26487_s5 + $0x7b0] sm:$0xf0] }
 0x7d3   :  { %v16223_v55 = vor.u32 %v18587_v5, %v16220_v20  ;;  %v16179_v20 = vor.u32 %v18582_v34, %v16178_v56  ;;  %v16148_v56 = vld [vmem:[%s26487_s5 + $0x770] sm:$0xf0]  ;;  %v16154_v34 = vld [vmem:[%s26487_s5 + $0x758] sm:$0xf] }
 0x7d4   :  { %9164 = vmatpush.bf16.msra.mxu1 %v16003_v54  ;;  %9177 = vmatpush.bf16.msra.mxu0 %v16007_v41  ;;  %v7688_v54 = vpop.f32.mrf.mxu2  ;;  %v7701_v41 = vpop.f32.mrf.mxu3 }
 0x7d5   :  { %9190 = vmatpush.bf16.msrb.mxu2 %v16011_v36  ;;  %9203 = vmatpush.bf16.msrb.mxu3 %v16015_v53  ;;  %v18578_v53 = vld [vmem:[%s26487_s5 + $0x794] sm:$0xf]  ;;  %v16219_v36 = vor.u32 %v18591_v57, %v16218_v31  ;;  %v7718_v13 = vrot.slane %v7688_v54, 2  ;;  %v7719_v48 = vrot.slane %v7701_v41, 1  ;;  %v7664_v12 = vpop.f32.mrf.mxu1  ;;  %v7677_v37 = vpop.f32.mrf.mxu0  ;;  %v18579_v31 = vld [vmem:[%s26487_s5 + $0x79c] sm:$0xf] }
 0x7d6   :  { %v16188_v57 = vld [vmem:[%s26487_s5 + $0x7b8] sm:$0xf0]  ;;  %v16183_v54 = vor.u32 %v18578_v53, %v16180_v16  ;;  %v16146_v41 = vld [vmem:[%s26487_s5 + $0x750] sm:$0xf] }
 0x7d7   :  { %v7729_v5 = vsel %vm7728_vm9, %v7718_v13, %v7719_v48  ;;  %v18571_v53 = vld [vmem:[%s26487_s5 + $0x75c] sm:$0xf]  ;;  %v16114_v37 = vld [vmem:[%s26487_s5 + $0x710] sm:$0xf] }
 0x7d8   :  { %9165 = vmatpush.bf16.msra.mxu1 %v15971_v46  ;;  %9178 = vmatpush.bf16.msra.mxu0 %v15975_v43  ;;  %v7731_v46 = vsel %vm7730_vm10, %v7727_v27, %v7729_v5  ;;  %v24193_v43 = vrot.slane %v23387_v8, 1  ;;  %v16187_v27 = vor.u32 %v18583_v29, %v16186_v14  ;;  %v18566_v16 = vld [vmem:[%s26487_s5 + $0x72c] sm:$0xf0]  ;;  %v16122_v5 = vld [vmem:[%s26487_s5 + $0x718] sm:$0xf] }
 0x7d9   :  { %9191 = vmatpush.bf16.msrb.mxu2 %v15979_v49  ;;  %9204 = vmatpush.bf16.msrb.mxu3 %v15983_v26  ;;  %v18574_v49 = vld [vmem:[%s26487_s5 + $0x76c] sm:$0xf0]  ;;  %v24203_v26 = vsel %vm7732_vm11, %v24082_v18, %v7731_v46  ;;  %v18575_v18 = vld [vmem:[%s26487_s5 + $0x774] sm:$0xf0] }
 0x7da   :  { %v16155_v14 = vor.u32 %v18575_v18, %v16154_v34  ;;  %v18567_v46 = vld [vmem:[%s26487_s5 + $0x734] sm:$0xf0]  ;;  %v18558_v34 = vld [vmem:[%s26487_s5 + $0x6ec] sm:$0xf0] }
 0x7db   :  { %9166 = vmatmul.bf16.vlgmr.msra.gmra.mxu1 %v24193_v43  ;;  %9179 = vmatmul.bf16.vlgmr.msra.gmra.mxu0 %v24193_v43  ;;  %v16123_v18 = vor.u32 %v18567_v46, %v16122_v5 }
 0x7dc   :  { %9210 = vmatpush.bf16.msrb.mxu1 %v16211_v21  ;;  %9223 = vmatpush.bf16.msrb.mxu0 %v16215_v4  ;;  %v16191_v21 = vor.u32 %v18579_v31, %v16188_v57  ;;  %v18570_v4 = vld [vmem:[%s26487_s5 + $0x754] sm:$0xf]  ;;  %v7690_v48 = vpop.f32.mrf.mxu2  ;;  %v7703_v12 = vpop.f32.mrf.mxu3 }
 0x7dd   :  { %9236 = vmatpush.bf16.msra.mxu2 %v16219_v36  ;;  %9249 = vmatpush.bf16.msra.mxu3 %v16223_v55  ;;  %v16156_v36 = vld [vmem:[%s26487_s5 + $0x778] sm:$0xf0]  ;;  %v16147_v55 = vor.u32 %v18574_v49, %v16146_v41  ;;  %v16151_v13 = vor.u32 %v18570_v4, %v16148_v56  ;;  %v18562_v31 = vld [vmem:[%s26487_s5 + $0x714] sm:$0xf]  ;;  %v8137_v41 = vpop.f32.mrf.mxu1  ;;  %v8150_v49 = vpop.f32.mrf.mxu0  ;;  %v16082_v56 = vld [vmem:[%s26487_s5 + $0x6d0] sm:$0xf] }
 0x7de   :  { %9192 = vmatmul.bf16.vlgmr.msrb.gmra.mxu2 %v24193_v43  ;;  %9205 = vmatmul.bf16.vlgmr.msrb.gmra.mxu3 %v24193_v43  ;;  %v16159_v29 = vor.u32 %v18571_v53, %v16156_v36  ;;  %v16116_v57 = vld [vmem:[%s26487_s5 + $0x730] sm:$0xf0]  ;;  %v18559_v12 = vld [vmem:[%s26487_s5 + $0x6f4] sm:$0xf0] }
 0x7df   :  { %v16119_v4 = vor.u32 %v18562_v31, %v16116_v57  ;;  %v18554_v36 = vld [vmem:[%s26487_s5 + $0x6d4] sm:$0xf]  ;;  %v16050_v31 = vld [vmem:[%s26487_s5 + $0x690] sm:$0xf] }
 0x7e0   :  { %9211 = vmatpush.bf16.msrb.mxu1 %v16179_v20  ;;  %9224 = vmatpush.bf16.msrb.mxu0 %v16183_v54  ;;  %v18563_v20 = vld [vmem:[%s26487_s5 + $0x71c] sm:$0xf]  ;;  %v18550_v57 = vld [vmem:[%s26487_s5 + $0x6ac] sm:$0xf0] }
 0x7e1   :  { %9237 = vmatpush.bf16.msra.mxu2 %v16187_v27  ;;  %9250 = vmatpush.bf16.msra.mxu3 %v16191_v21  ;;  %v16124_v54 = vld [vmem:[%s26487_s5 + $0x738] sm:$0xf0]  ;;  %v8240_v27 = vrot.slane %v8150_v49, 7  ;;  %v16115_v21 = vor.u32 %v18566_v16, %v16114_v37 }
 0x7e2   :  { %v16127_v53 = vor.u32 %v18563_v20, %v16124_v54  ;;  %v18555_v37 = vld [vmem:[%s26487_s5 + $0x6dc] sm:$0xf]  ;;  %v18546_v20 = vld [vmem:[%s26487_s5 + $0x694] sm:$0xf] }
 0x7e3   :  { %v8247_v48 = vsel %vm7720_vm5, %v8137_v41, %v8240_v27  ;;  %v16092_v16 = vld [vmem:[%s26487_s5 + $0x6f8] sm:$0xf0]  ;;  %v16052_v54 = vld [vmem:[%s26487_s5 + $0x6b0] sm:$0xf0]  ;;  %v16058_v41 = vld [vmem:[%s26487_s5 + $0x698] sm:$0xf] }
 0x7e4   :  { %9212 = vmatpush.bf16.msrb.mxu1 %v16147_v55  ;;  %9225 = vmatpush.bf16.msrb.mxu0 %v16151_v13  ;;  %v16084_v55 = vld [vmem:[%s26487_s5 + $0x6f0] sm:$0xf0]  ;;  %v16090_v13 = vld [vmem:[%s26487_s5 + $0x6d8] sm:$0xf]  ;;  %v16095_v46 = vor.u32 %v18555_v37, %v16092_v16  ;;  %v8163_v49 = vpop.f32.mrf.mxu2  ;;  %v8176_v27 = vpop.f32.mrf.mxu3  ;;  %v18542_v37 = vld [vmem:[%s26487_s5 + $0x66c] sm:$0xf0] }
 0x7e5   :  { %9238 = vmatpush.bf16.msra.mxu2 %v16155_v14  ;;  %9251 = vmatpush.bf16.msra.mxu3 %v16159_v29  ;;  %v16083_v14 = vor.u32 %v18558_v34, %v16082_v56  ;;  %v16087_v29 = vor.u32 %v18554_v36, %v16084_v55  ;;  %v16091_v5 = vor.u32 %v18559_v12, %v16090_v13  ;;  %v16060_v56 = vld [vmem:[%s26487_s5 + $0x6b8] sm:$0xf0]  ;;  %v8241_v34 = vrot.slane %v8163_v49, 6  ;;  %v8152_v36 = vpop.f32.mrf.mxu0  ;;  %v16018_v12 = vld [vmem:[%s26487_s5 + $0x650] sm:$0xf] }
 0x7e6   :  { %v16051_v55 = vor.u32 %v18550_v57, %v16050_v31  ;;  %v16055_v13 = vor.u32 %v18546_v20, %v16052_v54  ;;  %v16026_v31 = vld [vmem:[%s26487_s5 + $0x658] sm:$0xf]  ;;  %v16028_v20 = vld [vmem:[%s26487_s5 + $0x678] sm:$0xf0]  ;;  %v15986_v54 = vld [vmem:[%s26487_s5 + $0x610] sm:$0xf] }
 0x7e7   :  { %v18535_v36 = vld [vmem:[%s26487_s5 + $0x634] sm:$0xf0] }
 0x7e8   :  { %9213 = vmatpush.bf16.msrb.mxu1 %v16115_v21  ;;  %9226 = vmatpush.bf16.msrb.mxu0 %v16119_v4  ;;  %v18551_v21 = vld [vmem:[%s26487_s5 + $0x6b4] sm:$0xf0]  ;;  %v18547_v4 = vld [vmem:[%s26487_s5 + $0x69c] sm:$0xf] }
 0x7e9   :  { %9239 = vmatpush.bf16.msra.mxu2 %v16123_v18  ;;  %9252 = vmatpush.bf16.msra.mxu3 %v16127_v53  ;;  %v8242_v18 = vrot.slane %v8176_v27, 5  ;;  %v8139_v53 = vpop.f32.mrf.mxu1  ;;  %v16059_v49 = vor.u32 %v18551_v21, %v16058_v41  ;;  %v16063_v27 = vor.u32 %v18547_v4, %v16060_v56  ;;  %v18534_v21 = vld [vmem:[%s26487_s5 + $0x62c] sm:$0xf0]  ;;  %v18530_v4 = vld [vmem:[%s26487_s5 + $0x614] sm:$0xf] }
 0x7ea   :  { %v15988_v56 = vld [vmem:[%s26487_s5 + $0x630] sm:$0xf0]  ;;  %v15994_v53 = vld [vmem:[%s26487_s5 + $0x618] sm:$0xf] }
 0x7eb   :  { %v8248_v16 = vsel %vm7722_vm6, %v8241_v34, %v8242_v18 }
 0x7ec   :  { %9214 = vmatpush.bf16.msrb.mxu1 %v16083_v14  ;;  %9227 = vmatpush.bf16.msrb.mxu0 %v16087_v29  ;;  %v18538_v14 = vld [vmem:[%s26487_s5 + $0x654] sm:$0xf]  ;;  %v24317_v57 = vsel %vm7724_vm7, %v8247_v48, %v8248_v16  ;;  %v16019_v48 = vor.u32 %v18542_v37, %v16018_v12  ;;  %v8178_v12 = vpop.f32.mrf.mxu3  ;;  %v15996_v37 = vld [vmem:[%s26487_s5 + $0x638] sm:$0xf0]  ;;  %v16514_v16 = vld [vmem:[%s26487_s5 + $0x9c0] sm:$0xf] }
 0x7ed   :  { %9240 = vmatpush.bf16.msra.mxu2 %v16091_v5  ;;  %9253 = vmatpush.bf16.msra.mxu3 %v16095_v46  ;;  %v16020_v29 = vld [vmem:[%s26487_s5 + $0x670] sm:$0xf0]  ;;  %v18543_v5 = vld [vmem:[%s26487_s5 + $0x674] sm:$0xf0]  ;;  %v18539_v46 = vld [vmem:[%s26487_s5 + $0x65c] sm:$0xf]  ;;  %v15995_v12 = vor.u32 %v18535_v36, %v15994_v53 }
 0x7ee   :  { %v16023_v41 = vor.u32 %v18538_v14, %v16020_v29  ;;  %v16027_v34 = vor.u32 %v18543_v5, %v16026_v31  ;;  %v16031_v18 = vor.u32 %v18539_v46, %v16028_v20  ;;  %v16516_v14 = vld [vmem:[%s26487_s5 + $0x9e0] sm:$0xf0]  ;;  %v16522_v29 = vld [vmem:[%s26487_s5 + $0x9c8] sm:$0xf]  ;;  %v15987_v31 = vor.u32 %v18534_v21, %v15986_v54  ;;  %v18649_v20 = vld [vmem:[%s26487_s5 + $0x9cc] sm:$0xf] }
 0x7ef   :  { %v15991_v5 = vor.u32 %v18530_v4, %v15988_v56  ;;  %v18653_v46 = vld [vmem:[%s26487_s5 + $0x9e4] sm:$0xf0]  ;;  %v16482_v54 = vld [vmem:[%s26487_s5 + $0x980] sm:$0xf]  ;;  %v18641_v36 = vld [vmem:[%s26487_s5 + $0x98c] sm:$0xf] }
 0x7f0   :  { %9215 = vmatpush.bf16.msrb.mxu1 %v16051_v55  ;;  %9228 = vmatpush.bf16.msrb.mxu0 %v16055_v13  ;;  %v18531_v55 = vld [vmem:[%s26487_s5 + $0x61c] sm:$0xf]  ;;  %v8165_v13 = vpop.f32.mrf.mxu2  ;;  %v18644_v21 = vld [vmem:[%s26487_s5 + $0x99c] sm:$0xf0]  ;;  %v16523_v4 = vor.u32 %v18653_v46, %v16522_v29  ;;  %v18645_v53 = vld [vmem:[%s26487_s5 + $0x9a4] sm:$0xf0] }
 0x7f1   :  { %9241 = vmatpush.bf16.msra.mxu2 %v16059_v49  ;;  %9254 = vmatpush.bf16.msra.mxu3 %v16063_v27  ;;  %v18652_v49 = vld [vmem:[%s26487_s5 + $0x9dc] sm:$0xf0]  ;;  %v18648_v27 = vld [vmem:[%s26487_s5 + $0x9c4] sm:$0xf]  ;;  %v16524_v13 = vld [vmem:[%s26487_s5 + $0x9e8] sm:$0xf0]  ;;  %v15999_v44 = vor.u32 %v18531_v55, %v15996_v37  ;;  %v16483_v37 = vor.u32 %v18644_v21, %v16482_v54 }
 0x7f2   :  { %v16527_v56 = vor.u32 %v18649_v20, %v16524_v13  ;;  %v16492_v55 = vld [vmem:[%s26487_s5 + $0x9a8] sm:$0xf0] }
 0x7f3   :  { %v16495_v29 = vor.u32 %v18641_v36, %v16492_v55  ;;  %v18633_v46 = vld [vmem:[%s26487_s5 + $0x94c] sm:$0xf] }
 0x7f4   :  { %9216 = vmatpush.bf16.msrb.mxu1 %v16019_v48  ;;  %9229 = vmatpush.bf16.msrb.mxu0 %v16023_v41  ;;  %v16515_v48 = vor.u32 %v18652_v49, %v16514_v16  ;;  %v16519_v41 = vor.u32 %v18648_v27, %v16516_v14  ;;  %v16450_v49 = vld [vmem:[%s26487_s5 + $0x940] sm:$0xf]  ;;  %v16460_v20 = vld [vmem:[%s26487_s5 + $0x968] sm:$0xf0] }
 0x7f5   :  { %9242 = vmatpush.bf16.msra.mxu2 %v16027_v34  ;;  %9255 = vmatpush.bf16.msra.mxu3 %v16031_v18  ;;  %v16484_v34 = vld [vmem:[%s26487_s5 + $0x9a0] sm:$0xf0]  ;;  %v16490_v18 = vld [vmem:[%s26487_s5 + $0x988] sm:$0xf]  ;;  %v18636_v27 = vld [vmem:[%s26487_s5 + $0x95c] sm:$0xf0]  ;;  %v16463_v21 = vor.u32 %v18633_v46, %v16460_v20 }
 0x7f6   :  { %v16487_v16 = vor.u32 %v18640_v11, %v16484_v34  ;;  %v16491_v14 = vor.u32 %v18645_v53, %v16490_v18  ;;  %v16452_v11 = vld [vmem:[%s26487_s5 + $0x960] sm:$0xf0]  ;;  %v16451_v13 = vor.u32 %v18636_v27, %v16450_v49  ;;  %v18629_v34 = vld [vmem:[%s26487_s5 + $0x924] sm:$0xf0]  ;;  %v18625_v18 = vld [vmem:[%s26487_s5 + $0x90c] sm:$0xf] }
 0x7f7   :  { %v16428_v53 = vld [vmem:[%s26487_s5 + $0x928] sm:$0xf0]  ;;  %v16394_v46 = vld [vmem:[%s26487_s5 + $0x8c8] sm:$0xf] }
 0x7f8   :  { %9217 = vmatpush.bf16.msrb.mxu1 %v15987_v31  ;;  %9230 = vmatpush.bf16.msrb.mxu0 %v15991_v5  ;;  %v16458_v31 = vld [vmem:[%s26487_s5 + $0x948] sm:$0xf]  ;;  %v8189_v36 = vpop.f32.mrf.mxu1  ;;  %v8202_v55 = vpop.f32.mrf.mxu0 }
 0x7f9   :  { %9243 = vmatpush.bf16.msra.mxu2 %v15995_v12  ;;  %9256 = vmatpush.bf16.msra.mxu3 %v15999_v44  ;;  %v18632_v44 = vld [vmem:[%s26487_s5 + $0x944] sm:$0xf]  ;;  %v18637_v5 = vld [vmem:[%s26487_s5 + $0x964] sm:$0xf0] }
 0x7fa   :  { %v16455_v12 = vor.u32 %v18632_v44, %v16452_v11  ;;  %v16459_v54 = vor.u32 %v18637_v5, %v16458_v31  ;;  %v16431_v11 = vor.u32 %v18625_v18, %v16428_v53  ;;  %v18616_v31 = vld [vmem:[%s26487_s5 + $0x8c4] sm:$0xf]  ;;  %v16362_v53 = vld [vmem:[%s26487_s5 + $0x888] sm:$0xf] }
 0x7fb   :  { %9218 = vmatmul.bf16.vlgmr.msrb.gmra.mxu1 %v24193_v43  ;;  %9231 = vmatmul.bf16.vlgmr.msrb.gmra.mxu0 %v24193_v43  ;;  %v16388_v5 = vld [vmem:[%s26487_s5 + $0x8e0] sm:$0xf0] }
 0x7fc   :  { %9673 = vmatpush.bf16.msra.mxu1 %v16515_v48  ;;  %9686 = vmatpush.bf16.msra.mxu0 %v16519_v41  ;;  %v16418_v48 = vld [vmem:[%s26487_s5 + $0x900] sm:$0xf]  ;;  %v16356_v18 = vld [vmem:[%s26487_s5 + $0x8a0] sm:$0xf0] }
 0x7fd   :  { %9699 = vmatpush.bf16.msrb.mxu2 %v16523_v4  ;;  %9712 = vmatpush.bf16.msrb.mxu3 %v16527_v56  ;;  %v18628_v41 = vld [vmem:[%s26487_s5 + $0x91c] sm:$0xf0]  ;;  %v16420_v4 = vld [vmem:[%s26487_s5 + $0x920] sm:$0xf0]  ;;  %v16426_v56 = vld [vmem:[%s26487_s5 + $0x908] sm:$0xf] }
 0x7fe   :  { %9244 = vmatmul.bf16.vlgmr.msra.gmra.mxu2 %v24193_v43  ;;  %9257 = vmatmul.bf16.vlgmr.msra.gmra.mxu3 %v24193_v43  ;;  %v18624_v43 = vld [vmem:[%s26487_s5 + $0x904] sm:$0xf]  ;;  %v16419_v49 = vor.u32 %v18628_v41, %v16418_v48  ;;  %v16427_v44 = vor.u32 %v18629_v34, %v16426_v56  ;;  %v16396_v48 = vld [vmem:[%s26487_s5 + $0x8e8] sm:$0xf0] }
 0x7ff   :  { %v16423_v27 = vor.u32 %v18624_v43, %v16420_v4  ;;  %v18612_v43 = vld [vmem:[%s26487_s5 + $0x89c] sm:$0xf0]  ;;  %v18608_v34 = vld [vmem:[%s26487_s5 + $0x884] sm:$0xf] }
 0x800   :  { %9674 = vmatpush.bf16.msra.mxu1 %v16483_v37  ;;  %9687 = vmatpush.bf16.msra.mxu0 %v16487_v16  ;;  %v8243_v37 = vrot.slane %v8189_v36, 4  ;;  %v8244_v16 = vrot.slane %v8202_v55, 3 }
 0x801   :  { %9700 = vmatpush.bf16.msrb.mxu2 %v16491_v14  ;;  %9713 = vmatpush.bf16.msrb.mxu3 %v16495_v29  ;;  %v16386_v14 = vld [vmem:[%s26487_s5 + $0x8c0] sm:$0xf]  ;;  %v8215_v36 = vpop.f32.mrf.mxu2  ;;  %v8228_v55 = vpop.f32.mrf.mxu3 }
 0x802   :  { %v18620_v29 = vld [vmem:[%s26487_s5 + $0x8dc] sm:$0xf0]  ;;  %v8250_v20 = vsel %vm7726_vm8, %v8243_v37, %v8244_v16  ;;  %v18613_v37 = vld [vmem:[%s26487_s5 + $0x8a4] sm:$0xf0]  ;;  %v18609_v16 = vld [vmem:[%s26487_s5 + $0x88c] sm:$0xf] }
 0x803   :  { %v16387_v41 = vor.u32 %v18620_v29, %v16386_v14  ;;  %v8245_v14 = vrot.slane %v8215_v36, 2  ;;  %v8246_v29 = vrot.slane %v8228_v55, 1 }
 0x804   :  { %9675 = vmatpush.bf16.msra.mxu1 %v16451_v13  ;;  %9688 = vmatpush.bf16.msra.mxu0 %v16455_v12  ;;  %v18621_v13 = vld [vmem:[%s26487_s5 + $0x8e4] sm:$0xf0]  ;;  %v18617_v12 = vld [vmem:[%s26487_s5 + $0x8cc] sm:$0xf] }
 0x805   :  { %9701 = vmatpush.bf16.msrb.mxu2 %v16459_v54  ;;  %9714 = vmatpush.bf16.msrb.mxu3 %v16463_v21  ;;  %v16391_v54 = vor.u32 %v18616_v31, %v16388_v5  ;;  %v16354_v21 = vld [vmem:[%s26487_s5 + $0x880] sm:$0xf]  ;;  %v16395_v4 = vor.u32 %v18621_v13, %v16394_v46  ;;  %v16399_v56 = vor.u32 %v18617_v12, %v16396_v48 }
 0x806   :  { %v16355_v31 = vor.u32 %v18612_v43, %v16354_v21  ;;  %v16359_v5 = vor.u32 %v18608_v34, %v16356_v18  ;;  %v16322_v46 = vld [vmem:[%s26487_s5 + $0x840] sm:$0xf]  ;;  %v8251_v12 = vsel %vm7728_vm9, %v8245_v14, %v8246_v29  ;;  %v16363_v48 = vor.u32 %v18613_v37, %v16362_v53  ;;  %v16330_v21 = vld [vmem:[%s26487_s5 + $0x848] sm:$0xf]  ;;  %v18601_v34 = vld [vmem:[%s26487_s5 + $0x84c] sm:$0xf] }
 0x807   :  { %v18604_v13 = vld [vmem:[%s26487_s5 + $0x85c] sm:$0xf0]  ;;  %v16332_v18 = vld [vmem:[%s26487_s5 + $0x868] sm:$0xf0]  ;;  %v16298_v29 = vld [vmem:[%s26487_s5 + $0x808] sm:$0xf] }
 0x808   :  { %9676 = vmatpush.bf16.msra.mxu1 %v16419_v49  ;;  %9689 = vmatpush.bf16.msra.mxu0 %v16423_v27  ;;  %v16364_v49 = vld [vmem:[%s26487_s5 + $0x8a8] sm:$0xf0]  ;;  %v7216_v27 = vld [vmem:[%s26488_s6] sm:$0xff]  ;;  %v16323_v55 = vor.u32 %v18604_v13, %v16322_v46  ;;  %v16335_v14 = vor.u32 %v18601_v34, %v16332_v18  ;;  %v16530_v13 = vld [vmem:[%s26487_s5 + $0x9d0] sm:$0xf] }
 0x809   :  { %9702 = vmatpush.bf16.msrb.mxu2 %v16427_v44  ;;  %9715 = vmatpush.bf16.msrb.mxu3 %v16431_v11  ;;  %v8191_v44 = vpop.f32.mrf.mxu1  ;;  %v8204_v11 = vpop.f32.mrf.mxu0  ;;  %v16367_v36 = vor.u32 %v18609_v16, %v16364_v49  ;;  %v7735_v43 = vadd.f32 %v24203_v26, %v7216_v27  ;;  %v16290_v26 = vld [vmem:[%s26487_s5 + $0x800] sm:$0xf]  ;;  %v18592_v49 = vld [vmem:[%s26487_s5 + $0x804] sm:$0xf]  ;;  %v16300_v46 = vld [vmem:[%s26487_s5 + $0x828] sm:$0xf0] }
 0x80a   :  { %v18596_v16 = vld [vmem:[%s26487_s5 + $0x81c] sm:$0xf0]  ;;  %v18597_v44 = vld [vmem:[%s26487_s5 + $0x824] sm:$0xf0]  ;;  %v18593_v11 = vld [vmem:[%s26487_s5 + $0x80c] sm:$0xf] }
 0x80b   :  { %v16299_v34 = vor.u32 %v18597_v44, %v16298_v29  ;;  %v16303_v18 = vor.u32 %v18593_v11, %v16300_v46  ;;  %v18647_v29 = vld [vmem:[%s26487_s5 + $0x9b4] sm:$0xf0]  ;;  %v18643_v44 = vld [vmem:[%s26487_s5 + $0x99c] sm:$0xf] }
 0x80c   :  { %9677 = vmatpush.bf16.msra.mxu1 %v16387_v41  ;;  %9690 = vmatpush.bf16.msra.mxu0 %v16391_v54  ;;  %v18600_v41 = vld [vmem:[%s26487_s5 + $0x844] sm:$0xf]  ;;  %v16508_v11 = vld [vmem:[%s26487_s5 + $0x9b8] sm:$0xf0] }
 0x80d   :  { %9703 = vmatpush.bf16.msrb.mxu2 %v16395_v4  ;;  %9716 = vmatpush.bf16.msrb.mxu3 %v16399_v56  ;;  %v16324_v54 = vld [vmem:[%s26487_s5 + $0x860] sm:$0xf0]  ;;  %v8252_v4 = vsel %vm7730_vm10, %v8250_v20, %v8251_v12  ;;  %v18605_v56 = vld [vmem:[%s26487_s5 + $0x864] sm:$0xf0]  ;;  %v18654_v12 = vld [vmem:[%s26487_s5 + $0x9ec] sm:$0xf0] }
 0x80e   :  { %v8253_v53 = vsel %vm7732_vm11, %v24317_v57, %v8252_v4  ;;  %v16327_v37 = vor.u32 %v18600_v41, %v16324_v54  ;;  %v16292_v57 = vld [vmem:[%s26487_s5 + $0x820] sm:$0xf0]  ;;  %v16331_v27 = vor.u32 %v18605_v56, %v16330_v21  ;;  %v16538_v41 = vld [vmem:[%s26487_s5 + $0x9d8] sm:$0xf]  ;;  %v16291_v54 = vor.u32 %v18596_v16, %v16290_v26  ;;  %v18651_v4 = vld [vmem:[%s26487_s5 + $0x9dc] sm:$0xf] }
 0x80f   :  { %v24536_v20 = vadd.f32 %v8253_v53, %v7735_v43  ;;  %v16295_v21 = vor.u32 %v18592_v49, %v16292_v57  ;;  %v18655_v43 = vld [vmem:[%s26487_s5 + $0x9f4] sm:$0xf0]  ;;  %v16540_v56 = vld [vmem:[%s26487_s5 + $0x9f8] sm:$0xf0]  ;;  %v16531_v53 = vor.u32 %v18654_v12, %v16530_v13  ;;  %v16498_v26 = vld [vmem:[%s26487_s5 + $0x990] sm:$0xf] }
 0x810   :  { %9678 = vmatpush.bf16.msra.mxu1 %v16355_v31  ;;  %9691 = vmatpush.bf16.msra.mxu0 %v16359_v5  ;;  %v8217_v31 = vpop.f32.mrf.mxu2  ;;  %v8230_v5 = vpop.f32.mrf.mxu3  ;;  %v16539_v16 = vor.u32 %v18655_v43, %v16538_v41  ;;  %v16543_v49 = vor.u32 %v18651_v4, %v16540_v56  ;;  %v18642_v57 = vld [vmem:[%s26487_s5 + $0x994] sm:$0xf]  ;;  %v16466_v13 = vld [vmem:[%s26487_s5 + $0x950] sm:$0xf]  ;;  %v18639_v43 = vld [vmem:[%s26487_s5 + $0x974] sm:$0xf0] }
 0x811   :  { %9704 = vmatpush.bf16.msrb.mxu2 %v16363_v48  ;;  %9717 = vmatpush.bf16.msrb.mxu3 %v16367_v36  ;;  %v18650_v48 = vld [vmem:[%s26487_s5 + $0x9d4] sm:$0xf]  ;;  %v24608_v31 = vrot.slane %v23360_v62, 2  ;;  %v18638_v12 = vld [vmem:[%s26487_s5 + $0x96c] sm:$0xf0] }
 0x812   :  { %v16532_v36 = vld [vmem:[%s26487_s5 + $0x9f0] sm:$0xf0]  ;;  %v18635_v4 = vld [vmem:[%s26487_s5 + $0x95c] sm:$0xf] }
 0x813   :  { %v18634_v41 = vld [vmem:[%s26487_s5 + $0x954] sm:$0xf]  ;;  %v16476_v56 = vld [vmem:[%s26487_s5 + $0x978] sm:$0xf0] }
 0x814   :  { %9679 = vmatpush.bf16.msra.mxu1 %v16323_v55  ;;  %9692 = vmatpush.bf16.msra.mxu0 %v16327_v37  ;;  %v16535_v55 = vor.u32 %v18650_v48, %v16532_v36  ;;  %v18646_v37 = vld [vmem:[%s26487_s5 + $0x9ac] sm:$0xf0]  ;;  %v16511_v36 = vor.u32 %v18643_v44, %v16508_v11 }
 0x815   :  { %9705 = vmatpush.bf16.msrb.mxu2 %v16331_v27  ;;  %9718 = vmatpush.bf16.msrb.mxu3 %v16335_v14  ;;  %v16500_v27 = vld [vmem:[%s26487_s5 + $0x9b0] sm:$0xf0]  ;;  %v16506_v14 = vld [vmem:[%s26487_s5 + $0x998] sm:$0xf]  ;;  %v16499_v5 = vor.u32 %v18646_v37, %v16498_v26  ;;  %v16479_v37 = vor.u32 %v18635_v4, %v16476_v56 }
 0x816   :  { %v16503_v46 = vor.u32 %v18642_v57, %v16500_v27  ;;  %v16507_v48 = vor.u32 %v18647_v29, %v16506_v14  ;;  %v16442_v57 = vld [vmem:[%s26487_s5 + $0x918] sm:$0xf]  ;;  %v18627_v14 = vld [vmem:[%s26487_s5 + $0x91c] sm:$0xf] }
 0x817   :  { %v18631_v27 = vld [vmem:[%s26487_s5 + $0x934] sm:$0xf0]  ;;  %v16444_v29 = vld [vmem:[%s26487_s5 + $0x938] sm:$0xf0] }
 0x818   :  { %9680 = vmatpush.bf16.msra.mxu1 %v16291_v54  ;;  %9693 = vmatpush.bf16.msra.mxu0 %v16295_v21  ;;  %v16468_v54 = vld [vmem:[%s26487_s5 + $0x970] sm:$0xf0]  ;;  %v16474_v21 = vld [vmem:[%s26487_s5 + $0x958] sm:$0xf]  ;;  %v8652_v44 = vpop.f32.mrf.mxu1  ;;  %v8665_v11 = vpop.f32.mrf.mxu0 }
 0x819   :  { %9706 = vmatpush.bf16.msrb.mxu2 %v16299_v34  ;;  %9719 = vmatpush.bf16.msrb.mxu3 %v16303_v18  ;;  %v16467_v34 = vor.u32 %v18638_v12, %v16466_v13  ;;  %v16471_v18 = vor.u32 %v18634_v41, %v16468_v54  ;;  %v16475_v26 = vor.u32 %v18639_v43, %v16474_v21  ;;  %v16402_v12 = vld [vmem:[%s26487_s5 + $0x8d0] sm:$0xf]  ;;  %v18618_v54 = vld [vmem:[%s26487_s5 + $0x8d4] sm:$0xf]  ;;  %v16410_v43 = vld [vmem:[%s26487_s5 + $0x8d8] sm:$0xf] }
 0x81a   :  { %v16447_v41 = vor.u32 %v18627_v14, %v16444_v29  ;;  %v16404_v21 = vld [vmem:[%s26487_s5 + $0x8f0] sm:$0xf0]  ;;  %v18623_v56 = vld [vmem:[%s26487_s5 + $0x8f4] sm:$0xf0] }
 0x81b   :  { %9681 = vmatmul.bf16.vlgmr.msra.gmra.mxu1 %v24608_v31  ;;  %9694 = vmatmul.bf16.vlgmr.msra.gmra.mxu0 %v24608_v31  ;;  %v16378_v14 = vld [vmem:[%s26487_s5 + $0x898] sm:$0xf] }
 0x81c   :  { %9725 = vmatpush.bf16.msrb.mxu1 %v16531_v53  ;;  %9738 = vmatpush.bf16.msrb.mxu0 %v16535_v55  ;;  %v16434_v53 = vld [vmem:[%s26487_s5 + $0x910] sm:$0xf] }
 0x81d   :  { %9751 = vmatpush.bf16.msra.mxu2 %v16539_v16  ;;  %9764 = vmatpush.bf16.msra.mxu3 %v16543_v49  ;;  %v18630_v55 = vld [vmem:[%s26487_s5 + $0x92c] sm:$0xf0]  ;;  %v18626_v16 = vld [vmem:[%s26487_s5 + $0x914] sm:$0xf] }
 0x81e   :  { %9707 = vmatmul.bf16.vlgmr.msrb.gmra.mxu2 %v24608_v31  ;;  %9720 = vmatmul.bf16.vlgmr.msrb.gmra.mxu3 %v24608_v31  ;;  %v16436_v49 = vld [vmem:[%s26487_s5 + $0x930] sm:$0xf0] }
 0x81f   :  { %v16439_v13 = vor.u32 %v18626_v16, %v16436_v49  ;;  %v16411_v16 = vor.u32 %v18623_v56, %v16410_v43  ;;  %v18606_v43 = vld [vmem:[%s26487_s5 + $0x86c] sm:$0xf0] }
 0x820   :  { %9726 = vmatpush.bf16.msrb.mxu1 %v16499_v5  ;;  %9739 = vmatpush.bf16.msrb.mxu0 %v16503_v46  ;;  %v8755_v5 = vrot.slane %v8665_v11, 7  ;;  %v16435_v46 = vor.u32 %v18630_v55, %v16434_v53  ;;  %v16407_v55 = vor.u32 %v18618_v54, %v16404_v21  ;;  %v18615_v11 = vld [vmem:[%s26487_s5 + $0x8b4] sm:$0xf0]  ;;  %v16338_v21 = vld [vmem:[%s26487_s5 + $0x850] sm:$0xf] }
 0x821   :  { %9752 = vmatpush.bf16.msra.mxu2 %v16507_v48  ;;  %9765 = vmatpush.bf16.msra.mxu3 %v16511_v36  ;;  %v18622_v48 = vld [vmem:[%s26487_s5 + $0x8ec] sm:$0xf0]  ;;  %v16443_v36 = vor.u32 %v18631_v27, %v16442_v57  ;;  %v18610_v57 = vld [vmem:[%s26487_s5 + $0x894] sm:$0xf]  ;;  %v8678_v29 = vpop.f32.mrf.mxu2 }
 0x822   :  { %v8762_v4 = vsel %vm7720_vm5, %v8652_v44, %v8755_v5  ;;  %v16403_v53 = vor.u32 %v18622_v48, %v16402_v12  ;;  %v16372_v27 = vld [vmem:[%s26487_s5 + $0x8b0] sm:$0xf0]  ;;  %v8691_v44 = vpop.f32.mrf.mxu3  ;;  %v18611_v5 = vld [vmem:[%s26487_s5 + $0x89c] sm:$0xf]  ;;  %v8654_v48 = vpop.f32.mrf.mxu1 }
 0x823   :  { %v8757_v12 = vrot.slane %v8691_v44, 5  ;;  %v16375_v54 = vor.u32 %v18610_v57, %v16372_v27  ;;  %v16348_v57 = vld [vmem:[%s26487_s5 + $0x878] sm:$0xf0]  ;;  %v16306_v27 = vld [vmem:[%s26487_s5 + $0x810] sm:$0xf] }
 0x824   :  { %9727 = vmatpush.bf16.msrb.mxu1 %v16467_v34  ;;  %9740 = vmatpush.bf16.msrb.mxu0 %v16471_v18  ;;  %v18619_v34 = vld [vmem:[%s26487_s5 + $0x8dc] sm:$0xf]  ;;  %v18594_v44 = vld [vmem:[%s26487_s5 + $0x814] sm:$0xf] }
 0x825   :  { %9753 = vmatpush.bf16.msra.mxu2 %v16475_v26  ;;  %9766 = vmatpush.bf16.msra.mxu3 %v16479_v37  ;;  %v16412_v18 = vld [vmem:[%s26487_s5 + $0x8f8] sm:$0xf0]  ;;  %v16370_v26 = vld [vmem:[%s26487_s5 + $0x890] sm:$0xf] }
 0x826   :  { %v18614_v37 = vld [vmem:[%s26487_s5 + $0x8ac] sm:$0xf0]  ;;  %v16415_v49 = vor.u32 %v18619_v34, %v16412_v18  ;;  %v16379_v34 = vor.u32 %v18615_v11, %v16378_v14  ;;  %v16308_v11 = vld [vmem:[%s26487_s5 + $0x830] sm:$0xf0]  ;;  %v18595_v48 = vld [vmem:[%s26487_s5 + $0x81c] sm:$0xf] }
 0x828   :  { %9728 = vmatpush.bf16.msrb.mxu1 %v16435_v46  ;;  %9741 = vmatpush.bf16.msrb.mxu0 %v16439_v13  ;;  %v16380_v46 = vld [vmem:[%s26487_s5 + $0x8b8] sm:$0xf0]  ;;  %v8756_v13 = vrot.slane %v8678_v29, 6  ;;  %v18598_v29 = vld [vmem:[%s26487_s5 + $0x82c] sm:$0xf0] }
 0x829   :  { %9754 = vmatpush.bf16.msra.mxu2 %v16443_v36  ;;  %9767 = vmatpush.bf16.msra.mxu3 %v16447_v41  ;;  %v8667_v36 = vpop.f32.mrf.mxu0  ;;  %v16371_v41 = vor.u32 %v18614_v37, %v16370_v26  ;;  %v16383_v18 = vor.u32 %v18611_v5, %v16380_v46  ;;  %v16346_v26 = vld [vmem:[%s26487_s5 + $0x858] sm:$0xf] }
 0x82a   :  { %v8763_v56 = vsel %vm7722_vm6, %v8756_v13, %v8757_v12  ;;  %v16314_v13 = vld [vmem:[%s26487_s5 + $0x818] sm:$0xf]  ;;  %v8680_v36 = vpop.f32.mrf.mxu2 }
 0x82b   :  { %v24728_v37 = vsel %vm7724_vm7, %v8762_v4, %v8763_v56  ;;  %v16339_v4 = vor.u32 %v18606_v43, %v16338_v21  ;;  %v18599_v12 = vld [vmem:[%s26487_s5 + $0x834] sm:$0xf0]  ;;  %v16834_v21 = vld [vmem:[%s26487_s5 + $0xbc0] sm:$0xf]  ;;  %v18712_v56 = vld [vmem:[%s26487_s5 + $0xbc4] sm:$0xf] }
 0x82c   :  { %9729 = vmatpush.bf16.msrb.mxu1 %v16403_v53  ;;  %9742 = vmatpush.bf16.msrb.mxu0 %v16407_v55  ;;  %v18602_v53 = vld [vmem:[%s26487_s5 + $0x854] sm:$0xf]  ;;  %v18716_v43 = vld [vmem:[%s26487_s5 + $0xbdc] sm:$0xf0] }
 0x82d   :  { %9755 = vmatpush.bf16.msra.mxu2 %v16411_v16  ;;  %9768 = vmatpush.bf16.msra.mxu3 %v16415_v49  ;;  %v16340_v55 = vld [vmem:[%s26487_s5 + $0x870] sm:$0xf0]  ;;  %v18607_v16 = vld [vmem:[%s26487_s5 + $0x874] sm:$0xf0]  ;;  %v18603_v49 = vld [vmem:[%s26487_s5 + $0x85c] sm:$0xf] }
 0x82e   :  { %v16343_v14 = vor.u32 %v18602_v53, %v16340_v55  ;;  %v16347_v5 = vor.u32 %v18607_v16, %v16346_v26  ;;  %v16351_v46 = vor.u32 %v18603_v49, %v16348_v57  ;;  %v16307_v53 = vor.u32 %v18598_v29, %v16306_v27  ;;  %v18717_v26 = vld [vmem:[%s26487_s5 + $0xbe4] sm:$0xf0]  ;;  %v18713_v16 = vld [vmem:[%s26487_s5 + $0xbcc] sm:$0xf]  ;;  %v16802_v27 = vld [vmem:[%s26487_s5 + $0xb80] sm:$0xf] }
 0x82f   :  { %v16311_v55 = vor.u32 %v18594_v44, %v16308_v11  ;;  %v16844_v49 = vld [vmem:[%s26487_s5 + $0xbe8] sm:$0xf0]  ;;  %v16315_v57 = vor.u32 %v18599_v12, %v16314_v13  ;;  %v18708_v29 = vld [vmem:[%s26487_s5 + $0xb9c] sm:$0xf0]  ;;  %v18709_v13 = vld [vmem:[%s26487_s5 + $0xba4] sm:$0xf0] }
 0x830   :  { %9730 = vmatpush.bf16.msrb.mxu1 %v16371_v41  ;;  %9743 = vmatpush.bf16.msrb.mxu0 %v16375_v54  ;;  %v8693_v41 = vpop.f32.mrf.mxu3  ;;  %v16316_v54 = vld [vmem:[%s26487_s5 + $0x838] sm:$0xf0]  ;;  %v16847_v11 = vor.u32 %v18713_v16, %v16844_v49  ;;  %v18705_v12 = vld [vmem:[%s26487_s5 + $0xb8c] sm:$0xf]  ;;  %v16778_v16 = vld [vmem:[%s26487_s5 + $0xb48] sm:$0xf] }
 0x831   :  { %9756 = vmatpush.bf16.msra.mxu2 %v16379_v34  ;;  %9769 = vmatpush.bf16.msra.mxu3 %v16383_v18  ;;  %v16836_v34 = vld [vmem:[%s26487_s5 + $0xbe0] sm:$0xf0]  ;;  %v16842_v18 = vld [vmem:[%s26487_s5 + $0xbc8] sm:$0xf]  ;;  %v16319_v36 = vor.u32 %v18595_v48, %v16316_v54  ;;  %v16812_v48 = vld [vmem:[%s26487_s5 + $0xba8] sm:$0xf0]  ;;  %v16803_v54 = vor.u32 %v18708_v29, %v16802_v27 }
 0x832   :  { %v16843_v44 = vor.u32 %v18717_v26, %v16842_v18  ;;  %v18704_v41 = vld [vmem:[%s26487_s5 + $0xb84] sm:$0xf]  ;;  %v16780_v49 = vld [vmem:[%s26487_s5 + $0xb68] sm:$0xf0]  ;;  %v18692_v27 = vld [vmem:[%s26487_s5 + $0xb1c] sm:$0xf0] }
 0x833   :  { %v16772_v26 = vld [vmem:[%s26487_s5 + $0xb60] sm:$0xf0] }
 0x834   :  { %9731 = vmatpush.bf16.msrb.mxu1 %v16339_v4  ;;  %9744 = vmatpush.bf16.msrb.mxu0 %v16343_v14  ;;  %v16835_v4 = vor.u32 %v18716_v43, %v16834_v21  ;;  %v16839_v14 = vor.u32 %v18712_v56, %v16836_v34  ;;  %v16770_v43 = vld [vmem:[%s26487_s5 + $0xb40] sm:$0xf]  ;;  %v1663_v34 = vadd.f32 %v21530_v40, %v21548_v35  ;;  %v18701_v40 = vld [vmem:[%s26487_s5 + $0xb64] sm:$0xf0]  ;;  %v18697_v35 = vld [vmem:[%s26487_s5 + $0xb4c] sm:$0xf] }
 0x835   :  { %9757 = vmatpush.bf16.msra.mxu2 %v16347_v5  ;;  %9770 = vmatpush.bf16.msra.mxu3 %v16351_v46  ;;  %v16804_v5 = vld [vmem:[%s26487_s5 + $0xba0] sm:$0xf0]  ;;  %v16810_v46 = vld [vmem:[%s26487_s5 + $0xb88] sm:$0xf]  ;;  %v18700_v56 = vld [vmem:[%s26487_s5 + $0xb5c] sm:$0xf0]  ;;  %v16779_v29 = vor.u32 %v18701_v40, %v16778_v16 }
 0x836   :  { %v16807_v21 = vor.u32 %v18704_v41, %v16804_v5  ;;  %v16811_v18 = vor.u32 %v18709_v13, %v16810_v46  ;;  %v18693_v41 = vld [vmem:[%s26487_s5 + $0xb24] sm:$0xf0]  ;;  %v18689_v5 = vld [vmem:[%s26487_s5 + $0xb0c] sm:$0xf]  ;;  %v16708_v16 = vld [vmem:[%s26487_s5 + $0xae0] sm:$0xf0] }
 0x837   :  { %v16748_v46 = vld [vmem:[%s26487_s5 + $0xb28] sm:$0xf0]  ;;  %v16714_v40 = vld [vmem:[%s26487_s5 + $0xac8] sm:$0xf] }
 0x838   :  { %9732 = vmatpush.bf16.msrb.mxu1 %v16307_v53  ;;  %9745 = vmatpush.bf16.msrb.mxu0 %v16311_v55  ;;  %v16815_v53 = vor.u32 %v18705_v12, %v16812_v48  ;;  %v18696_v55 = vld [vmem:[%s26487_s5 + $0xb44] sm:$0xf]  ;;  %v8704_v12 = vpop.f32.mrf.mxu1  ;;  %v8717_v48 = vpop.f32.mrf.mxu0 }
 0x839   :  { %9758 = vmatpush.bf16.msra.mxu2 %v16315_v57  ;;  %9771 = vmatpush.bf16.msra.mxu3 %v16319_v36  ;;  %v1750_v57 = vadd.f32 %v21585_v50, %v1663_v34  ;;  %v16771_v36 = vor.u32 %v18700_v56, %v16770_v43  ;;  %v16783_v50 = vor.u32 %v18697_v35, %v16780_v49  ;;  %v16706_v34 = vld [vmem:[%s26487_s5 + $0xac0] sm:$0xf]  ;;  %v18681_v49 = vld [vmem:[%s26487_s5 + $0xacc] sm:$0xf] }
 0x83b   :  { %9733 = vmatmul.bf16.vlgmr.msrb.gmra.mxu1 %v24608_v31  ;;  %9746 = vmatmul.bf16.vlgmr.msrb.gmra.mxu0 %v24608_v31  ;;  %v1843_v13 = vadd.f32 %v21583_v25, %v1750_v57  ;;  %v16716_v57 = vld [vmem:[%s26487_s5 + $0xae8] sm:$0xf0] }
 0x83c   :  { %10188 = vmatpush.bf16.msra.mxu1 %v16835_v4  ;;  %10201 = vmatpush.bf16.msra.mxu0 %v16839_v14  ;;  %v16775_v4 = vor.u32 %v18696_v55, %v16772_v26  ;;  %v16738_v14 = vld [vmem:[%s26487_s5 + $0xb00] sm:$0xf]  ;;  %v16751_v55 = vor.u32 %v18689_v5, %v16748_v46  ;;  %v18680_v26 = vld [vmem:[%s26487_s5 + $0xac4] sm:$0xf] }
 0x83d   :  { %10214 = vmatpush.bf16.msrb.mxu2 %v16843_v44  ;;  %10227 = vmatpush.bf16.msrb.mxu3 %v16847_v11  ;;  %v16740_v44 = vld [vmem:[%s26487_s5 + $0xb20] sm:$0xf0]  ;;  %v16746_v11 = vld [vmem:[%s26487_s5 + $0xb08] sm:$0xf]  ;;  %v16739_v43 = vor.u32 %v18692_v27, %v16738_v14  ;;  %v16674_v14 = vld [vmem:[%s26487_s5 + $0xa80] sm:$0xf] }
 0x83e   :  { %9759 = vmatmul.bf16.vlgmr.msra.gmra.mxu2 %v24608_v31  ;;  %9772 = vmatmul.bf16.vlgmr.msra.gmra.mxu3 %v24608_v31  ;;  %v18688_v31 = vld [vmem:[%s26487_s5 + $0xb04] sm:$0xf]  ;;  %v16747_v25 = vor.u32 %v18693_v41, %v16746_v11  ;;  %v18676_v27 = vld [vmem:[%s26487_s5 + $0xa9c] sm:$0xf0]  ;;  %v16682_v41 = vld [vmem:[%s26487_s5 + $0xa88] sm:$0xf] }
 0x83f   :  { %v16743_v56 = vor.u32 %v18688_v31, %v16740_v44  ;;  %v16719_v31 = vor.u32 %v18681_v49, %v16716_v57  ;;  %v18672_v44 = vld [vmem:[%s26487_s5 + $0xa84] sm:$0xf]  ;;  %v18669_v57 = vld [vmem:[%s26487_s5 + $0xa64] sm:$0xf0] }
 0x840   :  { %10189 = vmatpush.bf16.msra.mxu1 %v16803_v54  ;;  %10202 = vmatpush.bf16.msra.mxu0 %v16807_v21  ;;  %v8758_v54 = vrot.slane %v8704_v12, 4  ;;  %v8759_v21 = vrot.slane %v8717_v48, 3  ;;  %v16676_v11 = vld [vmem:[%s26487_s5 + $0xaa0] sm:$0xf0]  ;;  %v16684_v12 = vld [vmem:[%s26487_s5 + $0xaa8] sm:$0xf0] }
 0x841   :  { %10215 = vmatpush.bf16.msrb.mxu2 %v16811_v18  ;;  %10228 = vmatpush.bf16.msrb.mxu3 %v16815_v53  ;;  %v18684_v18 = vld [vmem:[%s26487_s5 + $0xadc] sm:$0xf0]  ;;  %v1929_v53 = vadd.f32 %v21648_v32, %v1843_v13  ;;  %v18685_v32 = vld [vmem:[%s26487_s5 + $0xae4] sm:$0xf0]  ;;  %v8730_v5 = vpop.f32.mrf.mxu2  ;;  %v8743_v46 = vpop.f32.mrf.mxu3  ;;  %v18673_v13 = vld [vmem:[%s26487_s5 + $0xa8c] sm:$0xf] }
 0x842   :  { %v8765_v35 = vsel %vm7726_vm8, %v8758_v54, %v8759_v21  ;;  %v8760_v54 = vrot.slane %v8730_v5, 2  ;;  %v8761_v21 = vrot.slane %v8743_v46, 1  ;;  %v16618_v5 = vld [vmem:[%s26487_s5 + $0xa08] sm:$0xf] }
 0x843   :  { %v18661_v46 = vld [vmem:[%s26487_s5 + $0xa24] sm:$0xf0] }
 0x844   :  { %10190 = vmatpush.bf16.msra.mxu1 %v16771_v36  ;;  %10203 = vmatpush.bf16.msra.mxu0 %v16775_v4  ;;  %v16707_v36 = vor.u32 %v18684_v18, %v16706_v34  ;;  %v16711_v4 = vor.u32 %v18680_v26, %v16708_v16  ;;  %v16675_v34 = vor.u32 %v18676_v27, %v16674_v14  ;;  %v18664_v16 = vld [vmem:[%s26487_s5 + $0xa44] sm:$0xf] }
 0x845   :  { %10216 = vmatpush.bf16.msrb.mxu2 %v16779_v29  ;;  %10229 = vmatpush.bf16.msrb.mxu3 %v16783_v50  ;;  %v2022_v29 = vadd.f32 %v21653_v22, %v1929_v53  ;;  %v16715_v50 = vor.u32 %v18685_v32, %v16714_v40  ;;  %v18677_v22 = vld [vmem:[%s26487_s5 + $0xaa4] sm:$0xf0]  ;;  %v16679_v18 = vor.u32 %v18672_v44, %v16676_v11  ;;  %v16642_v53 = vld [vmem:[%s26487_s5 + $0xa40] sm:$0xf]  ;;  %v16644_v40 = vld [vmem:[%s26487_s5 + $0xa60] sm:$0xf0] }
 0x846   :  { %v16687_v26 = vor.u32 %v18673_v13, %v16684_v12  ;;  %v16650_v32 = vld [vmem:[%s26487_s5 + $0xa48] sm:$0xf]  ;;  %v18660_v44 = vld [vmem:[%s26487_s5 + $0xa1c] sm:$0xf0] }
 0x847   :  { %v2108_v48 = vadd.f32 %v21713_v30, %v2022_v29  ;;  %v8766_v30 = vsel %vm7728_vm9, %v8760_v54, %v8761_v21  ;;  %v18718_v54 = vld [vmem:[%s26487_s5 + $0xbec] sm:$0xf0]  ;;  %v18714_v21 = vld [vmem:[%s26487_s5 + $0xbd4] sm:$0xf] }
 0x848   :  { %10191 = vmatpush.bf16.msra.mxu1 %v16739_v43  ;;  %10204 = vmatpush.bf16.msra.mxu0 %v16743_v56  ;;  %v8706_v43 = vpop.f32.mrf.mxu1  ;;  %v8719_v56 = vpop.f32.mrf.mxu0  ;;  %v8767_v49 = vsel %vm7730_vm10, %v8765_v35, %v8766_v30  ;;  %v16610_v35 = vld [vmem:[%s26487_s5 + $0xa00] sm:$0xf]  ;;  %v16860_v30 = vld [vmem:[%s26487_s5 + $0xbf8] sm:$0xf0] }
 0x849   :  { %10217 = vmatpush.bf16.msrb.mxu2 %v16747_v25  ;;  %10230 = vmatpush.bf16.msrb.mxu3 %v16751_v55  ;;  %v18668_v25 = vld [vmem:[%s26487_s5 + $0xa5c] sm:$0xf0]  ;;  %v16683_v55 = vor.u32 %v18677_v22, %v16682_v41  ;;  %v2201_v14 = vadd.f32 %v21718_v38, %v2108_v48  ;;  %v8768_v27 = vsel %vm7732_vm11, %v24728_v37, %v8767_v49  ;;  %v18656_v38 = vld [vmem:[%s26487_s5 + $0xa04] sm:$0xf]  ;;  %v18657_v22 = vld [vmem:[%s26487_s5 + $0xa0c] sm:$0xf]  ;;  %v8732_v13 = vpop.f32.mrf.mxu2  ;;  %v8745_v12 = vpop.f32.mrf.mxu3 }
 0x84a   :  { %v24952_v29 = vadd.f32 %v8768_v27, %v24536_v20  ;;  %v16612_v37 = vld [vmem:[%s26487_s5 + $0xa20] sm:$0xf0]  ;;  %v16651_v20 = vor.u32 %v18669_v57, %v16650_v32  ;;  %v16850_v48 = vld [vmem:[%s26487_s5 + $0xbd0] sm:$0xf]  ;;  %v16852_v43 = vld [vmem:[%s26487_s5 + $0xbf0] sm:$0xf0] }
 0x84b   :  { %v2288_v11 = vadd.f32 %v21777_v23, %v2201_v14  ;;  %v16620_v23 = vld [vmem:[%s26487_s5 + $0xa28] sm:$0xf0]  ;;  %v16858_v56 = vld [vmem:[%s26487_s5 + $0xbd8] sm:$0xf]  ;;  %v16855_v32 = vor.u32 %v18714_v21, %v16852_v43  ;;  %v16818_v49 = vld [vmem:[%s26487_s5 + $0xb90] sm:$0xf] }
 0x84c   :  { %10192 = vmatpush.bf16.msra.mxu1 %v16707_v36  ;;  %10205 = vmatpush.bf16.msra.mxu0 %v16711_v4  ;;  %v18665_v36 = vld [vmem:[%s26487_s5 + $0xa4c] sm:$0xf]  ;;  %v18710_v57 = vld [vmem:[%s26487_s5 + $0xbac] sm:$0xf0]  ;;  %v16820_v27 = vld [vmem:[%s26487_s5 + $0xbb0] sm:$0xf0] }
 0x84d   :  { %10218 = vmatpush.bf16.msrb.mxu2 %v16715_v50  ;;  %10231 = vmatpush.bf16.msrb.mxu3 %v16719_v31  ;;  %v16652_v4 = vld [vmem:[%s26487_s5 + $0xa68] sm:$0xf0]  ;;  %v16643_v50 = vor.u32 %v18668_v25, %v16642_v53  ;;  %v16647_v31 = vor.u32 %v18664_v16, %v16644_v40  ;;  %v18719_v53 = vld [vmem:[%s26487_s5 + $0xbf4] sm:$0xf0]  ;;  %v18715_v25 = vld [vmem:[%s26487_s5 + $0xbdc] sm:$0xf]  ;;  %v16623_v16 = vor.u32 %v18657_v22, %v16620_v23 }
 0x84e   :  { %v16655_v41 = vor.u32 %v18665_v36, %v16652_v4  ;;  %v16851_v40 = vor.u32 %v18718_v54, %v16850_v48  ;;  %v16859_v4 = vor.u32 %v18719_v53, %v16858_v56  ;;  %v16863_v14 = vor.u32 %v18715_v25, %v16860_v30  ;;  %v18698_v22 = vld [vmem:[%s26487_s5 + $0xb54] sm:$0xf]  ;;  %v16794_v12 = vld [vmem:[%s26487_s5 + $0xb58] sm:$0xf]  ;;  %v18699_v23 = vld [vmem:[%s26487_s5 + $0xb5c] sm:$0xf] }
 0x84f   :  { %v16788_v13 = vld [vmem:[%s26487_s5 + $0xb70] sm:$0xf0]  ;;  %v16796_v48 = vld [vmem:[%s26487_s5 + $0xb78] sm:$0xf0]  ;;  %v16754_v56 = vld [vmem:[%s26487_s5 + $0xb10] sm:$0xf] }
 0x850   :  { %10193 = vmatpush.bf16.msra.mxu1 %v16675_v34  ;;  %10206 = vmatpush.bf16.msra.mxu0 %v16679_v18  ;;  %v16611_v34 = vor.u32 %v18660_v44, %v16610_v35  ;;  %v16615_v18 = vor.u32 %v18656_v38, %v16612_v37  ;;  %v16826_v35 = vld [vmem:[%s26487_s5 + $0xb98] sm:$0xf]  ;;  %v25027_v44 = vrot.slane %v23387_v8, 2  ;;  %v16819_v38 = vor.u32 %v18710_v57, %v16818_v49  ;;  %v18690_v53 = vld [vmem:[%s26487_s5 + $0xb14] sm:$0xf] }
 0x851   :  { %10219 = vmatpush.bf16.msrb.mxu2 %v16683_v55  ;;  %10232 = vmatpush.bf16.msrb.mxu3 %v16687_v26  ;;  %v2380_v55 = vadd.f32 %v21782_v47, %v2288_v11  ;;  %v16619_v26 = vor.u32 %v18661_v46, %v16618_v5  ;;  %v18706_v47 = vld [vmem:[%s26487_s5 + $0xb94] sm:$0xf]  ;;  %v16786_v11 = vld [vmem:[%s26487_s5 + $0xb50] sm:$0xf]  ;;  %v16791_v43 = vor.u32 %v18698_v22, %v16788_v13  ;;  %v16762_v30 = vld [vmem:[%s26487_s5 + $0xb18] sm:$0xf] }
 0x852   :  { %v16823_v37 = vor.u32 %v18706_v47, %v16820_v27  ;;  %v16756_v25 = vld [vmem:[%s26487_s5 + $0xb30] sm:$0xf0]  ;;  %v18686_v47 = vld [vmem:[%s26487_s5 + $0xaec] sm:$0xf0] }
 0x853   :  { %v2466_v36 = vadd.f32 %v21839_v59, %v2380_v55  ;;  %v18711_v59 = vld [vmem:[%s26487_s5 + $0xbb4] sm:$0xf0] }
 0x854   :  { %10194 = vmatpush.bf16.msra.mxu1 %v16643_v50  ;;  %10207 = vmatpush.bf16.msra.mxu0 %v16647_v31  ;;  %v18707_v50 = vld [vmem:[%s26487_s5 + $0xb9c] sm:$0xf]  ;;  %v16827_v5 = vor.u32 %v18711_v59, %v16826_v35  ;;  %v18695_v55 = vld [vmem:[%s26487_s5 + $0xb34] sm:$0xf0]  ;;  %v18682_v59 = vld [vmem:[%s26487_s5 + $0xad4] sm:$0xf] }
 0x855   :  { %10220 = vmatpush.bf16.msrb.mxu2 %v16651_v20  ;;  %10233 = vmatpush.bf16.msrb.mxu3 %v16655_v41  ;;  %v16828_v31 = vld [vmem:[%s26487_s5 + $0xbb8] sm:$0xf0]  ;;  %v18702_v20 = vld [vmem:[%s26487_s5 + $0xb6c] sm:$0xf0]  ;;  %v2559_v41 = vadd.f32 %v21844_v19, %v2466_v36  ;;  %v18703_v19 = vld [vmem:[%s26487_s5 + $0xb74] sm:$0xf0] }
 0x856   :  { %v16831_v46 = vor.u32 %v18707_v50, %v16828_v31  ;;  %v16787_v21 = vor.u32 %v18702_v20, %v16786_v11  ;;  %v16724_v50 = vld [vmem:[%s26487_s5 + $0xaf0] sm:$0xf0]  ;;  %v16730_v31 = vld [vmem:[%s26487_s5 + $0xad8] sm:$0xf]  ;;  %v16732_v11 = vld [vmem:[%s26487_s5 + $0xaf8] sm:$0xf0] }
 0x857   :  { %v2645_v54 = vadd.f32 %v21904_v24, %v2559_v41  ;;  %v16799_v24 = vor.u32 %v18699_v23, %v16796_v48  ;;  %v16727_v41 = vor.u32 %v18682_v59, %v16724_v50  ;;  %v16692_v23 = vld [vmem:[%s26487_s5 + $0xab0] sm:$0xf0]  ;;  %v16698_v48 = vld [vmem:[%s26487_s5 + $0xa98] sm:$0xf] }
 0x858   :  { %10195 = vmatpush.bf16.msra.mxu1 %v16611_v34  ;;  %10208 = vmatpush.bf16.msra.mxu0 %v16615_v18  ;;  %v18694_v34 = vld [vmem:[%s26487_s5 + $0xb2c] sm:$0xf0]  ;;  %v16795_v18 = vor.u32 %v18703_v19, %v16794_v12  ;;  %v9180_v49 = vpop.f32.mrf.mxu0  ;;  %v18674_v19 = vld [vmem:[%s26487_s5 + $0xa94] sm:$0xf] }
 0x859   :  { %10221 = vmatpush.bf16.msrb.mxu2 %v16619_v26  ;;  %10234 = vmatpush.bf16.msrb.mxu3 %v16623_v16  ;;  %v18691_v26 = vld [vmem:[%s26487_s5 + $0xb1c] sm:$0xf]  ;;  %v9270_v57 = vrot.slane %v9180_v49, 7  ;;  %v16755_v36 = vor.u32 %v18694_v34, %v16754_v56  ;;  %v18666_v49 = vld [vmem:[%s26487_s5 + $0xa54] sm:$0xf] }
 0x85a   :  { %v16764_v16 = vld [vmem:[%s26487_s5 + $0xb38] sm:$0xf0] }
 0x85b   :  { %10196 = vmatmul.bf16.vlgmr.msra.gmra.mxu1 %v25027_v44  ;;  %10209 = vmatmul.bf16.vlgmr.msra.gmra.mxu0 %v25027_v44  ;;  %v16767_v35 = vor.u32 %v18691_v26, %v16764_v16  ;;  %v16700_v56 = vld [vmem:[%s26487_s5 + $0xab8] sm:$0xf0]  ;;  %v16658_v26 = vld [vmem:[%s26487_s5 + $0xa50] sm:$0xf] }
 0x85c   :  { %10240 = vmatpush.bf16.msrb.mxu1 %v16851_v40  ;;  %10253 = vmatpush.bf16.msrb.mxu0 %v16855_v32  ;;  %v2738_v40 = vadd.f32 %v21910_v51, %v2645_v54  ;;  %v9167_v32 = vpop.f32.mrf.mxu1  ;;  %v16763_v51 = vor.u32 %v18695_v55, %v16762_v30  ;;  %v16695_v55 = vor.u32 %v18674_v19, %v16692_v23  ;;  %v18670_v16 = vld [vmem:[%s26487_s5 + $0xa6c] sm:$0xf0]  ;;  %v18776_v19 = vld [vmem:[%s26487_s5 + $0xdc4] sm:$0xf] }
 0x85d   :  { %10266 = vmatpush.bf16.msra.mxu2 %v16859_v4  ;;  %10279 = vmatpush.bf16.msra.mxu3 %v16863_v14  ;;  %v16759_v4 = vor.u32 %v18690_v53, %v16756_v25  ;;  %v16722_v14 = vld [vmem:[%s26487_s5 + $0xad0] sm:$0xf]  ;;  %v16659_v59 = vor.u32 %v18670_v16, %v16658_v26  ;;  %v17156_v23 = vld [vmem:[%s26487_s5 + $0xde0] sm:$0xf0] }
 0x85e   :  { %10222 = vmatmul.bf16.vlgmr.msrb.gmra.mxu2 %v25027_v44  ;;  %10235 = vmatmul.bf16.vlgmr.msrb.gmra.mxu3 %v25027_v44  ;;  %v2824_v27 = vadd.f32 %v21979_v3, %v2738_v40  ;;  %v18687_v3 = vld [vmem:[%s26487_s5 + $0xaf4] sm:$0xf0]  ;;  %v16723_v20 = vor.u32 %v18686_v47, %v16722_v14  ;;  %v18667_v47 = vld [vmem:[%s26487_s5 + $0xa5c] sm:$0xf] }
 0x85f   :  { %v16731_v13 = vor.u32 %v18687_v3, %v16730_v31  ;;  %v18671_v14 = vld [vmem:[%s26487_s5 + $0xa74] sm:$0xf0]  ;;  %v18662_v31 = vld [vmem:[%s26487_s5 + $0xa2c] sm:$0xf0] }
 0x860   :  { %10241 = vmatpush.bf16.msrb.mxu1 %v16819_v38  ;;  %10254 = vmatpush.bf16.msrb.mxu0 %v16823_v37  ;;  %v9277_v38 = vsel %vm7720_vm5, %v9167_v32, %v9270_v57  ;;  %v18683_v37 = vld [vmem:[%s26487_s5 + $0xadc] sm:$0xf]  ;;  %v2917_v22 = vadd.f32 %v21985_v17, %v2824_v27  ;;  %v18679_v17 = vld [vmem:[%s26487_s5 + $0xab4] sm:$0xf0]  ;;  %v9182_v25 = vpop.f32.mrf.mxu0  ;;  %v16660_v57 = vld [vmem:[%s26487_s5 + $0xa70] sm:$0xf0] }
 0x861   :  { %10267 = vmatpush.bf16.msra.mxu2 %v16827_v5  ;;  %10280 = vmatpush.bf16.msra.mxu3 %v16831_v46  ;;  %v16690_v5 = vld [vmem:[%s26487_s5 + $0xa90] sm:$0xf]  ;;  %v16735_v12 = vor.u32 %v18683_v37, %v16732_v11  ;;  %v9193_v54 = vpop.f32.mrf.mxu2  ;;  %v16699_v40 = vor.u32 %v18679_v17, %v16698_v48  ;;  %v16668_v27 = vld [vmem:[%s26487_s5 + $0xa78] sm:$0xf0]  ;;  %v16663_v50 = vor.u32 %v18666_v49, %v16660_v57  ;;  %v17162_v48 = vld [vmem:[%s26487_s5 + $0xdc8] sm:$0xf] }
 0x862   :  { %v18678_v46 = vld [vmem:[%s26487_s5 + $0xaac] sm:$0xf0]  ;;  %v3004_v34 = vadd.f32 %v22043_v2, %v2917_v22  ;;  %v16671_v11 = vor.u32 %v18667_v47, %v16668_v27  ;;  %v18781_v17 = vld [vmem:[%s26487_s5 + $0xde4] sm:$0xf0]  ;;  %v17159_v25 = vor.u32 %v18776_v19, %v17156_v23  ;;  %v18769_v49 = vld [vmem:[%s26487_s5 + $0xd8c] sm:$0xf] }
 0x863   :  { %v16691_v30 = vor.u32 %v18678_v46, %v16690_v5  ;;  %v18659_v5 = vld [vmem:[%s26487_s5 + $0xa1c] sm:$0xf]  ;;  %v17163_v16 = vor.u32 %v18781_v17, %v17162_v48  ;;  %v17132_v57 = vld [vmem:[%s26487_s5 + $0xda8] sm:$0xf0]  ;;  %v17090_v47 = vld [vmem:[%s26487_s5 + $0xd40] sm:$0xf] }
 0x864   :  { %10242 = vmatpush.bf16.msrb.mxu1 %v16787_v21  ;;  %10255 = vmatpush.bf16.msrb.mxu0 %v16791_v43  ;;  %v9206_v21 = vpop.f32.mrf.mxu3  ;;  %v18675_v43 = vld [vmem:[%s26487_s5 + $0xa9c] sm:$0xf]  ;;  %v9169_v53 = vpop.f32.mrf.mxu1  ;;  %v18764_v27 = vld [vmem:[%s26487_s5 + $0xd5c] sm:$0xf0]  ;;  %v17068_v19 = vld [vmem:[%s26487_s5 + $0xd28] sm:$0xf0] }
 0x865   :  { %10268 = vmatpush.bf16.msra.mxu2 %v16795_v18  ;;  %10281 = vmatpush.bf16.msra.mxu3 %v16799_v24  ;;  %v9271_v18 = vrot.slane %v9193_v54, 6  ;;  %v9272_v24 = vrot.slane %v9206_v21, 5  ;;  %v16703_v32 = vor.u32 %v18675_v43, %v16700_v56  ;;  %v18777_v43 = vld [vmem:[%s26487_s5 + $0xdcc] sm:$0xf] }
 0x866   :  { %v17164_v56 = vld [vmem:[%s26487_s5 + $0xde8] sm:$0xf0] }
 0x867   :  { %v9278_v2 = vsel %vm7722_vm6, %v9271_v18, %v9272_v24 }
 0x868   :  { %10243 = vmatpush.bf16.msrb.mxu1 %v16755_v36  ;;  %10256 = vmatpush.bf16.msrb.mxu0 %v16759_v4  ;;  %v16666_v36 = vld [vmem:[%s26487_s5 + $0xa58] sm:$0xf]  ;;  %v25153_v4 = vsel %vm7724_vm7, %v9277_v38, %v9278_v2  ;;  %v18658_v38 = vld [vmem:[%s26487_s5 + $0xa14] sm:$0xf]  ;;  %v17167_v2 = vor.u32 %v18777_v43, %v17164_v56 }
 0x869   :  { %10269 = vmatpush.bf16.msra.mxu2 %v16763_v51  ;;  %10282 = vmatpush.bf16.msra.mxu3 %v16767_v35  ;;  %v3096_v51 = vadd.f32 %v22049_v7, %v3004_v34  ;;  %v16626_v35 = vld [vmem:[%s26487_s5 + $0xa10] sm:$0xf]  ;;  %v16628_v7 = vld [vmem:[%s26487_s5 + $0xa30] sm:$0xf0]  ;;  %v16667_v37 = vor.u32 %v18671_v14, %v16666_v36  ;;  %v9195_v46 = vpop.f32.mrf.mxu2 }
 0x86a   :  { %v16627_v54 = vor.u32 %v18662_v31, %v16626_v35  ;;  %v16631_v21 = vor.u32 %v18658_v38, %v16628_v7  ;;  %v17092_v31 = vld [vmem:[%s26487_s5 + $0xd60] sm:$0xf0]  ;;  %v17098_v38 = vld [vmem:[%s26487_s5 + $0xd48] sm:$0xf]  ;;  %v18761_v7 = vld [vmem:[%s26487_s5 + $0xd4c] sm:$0xf] }
 0x86b   :  { %v3182_v3 = vadd.f32 %v22105_v58, %v3096_v51  ;;  %v16636_v58 = vld [vmem:[%s26487_s5 + $0xa38] sm:$0xf0] }
 0x86c   :  { %10244 = vmatpush.bf16.msrb.mxu1 %v16723_v20  ;;  %10257 = vmatpush.bf16.msrb.mxu0 %v16727_v41  ;;  %v16634_v20 = vld [vmem:[%s26487_s5 + $0xa18] sm:$0xf]  ;;  %v9208_v22 = vpop.f32.mrf.mxu3  ;;  %v16639_v24 = vor.u32 %v18659_v5, %v16636_v58  ;;  %v18756_v5 = vld [vmem:[%s26487_s5 + $0xd1c] sm:$0xf0]  ;;  %v17066_v58 = vld [vmem:[%s26487_s5 + $0xd08] sm:$0xf] }
 0x86d   :  { %10270 = vmatpush.bf16.msra.mxu2 %v16731_v13  ;;  %10283 = vmatpush.bf16.msra.mxu3 %v16735_v12  ;;  %v18663_v41 = vld [vmem:[%s26487_s5 + $0xa34] sm:$0xf0]  ;;  %v17154_v13 = vld [vmem:[%s26487_s5 + $0xdc0] sm:$0xf]  ;;  %v3275_v34 = vadd.f32 %v22110_v39, %v3182_v3  ;;  %v18768_v39 = vld [vmem:[%s26487_s5 + $0xd84] sm:$0xf] }
 0x86e   :  { %v18780_v12 = vld [vmem:[%s26487_s5 + $0xddc] sm:$0xf0]  ;;  %v16635_v18 = vor.u32 %v18663_v41, %v16634_v20  ;;  %v17100_v3 = vld [vmem:[%s26487_s5 + $0xd68] sm:$0xf0]  ;;  %v17060_v22 = vld [vmem:[%s26487_s5 + $0xd20] sm:$0xf0] }
 0x86f   :  { %v17155_v53 = vor.u32 %v18780_v12, %v17154_v13  ;;  %v3361_v26 = vadd.f32 %v22170_v63, %v3275_v34  ;;  %v18773_v63 = vld [vmem:[%s26487_s5 + $0xda4] sm:$0xf0]  ;;  %v17058_v41 = vld [vmem:[%s26487_s5 + $0xd00] sm:$0xf]  ;;  %v18753_v12 = vld [vmem:[%s26487_s5 + $0xd0c] sm:$0xf] }
 0x870   :  { %10245 = vmatpush.bf16.msrb.mxu1 %v16691_v30  ;;  %10258 = vmatpush.bf16.msrb.mxu0 %v16695_v55  ;;  %v17122_v30 = vld [vmem:[%s26487_s5 + $0xd80] sm:$0xf]  ;;  %v18757_v13 = vld [vmem:[%s26487_s5 + $0xd24] sm:$0xf0]  ;;  %v17059_v43 = vor.u32 %v18756_v5, %v17058_v41 }
 0x871   :  { %10271 = vmatpush.bf16.msra.mxu2 %v16699_v40  ;;  %10284 = vmatpush.bf16.msra.mxu3 %v16703_v32  ;;  %v18772_v55 = vld [vmem:[%s26487_s5 + $0xd9c] sm:$0xf0]  ;;  %v17124_v40 = vld [vmem:[%s26487_s5 + $0xda0] sm:$0xf0]  ;;  %v17130_v32 = vld [vmem:[%s26487_s5 + $0xd88] sm:$0xf]  ;;  %v3454_v51 = vadd.f32 %v22176_v45, %v3361_v26 }
 0x872   :  { %v17123_v36 = vor.u32 %v18772_v55, %v17122_v30  ;;  %v17127_v14 = vor.u32 %v18768_v39, %v17124_v40  ;;  %v17131_v35 = vor.u32 %v18773_v63, %v17130_v32  ;;  %v18765_v45 = vld [vmem:[%s26487_s5 + $0xd64] sm:$0xf0]  ;;  %v17026_v34 = vld [vmem:[%s26487_s5 + $0xcc0] sm:$0xf]  ;;  %v17036_v39 = vld [vmem:[%s26487_s5 + $0xce8] sm:$0xf0] }
 0x873   :  { %v17099_v46 = vor.u32 %v18765_v45, %v17098_v38  ;;  %v17034_v30 = vld [vmem:[%s26487_s5 + $0xcc8] sm:$0xf]  ;;  %v18740_v63 = vld [vmem:[%s26487_s5 + $0xc9c] sm:$0xf0] }
 0x874   :  { %10246 = vmatpush.bf16.msrb.mxu1 %v16659_v59  ;;  %10259 = vmatpush.bf16.msrb.mxu0 %v16663_v50  ;;  %v17135_v59 = vor.u32 %v18769_v49, %v17132_v57  ;;  %v18760_v50 = vld [vmem:[%s26487_s5 + $0xd44] sm:$0xf]  ;;  %v18732_v41 = vld [vmem:[%s26487_s5 + $0xc5c] sm:$0xf0] }
 0x875   :  { %10272 = vmatpush.bf16.msra.mxu2 %v16667_v37  ;;  %10285 = vmatpush.bf16.msra.mxu3 %v16671_v11  ;;  %v3540_v37 = vadd.f32 %v22225_v52, %v3454_v51  ;;  %v17091_v11 = vor.u32 %v18764_v27, %v17090_v47  ;;  %v17095_v20 = vor.u32 %v18760_v50, %v17092_v31  ;;  %v17002_v47 = vld [vmem:[%s26487_s5 + $0xc88] sm:$0xf]  ;;  %v18737_v50 = vld [vmem:[%s26487_s5 + $0xc8c] sm:$0xf] }
 0x876   :  { %v17103_v52 = vor.u32 %v18761_v7, %v17100_v3  ;;  %v17004_v31 = vld [vmem:[%s26487_s5 + $0xca8] sm:$0xf0] }
 0x877   :  { %v3633_v23 = vadd.f32 %v22230_v1, %v3540_v37  ;;  %v17071_v1 = vor.u32 %v18753_v12, %v17068_v19  ;;  %v18729_v12 = vld [vmem:[%s26487_s5 + $0xc4c] sm:$0xf] }
 0x878   :  { %10247 = vmatpush.bf16.msrb.mxu1 %v16627_v54  ;;  %10260 = vmatpush.bf16.msrb.mxu0 %v16631_v21  ;;  %v9219_v48 = vpop.f32.mrf.mxu1  ;;  %v9232_v54 = vpop.f32.mrf.mxu0  ;;  %v16972_v19 = vld [vmem:[%s26487_s5 + $0xc68] sm:$0xf0] }
 0x879   :  { %10273 = vmatpush.bf16.msra.mxu2 %v16635_v18  ;;  %10286 = vmatpush.bf16.msra.mxu3 %v16639_v24  ;;  %v9273_v21 = vrot.slane %v9219_v48, 4  ;;  %v9274_v17 = vrot.slane %v9232_v54, 3  ;;  %v18748_v18 = vld [vmem:[%s26487_s5 + $0xcdc] sm:$0xf0]  ;;  %v17067_v24 = vor.u32 %v18757_v13, %v17066_v58  ;;  %v3720_v55 = vadd.f32 %v22285_v0, %v3633_v23  ;;  %v18733_v13 = vld [vmem:[%s26487_s5 + $0xc64] sm:$0xf0] }
 0x87a   :  { %v17027_v40 = vor.u32 %v18748_v18, %v17026_v34  ;;  %v16994_v0 = vld [vmem:[%s26487_s5 + $0xc80] sm:$0xf]  ;;  %v16975_v18 = vor.u32 %v18729_v12, %v16972_v19 }
 0x87b   :  { %10248 = vmatmul.bf16.vlgmr.msrb.gmra.mxu1 %v25027_v44  ;;  %10261 = vmatmul.bf16.vlgmr.msrb.gmra.mxu0 %v25027_v44  ;;  %v9280_v26 = vsel %vm7726_vm8, %v9273_v21, %v9274_v17  ;;  %v3812_v27 = vadd.f32 %v22291_v60, %v3720_v55  ;;  %v16995_v37 = vor.u32 %v18740_v63, %v16994_v0  ;;  %v16930_v48 = vld [vmem:[%s26487_s5 + $0xc00] sm:$0xf]  ;;  %v17170_v55 = vld [vmem:[%s26487_s5 + $0xdd0] sm:$0xf]  ;;  %v18779_v63 = vld [vmem:[%s26487_s5 + $0xddc] sm:$0xf] }
 0x87c   :  { %10703 = vmatpush.bf16.msra.mxu1 %v17155_v53  ;;  %10716 = vmatpush.bf16.msra.mxu0 %v17159_v25  ;;  %v18744_v53 = vld [vmem:[%s26487_s5 + $0xcc4] sm:$0xf] }
 0x87d   :  { %10729 = vmatpush.bf16.msrb.mxu2 %v17163_v16  ;;  %10742 = vmatpush.bf16.msrb.mxu3 %v17167_v2  ;;  %v17028_v25 = vld [vmem:[%s26487_s5 + $0xce0] sm:$0xf0]  ;;  %v18749_v16 = vld [vmem:[%s26487_s5 + $0xce4] sm:$0xf0]  ;;  %v18745_v2 = vld [vmem:[%s26487_s5 + $0xccc] sm:$0xf]  ;;  %v3898_v60 = vadd.f32 %v22341_v10, %v3812_v27 }
 0x87e   :  { %10274 = vmatmul.bf16.vlgmr.msra.gmra.mxu2 %v25027_v44  ;;  %10287 = vmatmul.bf16.vlgmr.msra.gmra.mxu3 %v25027_v44  ;;  %v18752_v44 = vld [vmem:[%s26487_s5 + $0xd04] sm:$0xf]  ;;  %v17031_v32 = vor.u32 %v18744_v53, %v17028_v25  ;;  %v17035_v49 = vor.u32 %v18749_v16, %v17034_v30  ;;  %v17039_v57 = vor.u32 %v18745_v2, %v17036_v39  ;;  %v18721_v53 = vld [vmem:[%s26487_s5 + $0xc0c] sm:$0xf]  ;;  %v18778_v2 = vld [vmem:[%s26487_s5 + $0xdd4] sm:$0xf] }
 0x87f   :  { %v17063_v56 = vor.u32 %v18752_v44, %v17060_v22  ;;  %v18728_v10 = vld [vmem:[%s26487_s5 + $0xc44] sm:$0xf]  ;;  %v16970_v22 = vld [vmem:[%s26487_s5 + $0xc48] sm:$0xf]  ;;  %v3991_v34 = vadd.f32 %v22346_v28, %v3898_v60  ;;  %v16940_v28 = vld [vmem:[%s26487_s5 + $0xc28] sm:$0xf0] }
 0x880   :  { %10704 = vmatpush.bf16.msra.mxu1 %v17123_v36  ;;  %10717 = vmatpush.bf16.msra.mxu0 %v17127_v14  ;;  %v18736_v36 = vld [vmem:[%s26487_s5 + $0xc84] sm:$0xf]  ;;  %v9221_v7 = vpop.f32.mrf.mxu1  ;;  %v9234_v3 = vpop.f32.mrf.mxu0  ;;  %v17172_v39 = vld [vmem:[%s26487_s5 + $0xdf0] sm:$0xf0]  ;;  %v17138_v27 = vld [vmem:[%s26487_s5 + $0xd90] sm:$0xf] }
 0x881   :  { %10730 = vmatpush.bf16.msrb.mxu2 %v17131_v35  ;;  %10743 = vmatpush.bf16.msrb.mxu3 %v17135_v59  ;;  %v16996_v14 = vld [vmem:[%s26487_s5 + $0xca0] sm:$0xf0]  ;;  %v9245_v51 = vpop.f32.mrf.mxu2  ;;  %v9258_v35 = vpop.f32.mrf.mxu3  ;;  %v18741_v59 = vld [vmem:[%s26487_s5 + $0xca4] sm:$0xf0]  ;;  %v4077_v16 = vadd.f32 %v22402_v33, %v3991_v34  ;;  %v18783_v33 = vld [vmem:[%s26487_s5 + $0xdf4] sm:$0xf0] }
 0x882   :  { %v9275_v38 = vrot.slane %v9245_v51, 2  ;;  %v9276_v45 = vrot.slane %v9258_v35, 1  ;;  %v16964_v44 = vld [vmem:[%s26487_s5 + $0xc60] sm:$0xf0]  ;;  %v18774_v51 = vld [vmem:[%s26487_s5 + $0xdac] sm:$0xf0] }
 0x883   :  { %v16967_v17 = vor.u32 %v18728_v10, %v16964_v44  ;;  %v4170_v35 = vadd.f32 %v22408_v6, %v4077_v16  ;;  %v18775_v6 = vld [vmem:[%s26487_s5 + $0xdb4] sm:$0xf0]  ;;  %v18771_v7 = vld [vmem:[%s26487_s5 + $0xd9c] sm:$0xf] }
 0x884   :  { %10705 = vmatpush.bf16.msra.mxu1 %v17091_v11  ;;  %10718 = vmatpush.bf16.msra.mxu0 %v17095_v20  ;;  %v16999_v11 = vor.u32 %v18736_v36, %v16996_v14  ;;  %v16962_v20 = vld [vmem:[%s26487_s5 + $0xc40] sm:$0xf]  ;;  %v9281_v5 = vsel %vm7728_vm9, %v9275_v38, %v9276_v45  ;;  %v16943_v36 = vor.u32 %v18721_v53, %v16940_v28  ;;  %v17140_v38 = vld [vmem:[%s26487_s5 + $0xdb0] sm:$0xf0]  ;;  %v17146_v45 = vld [vmem:[%s26487_s5 + $0xd98] sm:$0xf] }
 0x885   :  { %10731 = vmatpush.bf16.msrb.mxu2 %v17099_v46  ;;  %10744 = vmatpush.bf16.msrb.mxu3 %v17103_v52  ;;  %v17003_v46 = vor.u32 %v18741_v59, %v17002_v47  ;;  %v17007_v52 = vor.u32 %v18737_v50, %v17004_v31  ;;  %v9282_v58 = vsel %vm7730_vm10, %v9280_v26, %v9281_v5  ;;  %v18782_v26 = vld [vmem:[%s26487_s5 + $0xdec] sm:$0xf0]  ;;  %v18770_v31 = vld [vmem:[%s26487_s5 + $0xd94] sm:$0xf]  ;;  %v17148_v3 = vld [vmem:[%s26487_s5 + $0xdb8] sm:$0xf0] }
 0x886   :  { %v9283_v23 = vsel %vm7732_vm11, %v25153_v4, %v9282_v58  ;;  %v16963_v21 = vor.u32 %v18732_v41, %v16962_v20  ;;  %v16932_v4 = vld [vmem:[%s26487_s5 + $0xc20] sm:$0xf0]  ;;  %v17171_v14 = vor.u32 %v18782_v26, %v17170_v55  ;;  %v17175_v47 = vor.u32 %v18778_v2, %v17172_v39  ;;  %v17106_v41 = vld [vmem:[%s26487_s5 + $0xd50] sm:$0xf]  ;;  %v17114_v10 = vld [vmem:[%s26487_s5 + $0xd58] sm:$0xf] }
 0x887   :  { %v25379_v54 = vadd.f32 %v9283_v23, %v24952_v29  ;;  %v16971_v29 = vor.u32 %v18733_v13, %v16970_v22  ;;  %v4256_v60 = vadd.f32 %v22458_v15, %v4170_v35  ;;  %v17143_v20 = vor.u32 %v18770_v31, %v17140_v38  ;;  %v18766_v5 = vld [vmem:[%s26487_s5 + $0xd6c] sm:$0xf0]  ;;  %v18767_v44 = vld [vmem:[%s26487_s5 + $0xd74] sm:$0xf0]  ;;  %v18763_v22 = vld [vmem:[%s26487_s5 + $0xd5c] sm:$0xf] }
 0x888   :  { %10706 = vmatpush.bf16.msra.mxu1 %v17059_v43  ;;  %10719 = vmatpush.bf16.msra.mxu0 %v17063_v56  ;;  %v18724_v43 = vld [vmem:[%s26487_s5 + $0xc1c] sm:$0xf0]  ;;  %v18720_v56 = vld [vmem:[%s26487_s5 + $0xc04] sm:$0xf]  ;;  %v17147_v15 = vor.u32 %v18775_v6, %v17146_v45  ;;  %v17116_v58 = vld [vmem:[%s26487_s5 + $0xd78] sm:$0xf0]  ;;  %v17107_v12 = vor.u32 %v18766_v5, %v17106_v41 }
 0x889   :  { %10732 = vmatpush.bf16.msrb.mxu2 %v17067_v24  ;;  %10745 = vmatpush.bf16.msrb.mxu3 %v17071_v1  ;;  %v16938_v24 = vld [vmem:[%s26487_s5 + $0xc08] sm:$0xf]  ;;  %v9247_v25 = vpop.f32.mrf.mxu2  ;;  %v9260_v30 = vpop.f32.mrf.mxu3  ;;  %v16935_v0 = vor.u32 %v18720_v56, %v16932_v4  ;;  %v4349_v13 = vadd.f32 %v22463_v42, %v4256_v60  ;;  %v17074_v23 = vld [vmem:[%s26487_s5 + $0xd10] sm:$0xf]  ;;  %v17115_v42 = vor.u32 %v18767_v44, %v17114_v10  ;;  %v17076_v56 = vld [vmem:[%s26487_s5 + $0xd30] sm:$0xf0] }
 0x88a   :  { %v18725_v1 = vld [vmem:[%s26487_s5 + $0xc24] sm:$0xf0]  ;;  %v17082_v4 = vld [vmem:[%s26487_s5 + $0xd18] sm:$0xf]  ;;  %v18755_v34 = vld [vmem:[%s26487_s5 + $0xd1c] sm:$0xf] }
 0x88b   :  { %v17042_v30 = vld [vmem:[%s26487_s5 + $0xcd0] sm:$0xf]  ;;  %v18746_v2 = vld [vmem:[%s26487_s5 + $0xcd4] sm:$0xf]  ;;  %v18743_v45 = vld [vmem:[%s26487_s5 + $0xcb4] sm:$0xf0] }
 0x88c   :  { %10707 = vmatpush.bf16.msra.mxu1 %v17027_v40  ;;  %10720 = vmatpush.bf16.msra.mxu0 %v17031_v32  ;;  %v17178_v40 = vld [vmem:[%s26487_s5 + $0xdd8] sm:$0xf]  ;;  %v16931_v32 = vor.u32 %v18724_v43, %v16930_v48  ;;  %v18758_v48 = vld [vmem:[%s26487_s5 + $0xd2c] sm:$0xf0]  ;;  %v18754_v43 = vld [vmem:[%s26487_s5 + $0xd14] sm:$0xf] }
 0x88d   :  { %10733 = vmatpush.bf16.msrb.mxu2 %v17035_v49  ;;  %10746 = vmatpush.bf16.msrb.mxu3 %v17039_v57  ;;  %v17180_v49 = vld [vmem:[%s26487_s5 + $0xdf8] sm:$0xf0]  ;;  %v16939_v57 = vor.u32 %v18725_v1, %v16938_v24  ;;  %v17179_v59 = vor.u32 %v18783_v33, %v17178_v40  ;;  %v17075_v53 = vor.u32 %v18758_v48, %v17074_v23  ;;  %v18750_v28 = vld [vmem:[%s26487_s5 + $0xcec] sm:$0xf0]  ;;  %v17044_v39 = vld [vmem:[%s26487_s5 + $0xcf0] sm:$0xf0] }
 0x88e   :  { %v17183_v50 = vor.u32 %v18779_v63, %v17180_v49  ;;  %v17079_v25 = vor.u32 %v18754_v43, %v17076_v56  ;;  %v17050_v40 = vld [vmem:[%s26487_s5 + $0xcd8] sm:$0xf]  ;;  %v17052_v33 = vld [vmem:[%s26487_s5 + $0xcf8] sm:$0xf0]  ;;  %v26802_v63 = vld [vmem:[#allocation12_spill] sm:$0xff] }
 0x88f   :  { %v18738_v35 = vld [vmem:[%s26487_s5 + $0xc94] sm:$0xf]  ;;  %v18739_v6 = vld [vmem:[%s26487_s5 + $0xc9c] sm:$0xf]  ;;  %v18735_v23 = vld [vmem:[%s26487_s5 + $0xc74] sm:$0xf0] }
 0x890   :  { %10708 = vmatpush.bf16.msra.mxu1 %v16995_v37  ;;  %10721 = vmatpush.bf16.msra.mxu0 %v16999_v11  ;;  %v25455_v37 = vrot.slane %v23360_v62, 3  ;;  %v17139_v11 = vor.u32 %v18774_v51, %v17138_v27  ;;  %v17108_v62 = vld [vmem:[%s26487_s5 + $0xd70] sm:$0xf0]  ;;  %v18731_v48 = vld [vmem:[%s26487_s5 + $0xc5c] sm:$0xf] }
 0x891   :  { %10734 = vmatpush.bf16.msrb.mxu2 %v17003_v46  ;;  %10747 = vmatpush.bf16.msrb.mxu3 %v17007_v52  ;;  %v17151_v46 = vor.u32 %v18771_v7, %v17148_v3  ;;  %v18762_v52 = vld [vmem:[%s26487_s5 + $0xd54] sm:$0xf]  ;;  %v17020_v7 = vld [vmem:[%s26487_s5 + $0xcb8] sm:$0xf0]  ;;  %v26803_v3 = vld [vmem:[#allocation9_spill] sm:$0xff] }
 0x892   :  { %v17111_v19 = vor.u32 %v18762_v52, %v17108_v62  ;;  %v16978_v52 = vld [vmem:[%s26487_s5 + $0xc50] sm:$0xf] }
 0x893   :  { %v18734_v62 = vld [vmem:[%s26487_s5 + $0xc6c] sm:$0xf0] }
 0x894   :  { %10709 = vmatpush.bf16.msra.mxu1 %v16963_v21  ;;  %10722 = vmatpush.bf16.msra.mxu0 %v16967_v17  ;;  %v4436_v21 = vadd.f32 %v22656_v9, %v4349_v13  ;;  %v17119_v17 = vor.u32 %v18763_v22, %v17116_v58  ;;  %v18759_v9 = vld [vmem:[%s26487_s5 + $0xd34] sm:$0xf0]  ;;  %v17023_v22 = vor.u32 %v18739_v6, %v17020_v7  ;;  %v18730_v58 = vld [vmem:[%s26487_s5 + $0xc54] sm:$0xf]  ;;  %v16946_v43 = vld [vmem:[%s26487_s5 + $0xc10] sm:$0xf] }
 0x895   :  { %10735 = vmatpush.bf16.msrb.mxu2 %v16971_v29  ;;  %10748 = vmatpush.bf16.msrb.mxu3 %v16975_v18  ;;  %v17084_v29 = vld [vmem:[%s26487_s5 + $0xd38] sm:$0xf0]  ;;  %v17083_v26 = vor.u32 %v18759_v9, %v17082_v4  ;;  %v16980_v13 = vld [vmem:[%s26487_s5 + $0xc70] sm:$0xf0]  ;;  %v16979_v56 = vor.u32 %v18734_v62, %v16978_v52  ;;  %v18726_v9 = vld [vmem:[%s26487_s5 + $0xc2c] sm:$0xf0] }
 0x896   :  { %v4528_v55 = vadd.f32 %v22661_v61, %v4436_v21  ;;  %v17087_v16 = vor.u32 %v18755_v34, %v17084_v29  ;;  %v18751_v61 = vld [vmem:[%s26487_s5 + $0xcf4] sm:$0xf0]  ;;  %v16988_v21 = vld [vmem:[%s26487_s5 + $0xc78] sm:$0xf0]  ;;  %v16983_v4 = vor.u32 %v18730_v58, %v16980_v13  ;;  %v18722_v34 = vld [vmem:[%s26487_s5 + $0xc14] sm:$0xf] }
 0x897   :  { %v17051_v27 = vor.u32 %v18751_v61, %v17050_v40  ;;  %v16948_v29 = vld [vmem:[%s26487_s5 + $0xc30] sm:$0xf0]  ;;  %v18840_v40 = vld [vmem:[%s26487_s5 + $0xfc4] sm:$0xf]  ;;  %v17482_v61 = vld [vmem:[%s26487_s5 + $0xfc8] sm:$0xf] }
 0x898   :  { %10710 = vmatpush.bf16.msra.mxu1 %v16931_v32  ;;  %10723 = vmatpush.bf16.msra.mxu0 %v16935_v0  ;;  %v9682_v18 = vpop.f32.mrf.mxu1  ;;  %v9695_v24 = vpop.f32.mrf.mxu0  ;;  %v18747_v0 = vld [vmem:[%s26487_s5 + $0xcdc] sm:$0xf]  ;;  %v4614_v49 = vadd.f32 %v26802_v63, %v4528_v55  ;;  %v18845_v63 = vld [vmem:[%s26487_s5 + $0xfe4] sm:$0xf0]  ;;  %v17444_v6 = vld [vmem:[%s26487_s5 + $0xfa0] sm:$0xf0] }
 0x899   :  { %10736 = vmatpush.bf16.msrb.mxu2 %v16939_v57  ;;  %10749 = vmatpush.bf16.msrb.mxu3 %v16943_v36  ;;  %v9785_v1 = vrot.slane %v9695_v24, 7  ;;  %v17043_v57 = vor.u32 %v18750_v28, %v17042_v30  ;;  %v17047_v36 = vor.u32 %v18746_v2, %v17044_v39  ;;  %v17055_v51 = vor.u32 %v18747_v0, %v17052_v33  ;;  %v16956_v55 = vld [vmem:[%s26487_s5 + $0xc38] sm:$0xf0]  ;;  %v17450_v7 = vld [vmem:[%s26487_s5 + $0xf88] sm:$0xf] }
 0x89a   :  { %v4707_v60 = vadd.f32 %v26803_v3, %v4614_v49  ;;  %v16991_v24 = vor.u32 %v18731_v48, %v16988_v21  ;;  %v26805_v2 = vld [vmem:[#allocation11_spill] sm:$0xff]  ;;  %v16947_v0 = vor.u32 %v18726_v9, %v16946_v43  ;;  %v16951_v33 = vor.u32 %v18722_v34, %v16948_v29  ;;  %v18841_v49 = vld [vmem:[%s26487_s5 + $0xfcc] sm:$0xf]  ;;  %v18837_v3 = vld [vmem:[%s26487_s5 + $0xfa4] sm:$0xf0] }
 0x89b   :  { %10711 = vmatmul.bf16.vlgmr.msra.gmra.mxu1 %v25455_v37  ;;  %10724 = vmatmul.bf16.vlgmr.msra.gmra.mxu0 %v25455_v37  ;;  %v9792_v32 = vsel %vm7720_vm5, %v9682_v18, %v9785_v1  ;;  %v16954_v1 = vld [vmem:[%s26487_s5 + $0xc18] sm:$0xf]  ;;  %v18828_v52 = vld [vmem:[%s26487_s5 + $0xf5c] sm:$0xf0]  ;;  %v17451_v62 = vor.u32 %v18837_v3, %v17450_v7  ;;  %v17418_v58 = vld [vmem:[%s26487_s5 + $0xf48] sm:$0xf] }
 0x89c   :  { %10755 = vmatpush.bf16.msrb.mxu1 %v17171_v14  ;;  %10768 = vmatpush.bf16.msrb.mxu0 %v17175_v47  ;;  %v17010_v14 = vld [vmem:[%s26487_s5 + $0xc90] sm:$0xf]  ;;  %v18829_v13 = vld [vmem:[%s26487_s5 + $0xf64] sm:$0xf0]  ;;  %v17378_v43 = vld [vmem:[%s26487_s5 + $0xf00] sm:$0xf] }
 0x89d   :  { %10781 = vmatpush.bf16.msra.mxu2 %v17179_v59  ;;  %10794 = vmatpush.bf16.msra.mxu3 %v17183_v50  ;;  %v18742_v47 = vld [vmem:[%s26487_s5 + $0xcac] sm:$0xf0]  ;;  %v17012_v59 = vld [vmem:[%s26487_s5 + $0xcb0] sm:$0xf0]  ;;  %v17018_v50 = vld [vmem:[%s26487_s5 + $0xc98] sm:$0xf] }
 0x89e   :  { %10737 = vmatmul.bf16.vlgmr.msrb.gmra.mxu2 %v25455_v37  ;;  %10750 = vmatmul.bf16.vlgmr.msrb.gmra.mxu3 %v25455_v37  ;;  %v17019_v44 = vor.u32 %v18743_v45, %v17018_v50  ;;  %v18836_v50 = vld [vmem:[%s26487_s5 + $0xf9c] sm:$0xf0]  ;;  %v18832_v45 = vld [vmem:[%s26487_s5 + $0xf84] sm:$0xf]  ;;  %v26808_v48 = vld [vmem:[#allocation18_spill] sm:$0xff] }
 0x89f   :  { %v17380_v34 = vld [vmem:[%s26487_s5 + $0xf20] sm:$0xf0]  ;;  %v17386_v29 = vld [vmem:[%s26487_s5 + $0xf08] sm:$0xf] }
 0x8a0   :  { %10756 = vmatpush.bf16.msrb.mxu1 %v17139_v11  ;;  %10769 = vmatpush.bf16.msrb.mxu0 %v17143_v20  ;;  %v9684_v41 = vpop.f32.mrf.mxu1  ;;  %v9697_v5 = vpop.f32.mrf.mxu0  ;;  %v17322_v7 = vld [vmem:[%s26487_s5 + $0xe88] sm:$0xf] }
 0x8a1   :  { %10782 = vmatpush.bf16.msra.mxu2 %v17147_v15  ;;  %10795 = vmatpush.bf16.msra.mxu3 %v17151_v46  ;;  %v9708_v31 = vpop.f32.mrf.mxu2  ;;  %v9721_v38 = vpop.f32.mrf.mxu3  ;;  %v17011_v15 = vor.u32 %v18742_v47, %v17010_v14  ;;  %v17015_v46 = vor.u32 %v18738_v35, %v17012_v59  ;;  %v17442_v59 = vld [vmem:[%s26487_s5 + $0xf80] sm:$0xf]  ;;  %v26811_v3 = vld [vmem:[#allocation17_spill] sm:$0xff] }
 0x8a2   :  { %v9786_v11 = vrot.slane %v9708_v31, 6  ;;  %v9787_v20 = vrot.slane %v9721_v38, 5  ;;  %v17483_v31 = vor.u32 %v18845_v63, %v17482_v61  ;;  %v17443_v5 = vor.u32 %v18836_v50, %v17442_v59  ;;  %v17354_v63 = vld [vmem:[%s26487_s5 + $0xec8] sm:$0xf]  ;;  %v17314_v59 = vld [vmem:[%s26487_s5 + $0xe80] sm:$0xf] }
 0x8a3   :  { %v18804_v50 = vld [vmem:[%s26487_s5 + $0xe9c] sm:$0xf0] }
 0x8a4   :  { %10757 = vmatpush.bf16.msrb.mxu1 %v17107_v12  ;;  %10770 = vmatpush.bf16.msrb.mxu0 %v17111_v19  ;;  %v9793_v10 = vsel %vm7722_vm6, %v9786_v11, %v9787_v20  ;;  %v16986_v12 = vld [vmem:[%s26487_s5 + $0xc58] sm:$0xf]  ;;  %v17452_v11 = vld [vmem:[%s26487_s5 + $0xfa8] sm:$0xf0] }
 0x8a5   :  { %10783 = vmatpush.bf16.msra.mxu2 %v17115_v42  ;;  %10796 = vmatpush.bf16.msra.mxu3 %v17119_v17  ;;  %v25580_v19 = vsel %vm7724_vm7, %v9792_v32, %v9793_v10  ;;  %v26804_v42 = vld [vmem:[#allocation14_spill] sm:$0xff]  ;;  %v16987_v18 = vor.u32 %v18735_v23, %v16986_v12  ;;  %v17476_v32 = vld [vmem:[%s26487_s5 + $0xfe0] sm:$0xf0]  ;;  %v26807_v20 = vld [vmem:[#allocation13_spill] sm:$0xff] }
 0x8a6   :  { %v4793_v17 = vadd.f32 %v26804_v42, %v4707_v60  ;;  %v17479_v35 = vor.u32 %v18840_v40, %v17476_v32  ;;  %v18833_v60 = vld [vmem:[%s26487_s5 + $0xf8c] sm:$0xf]  ;;  %v18812_v40 = vld [vmem:[%s26487_s5 + $0xedc] sm:$0xf0] }
 0x8a7   :  { %v17455_v10 = vor.u32 %v18833_v60, %v17452_v11  ;;  %v18825_v12 = vld [vmem:[%s26487_s5 + $0xf4c] sm:$0xf] }
 0x8a8   :  { %10758 = vmatpush.bf16.msrb.mxu1 %v17075_v53  ;;  %10771 = vmatpush.bf16.msrb.mxu0 %v17079_v25  ;;  %v18727_v53 = vld [vmem:[%s26487_s5 + $0xc34] sm:$0xf0]  ;;  %v18723_v25 = vld [vmem:[%s26487_s5 + $0xc1c] sm:$0xf]  ;;  %v4886_v39 = vadd.f32 %v26805_v2, %v4793_v17  ;;  %v17420_v23 = vld [vmem:[%s26487_s5 + $0xf68] sm:$0xf0] }
 0x8a9   :  { %10784 = vmatpush.bf16.msra.mxu2 %v17083_v26  ;;  %10797 = vmatpush.bf16.msra.mxu3 %v17087_v16  ;;  %v9710_v30 = vpop.f32.mrf.mxu2  ;;  %v9723_v28 = vpop.f32.mrf.mxu3  ;;  %v17474_v26 = vld [vmem:[%s26487_s5 + $0xfc0] sm:$0xf]  ;;  %v16955_v47 = vor.u32 %v18727_v53, %v16954_v1  ;;  %v17423_v9 = vor.u32 %v18825_v12, %v17420_v23  ;;  %v17388_v1 = vld [vmem:[%s26487_s5 + $0xf28] sm:$0xf0]  ;;  %v26809_v53 = vld [vmem:[#allocation15_spill] sm:$0xff] }
 0x8aa   :  { %v18844_v16 = vld [vmem:[%s26487_s5 + $0xfdc] sm:$0xf0] }
 0x8ac   :  { %10759 = vmatpush.bf16.msrb.mxu1 %v17043_v57  ;;  %10772 = vmatpush.bf16.msrb.mxu0 %v17047_v36  ;;  %v17484_v57 = vld [vmem:[%s26487_s5 + $0xfe8] sm:$0xf0]  ;;  %v26806_v36 = vld [vmem:[#allocation16_spill] sm:$0xff] }
 0x8ad   :  { %10785 = vmatpush.bf16.msra.mxu2 %v17051_v27  ;;  %10798 = vmatpush.bf16.msra.mxu3 %v17055_v51  ;;  %v4972_v14 = vadd.f32 %v26806_v36, %v4886_v39  ;;  %v16959_v27 = vor.u32 %v18723_v25, %v16956_v55  ;;  %v17475_v51 = vor.u32 %v18844_v16, %v17474_v26  ;;  %v17346_v39 = vld [vmem:[%s26487_s5 + $0xec0] sm:$0xf] }
 0x8ae   :  { %v17487_v38 = vor.u32 %v18841_v49, %v17484_v57  ;;  %v26810_v49 = vld [vmem:[#allocation20_spill] sm:$0xff] }
 0x8af   :  { %v5065_v41 = vadd.f32 %v26807_v20, %v4972_v14  ;;  %v18813_v14 = vld [vmem:[%s26487_s5 + $0xee4] sm:$0xf0] }
 0x8b0   :  { %10760 = vmatpush.bf16.msrb.mxu1 %v17011_v15  ;;  %10773 = vmatpush.bf16.msrb.mxu0 %v17015_v46  ;;  %v17447_v15 = vor.u32 %v18832_v45, %v17444_v6  ;;  %v17410_v46 = vld [vmem:[%s26487_s5 + $0xf40] sm:$0xf]  ;;  %v18800_v45 = vld [vmem:[%s26487_s5 + $0xe84] sm:$0xf] }
 0x8b1   :  { %10786 = vmatpush.bf16.msra.mxu2 %v17019_v44  ;;  %10799 = vmatpush.bf16.msra.mxu3 %v17023_v22  ;;  %v18824_v44 = vld [vmem:[%s26487_s5 + $0xf44] sm:$0xf]  ;;  %v5152_v21 = vadd.f32 %v26808_v48, %v5065_v41  ;;  %v17411_v42 = vor.u32 %v18828_v52, %v17410_v46  ;;  %v18805_v41 = vld [vmem:[%s26487_s5 + $0xea4] sm:$0xf0] }
 0x8b2   :  { %v17412_v22 = vld [vmem:[%s26487_s5 + $0xf60] sm:$0xf0]  ;;  %v17323_v23 = vor.u32 %v18805_v41, %v17322_v7  ;;  %v18838_v7 = vld [vmem:[%s26487_s5 + $0xfac] sm:$0xf0]  ;;  %v17466_v41 = vld [vmem:[%s26487_s5 + $0xf98] sm:$0xf] }
 0x8b3   :  { %v17415_v17 = vor.u32 %v18824_v44, %v17412_v22  ;;  %v5244_v25 = vadd.f32 %v26809_v53, %v5152_v21  ;;  %v17316_v6 = vld [vmem:[%s26487_s5 + $0xea0] sm:$0xf0]  ;;  %v17315_v44 = vor.u32 %v18804_v50, %v17314_v59  ;;  %v17500_v59 = vld [vmem:[%s26487_s5 + $0xff8] sm:$0xf0] }
 0x8b4   :  { %10761 = vmatpush.bf16.msrb.mxu1 %v16979_v56  ;;  %10774 = vmatpush.bf16.msrb.mxu0 %v16983_v4  ;;  %v18820_v56 = vld [vmem:[%s26487_s5 + $0xf1c] sm:$0xf0]  ;;  %v17419_v4 = vor.u32 %v18829_v13, %v17418_v58  ;;  %v17319_v22 = vor.u32 %v18800_v45, %v17316_v6  ;;  %v18792_v21 = vld [vmem:[%s26487_s5 + $0xe44] sm:$0xf]  ;;  %v17458_v6 = vld [vmem:[%s26487_s5 + $0xf90] sm:$0xf] }
 0x8b5   :  { %10787 = vmatpush.bf16.msra.mxu2 %v16987_v18  ;;  %10800 = vmatpush.bf16.msra.mxu3 %v16991_v24  ;;  %v18821_v18 = vld [vmem:[%s26487_s5 + $0xf24] sm:$0xf0]  ;;  %v18817_v24 = vld [vmem:[%s26487_s5 + $0xf0c] sm:$0xf]  ;;  %v17379_v16 = vor.u32 %v18820_v56, %v17378_v43  ;;  %v5330_v57 = vadd.f32 %v26810_v49, %v5244_v25  ;;  %v17282_v58 = vld [vmem:[%s26487_s5 + $0xe40] sm:$0xf] }
 0x8b6   :  { %v17387_v32 = vor.u32 %v18821_v18, %v17386_v29  ;;  %v17391_v61 = vor.u32 %v18817_v24, %v17388_v1  ;;  %v18796_v13 = vld [vmem:[%s26487_s5 + $0xe5c] sm:$0xf0]  ;;  %v26812_v43 = vld [vmem:[#allocation22_spill] sm:$0xff] }
 0x8b7   :  { %v5423_v60 = vadd.f32 %v26811_v3, %v5330_v57  ;;  %v17250_v18 = vld [vmem:[%s26487_s5 + $0xe00] sm:$0xf]  ;;  %v17283_v1 = vor.u32 %v18796_v13, %v17282_v58  ;;  %v17492_v49 = vld [vmem:[%s26487_s5 + $0xff0] sm:$0xf0]  ;;  %v17498_v57 = vld [vmem:[%s26487_s5 + $0xfd8] sm:$0xf] }
 0x8b8   :  { %10762 = vmatpush.bf16.msrb.mxu1 %v16947_v0  ;;  %10775 = vmatpush.bf16.msrb.mxu0 %v16951_v33  ;;  %v9734_v30 = vpop.f32.mrf.mxu1  ;;  %v9747_v28 = vpop.f32.mrf.mxu0  ;;  %v18808_v0 = vld [vmem:[%s26487_s5 + $0xec4] sm:$0xf]  ;;  %v18788_v25 = vld [vmem:[%s26487_s5 + $0xe1c] sm:$0xf0]  ;;  %v17426_v58 = vld [vmem:[%s26487_s5 + $0xf50] sm:$0xf] }
 0x8b9   :  { %10788 = vmatpush.bf16.msra.mxu2 %v16955_v47  ;;  %10801 = vmatpush.bf16.msra.mxu3 %v16959_v27  ;;  %v9788_v55 = vrot.slane %v9734_v30, 4  ;;  %v9789_v26 = vrot.slane %v9747_v28, 3  ;;  %v17348_v33 = vld [vmem:[%s26487_s5 + $0xee0] sm:$0xf0]  ;;  %v18809_v47 = vld [vmem:[%s26487_s5 + $0xecc] sm:$0xf]  ;;  %v5509_v56 = vadd.f32 %v26812_v43, %v5423_v60 }
 0x8ba   :  { %v17356_v27 = vld [vmem:[%s26487_s5 + $0xee8] sm:$0xf0]  ;;  %v18784_v30 = vld [vmem:[%s26487_s5 + $0xe04] sm:$0xf]  ;;  %v18830_v13 = vld [vmem:[%s26487_s5 + $0xf6c] sm:$0xf0] }
 0x8bb   :  { %10763 = vmatmul.bf16.vlgmr.msrb.gmra.mxu1 %v25455_v37  ;;  %10776 = vmatmul.bf16.vlgmr.msrb.gmra.mxu0 %v25455_v37  ;;  %v9795_v36 = vsel %vm7726_vm8, %v9788_v55, %v9789_v26  ;;  %v17258_v55 = vld [vmem:[%s26487_s5 + $0xe08] sm:$0xf]  ;;  %v18831_v43 = vld [vmem:[%s26487_s5 + $0xf74] sm:$0xf0] }
 0x8bc   :  { %11218 = vmatpush.bf16.msra.mxu1 %v17475_v51  ;;  %11231 = vmatpush.bf16.msra.mxu0 %v17479_v35  ;;  %v17347_v51 = vor.u32 %v18812_v40, %v17346_v39  ;;  %v17351_v35 = vor.u32 %v18808_v0, %v17348_v33  ;;  %v18789_v26 = vld [vmem:[%s26487_s5 + $0xe24] sm:$0xf0]  ;;  %v17490_v0 = vld [vmem:[%s26487_s5 + $0xfd0] sm:$0xf] }
 0x8bd   :  { %11244 = vmatpush.bf16.msrb.mxu2 %v17483_v31  ;;  %11257 = vmatpush.bf16.msrb.mxu3 %v17487_v38  ;;  %v17355_v31 = vor.u32 %v18813_v14, %v17354_v63  ;;  %v17359_v38 = vor.u32 %v18809_v47, %v17356_v27  ;;  %v18846_v33 = vld [vmem:[%s26487_s5 + $0xfec] sm:$0xf0]  ;;  %v18842_v63 = vld [vmem:[%s26487_s5 + $0xfd4] sm:$0xf]  ;;  %v17251_v47 = vor.u32 %v18788_v25, %v17250_v18 }
 0x8be   :  { %10789 = vmatmul.bf16.vlgmr.msra.gmra.mxu2 %v25455_v37  ;;  %10802 = vmatmul.bf16.vlgmr.msra.gmra.mxu3 %v25455_v37  ;;  %v18816_v37 = vld [vmem:[%s26487_s5 + $0xf04] sm:$0xf]  ;;  %v17259_v50 = vor.u32 %v18789_v26, %v17258_v55  ;;  %v17495_v45 = vor.u32 %v18842_v63, %v17492_v49  ;;  %v17396_v25 = vld [vmem:[%s26487_s5 + $0xf30] sm:$0xf0]  ;;  %v18819_v55 = vld [vmem:[%s26487_s5 + $0xf1c] sm:$0xf] }
 0x8bf   :  { %v17383_v2 = vor.u32 %v18816_v37, %v17380_v34  ;;  %v18793_v37 = vld [vmem:[%s26487_s5 + $0xe4c] sm:$0xf]  ;;  %v17404_v26 = vld [vmem:[%s26487_s5 + $0xf38] sm:$0xf0]  ;;  %v18814_v63 = vld [vmem:[%s26487_s5 + $0xeec] sm:$0xf0] }
 0x8c0   :  { %11219 = vmatpush.bf16.msra.mxu1 %v17443_v5  ;;  %11232 = vmatpush.bf16.msra.mxu0 %v17447_v15  ;;  %v18801_v5 = vld [vmem:[%s26487_s5 + $0xe8c] sm:$0xf] }
 0x8c1   :  { %11245 = vmatpush.bf16.msrb.mxu2 %v17451_v62  ;;  %11258 = vmatpush.bf16.msrb.mxu3 %v17455_v10  ;;  %v9760_v11 = vpop.f32.mrf.mxu2  ;;  %v9773_v20 = vpop.f32.mrf.mxu3  ;;  %v17324_v15 = vld [vmem:[%s26487_s5 + $0xea8] sm:$0xf0] }
 0x8c2   :  { %v9790_v46 = vrot.slane %v9760_v11, 2  ;;  %v9791_v52 = vrot.slane %v9773_v20, 1  ;;  %v9736_v62 = vpop.f32.mrf.mxu1  ;;  %v9749_v10 = vpop.f32.mrf.mxu0  ;;  %v17327_v48 = vor.u32 %v18801_v5, %v17324_v15  ;;  %v17292_v34 = vld [vmem:[%s26487_s5 + $0xe68] sm:$0xf0]  ;;  %v18834_v11 = vld [vmem:[%s26487_s5 + $0xf94] sm:$0xf] }
 0x8c3   :  { %v17295_v28 = vor.u32 %v18793_v37, %v17292_v34  ;;  %v17460_v20 = vld [vmem:[%s26487_s5 + $0xfb0] sm:$0xf0]  ;;  %v26815_v5 = vld [vmem:[#allocation21_spill] sm:$0xff]  ;;  %v17468_v62 = vld [vmem:[%s26487_s5 + $0xfb8] sm:$0xf0]  ;;  %v25880_v10 = vrot.slane %v23387_v8, 3 }
 0x8c4   :  { %11220 = vmatpush.bf16.msra.mxu1 %v17411_v42  ;;  %11233 = vmatpush.bf16.msra.mxu0 %v17415_v17  ;;  %v9796_v12 = vsel %vm7728_vm9, %v9790_v46, %v9791_v52  ;;  %v17284_v42 = vld [vmem:[%s26487_s5 + $0xe60] sm:$0xf0]  ;;  %v17290_v17 = vld [vmem:[%s26487_s5 + $0xe48] sm:$0xf]  ;;  %v18839_v46 = vld [vmem:[%s26487_s5 + $0xfb4] sm:$0xf0] }
 0x8c5   :  { %11246 = vmatpush.bf16.msrb.mxu2 %v17419_v4  ;;  %11259 = vmatpush.bf16.msrb.mxu3 %v17423_v9  ;;  %v9797_v4 = vsel %vm7730_vm10, %v9795_v36, %v9796_v12  ;;  %v18797_v9 = vld [vmem:[%s26487_s5 + $0xe64] sm:$0xf0]  ;;  %v17287_v53 = vor.u32 %v18792_v21, %v17284_v42  ;;  %v26814_v36 = vld [vmem:[#allocation24_spill] sm:$0xff]  ;;  %v18835_v52 = vld [vmem:[%s26487_s5 + $0xf9c] sm:$0xf]  ;;  %v17467_v12 = vor.u32 %v18839_v46, %v17466_v41 }
 0x8c6   :  { %v9798_v29 = vsel %vm7732_vm11, %v25580_v19, %v9797_v4  ;;  %v17252_v19 = vld [vmem:[%s26487_s5 + $0xe20] sm:$0xf0]  ;;  %v17428_v8 = vld [vmem:[%s26487_s5 + $0xf70] sm:$0xf0]  ;;  %v17434_v21 = vld [vmem:[%s26487_s5 + $0xf58] sm:$0xf] }
 0x8c7   :  { %v25805_v24 = vadd.f32 %v9798_v29, %v25379_v54  ;;  %v17291_v54 = vor.u32 %v18797_v9, %v17290_v17  ;;  %v17255_v27 = vor.u32 %v18784_v30, %v17252_v19  ;;  %v26816_v42 = vld [vmem:[#allocation26_spill] sm:$0xff]  ;;  %v17436_v4 = vld [vmem:[%s26487_s5 + $0xf78] sm:$0xf0]  ;;  %v17427_v9 = vor.u32 %v18830_v13, %v17426_v58  ;;  %v17402_v30 = vld [vmem:[%s26487_s5 + $0xf18] sm:$0xf] }
 0x8c8   :  { %11221 = vmatpush.bf16.msra.mxu1 %v17379_v16  ;;  %11234 = vmatpush.bf16.msra.mxu0 %v17383_v2  ;;  %v18785_v16 = vld [vmem:[%s26487_s5 + $0xe0c] sm:$0xf]  ;;  %v26813_v2 = vld [vmem:[#allocation19_spill] sm:$0xff]  ;;  %v17394_v34 = vld [vmem:[%s26487_s5 + $0xf10] sm:$0xf]  ;;  %v17435_v18 = vor.u32 %v18831_v43, %v17434_v21 }
 0x8c9   :  { %11247 = vmatpush.bf16.msrb.mxu2 %v17387_v32  ;;  %11260 = vmatpush.bf16.msrb.mxu3 %v17391_v61  ;;  %v5602_v39 = vadd.f32 %v26813_v2, %v5509_v56  ;;  %v9762_v40 = vpop.f32.mrf.mxu2  ;;  %v9775_v32 = vpop.f32.mrf.mxu3  ;;  %v17260_v61 = vld [vmem:[%s26487_s5 + $0xe28] sm:$0xf0]  ;;  %v18827_v56 = vld [vmem:[%s26487_s5 + $0xf5c] sm:$0xf]  ;;  %v18822_v29 = vld [vmem:[%s26487_s5 + $0xf2c] sm:$0xf0] }
 0x8ca   :  { %v26817_v19 = vld [vmem:[#allocation23_spill] sm:$0xff]  ;;  %v17298_v21 = vld [vmem:[%s26487_s5 + $0xe50] sm:$0xf] }
 0x8cb   :  { %v5688_v14 = vadd.f32 %v26814_v36, %v5602_v39  ;;  %v26818_v39 = vld [vmem:[#allocation28_spill] sm:$0xff]  ;;  %v18810_v36 = vld [vmem:[%s26487_s5 + $0xed4] sm:$0xf]  ;;  %v17338_v41 = vld [vmem:[%s26487_s5 + $0xe98] sm:$0xf] }
 0x8cc   :  { %11222 = vmatpush.bf16.msra.mxu1 %v17347_v51  ;;  %11235 = vmatpush.bf16.msra.mxu0 %v17351_v35  ;;  %v18847_v51 = vld [vmem:[%s26487_s5 + $0xff4] sm:$0xf0]  ;;  %v18843_v35 = vld [vmem:[%s26487_s5 + $0xfdc] sm:$0xf] }
 0x8cd   :  { %11248 = vmatpush.bf16.msrb.mxu2 %v17355_v31  ;;  %11261 = vmatpush.bf16.msrb.mxu3 %v17359_v38  ;;  %v17263_v31 = vor.u32 %v18785_v16, %v17260_v61  ;;  %v17491_v38 = vor.u32 %v18846_v33, %v17490_v0  ;;  %v17499_v3 = vor.u32 %v18847_v51, %v17498_v57  ;;  %v17362_v33 = vld [vmem:[%s26487_s5 + $0xed0] sm:$0xf]  ;;  %v18815_v51 = vld [vmem:[%s26487_s5 + $0xef4] sm:$0xf0] }
 0x8ce   :  { %v17503_v60 = vor.u32 %v18843_v35, %v17500_v59  ;;  %v5781_v15 = vadd.f32 %v26815_v5, %v5688_v14  ;;  %v17395_v61 = vor.u32 %v18822_v29, %v17394_v34  ;;  %v17407_v57 = vor.u32 %v18819_v55, %v17404_v26  ;;  %v17364_v14 = vld [vmem:[%s26487_s5 + $0xef0] sm:$0xf0]  ;;  %v18811_v35 = vld [vmem:[%s26487_s5 + $0xedc] sm:$0xf]  ;;  %v18807_v46 = vld [vmem:[%s26487_s5 + $0xeb4] sm:$0xf0] }
 0x8cf   :  { %v17372_v59 = vld [vmem:[%s26487_s5 + $0xef8] sm:$0xf0]  ;;  %v17339_v43 = vor.u32 %v18807_v46, %v17338_v41  ;;  %v18799_v29 = vld [vmem:[%s26487_s5 + $0xe74] sm:$0xf0]  ;;  %v26821_v55 = vld [vmem:[#allocation30_spill] sm:$0xff] }
 0x8d0   :  { %11223 = vmatpush.bf16.msra.mxu1 %v17315_v44  ;;  %11236 = vmatpush.bf16.msra.mxu0 %v17319_v22  ;;  %v17459_v44 = vor.u32 %v18838_v7, %v17458_v6  ;;  %v17463_v22 = vor.u32 %v18834_v11, %v17460_v20  ;;  %v5868_v17 = vadd.f32 %v26816_v42, %v5781_v15  ;;  %v17330_v6 = vld [vmem:[%s26487_s5 + $0xe90] sm:$0xf]  ;;  %v18802_v11 = vld [vmem:[%s26487_s5 + $0xe94] sm:$0xf]  ;;  %v17764_v46 = vld [vmem:[%s26487_s5 + $0x11a0] sm:$0xf0] }
 0x8d1   :  { %11249 = vmatpush.bf16.msrb.mxu2 %v17323_v23  ;;  %11262 = vmatpush.bf16.msrb.mxu3 %v17327_v48  ;;  %v17471_v23 = vor.u32 %v18835_v52, %v17468_v62  ;;  %v18826_v48 = vld [vmem:[%s26487_s5 + $0xf54] sm:$0xf]  ;;  %v18806_v7 = vld [vmem:[%s26487_s5 + $0xeac] sm:$0xf0]  ;;  %v18803_v52 = vld [vmem:[%s26487_s5 + $0xe9c] sm:$0xf] }
 0x8d2   :  { %v17431_v37 = vor.u32 %v18826_v48, %v17428_v8  ;;  %v17332_v20 = vld [vmem:[%s26487_s5 + $0xeb0] sm:$0xf0]  ;;  %v17340_v62 = vld [vmem:[%s26487_s5 + $0xeb8] sm:$0xf0]  ;;  %v17331_v48 = vor.u32 %v18806_v7, %v17330_v6  ;;  %v18798_v42 = vld [vmem:[%s26487_s5 + $0xe6c] sm:$0xf0] }
 0x8d3   :  { %v17335_v8 = vor.u32 %v18802_v11, %v17332_v20  ;;  %v26823_v11 = vld [vmem:[#allocation32_spill] sm:$0xff] }
 0x8d4   :  { %11224 = vmatpush.bf16.msra.mxu1 %v17283_v1  ;;  %11237 = vmatpush.bf16.msra.mxu0 %v17287_v53  ;;  %v17439_v1 = vor.u32 %v18827_v56, %v17436_v4  ;;  %v18818_v53 = vld [vmem:[%s26487_s5 + $0xf14] sm:$0xf]  ;;  %v17343_v56 = vor.u32 %v18803_v52, %v17340_v62  ;;  %v17770_v52 = vld [vmem:[%s26487_s5 + $0x1188] sm:$0xf] }
 0x8d5   :  { %11250 = vmatpush.bf16.msrb.mxu2 %v17291_v54  ;;  %11263 = vmatpush.bf16.msrb.mxu3 %v17295_v28  ;;  %v5960_v54 = vadd.f32 %v26817_v19, %v5868_v17  ;;  %v18823_v28 = vld [vmem:[%s26487_s5 + $0xf34] sm:$0xf0]  ;;  %v17399_v0 = vor.u32 %v18818_v53, %v17396_v25  ;;  %v18794_v4 = vld [vmem:[%s26487_s5 + $0xe54] sm:$0xf]  ;;  %v17266_v53 = vld [vmem:[%s26487_s5 + $0xe10] sm:$0xf]  ;;  %v17299_v25 = vor.u32 %v18798_v42, %v17298_v21 }
 0x8d6   :  { %v17403_v49 = vor.u32 %v18823_v28, %v17402_v30  ;;  %v18790_v19 = vld [vmem:[%s26487_s5 + $0xe2c] sm:$0xf0]  ;;  %v17268_v28 = vld [vmem:[%s26487_s5 + $0xe30] sm:$0xf0]  ;;  %v18901_v62 = vld [vmem:[%s26487_s5 + $0x11a4] sm:$0xf0] }
 0x8d7   :  { %v6046_v40 = vadd.f32 %v26818_v39, %v5960_v54  ;;  %v18786_v54 = vld [vmem:[%s26487_s5 + $0xe14] sm:$0xf]  ;;  %v17274_v39 = vld [vmem:[%s26487_s5 + $0xe18] sm:$0xf]  ;;  %v17771_v21 = vor.u32 %v18901_v62, %v17770_v52 }
 0x8d8   :  { %11225 = vmatpush.bf16.msra.mxu1 %v17251_v47  ;;  %11238 = vmatpush.bf16.msra.mxu0 %v17255_v27  ;;  %v10197_v16 = vpop.f32.mrf.mxu1  ;;  %v10210_v2 = vpop.f32.mrf.mxu0  ;;  %v17370_v47 = vld [vmem:[%s26487_s5 + $0xed8] sm:$0xf] }
 0x8d9   :  { %11251 = vmatpush.bf16.msrb.mxu2 %v17259_v50  ;;  %11264 = vmatpush.bf16.msrb.mxu3 %v17263_v31  ;;  %v10300_v32 = vrot.slane %v10210_v2, 7  ;;  %v26819_v50 = vld [vmem:[#allocation25_spill] sm:$0xff] }
 0x8da   :  { %v6139_v31 = vadd.f32 %v26819_v50, %v6046_v40  ;;  %v18791_v40 = vld [vmem:[%s26487_s5 + $0xe34] sm:$0xf0]  ;;  %v18905_v50 = vld [vmem:[%s26487_s5 + $0x11cc] sm:$0xf] }
 0x8db   :  { %11226 = vmatmul.bf16.vlgmr.msra.gmra.mxu1 %v25880_v10  ;;  %11239 = vmatmul.bf16.vlgmr.msra.gmra.mxu0 %v25880_v10  ;;  %v10307_v27 = vsel %vm7720_vm5, %v10197_v16, %v10300_v32  ;;  %v18787_v32 = vld [vmem:[%s26487_s5 + $0xe1c] sm:$0xf] }
 0x8dc   :  { %11270 = vmatpush.bf16.msrb.mxu1 %v17491_v38  ;;  %11283 = vmatpush.bf16.msrb.mxu0 %v17495_v45  ;;  %v17363_v38 = vor.u32 %v18814_v63, %v17362_v33  ;;  %v17367_v45 = vor.u32 %v18810_v36, %v17364_v14  ;;  %v17276_v33 = vld [vmem:[%s26487_s5 + $0xe38] sm:$0xf0]  ;;  %v17794_v63 = vld [vmem:[%s26487_s5 + $0x11c0] sm:$0xf]  ;;  %v18904_v14 = vld [vmem:[%s26487_s5 + $0x11c4] sm:$0xf] }
 0x8dd   :  { %11296 = vmatpush.bf16.msra.mxu2 %v17499_v3  ;;  %11309 = vmatpush.bf16.msra.mxu3 %v17503_v60  ;;  %v17371_v3 = vor.u32 %v18815_v51, %v17370_v47  ;;  %v17375_v60 = vor.u32 %v18811_v35, %v17372_v59  ;;  %v17796_v47 = vld [vmem:[%s26487_s5 + $0x11e0] sm:$0xf0]  ;;  %v17267_v51 = vor.u32 %v18790_v19, %v17266_v53  ;;  %v18909_v59 = vld [vmem:[%s26487_s5 + $0x11e4] sm:$0xf0]  ;;  %v18884_v53 = vld [vmem:[%s26487_s5 + $0x111c] sm:$0xf0] }
 0x8de   :  { %11252 = vmatmul.bf16.vlgmr.msrb.gmra.mxu2 %v25880_v10  ;;  %11265 = vmatmul.bf16.vlgmr.msrb.gmra.mxu3 %v25880_v10  ;;  %v17271_v35 = vor.u32 %v18786_v54, %v17268_v28  ;;  %v17799_v7 = vor.u32 %v18904_v14, %v17796_v47  ;;  %v17700_v28 = vld [vmem:[%s26487_s5 + $0x1120] sm:$0xf0] }
 0x8e0   :  { %11271 = vmatpush.bf16.msrb.mxu1 %v17459_v44  ;;  %11284 = vmatpush.bf16.msrb.mxu0 %v17463_v22  ;;  %v10199_v58 = vpop.f32.mrf.mxu1  ;;  %v10212_v13 = vpop.f32.mrf.mxu0 }
 0x8e1   :  { %11297 = vmatpush.bf16.msra.mxu2 %v17467_v12  ;;  %11310 = vmatpush.bf16.msra.mxu3 %v17471_v23  ;;  %v10223_v5 = vpop.f32.mrf.mxu2  ;;  %v10236_v15 = vpop.f32.mrf.mxu3  ;;  %v26820_v12 = vld [vmem:[#allocation6_spill] sm:$0xff] }
 0x8e2   :  { %v10301_v44 = vrot.slane %v10223_v5, 6  ;;  %v10302_v22 = vrot.slane %v10236_v15, 5  ;;  %v6225_v23 = vadd.f32 %v26820_v12, %v6139_v31  ;;  %v17804_v31 = vld [vmem:[%s26487_s5 + $0x11e8] sm:$0xf0]  ;;  %v18896_v15 = vld [vmem:[%s26487_s5 + $0x1184] sm:$0xf] }
 0x8e3   :  { %v17807_v5 = vor.u32 %v18905_v50, %v17804_v31  ;;  %v17767_v13 = vor.u32 %v18896_v15, %v17764_v46  ;;  %v17730_v12 = vld [vmem:[%s26487_s5 + $0x1140] sm:$0xf]  ;;  %v18877_v50 = vld [vmem:[%s26487_s5 + $0x10e4] sm:$0xf0]  ;;  %v18873_v31 = vld [vmem:[%s26487_s5 + $0x10cc] sm:$0xf] }
 0x8e4   :  { %11272 = vmatpush.bf16.msrb.mxu1 %v17427_v9  ;;  %11285 = vmatpush.bf16.msrb.mxu0 %v17431_v37  ;;  %v10308_v17 = vsel %vm7722_vm6, %v10301_v44, %v10302_v22  ;;  %v17300_v9 = vld [vmem:[%s26487_s5 + $0xe70] sm:$0xf0]  ;;  %v17306_v37 = vld [vmem:[%s26487_s5 + $0xe58] sm:$0xf]  ;;  %v6318_v26 = vadd.f32 %v26821_v55, %v6225_v23  ;;  %v18897_v44 = vld [vmem:[%s26487_s5 + $0x118c] sm:$0xf] }
 0x8e5   :  { %11298 = vmatpush.bf16.msra.mxu2 %v17435_v18  ;;  %11311 = vmatpush.bf16.msra.mxu3 %v17439_v1  ;;  %v26005_v34 = vsel %vm7724_vm7, %v10307_v27, %v10308_v17  ;;  %v18795_v18 = vld [vmem:[%s26487_s5 + $0xe5c] sm:$0xf]  ;;  %v17303_v30 = vor.u32 %v18794_v4, %v17300_v9  ;;  %v17307_v16 = vor.u32 %v18799_v29, %v17306_v37  ;;  %v17802_v27 = vld [vmem:[%s26487_s5 + $0x11c8] sm:$0xf]  ;;  %v17772_v22 = vld [vmem:[%s26487_s5 + $0x11a8] sm:$0xf0] }
 0x8e6   :  { %v17308_v1 = vld [vmem:[%s26487_s5 + $0xe78] sm:$0xf0]  ;;  %v17803_v41 = vor.u32 %v18909_v59, %v17802_v27  ;;  %v18892_v23 = vld [vmem:[%s26487_s5 + $0x115c] sm:$0xf0]  ;;  %v17775_v42 = vor.u32 %v18897_v44, %v17772_v22  ;;  %v18888_v17 = vld [vmem:[%s26487_s5 + $0x1144] sm:$0xf] }
 0x8e7   :  { %v17311_v2 = vor.u32 %v18795_v18, %v17308_v1  ;;  %v18893_v4 = vld [vmem:[%s26487_s5 + $0x1164] sm:$0xf0]  ;;  %v18889_v9 = vld [vmem:[%s26487_s5 + $0x114c] sm:$0xf]  ;;  %v17731_v29 = vor.u32 %v18892_v23, %v17730_v12  ;;  %v17698_v1 = vld [vmem:[%s26487_s5 + $0x1100] sm:$0xf] }
 0x8e8   :  { %11273 = vmatpush.bf16.msrb.mxu1 %v17395_v61  ;;  %11286 = vmatpush.bf16.msrb.mxu0 %v17399_v0  ;;  %v17740_v37 = vld [vmem:[%s26487_s5 + $0x1168] sm:$0xf0]  ;;  %v17706_v55 = vld [vmem:[%s26487_s5 + $0x1108] sm:$0xf]  ;;  %v18872_v27 = vld [vmem:[%s26487_s5 + $0x10c4] sm:$0xf] }
 0x8e9   :  { %11299 = vmatpush.bf16.msra.mxu2 %v17403_v49  ;;  %11312 = vmatpush.bf16.msra.mxu3 %v17407_v57  ;;  %v10225_v61 = vpop.f32.mrf.mxu2  ;;  %v10238_v0 = vpop.f32.mrf.mxu3  ;;  %v18908_v49 = vld [vmem:[%s26487_s5 + $0x11dc] sm:$0xf0]  ;;  %v26822_v57 = vld [vmem:[#allocation27_spill] sm:$0xff]  ;;  %v17743_v54 = vor.u32 %v18889_v9, %v17740_v37  ;;  %v17636_v15 = vld [vmem:[%s26487_s5 + $0x10a0] sm:$0xf0] }
 0x8ea   :  { %v6404_v36 = vadd.f32 %v26822_v57, %v6318_v26  ;;  %v17795_v6 = vor.u32 %v18908_v49, %v17794_v63  ;;  %v18885_v26 = vld [vmem:[%s26487_s5 + $0x1124] sm:$0xf0]  ;;  %v17699_v63 = vor.u32 %v18884_v53, %v17698_v1  ;;  %v17666_v57 = vld [vmem:[%s26487_s5 + $0x10c0] sm:$0xf]  ;;  %v18865_v22 = vld [vmem:[%s26487_s5 + $0x108c] sm:$0xf] }
 0x8eb   :  { %v17707_v14 = vor.u32 %v18885_v26, %v17706_v55  ;;  %v17642_v46 = vld [vmem:[%s26487_s5 + $0x1088] sm:$0xf]  ;;  %v17570_v55 = vld [vmem:[%s26487_s5 + $0x1000] sm:$0xf] }
 0x8ec   :  { %11274 = vmatpush.bf16.msrb.mxu1 %v17363_v38  ;;  %11287 = vmatpush.bf16.msrb.mxu0 %v17367_v45  ;;  %v17275_v38 = vor.u32 %v18791_v40, %v17274_v39  ;;  %v17279_v45 = vor.u32 %v18787_v32, %v17276_v33  ;;  %v6497_v20 = vadd.f32 %v26823_v11, %v6404_v36  ;;  %v26826_v39 = vld [vmem:[#allocation33_spill] sm:$0xff]  ;;  %v18876_v36 = vld [vmem:[%s26487_s5 + $0x10dc] sm:$0xf0] }
 0x8ed   :  { %11300 = vmatpush.bf16.msra.mxu2 %v17371_v3  ;;  %11313 = vmatpush.bf16.msra.mxu3 %v17375_v60  ;;  %v17762_v3 = vld [vmem:[%s26487_s5 + $0x1180] sm:$0xf]  ;;  %v18869_v44 = vld [vmem:[%s26487_s5 + $0x10a4] sm:$0xf0] }
 0x8ee   :  { %v18900_v60 = vld [vmem:[%s26487_s5 + $0x119c] sm:$0xf0]  ;;  %v17643_v9 = vor.u32 %v18869_v44, %v17642_v46  ;;  %v17610_v1 = vld [vmem:[%s26487_s5 + $0x1048] sm:$0xf]  ;;  %v17780_v44 = vld [vmem:[%s26487_s5 + $0x11b0] sm:$0xf0] }
 0x8ef   :  { %v17763_v58 = vor.u32 %v18900_v60, %v17762_v3  ;;  %v17634_v60 = vld [vmem:[%s26487_s5 + $0x1080] sm:$0xf] }
 0x8f0   :  { %11275 = vmatpush.bf16.msrb.mxu1 %v17331_v48  ;;  %11288 = vmatpush.bf16.msrb.mxu0 %v17335_v8  ;;  %v26824_v48 = vld [vmem:[#allocation29_spill] sm:$0xff]  ;;  %v18868_v11 = vld [vmem:[%s26487_s5 + $0x109c] sm:$0xf0] }
 0x8f1   :  { %11301 = vmatpush.bf16.msra.mxu2 %v17339_v43  ;;  %11314 = vmatpush.bf16.msra.mxu3 %v17343_v56  ;;  %v6584_v8 = vadd.f32 %v26824_v48, %v6497_v20  ;;  %v17732_v43 = vld [vmem:[%s26487_s5 + $0x1160] sm:$0xf0]  ;;  %v17738_v56 = vld [vmem:[%s26487_s5 + $0x1148] sm:$0xf] }
 0x8f2   :  { %v17735_v18 = vor.u32 %v18888_v17, %v17732_v43  ;;  %v17739_v19 = vor.u32 %v18893_v4, %v17738_v56  ;;  %v17602_v43 = vld [vmem:[%s26487_s5 + $0x1040] sm:$0xf] }
 0x8f3   :  { %v18860_v56 = vld [vmem:[%s26487_s5 + $0x105c] sm:$0xf0] }
 0x8f4   :  { %11276 = vmatpush.bf16.msrb.mxu1 %v17299_v25  ;;  %11289 = vmatpush.bf16.msrb.mxu0 %v17303_v30  ;;  %v26825_v25 = vld [vmem:[#allocation36_spill] sm:$0xff] }
 0x8f5   :  { %11302 = vmatpush.bf16.msra.mxu2 %v17307_v16  ;;  %11315 = vmatpush.bf16.msra.mxu3 %v17311_v2  ;;  %v6676_v30 = vadd.f32 %v26825_v25, %v6584_v8  ;;  %v18881_v16 = vld [vmem:[%s26487_s5 + $0x110c] sm:$0xf]  ;;  %v18861_v25 = vld [vmem:[%s26487_s5 + $0x1064] sm:$0xf0] }
 0x8f6   :  { %v17708_v2 = vld [vmem:[%s26487_s5 + $0x1128] sm:$0xf0] }
 0x8f7   :  { %v6762_v40 = vadd.f32 %v26826_v39, %v6676_v30  ;;  %v17711_v47 = vor.u32 %v18881_v16, %v17708_v2  ;;  %v18857_v30 = vld [vmem:[%s26487_s5 + $0x104c] sm:$0xf]  ;;  %v17603_v16 = vor.u32 %v18860_v56, %v17602_v43  ;;  %v18852_v39 = vld [vmem:[%s26487_s5 + $0x101c] sm:$0xf0]  ;;  %v18890_v56 = vld [vmem:[%s26487_s5 + $0x1154] sm:$0xf] }
 0x8f8   :  { %11277 = vmatpush.bf16.msrb.mxu1 %v17267_v51  ;;  %11290 = vmatpush.bf16.msrb.mxu0 %v17271_v35  ;;  %v10249_v32 = vpop.f32.mrf.mxu1  ;;  %v10262_v61 = vpop.f32.mrf.mxu0  ;;  %v17668_v51 = vld [vmem:[%s26487_s5 + $0x10e0] sm:$0xf0]  ;;  %v17674_v35 = vld [vmem:[%s26487_s5 + $0x10c8] sm:$0xf] }
 0x8f9   :  { %11303 = vmatpush.bf16.msra.mxu2 %v17275_v38  ;;  %11316 = vmatpush.bf16.msra.mxu3 %v17279_v45  ;;  %v10303_v0 = vrot.slane %v10249_v32, 4  ;;  %v10304_v33 = vrot.slane %v10262_v61, 3  ;;  %v17676_v38 = vld [vmem:[%s26487_s5 + $0x10e8] sm:$0xf0]  ;;  %v26827_v45 = vld [vmem:[#allocation31_spill] sm:$0xff]  ;;  %v17671_v3 = vor.u32 %v18872_v27, %v17668_v51  ;;  %v17675_v20 = vor.u32 %v18877_v50, %v17674_v35 }
 0x8fa   :  { %v17578_v61 = vld [vmem:[%s26487_s5 + $0x1008] sm:$0xf]  ;;  %v18910_v27 = vld [vmem:[%s26487_s5 + $0x11ec] sm:$0xf0]  ;;  %v18906_v51 = vld [vmem:[%s26487_s5 + $0x11d4] sm:$0xf]  ;;  %v17571_v50 = vor.u32 %v18852_v39, %v17570_v55 }
 0x8fb   :  { %11278 = vmatmul.bf16.vlgmr.msrb.gmra.mxu1 %v25880_v10  ;;  %11291 = vmatmul.bf16.vlgmr.msrb.gmra.mxu0 %v25880_v10  ;;  %v10310_v59 = vsel %vm7726_vm8, %v10303_v0, %v10304_v33  ;;  %v18853_v0 = vld [vmem:[%s26487_s5 + $0x1024] sm:$0xf0]  ;;  %v18849_v33 = vld [vmem:[%s26487_s5 + $0x100c] sm:$0xf]  ;;  %v17812_v35 = vld [vmem:[%s26487_s5 + $0x11f0] sm:$0xf0] }
 0x8fc   :  { %11731 = vmatpush.bf16.msra.mxu1 %v17795_v6  ;;  %11744 = vmatpush.bf16.msra.mxu0 %v17799_v7  ;;  %v6855_v6 = vadd.f32 %v26827_v45, %v6762_v40  ;;  %v17667_v7 = vor.u32 %v18876_v36, %v17666_v57  ;;  %v18848_v40 = vld [vmem:[%s26487_s5 + $0x1004] sm:$0xf]  ;;  %v18907_v45 = vld [vmem:[%s26487_s5 + $0x11dc] sm:$0xf]  ;;  %v17722_v55 = vld [vmem:[%s26487_s5 + $0x1118] sm:$0xf] }
 0x8fd   :  { %11757 = vmatpush.bf16.msrb.mxu2 %v17803_v41  ;;  %11770 = vmatpush.bf16.msrb.mxu3 %v17807_v5  ;;  %v17679_v41 = vor.u32 %v18873_v31, %v17676_v38  ;;  %v18864_v5 = vld [vmem:[%s26487_s5 + $0x1084] sm:$0xf]  ;;  %v18911_v38 = vld [vmem:[%s26487_s5 + $0x11f4] sm:$0xf0]  ;;  %v17724_v39 = vld [vmem:[%s26487_s5 + $0x1138] sm:$0xf0] }
 0x8fe   :  { %11304 = vmatmul.bf16.vlgmr.msra.gmra.mxu2 %v25880_v10  ;;  %11317 = vmatmul.bf16.vlgmr.msra.gmra.mxu3 %v25880_v10  ;;  %v18880_v10 = vld [vmem:[%s26487_s5 + $0x1104] sm:$0xf]  ;;  %v17639_v17 = vor.u32 %v18864_v5, %v17636_v15  ;;  %v17778_v5 = vld [vmem:[%s26487_s5 + $0x1190] sm:$0xf] }
 0x8ff   :  { %v17703_v49 = vor.u32 %v18880_v10, %v17700_v28  ;;  %v18902_v15 = vld [vmem:[%s26487_s5 + $0x11ac] sm:$0xf0] }
 0x900   :  { %11732 = vmatpush.bf16.msra.mxu1 %v17763_v58  ;;  %11745 = vmatpush.bf16.msra.mxu0 %v17767_v13  ;;  %v17644_v58 = vld [vmem:[%s26487_s5 + $0x10a8] sm:$0xf0]  ;;  %v26828_v13 = vld [vmem:[#allocation38_spill] sm:$0xff]  ;;  %v10251_v8 = vpop.f32.mrf.mxu1 }
 0x901   :  { %11758 = vmatpush.bf16.msrb.mxu2 %v17771_v21  ;;  %11771 = vmatpush.bf16.msrb.mxu3 %v17775_v42  ;;  %v10275_v52 = vpop.f32.mrf.mxu2  ;;  %v10288_v62 = vpop.f32.mrf.mxu3  ;;  %v6941_v12 = vadd.f32 %v26828_v13, %v6855_v6  ;;  %v17635_v42 = vor.u32 %v18868_v11, %v17634_v60  ;;  %v17647_v37 = vor.u32 %v18865_v22, %v17644_v58  ;;  %v17820_v6 = vld [vmem:[%s26487_s5 + $0x11f8] sm:$0xf0]  ;;  %v26831_v60 = vld [vmem:[#allocation40_spill] sm:$0xff]  ;;  %v17786_v22 = vld [vmem:[%s26487_s5 + $0x1198] sm:$0xf] }
 0x902   :  { %v10305_v23 = vrot.slane %v10275_v52, 2  ;;  %v10306_v48 = vrot.slane %v10288_v62, 1  ;;  %v10264_v21 = vpop.f32.mrf.mxu0  ;;  %v17823_v52 = vor.u32 %v18907_v45, %v17820_v6  ;;  %v18898_v62 = vld [vmem:[%s26487_s5 + $0x1194] sm:$0xf]  ;;  %v18903_v58 = vld [vmem:[%s26487_s5 + $0x11b4] sm:$0xf0] }
 0x903   :  { %v18899_v13 = vld [vmem:[%s26487_s5 + $0x119c] sm:$0xf]  ;;  %v17783_v8 = vor.u32 %v18898_v62, %v17780_v44  ;;  %v17746_v21 = vld [vmem:[%s26487_s5 + $0x1150] sm:$0xf] }
 0x904   :  { %11733 = vmatpush.bf16.msra.mxu1 %v17731_v29  ;;  %11746 = vmatpush.bf16.msra.mxu0 %v17735_v18  ;;  %v10311_v4 = vsel %vm7728_vm9, %v10305_v23, %v10306_v48  ;;  %v18856_v29 = vld [vmem:[%s26487_s5 + $0x1044] sm:$0xf]  ;;  %v17779_v48 = vor.u32 %v18902_v15, %v17778_v5  ;;  %v18867_v5 = vld [vmem:[%s26487_s5 + $0x109c] sm:$0xf] }
 0x905   :  { %11759 = vmatpush.bf16.msrb.mxu2 %v17739_v19  ;;  %11772 = vmatpush.bf16.msrb.mxu3 %v17743_v54  ;;  %v17604_v18 = vld [vmem:[%s26487_s5 + $0x1060] sm:$0xf0]  ;;  %v10312_v53 = vsel %vm7730_vm10, %v10310_v59, %v10311_v4  ;;  %v17612_v19 = vld [vmem:[%s26487_s5 + $0x1068] sm:$0xf0]  ;;  %v26829_v54 = vld [vmem:[#allocation35_spill] sm:$0xff] }
 0x906   :  { %v7034_v10 = vadd.f32 %v26829_v54, %v6941_v12  ;;  %v10313_v28 = vsel %vm7732_vm11, %v26005_v34, %v10312_v53  ;;  %v17607_v2 = vor.u32 %v18856_v29, %v17604_v18  ;;  %v17572_v34 = vld [vmem:[%s26487_s5 + $0x1020] sm:$0xf0]  ;;  %v17615_v32 = vor.u32 %v18857_v30, %v17612_v19  ;;  %v17818_v59 = vld [vmem:[%s26487_s5 + $0x11d8] sm:$0xf]  ;;  %v17788_v12 = vld [vmem:[%s26487_s5 + $0x11b8] sm:$0xf0] }
 0x907   :  { %v26230_v26 = vadd.f32 %v10313_v28, %v25805_v24  ;;  %v17611_v24 = vor.u32 %v18861_v25, %v17610_v1  ;;  %v17575_v31 = vor.u32 %v18848_v40, %v17572_v34  ;;  %v17819_v46 = vor.u32 %v18911_v38, %v17818_v59  ;;  %v17748_v4 = vld [vmem:[%s26487_s5 + $0x1170] sm:$0xf0]  ;;  %v18891_v29 = vld [vmem:[%s26487_s5 + $0x115c] sm:$0xf]  ;;  %v17714_v25 = vld [vmem:[%s26487_s5 + $0x1110] sm:$0xf] }
 0x908   :  { %11734 = vmatpush.bf16.msra.mxu1 %v17699_v63  ;;  %11747 = vmatpush.bf16.msra.mxu0 %v17703_v49  ;;  %v26830_v63 = vld [vmem:[#allocation37_spill] sm:$0xff]  ;;  %v17791_v43 = vor.u32 %v18899_v13, %v17788_v12  ;;  %v17756_v18 = vld [vmem:[%s26487_s5 + $0x1178] sm:$0xf0]  ;;  %v17751_v53 = vor.u32 %v18890_v56, %v17748_v4  ;;  %v18886_v30 = vld [vmem:[%s26487_s5 + $0x112c] sm:$0xf0] }
 0x909   :  { %11760 = vmatpush.bf16.msrb.mxu2 %v17707_v14  ;;  %11773 = vmatpush.bf16.msrb.mxu3 %v17711_v47  ;;  %v7120_v49 = vadd.f32 %v26830_v63, %v7034_v10  ;;  %v10277_v57 = vpop.f32.mrf.mxu2  ;;  %v10290_v36 = vpop.f32.mrf.mxu3  ;;  %v17580_v14 = vld [vmem:[%s26487_s5 + $0x1028] sm:$0xf0]  ;;  %v17810_v47 = vld [vmem:[%s26487_s5 + $0x11d0] sm:$0xf]  ;;  %v17759_v54 = vor.u32 %v18891_v29, %v17756_v18  ;;  %v18882_v10 = vld [vmem:[%s26487_s5 + $0x1114] sm:$0xf] }
 0x90a   :  { %v17716_v28 = vld [vmem:[%s26487_s5 + $0x1130] sm:$0xf0]  ;;  %v18870_v38 = vld [vmem:[%s26487_s5 + $0x10ac] sm:$0xf0]  ;;  %v17660_v15 = vld [vmem:[%s26487_s5 + $0x10b8] sm:$0xf0] }
 0x90b   :  { %v7213_v11 = vadd.f32 %v26831_v60, %v7120_v49  ;;  %v18874_v57 = vld [vmem:[%s26487_s5 + $0x10d4] sm:$0xf]  ;;  %v17658_v60 = vld [vmem:[%s26487_s5 + $0x1098] sm:$0xf]  ;;  %v17618_v13 = vld [vmem:[%s26487_s5 + $0x1050] sm:$0xf] }
 0x90c   :  { %11735 = vmatpush.bf16.msra.mxu1 %v17667_v7  ;;  %11748 = vmatpush.bf16.msra.mxu0 %v17671_v3  ;;  %v17579_v7 = vor.u32 %v18853_v0, %v17578_v61  ;;  %v17583_v3 = vor.u32 %v18849_v33, %v17580_v14  ;;  %v17719_v61 = vor.u32 %v18882_v10, %v17716_v28  ;;  %v17682_v0 = vld [vmem:[%s26487_s5 + $0x10d0] sm:$0xf]  ;;  %v17684_v36 = vld [vmem:[%s26487_s5 + $0x10f0] sm:$0xf0]  ;;  %v17690_v14 = vld [vmem:[%s26487_s5 + $0x10d8] sm:$0xf] }
 0x90d   :  { %11761 = vmatpush.bf16.msrb.mxu2 %v17675_v20  ;;  %11774 = vmatpush.bf16.msrb.mxu3 %v17679_v41  ;;  %v17811_v20 = vor.u32 %v18910_v27, %v17810_v47  ;;  %v17815_v41 = vor.u32 %v18906_v51, %v17812_v35  ;;  %v26303_v23 = vpack.c.bf16 %v7213_v11, %v7213_v11  ;;  %v18878_v33 = vld [vmem:[%s26487_s5 + $0x10ec] sm:$0xf0]  ;;  %v18879_v27 = vld [vmem:[%s26487_s5 + $0x10f4] sm:$0xf0]  ;;  %v18875_v51 = vld [vmem:[%s26487_s5 + $0x10dc] sm:$0xf] }
 0x90e   :  { %v17692_v35 = vld [vmem:[%s26487_s5 + $0x10f8] sm:$0xf0]  ;;  %v17683_v59 = vor.u32 %v18878_v33, %v17682_v0  ;;  %v17691_v45 = vor.u32 %v18879_v27, %v17690_v14  ;;  %v18862_v12 = vld [vmem:[%s26487_s5 + $0x106c] sm:$0xf0]  ;;  %v18863_v4 = vld [vmem:[%s26487_s5 + $0x1074] sm:$0xf0] }
 0x90f   :  { %v17695_v6 = vor.u32 %v18875_v51, %v17692_v35  ;;  %v17619_v29 = vor.u32 %v18862_v12, %v17618_v13  ;;  %v17594_v10 = vld [vmem:[%s26487_s5 + $0x1018] sm:$0xf] }
 0x910   :  { %11736 = vmatpush.bf16.msra.mxu1 %v17635_v42  ;;  %11749 = vmatpush.bf16.msra.mxu0 %v17639_v17  ;;  %v18894_v42 = vld [vmem:[%s26487_s5 + $0x116c] sm:$0xf0]  ;;  %v17787_v17 = vor.u32 %v18903_v58, %v17786_v22 }
 0x911   :  { %11762 = vmatpush.bf16.msrb.mxu2 %v17643_v9  ;;  %11775 = vmatpush.bf16.msrb.mxu3 %v17647_v37  ;;  %v17754_v9 = vld [vmem:[%s26487_s5 + $0x1158] sm:$0xf]  ;;  %v17747_v1 = vor.u32 %v18894_v42, %v17746_v21  ;;  %v17663_v21 = vor.u32 %v18867_v5, %v17660_v15  ;;  %v18858_v42 = vld [vmem:[%s26487_s5 + $0x1054] sm:$0xf] }
 0x912   :  { %v18895_v37 = vld [vmem:[%s26487_s5 + $0x1174] sm:$0xf0] }
 0x913   :  { %v17755_v19 = vor.u32 %v18895_v37, %v17754_v9  ;;  %v18859_v9 = vld [vmem:[%s26487_s5 + $0x105c] sm:$0xf] }
 0x914   :  { %11737 = vmatpush.bf16.msra.mxu1 %v17603_v16  ;;  %11750 = vmatpush.bf16.msra.mxu0 %v17607_v2  ;;  %v18887_v16 = vld [vmem:[%s26487_s5 + $0x1134] sm:$0xf0]  ;;  %v18883_v2 = vld [vmem:[%s26487_s5 + $0x111c] sm:$0xf] }
 0x915   :  { %11763 = vmatpush.bf16.msrb.mxu2 %v17611_v24  ;;  %11776 = vmatpush.bf16.msrb.mxu3 %v17615_v32  ;;  %v17715_v32 = vor.u32 %v18886_v30, %v17714_v25  ;;  %v17723_v63 = vor.u32 %v18887_v16, %v17722_v55  ;;  %v17727_v49 = vor.u32 %v18883_v2, %v17724_v39  ;;  %v17628_v37 = vld [vmem:[%s26487_s5 + $0x1078] sm:$0xf0]  ;;  %v18855_v16 = vld [vmem:[%s26487_s5 + $0x1034] sm:$0xf0] }
 0x916   :  { %v17631_v30 = vor.u32 %v18859_v9, %v17628_v37  ;;  %v18851_v2 = vld [vmem:[%s26487_s5 + $0x101c] sm:$0xf] }
 0x917   :  { %v17596_v39 = vld [vmem:[%s26487_s5 + $0x1038] sm:$0xf0] }
 0x918   :  { %11738 = vmatpush.bf16.msra.mxu1 %v17571_v50  ;;  %11751 = vmatpush.bf16.msra.mxu0 %v17575_v31  ;;  %v10712_v40 = vpop.f32.mrf.mxu1  ;;  %v10725_v34 = vpop.f32.mrf.mxu0  ;;  %v17687_v50 = vor.u32 %v18874_v57, %v17684_v36  ;;  %v17650_v31 = vld [vmem:[%s26487_s5 + $0x1090] sm:$0xf] }
 0x919   :  { %11764 = vmatpush.bf16.msrb.mxu2 %v17579_v7  ;;  %11777 = vmatpush.bf16.msrb.mxu3 %v17583_v3  ;;  %v10815_v24 = vrot.slane %v10725_v34, 7  ;;  %v18866_v7 = vld [vmem:[%s26487_s5 + $0x1094] sm:$0xf]  ;;  %v17651_v22 = vor.u32 %v18870_v38, %v17650_v31 }
 0x91a   :  { %v17652_v3 = vld [vmem:[%s26487_s5 + $0x10b0] sm:$0xf0] }
 0x91b   :  { %11739 = vmatmul.bf16.vlgmr.msra.gmra.mxu1 %v26303_v23  ;;  %11752 = vmatmul.bf16.vlgmr.msra.gmra.mxu0 %v26303_v23  ;;  %v10822_v47 = vsel %vm7720_vm5, %v10712_v40, %v10815_v24  ;;  %v17655_v58 = vor.u32 %v18866_v7, %v17652_v3  ;;  %v17595_v24 = vor.u32 %v18855_v16, %v17594_v10 }
 0x91c   :  { %11783 = vmatpush.bf16.msrb.mxu1 %v17811_v20  ;;  %11796 = vmatpush.bf16.msrb.mxu0 %v17815_v41  ;;  %v18871_v41 = vld [vmem:[%s26487_s5 + $0x10b4] sm:$0xf0] }
 0x91d   :  { %11809 = vmatpush.bf16.msra.mxu2 %v17819_v46  ;;  %11822 = vmatpush.bf16.msra.mxu3 %v17823_v52 }
 0x91e   :  { %11765 = vmatmul.bf16.vlgmr.msrb.gmra.mxu2 %v26303_v23  ;;  %11778 = vmatmul.bf16.vlgmr.msrb.gmra.mxu3 %v26303_v23 }
 0x920   :  { %11784 = vmatpush.bf16.msrb.mxu1 %v17779_v48  ;;  %11797 = vmatpush.bf16.msrb.mxu0 %v17783_v8  ;;  %v10714_v62 = vpop.f32.mrf.mxu1  ;;  %v10727_v44 = vpop.f32.mrf.mxu0  ;;  %v17659_v8 = vor.u32 %v18871_v41, %v17658_v60 }
 0x921   :  { %11810 = vmatpush.bf16.msra.mxu2 %v17787_v17  ;;  %11823 = vmatpush.bf16.msra.mxu3 %v17791_v43  ;;  %v10738_v11 = vpop.f32.mrf.mxu2  ;;  %v10751_v20 = vpop.f32.mrf.mxu3  ;;  %v17620_v17 = vld [vmem:[%s26487_s5 + $0x1070] sm:$0xf0]  ;;  %v17626_v43 = vld [vmem:[%s26487_s5 + $0x1058] sm:$0xf] }
 0x922   :  { %v10816_v46 = vrot.slane %v10738_v11, 6  ;;  %v10817_v52 = vrot.slane %v10751_v20, 5  ;;  %v17623_v18 = vor.u32 %v18858_v42, %v17620_v17  ;;  %v17627_v25 = vor.u32 %v18863_v4, %v17626_v43 }
 0x924   :  { %11785 = vmatpush.bf16.msrb.mxu1 %v17747_v1  ;;  %11798 = vmatpush.bf16.msrb.mxu0 %v17751_v53  ;;  %v10823_v48 = vsel %vm7722_vm6, %v10816_v46, %v10817_v52  ;;  %v17586_v1 = vld [vmem:[%s26487_s5 + $0x1010] sm:$0xf] }
 0x925   :  { %11811 = vmatpush.bf16.msra.mxu2 %v17755_v19  ;;  %11824 = vmatpush.bf16.msra.mxu3 %v17759_v54  ;;  %v10824_v56 = vsel %vm7724_vm7, %v10822_v47, %v10823_v48  ;;  %v18854_v53 = vld [vmem:[%s26487_s5 + $0x102c] sm:$0xf0]  ;;  %v18850_v19 = vld [vmem:[%s26487_s5 + $0x1014] sm:$0xf] }
 0x926   :  { %v17588_v54 = vld [vmem:[%s26487_s5 + $0x1030] sm:$0xf0]  ;;  %v17587_v40 = vor.u32 %v18854_v53, %v17586_v1  ;;  %s18953_s5 = smov [#allocation2]  }
 0x927   :  { %v17591_v34 = vor.u32 %v18850_v19, %v17588_v54  ;;  %s11869_s12 = sshll.u32 %s18953_s5, 4  ;;  %s11870_s12 = int_to_ptr.vmem [resolvable:$true] %s11869_s12 }
 0x928   :  { %11786 = vmatpush.bf16.msrb.mxu1 %v17715_v32  ;;  %11799 = vmatpush.bf16.msrb.mxu0 %v17719_v61  ;;  %v17599_v32 = vor.u32 %v18851_v2, %v17596_v39 }
 0x929   :  { %11812 = vmatpush.bf16.msra.mxu2 %v17723_v63  ;;  %11825 = vmatpush.bf16.msra.mxu3 %v17727_v49  ;;  %v10740_v28 = vpop.f32.mrf.mxu2  ;;  %v10753_v55 = vpop.f32.mrf.mxu3 }
 0x92c   :  { %11787 = vmatpush.bf16.msrb.mxu1 %v17683_v59  ;;  %11800 = vmatpush.bf16.msrb.mxu0 %v17687_v50 }
 0x92d   :  { %11813 = vmatpush.bf16.msra.mxu2 %v17691_v45  ;;  %11826 = vmatpush.bf16.msra.mxu3 %v17695_v6 }
 0x930   :  { %11788 = vmatpush.bf16.msrb.mxu1 %v17651_v22  ;;  %11801 = vmatpush.bf16.msrb.mxu0 %v17655_v58 }
 0x931   :  { %11814 = vmatpush.bf16.msra.mxu2 %v17659_v8  ;;  %11827 = vmatpush.bf16.msra.mxu3 %v17663_v21 }
 0x934   :  { %11789 = vmatpush.bf16.msrb.mxu1 %v17619_v29  ;;  %11802 = vmatpush.bf16.msrb.mxu0 %v17623_v18 }
 0x935   :  { %11815 = vmatpush.bf16.msra.mxu2 %v17627_v25  ;;  %11828 = vmatpush.bf16.msra.mxu3 %v17631_v30 }
 0x938   :  { %11790 = vmatpush.bf16.msrb.mxu1 %v17587_v40  ;;  %11803 = vmatpush.bf16.msrb.mxu0 %v17591_v34  ;;  %v10764_v61 = vpop.f32.mrf.mxu1  ;;  %v10777_v0 = vpop.f32.mrf.mxu0 }
 0x939   :  { %11816 = vmatpush.bf16.msra.mxu2 %v17595_v24  ;;  %11829 = vmatpush.bf16.msra.mxu3 %v17599_v32  ;;  %v10818_v33 = vrot.slane %v10764_v61, 4  ;;  %v10819_v63 = vrot.slane %v10777_v0, 3 }
 0x93b   :  { %11791 = vmatmul.bf16.vlgmr.msrb.gmra.mxu1 %v26303_v23  ;;  %11804 = vmatmul.bf16.vlgmr.msrb.gmra.mxu0 %v26303_v23  ;;  %v10825_v49 = vsel %vm7726_vm8, %v10818_v33, %v10819_v63 }
 0x93c   :  { %11817 = vmatmul.bf16.vlgmr.msra.gmra.mxu2 %v26303_v23  ;;  %11830 = vmatmul.bf16.vlgmr.msra.gmra.mxu3 %v26303_v23 }
 0x940   :  { %v10766_v27 = vpop.f32.mrf.mxu1  ;;  %v10779_v51 = vpop.f32.mrf.mxu0 }
 0x941   :  { %v10790_v57 = vpop.f32.mrf.mxu2  ;;  %v10803_v36 = vpop.f32.mrf.mxu3 }
 0x942   :  { %v10820_v14 = vrot.slane %v10790_v57, 2  ;;  %v10821_v47 = vrot.slane %v10803_v36, 1  ;;  %v11859_v36 = vlaneseq }
 0x944   :  { %v10826_v35 = vsel %vm7728_vm9, %v10820_v14, %v10821_v47  ;;  %vm11861_vm12 = vcmp.lt.s32.totalorder %v11859_v36, 1000 }
 0x945   :  { %v10827_v59 = vsel %vm7730_vm10, %v10825_v49, %v10826_v35 }
 0x946   :  { %v10828_v50 = vsel %vm7732_vm11, %v10824_v56, %v10827_v59 }
 0x947   :  { %v10830_v23 = vadd.f32 %v10828_v50, %v26230_v26 }
 0x949   :  { %v10792_v31 = vpop.f32.mrf.mxu2  ;;  %v10805_v38 = vpop.f32.mrf.mxu3 }
 0x958   :  { %v11227_v45 = vpop.f32.mrf.mxu1  ;;  %v11240_v6 = vpop.f32.mrf.mxu0 }
 0x959   :  { %v11330_v7 = vrot.slane %v11240_v6, 7 }
 0x95b   :  { %v11337_v3 = vsel %vm7720_vm5, %v11227_v45, %v11330_v7 }
 0x960   :  { %v11229_v5 = vpop.f32.mrf.mxu1  ;;  %v11242_v15 = vpop.f32.mrf.mxu0 }
 0x961   :  { %v11253_v60 = vpop.f32.mrf.mxu2  ;;  %v11266_v11 = vpop.f32.mrf.mxu3 }
 0x962   :  { %v11331_v20 = vrot.slane %v11253_v60, 6  ;;  %v11332_v41 = vrot.slane %v11266_v11, 5 }
 0x964   :  { %v11338_v46 = vsel %vm7722_vm6, %v11331_v20, %v11332_v41 }
 0x965   :  { %v11339_v52 = vsel %vm7724_vm7, %v11337_v3, %v11338_v46 }
 0x969   :  { %v11255_v62 = vpop.f32.mrf.mxu2  ;;  %v11268_v44 = vpop.f32.mrf.mxu3 }
 0x978   :  { %v11279_v26 = vpop.f32.mrf.mxu1  ;;  %v11292_v22 = vpop.f32.mrf.mxu0 }
 0x979   :  { %v11333_v58 = vrot.slane %v11279_v26, 4  ;;  %v11334_v13 = vrot.slane %v11292_v22, 3 }
 0x97b   :  { %v11340_v12 = vsel %vm7726_vm8, %v11333_v58, %v11334_v13 }
 0x980   :  { %v11281_v17 = vpop.f32.mrf.mxu1  ;;  %v11294_v43 = vpop.f32.mrf.mxu0 }
 0x981   :  { %v11305_v48 = vpop.f32.mrf.mxu2  ;;  %v11318_v8 = vpop.f32.mrf.mxu3 }
 0x982   :  { %v11335_v21 = vrot.slane %v11305_v48, 2  ;;  %v11336_v42 = vrot.slane %v11318_v8, 1 }
 0x984   :  { %v11341_v56 = vsel %vm7728_vm9, %v11335_v21, %v11336_v42 }
 0x985   :  { %v11342_v4 = vsel %vm7730_vm10, %v11340_v12, %v11341_v56 }
 0x986   :  { %v11343_v9 = vsel %vm7732_vm11, %v11339_v52, %v11342_v4 }
 0x987   :  { %v11345_v37 = vadd.f32 %v11343_v9, %v10830_v23 }
 0x989   :  { %v11307_v29 = vpop.f32.mrf.mxu2  ;;  %v11320_v18 = vpop.f32.mrf.mxu3 }
 0x998   :  { %v11740_v1 = vpop.f32.mrf.mxu1  ;;  %v11753_v53 = vpop.f32.mrf.mxu0 }
 0x999   :  { %v11843_v40 = vrot.slane %v11753_v53, 7 }
 0x99b   :  { %v11850_v14 = vsel %vm7720_vm5, %v11740_v1, %v11843_v40 }
 0x9a0   :  { %v11742_v19 = vpop.f32.mrf.mxu1  ;;  %v11755_v54 = vpop.f32.mrf.mxu0 }
 0x9a1   :  { %v11766_v25 = vpop.f32.mrf.mxu2  ;;  %v11779_v30 = vpop.f32.mrf.mxu3 }
 0x9a2   :  { %v11844_v2 = vrot.slane %v11766_v25, 6  ;;  %v11845_v39 = vrot.slane %v11779_v30, 5 }
 0x9a4   :  { %v11851_v0 = vsel %vm7722_vm6, %v11844_v2, %v11845_v39 }
 0x9a5   :  { %v11852_v51 = vsel %vm7724_vm7, %v11850_v14, %v11851_v0 }
 0x9a9   :  { %v11768_v10 = vpop.f32.mrf.mxu2  ;;  %v11781_v28 = vpop.f32.mrf.mxu3 }
 0x9b8   :  { %v11792_v55 = vpop.f32.mrf.mxu1  ;;  %v11805_v16 = vpop.f32.mrf.mxu0 }
 0x9b9   :  { %v11846_v34 = vrot.slane %v11792_v55, 4  ;;  %v11847_v24 = vrot.slane %v11805_v16, 3 }
 0x9bb   :  { %v11853_v47 = vsel %vm7726_vm8, %v11846_v34, %v11847_v24 }
 0x9bf   :  { %v11818_v32 = vpop.f32.mrf.mxu2  ;;  %v11831_v61 = vpop.f32.mrf.mxu3 }
 0x9c0   :  { %v11848_v33 = vrot.slane %v11818_v32, 2  ;;  %v11849_v63 = vrot.slane %v11831_v61, 1  ;;  %v11794_v49 = vpop.f32.mrf.mxu1  ;;  %v11807_v57 = vpop.f32.mrf.mxu0 }
 0x9c2   :  { %v11854_v27 = vsel %vm7728_vm9, %v11848_v33, %v11849_v63 }
 0x9c3   :  { %v11855_v35 = vsel %vm7730_vm10, %v11853_v47, %v11854_v27 }
 0x9c4   :  { %v11856_v59 = vsel %vm7732_vm11, %v11852_v51, %v11855_v35 }
 0x9c5   :  { %v11858_v50 = vadd.f32 %v11856_v59, %v11345_v37 }
 0x9c7   :  { %v11820_v23 = vpop.f32.mrf.mxu2  ;;  %v11833_v31 = vpop.f32.mrf.mxu3  ;;  %11863 = vst.msk [vmem:[#allocation2] sm:$0xff] %vm11861_vm12, %v11858_v50 }
 0x9c8   :  { %11874 = dma.vmem_to_hbm [thread:$0]  %s11870_s12, 128, %s11872_s4, [#allocation3]  }
 0x9c9   :  { %18950 = dma.done.wait [#allocation3], 128  }
 0x9ca   :  { %18951 = vsyncadd [#allocation3], 4294967168 }
 0x9cb   :  { %11879 = vsyncpa [#allocation3], 1 }

</bundles_post_ra>
